<compile_context>
chip_gen: v5e
topology: v5e:2x2
jax: 0.10.0
libtpu: 0.0.40
codegen_flags: <defaults>
</compile_context>

<pallas_src>
import jax
import jax.numpy as jnp
from jax import lax
from jax.experimental import pallas as pl
from jax.experimental.pallas import tpu as pltpu

BN_EPS = 1e-5
_VMEM_LIMIT = 32 * 1024 * 1024      # safe scoped-VMEM budget on v5e/v6e/v7x

# (output sub-pixel phase p, 3-tap window index t) -> ConvTranspose kernel tap k
# for k=4, stride=2, pad=1 (all other (p, t) pairs are structural zeros).
_TAP_TO_K = {(0, 0): 3, (0, 1): 1, (1, 1): 2, (1, 2): 0}


# ----------------------------- Pallas kernels ------------------------------

def _conv_bn_relu_kernel(w_ref, p_ref, g_ref, b_ref, o_ref):
    """Sub-pixel conv GEMM + fused BatchNorm (batch stats) + ReLU.

    w: (4*C, 9*Cin) bf16, rows ordered (py, px, cout)
    p: (9*Cin, M)   bf16, M = N*Hin*Win on lanes
    g, b: (C, 1)    f32   BatchNorm gamma / beta
    o: (4*C, M)     bf16  normalized activation (pixel-shuffled outside)
    """
    y = jnp.dot(w_ref[...], p_ref[...], preferred_element_type=jnp.float32)
    c = g_ref.shape[0]
    m = y.shape[1]
    # Per-channel batch stats: channel c owns rows {c, C+c, 2C+c, 3C+c}.
    s = jnp.sum(y, axis=1, keepdims=True)
    sq = jnp.sum(y * y, axis=1, keepdims=True)
    s_c = s[0:c] + s[c:2 * c] + s[2 * c:3 * c] + s[3 * c:4 * c]
    sq_c = sq[0:c] + sq[c:2 * c] + sq[2 * c:3 * c] + sq[3 * c:4 * c]
    cnt = 4.0 * m                                        # = N * Hout * Wout
    mean = s_c / cnt
    var = jnp.maximum(sq_c / cnt - mean * mean, 0.0)     # clamp f32 cancellation
    scale = g_ref[...] * lax.rsqrt(var + BN_EPS)
    bias = b_ref[...] - mean * scale
    scale4 = jnp.concatenate([scale] * 4, axis=0)
    bias4 = jnp.concatenate([bias] * 4, axis=0)
    o_ref[...] = jnp.maximum(y * scale4 + bias4, 0.0).astype(o_ref.dtype)


def _conv_tanh_kernel(w_ref, p_ref, o_ref):
    """Sub-pixel conv GEMM tile + fused tanh (final layer, no BatchNorm)."""
    y = jnp.dot(w_ref[...], p_ref[...], preferred_element_type=jnp.float32)
    o_ref[...] = jnp.tanh(y)


# ------------------------------ Pallas wrappers -----------------------------

def conv_block_bn_relu(w2d, patches, gamma, beta):
    """Single-step fully fused layer: GEMM + BN stats + affine + ReLU.

    At these layer sizes the whole layer (patches <= ~2.3 MiB, y <= 512 KiB)
    fits comfortably in VMEM, so one grid step keeps y resident and avoids the
    previous f32 y HBM round-trip plus a second kernel launch.
    """
    R, K = w2d.shape
    _, M = patches.shape
    C = gamma.shape[0]
    # TODO(synk): for v7x dual-TensorCore, shard M with per-core partial stats
    # and a wrapper-side combine; at these sizes the extra pass costs more than
    # it saves, so the fully fused single-step form is kept.
    return pl.pallas_call(
        _conv_bn_relu_kernel,
        out_shape=jax.ShapeDtypeStruct((R, M), jnp.bfloat16),
        grid=(1,),
        in_specs=[pl.BlockSpec((R, K), lambda i: (0, 0)),
                  pl.BlockSpec((K, M), lambda i: (0, 0)),
                  pl.BlockSpec((C, 1), lambda i: (0, 0)),
                  pl.BlockSpec((C, 1), lambda i: (0, 0))],
        out_specs=pl.BlockSpec((R, M), lambda i: (0, 0)),
        compiler_params=pltpu.CompilerParams(
            dimension_semantics=("arbitrary",),
            vmem_limit_bytes=_VMEM_LIMIT),
    )(w2d, patches, gamma, beta)


def _pick_tn(m, max_tn=2048):
    """Largest lane-tile that divides m and is a multiple of 128."""
    if m <= max_tn:
        return m
    for tn in range(max_tn, 127, -128):
        if m % tn == 0:
            return tn
    return m


def conv_block_tanh(w2d, patches):
    """Final-layer GEMM + tanh, tiled over the lane (M) axis.

    'parallel' grid so the largest GEMM can be split across both TensorCores
    on v7x; lane-dense (R, tn) output blocks (tn multiple of 128).
    """
    R, K = w2d.shape
    _, M = patches.shape
    tn = _pick_tn(M)
    return pl.pallas_call(
        _conv_tanh_kernel,
        out_shape=jax.ShapeDtypeStruct((R, M), jnp.float32),
        grid=(M // tn,),
        in_specs=[pl.BlockSpec((R, K), lambda i: (0, 0)),
                  pl.BlockSpec((K, tn), lambda i: (0, i))],
        out_specs=pl.BlockSpec((R, tn), lambda i: (0, i)),
        compiler_params=pltpu.CompilerParams(
            dimension_semantics=("parallel",),
            vmem_limit_bytes=_VMEM_LIMIT),
    )(w2d, patches)


# -------------------------------- JAX glue ----------------------------------

def _convT_block_weight(w):
    """PyTorch ConvTranspose2d weight (Cin, Cout, 4, 4) -> dense sub-pixel
    weight (4*Cout, 9*Cin); rows (py, px, cout), cols (ty, tx, cin)."""
    cin, cout = w.shape[0], w.shape[1]
    W = jnp.zeros((2, 2, cout, 3, 3, cin), w.dtype)
    for (py, ty), ky in _TAP_TO_K.items():
        for (px, tx), kx in _TAP_TO_K.items():
            W = W.at[py, px, :, ty, tx, :].set(w[:, :, ky, kx].T)
    return W.reshape(4 * cout, 9 * cin)


def _block_patches(x):
    """Channel-major activation (C, N, H, W) -> sub-pixel im2col patches
    (9*C, N*H*W); rows (ty, tx, c), cols (n, h, w)."""
    # TODO(synk): implicit im2col (kernel reading the padded activation with a
    # tap grid axis) would remove this remaining 9x patch materialization; kept
    # in XLA because the in-kernel (C,N,H,W)->(C,N*H*W) relayout is costlier at
    # these shapes.
    C, N, H, W = x.shape
    xp = jnp.pad(x, ((0, 0), (0, 0), (1, 1), (1, 1)))
    taps = [xp[:, :, ty:ty + H, tx:tx + W] for ty in range(3) for tx in range(3)]
    return jnp.stack(taps, axis=0).reshape(9 * C, N * H * W)


def _pixel_shuffle(y, cout, n, h, w):
    """(4*cout, n*h*w) with rows (py, px, c) -> (cout, n, 2h, 2w)."""
    y = y.reshape(2, 2, cout, n, h, w)
    y = y.transpose(2, 3, 4, 0, 5, 1)            # (c, n, h, py, w, px)
    return y.reshape(cout, n, 2 * h, 2 * w)


def generator_forward(z, params):
    N = z.shape[0]

    # Layer 1: ConvTranspose(nz -> ngf*8, k4 s1 p0) on a 1x1 input is a tiny
    # (N, nz) matmul + BatchNorm over a few thousand values -- far below a
    # useful Pallas tile; kept in plain XLA, emitted channel-major.
    w1, g1, b1 = params["w1"], params["g1"], params["b1"]
    y1 = jnp.einsum("nz,zcyx->cnyx", z.reshape(N, -1), w1)           # (C1, N, 4, 4)
    mean = y1.mean(axis=(1, 2, 3), keepdims=True)
    var = y1.var(axis=(1, 2, 3), keepdims=True)
    y1 = (y1 - mean) * (g1.reshape(-1, 1, 1, 1) * lax.rsqrt(var + BN_EPS)) \
        + b1.reshape(-1, 1, 1, 1)
    x = jnp.maximum(y1, 0.0).astype(jnp.bfloat16)                     # (C1, N, 4, 4)

    # Layers 2..5: ConvTranspose(k4 s2 p1) -> BatchNorm -> ReLU, fully fused.
    for idx in (2, 3, 4, 5):
        w = params[f"w{idx}"]
        cout = w.shape[1]
        C, _, H, W = x.shape
        w2d = _convT_block_weight(w).astype(jnp.bfloat16)             # (4*cout, 9*C)
        patches = _block_patches(x)                                   # (9*C, N*H*W) bf16
        yb = conv_block_bn_relu(
            w2d, patches,
            params[f"g{idx}"].reshape(-1, 1).astype(jnp.float32),
            params[f"b{idx}"].reshape(-1, 1).astype(jnp.float32))
        x = _pixel_shuffle(yb, cout, N, H, W)                         # bf16 channel-major

    # Layer 6: ConvTranspose(k4 s2 p1) -> tanh (fused into the GEMM epilogue).
    w = params["w6"]
    nc_out = w.shape[1]
    C, _, H, W = x.shape
    w2d = _convT_block_weight(w).astype(jnp.bfloat16)                 # (4*nc, 9*C)
    R = 4 * nc_out
    Rpad = -(-R // 8) * 8                                             # sublane-align rows
    if Rpad != R:
        w2d = jnp.pad(w2d, ((0, Rpad - R), (0, 0)))
    y = conv_block_tanh(w2d, _block_patches(x))[:R]                   # (4*nc, N*H*W) f32
    img = _pixel_shuffle(y, nc_out, N, H, W)                          # (nc, N, 2H, 2W)
    return img.transpose(1, 0, 2, 3)                                  # NCHW only at the API


# --------------------------- pure-JAX reference -----------------------------

def reference_forward(z, params):
    def convT(x, w, stride, pad):
        k = w.shape[2]
        w_conv = jnp.flip(w, (2, 3)).transpose(1, 0, 2, 3)   # (Cout, Cin, kh, kw)
        return lax.conv_general_dilated(
            x, w_conv, (1, 1), [(k - 1 - pad, k - 1 - pad)] * 2,
            lhs_dilation=(stride, stride),
            dimension_numbers=("NCHW", "OIHW", "NCHW"))

    def bn(v, g, b):
        mean = v.mean(axis=(0, 2, 3), keepdims=True)
        var = v.var(axis=(0, 2, 3), keepdims=True)
        return (v - mean) / jnp.sqrt(var + BN_EPS) * g.reshape(1, -1, 1, 1) \
            + b.reshape(1, -1, 1, 1)

    y = jax.nn.relu(bn(convT(z, params["w1"], 1, 0), params["g1"], params["b1"]))
    for idx in (2, 3, 4, 5):
        y = jax.nn.relu(bn(convT(y, params[f"w{idx}"], 2, 1),
                           params[f"g{idx}"], params[f"b{idx}"]))
    return jnp.tanh(convT(y, params["w6"], 2, 1))


# ---------------------------------- main ------------------------------------

if __name__ == "__main__":
    # Small config: ngf=16 (instead of 64), nz=64, batch=2.  Spatial sizes
    # 1 -> 4 -> 8 -> 16 -> 32 -> 64 -> 128 are fixed by the architecture.
    nz, ngf, nc, N = 64, 16, 3, 2
    chans = [nz, ngf * 8, ngf * 4, ngf * 2, ngf, ngf, nc]

    key = jax.random.PRNGKey(0)
    keys = jax.random.split(key, 20)
    params = {}
    for i in range(1, 7):
        # ConvTranspose2d(chans[i-1] -> chans[i], k=4, bias=False), DCGAN init std=0.02
        params[f"w{i}"] = 0.02 * jax.random.normal(
            keys[i], (chans[i - 1], chans[i], 4, 4), jnp.float32)
    for i in range(1, 6):
        # BatchNorm2d affine params (slightly perturbed so the affine path is exercised)
        params[f"g{i}"] = 1.0 + 0.1 * jax.random.normal(keys[6 + i], (chans[i],), jnp.float32)
        params[f"b{i}"] = 0.05 * jax.random.normal(keys[11 + i], (chans[i],), jnp.float32)

    z = jax.random.normal(keys[0], (N, nz, 1, 1), jnp.float32)

    fwd = jax.jit(generator_forward)
    out = jax.block_until_ready(fwd(z, params))
    ref = jax.block_until_ready(reference_forward(z, params))

    assert out.shape == (N, nc, 128, 128), out.shape
    max_err = float(jnp.max(jnp.abs(out - ref)))
    mean_err = float(jnp.mean(jnp.abs(out - ref)))
    # bf16 GEMM operands vs f32 reference across 6 layers: allow bf16-level error
    assert max_err < 5e-2 and mean_err < 1e-2, (max_err, mean_err)
    print("KERNEL_OK")
</pallas_src>

<mosaic_0001>
module attributes {stable_mosaic.version = 11 : i64} {
  func.func @_conv_bn_relu_kernel(%arg0: i32, %arg1: memref<256x1152xbf16, #tpu.memory_space<vmem>>, %arg2: memref<1152x32xbf16, #tpu.memory_space<vmem>>, %arg3: memref<64x1xf32, #tpu.memory_space<vmem>>, %arg4: memref<64x1xf32, #tpu.memory_space<vmem>>, %arg5: memref<256x32xbf16, #tpu.memory_space<vmem>>) attributes {dimension_semantics = [#tpu.dimension_semantics<arbitrary>], iteration_bounds = array<i64: 1>, scalar_prefetch = 0 : i64, scratch_operands = 0 : i64, tpu.core_type = #tpu.core_type<tc>, window_params = [{pipeline_mode = #tpu.pipeline_mode<synchronous>, transform_indices = @transform_0, window_bounds = array<i64: 256, 1152>}, {pipeline_mode = #tpu.pipeline_mode<synchronous>, transform_indices = @transform_1, window_bounds = array<i64: 1152, 32>}, {pipeline_mode = #tpu.pipeline_mode<synchronous>, transform_indices = @transform_2, window_bounds = array<i64: 64, 1>}, {pipeline_mode = #tpu.pipeline_mode<synchronous>, transform_indices = @transform_3, window_bounds = array<i64: 64, 1>}, {pipeline_mode = #tpu.pipeline_mode<synchronous>, transform_indices = @transform_4, window_bounds = array<i64: 256, 32>}]} {
    %c0 = arith.constant 0 : index
    %c0_0 = arith.constant 0 : index
    %0 = vector.load %arg1[%c0, %c0_0] : memref<256x1152xbf16, #tpu.memory_space<vmem>>, vector<256x1152xbf16>
    %c0_1 = arith.constant 0 : index
    %c0_2 = arith.constant 0 : index
    %1 = vector.load %arg2[%c0_1, %c0_2] : memref<1152x32xbf16, #tpu.memory_space<vmem>>, vector<1152x32xbf16>
    %cst = arith.constant dense<0.000000e+00> : vector<256x32xf32>
    %2 = tpu.matmul %0, %1, %cst {dimension_numbers = #tpu.dot_dimension_numbers<[1], [0], [0], [1], [0, 0, 1, 1], [], []>} : vector<256x1152xbf16>, vector<1152x32xbf16>, vector<256x32xf32> -> vector<256x32xf32>
    %cst_3 = arith.constant dense<0.000000e+00> : vector<256xf32>
    %3 = vector.multi_reduction <add>, %2, %cst_3 [1] : vector<256x32xf32> to vector<256xf32>
    %4 = vector.shape_cast %3 : vector<256xf32> to vector<256x1xf32>
    %5 = arith.mulf %2, %2 : vector<256x32xf32>
    %cst_4 = arith.constant dense<0.000000e+00> : vector<256xf32>
    %6 = vector.multi_reduction <add>, %5, %cst_4 [1] : vector<256x32xf32> to vector<256xf32>
    %7 = vector.shape_cast %6 : vector<256xf32> to vector<256x1xf32>
    %8 = vector.extract_strided_slice %4 {offsets = [0, 0], sizes = [64, 1], strides = [1, 1]} : vector<256x1xf32> to vector<64x1xf32>
    %9 = vector.extract_strided_slice %4 {offsets = [64, 0], sizes = [64, 1], strides = [1, 1]} : vector<256x1xf32> to vector<64x1xf32>
    %10 = arith.addf %8, %9 : vector<64x1xf32>
    %11 = vector.extract_strided_slice %4 {offsets = [128, 0], sizes = [64, 1], strides = [1, 1]} : vector<256x1xf32> to vector<64x1xf32>
    %12 = arith.addf %10, %11 : vector<64x1xf32>
    %13 = vector.extract_strided_slice %4 {offsets = [192, 0], sizes = [64, 1], strides = [1, 1]} : vector<256x1xf32> to vector<64x1xf32>
    %14 = arith.addf %12, %13 : vector<64x1xf32>
    %15 = vector.extract_strided_slice %7 {offsets = [0, 0], sizes = [64, 1], strides = [1, 1]} : vector<256x1xf32> to vector<64x1xf32>
    %16 = vector.extract_strided_slice %7 {offsets = [64, 0], sizes = [64, 1], strides = [1, 1]} : vector<256x1xf32> to vector<64x1xf32>
    %17 = arith.addf %15, %16 : vector<64x1xf32>
    %18 = vector.extract_strided_slice %7 {offsets = [128, 0], sizes = [64, 1], strides = [1, 1]} : vector<256x1xf32> to vector<64x1xf32>
    %19 = arith.addf %17, %18 : vector<64x1xf32>
    %20 = vector.extract_strided_slice %7 {offsets = [192, 0], sizes = [64, 1], strides = [1, 1]} : vector<256x1xf32> to vector<64x1xf32>
    %21 = arith.addf %19, %20 : vector<64x1xf32>
    %cst_5 = arith.constant 1.280000e+02 : f32
    %22 = vector.broadcast %cst_5 : f32 to vector<64x1xf32>
    %23 = arith.divf %14, %22 : vector<64x1xf32>
    %cst_6 = arith.constant 1.280000e+02 : f32
    %24 = vector.broadcast %cst_6 : f32 to vector<64x1xf32>
    %25 = arith.divf %21, %24 : vector<64x1xf32>
    %26 = arith.mulf %23, %23 : vector<64x1xf32>
    %27 = arith.subf %25, %26 : vector<64x1xf32>
    %cst_7 = arith.constant 0.000000e+00 : f32
    %28 = vector.broadcast %cst_7 : f32 to vector<64x1xf32>
    %29 = arith.maximumf %27, %28 : vector<64x1xf32>
    %c0_8 = arith.constant 0 : index
    %c0_9 = arith.constant 0 : index
    %30 = vector.load %arg3[%c0_8, %c0_9] : memref<64x1xf32, #tpu.memory_space<vmem>>, vector<64x1xf32>
    %cst_10 = arith.constant 9.99999974E-6 : f32
    %31 = vector.broadcast %cst_10 : f32 to vector<64x1xf32>
    %32 = arith.addf %29, %31 : vector<64x1xf32>
    %33 = math.rsqrt %32 : vector<64x1xf32>
    %34 = arith.mulf %30, %33 : vector<64x1xf32>
    %c0_11 = arith.constant 0 : index
    %c0_12 = arith.constant 0 : index
    %35 = vector.load %arg4[%c0_11, %c0_12] : memref<64x1xf32, #tpu.memory_space<vmem>>, vector<64x1xf32>
    %36 = arith.mulf %23, %34 : vector<64x1xf32>
    %37 = arith.subf %35, %36 : vector<64x1xf32>
    %38 = tpu.concatenate %34, %34, %34, %34 in 0 : vector<64x1xf32>, vector<64x1xf32>, vector<64x1xf32>, vector<64x1xf32> -> vector<256x1xf32>
    %39 = tpu.concatenate %37, %37, %37, %37 in 0 : vector<64x1xf32>, vector<64x1xf32>, vector<64x1xf32>, vector<64x1xf32> -> vector<256x1xf32>
    %40 = vector.broadcast %38 : vector<256x1xf32> to vector<256x32xf32>
    %41 = arith.mulf %2, %40 : vector<256x32xf32>
    %42 = vector.broadcast %39 : vector<256x1xf32> to vector<256x32xf32>
    %43 = arith.addf %41, %42 : vector<256x32xf32>
    %cst_13 = arith.constant 0.000000e+00 : f32
    %44 = vector.broadcast %cst_13 : f32 to vector<256x32xf32>
    %45 = arith.maximumf %43, %44 : vector<256x32xf32>
    %46 = arith.truncf %45 : vector<256x32xf32> to vector<256x32xbf16>
    %c0_14 = arith.constant 0 : index
    %c0_15 = arith.constant 0 : index
    %47 = vector.load %arg5[%c0_14, %c0_15] : memref<256x32xbf16, #tpu.memory_space<vmem>>, vector<256x32xbf16>
    tpu.vector_store %arg5[%c0_14, %c0_15], %46 {strides = array<i32>} : memref<256x32xbf16, #tpu.memory_space<vmem>>, vector<256x32xbf16>,
    return
  }
  func.func @transform_0(%arg0: i32) -> (i32, i32) {
    %c0_i32 = arith.constant 0 : i32
    %c0_i32_0 = arith.constant 0 : i32
    %c0_i32_1 = arith.constant 0 : i32
    return %c0_i32, %c0_i32_0 : i32, i32
  }
  func.func @transform_1(%arg0: i32) -> (i32, i32) {
    %c0_i32 = arith.constant 0 : i32
    %c0_i32_0 = arith.constant 0 : i32
    %c0_i32_1 = arith.constant 0 : i32
    return %c0_i32, %c0_i32_0 : i32, i32
  }
  func.func @transform_2(%arg0: i32) -> (i32, i32) {
    %c0_i32 = arith.constant 0 : i32
    %c0_i32_0 = arith.constant 0 : i32
    %c0_i32_1 = arith.constant 0 : i32
    return %c0_i32, %c0_i32_0 : i32, i32
  }
  func.func @transform_3(%arg0: i32) -> (i32, i32) {
    %c0_i32 = arith.constant 0 : i32
    %c0_i32_0 = arith.constant 0 : i32
    %c0_i32_1 = arith.constant 0 : i32
    return %c0_i32, %c0_i32_0 : i32, i32
  }
  func.func @transform_4(%arg0: i32) -> (i32, i32) {
    %c0_i32 = arith.constant 0 : i32
    %c0_i32_0 = arith.constant 0 : i32
    %c0_i32_1 = arith.constant 0 : i32
    return %c0_i32, %c0_i32_0 : i32, i32
  }
}

module attributes {stable_mosaic.version = 11 : i64} {
  func.func @_conv_bn_relu_kernel(%arg0: i32, %arg1: memref<128x576xbf16, #tpu.memory_space<vmem>>, %arg2: memref<576x128xbf16, #tpu.memory_space<vmem>>, %arg3: memref<32x1xf32, #tpu.memory_space<vmem>>, %arg4: memref<32x1xf32, #tpu.memory_space<vmem>>, %arg5: memref<128x128xbf16, #tpu.memory_space<vmem>>) attributes {dimension_semantics = [#tpu.dimension_semantics<arbitrary>], iteration_bounds = array<i64: 1>, scalar_prefetch = 0 : i64, scratch_operands = 0 : i64, tpu.core_type = #tpu.core_type<tc>, window_params = [{pipeline_mode = #tpu.pipeline_mode<synchronous>, transform_indices = @transform_0, window_bounds = array<i64: 128, 576>}, {pipeline_mode = #tpu.pipeline_mode<synchronous>, transform_indices = @transform_1, window_bounds = array<i64: 576, 128>}, {pipeline_mode = #tpu.pipeline_mode<synchronous>, transform_indices = @transform_2, window_bounds = array<i64: 32, 1>}, {pipeline_mode = #tpu.pipeline_mode<synchronous>, transform_indices = @transform_3, window_bounds = array<i64: 32, 1>}, {pipeline_mode = #tpu.pipeline_mode<synchronous>, transform_indices = @transform_4, window_bounds = array<i64: 128, 128>}]} {
    %c0 = arith.constant 0 : index
    %c0_0 = arith.constant 0 : index
    %0 = vector.load %arg1[%c0, %c0_0] : memref<128x576xbf16, #tpu.memory_space<vmem>>, vector<128x576xbf16>
    %c0_1 = arith.constant 0 : index
    %c0_2 = arith.constant 0 : index
    %1 = vector.load %arg2[%c0_1, %c0_2] : memref<576x128xbf16, #tpu.memory_space<vmem>>, vector<576x128xbf16>
    %cst = arith.constant dense<0.000000e+00> : vector<128x128xf32>
    %2 = tpu.matmul %0, %1, %cst {dimension_numbers = #tpu.dot_dimension_numbers<[1], [0], [0], [1], [0, 0, 1, 1], [], []>} : vector<128x576xbf16>, vector<576x128xbf16>, vector<128x128xf32> -> vector<128x128xf32>
    %cst_3 = arith.constant dense<0.000000e+00> : vector<128xf32>
    %3 = vector.multi_reduction <add>, %2, %cst_3 [1] : vector<128x128xf32> to vector<128xf32>
    %4 = vector.shape_cast %3 : vector<128xf32> to vector<128x1xf32>
    %5 = arith.mulf %2, %2 : vector<128x128xf32>
    %cst_4 = arith.constant dense<0.000000e+00> : vector<128xf32>
    %6 = vector.multi_reduction <add>, %5, %cst_4 [1] : vector<128x128xf32> to vector<128xf32>
    %7 = vector.shape_cast %6 : vector<128xf32> to vector<128x1xf32>
    %8 = vector.extract_strided_slice %4 {offsets = [0, 0], sizes = [32, 1], strides = [1, 1]} : vector<128x1xf32> to vector<32x1xf32>
    %9 = vector.extract_strided_slice %4 {offsets = [32, 0], sizes = [32, 1], strides = [1, 1]} : vector<128x1xf32> to vector<32x1xf32>
    %10 = arith.addf %8, %9 : vector<32x1xf32>
    %11 = vector.extract_strided_slice %4 {offsets = [64, 0], sizes = [32, 1], strides = [1, 1]} : vector<128x1xf32> to vector<32x1xf32>
    %12 = arith.addf %10, %11 : vector<32x1xf32>
    %13 = vector.extract_strided_slice %4 {offsets = [96, 0], sizes = [32, 1], strides = [1, 1]} : vector<128x1xf32> to vector<32x1xf32>
    %14 = arith.addf %12, %13 : vector<32x1xf32>
    %15 = vector.extract_strided_slice %7 {offsets = [0, 0], sizes = [32, 1], strides = [1, 1]} : vector<128x1xf32> to vector<32x1xf32>
    %16 = vector.extract_strided_slice %7 {offsets = [32, 0], sizes = [32, 1], strides = [1, 1]} : vector<128x1xf32> to vector<32x1xf32>
    %17 = arith.addf %15, %16 : vector<32x1xf32>
    %18 = vector.extract_strided_slice %7 {offsets = [64, 0], sizes = [32, 1], strides = [1, 1]} : vector<128x1xf32> to vector<32x1xf32>
    %19 = arith.addf %17, %18 : vector<32x1xf32>
    %20 = vector.extract_strided_slice %7 {offsets = [96, 0], sizes = [32, 1], strides = [1, 1]} : vector<128x1xf32> to vector<32x1xf32>
    %21 = arith.addf %19, %20 : vector<32x1xf32>
    %cst_5 = arith.constant 5.120000e+02 : f32
    %22 = vector.broadcast %cst_5 : f32 to vector<32x1xf32>
    %23 = arith.divf %14, %22 : vector<32x1xf32>
    %cst_6 = arith.constant 5.120000e+02 : f32
    %24 = vector.broadcast %cst_6 : f32 to vector<32x1xf32>
    %25 = arith.divf %21, %24 : vector<32x1xf32>
    %26 = arith.mulf %23, %23 : vector<32x1xf32>
    %27 = arith.subf %25, %26 : vector<32x1xf32>
    %cst_7 = arith.constant 0.000000e+00 : f32
    %28 = vector.broadcast %cst_7 : f32 to vector<32x1xf32>
    %29 = arith.maximumf %27, %28 : vector<32x1xf32>
    %c0_8 = arith.constant 0 : index
    %c0_9 = arith.constant 0 : index
    %30 = vector.load %arg3[%c0_8, %c0_9] : memref<32x1xf32, #tpu.memory_space<vmem>>, vector<32x1xf32>
    %cst_10 = arith.constant 9.99999974E-6 : f32
    %31 = vector.broadcast %cst_10 : f32 to vector<32x1xf32>
    %32 = arith.addf %29, %31 : vector<32x1xf32>
    %33 = math.rsqrt %32 : vector<32x1xf32>
    %34 = arith.mulf %30, %33 : vector<32x1xf32>
    %c0_11 = arith.constant 0 : index
    %c0_12 = arith.constant 0 : index
    %35 = vector.load %arg4[%c0_11, %c0_12] : memref<32x1xf32, #tpu.memory_space<vmem>>, vector<32x1xf32>
    %36 = arith.mulf %23, %34 : vector<32x1xf32>
    %37 = arith.subf %35, %36 : vector<32x1xf32>
    %38 = tpu.concatenate %34, %34, %34, %34 in 0 : vector<32x1xf32>, vector<32x1xf32>, vector<32x1xf32>, vector<32x1xf32> -> vector<128x1xf32>
    %39 = tpu.concatenate %37, %37, %37, %37 in 0 : vector<32x1xf32>, vector<32x1xf32>, vector<32x1xf32>, vector<32x1xf32> -> vector<128x1xf32>
    %40 = vector.broadcast %38 : vector<128x1xf32> to vector<128x128xf32>
    %41 = arith.mulf %2, %40 : vector<128x128xf32>
    %42 = vector.broadcast %39 : vector<128x1xf32> to vector<128x128xf32>
    %43 = arith.addf %41, %42 : vector<128x128xf32>
    %cst_13 = arith.constant 0.000000e+00 : f32
    %44 = vector.broadcast %cst_13 : f32 to vector<128x128xf32>
    %45 = arith.maximumf %43, %44 : vector<128x128xf32>
    %46 = arith.truncf %45 : vector<128x128xf32> to vector<128x128xbf16>
    %c0_14 = arith.constant 0 : index
    %c0_15 = arith.constant 0 : index
    %47 = vector.load %arg5[%c0_14, %c0_15] : memref<128x128xbf16, #tpu.memory_space<vmem>>, vector<128x128xbf16>
    tpu.vector_store %arg5[%c0_14, %c0_15], %46 {strides = array<i32>} : memref<128x128xbf16, #tpu.memory_space<vmem>>, vector<128x128xbf16>,
    return
  }
  func.func @transform_0(%arg0: i32) -> (i32, i32) {
    %c0_i32 = arith.constant 0 : i32
    %c0_i32_0 = arith.constant 0 : i32
    %c0_i32_1 = arith.constant 0 : i32
    return %c0_i32, %c0_i32_0 : i32, i32
  }
  func.func @transform_1(%arg0: i32) -> (i32, i32) {
    %c0_i32 = arith.constant 0 : i32
    %c0_i32_0 = arith.constant 0 : i32
    %c0_i32_1 = arith.constant 0 : i32
    return %c0_i32, %c0_i32_0 : i32, i32
  }
  func.func @transform_2(%arg0: i32) -> (i32, i32) {
    %c0_i32 = arith.constant 0 : i32
    %c0_i32_0 = arith.constant 0 : i32
    %c0_i32_1 = arith.constant 0 : i32
    return %c0_i32, %c0_i32_0 : i32, i32
  }
  func.func @transform_3(%arg0: i32) -> (i32, i32) {
    %c0_i32 = arith.constant 0 : i32
    %c0_i32_0 = arith.constant 0 : i32
    %c0_i32_1 = arith.constant 0 : i32
    return %c0_i32, %c0_i32_0 : i32, i32
  }
  func.func @transform_4(%arg0: i32) -> (i32, i32) {
    %c0_i32 = arith.constant 0 : i32
    %c0_i32_0 = arith.constant 0 : i32
    %c0_i32_1 = arith.constant 0 : i32
    return %c0_i32, %c0_i32_0 : i32, i32
  }
}

module attributes {stable_mosaic.version = 11 : i64} {
  func.func @_conv_bn_relu_kernel(%arg0: i32, %arg1: memref<64x288xbf16, #tpu.memory_space<vmem>>, %arg2: memref<288x512xbf16, #tpu.memory_space<vmem>>, %arg3: memref<16x1xf32, #tpu.memory_space<vmem>>, %arg4: memref<16x1xf32, #tpu.memory_space<vmem>>, %arg5: memref<64x512xbf16, #tpu.memory_space<vmem>>) attributes {dimension_semantics = [#tpu.dimension_semantics<arbitrary>], iteration_bounds = array<i64: 1>, scalar_prefetch = 0 : i64, scratch_operands = 0 : i64, tpu.core_type = #tpu.core_type<tc>, window_params = [{pipeline_mode = #tpu.pipeline_mode<synchronous>, transform_indices = @transform_0, window_bounds = array<i64: 64, 288>}, {pipeline_mode = #tpu.pipeline_mode<synchronous>, transform_indices = @transform_1, window_bounds = array<i64: 288, 512>}, {pipeline_mode = #tpu.pipeline_mode<synchronous>, transform_indices = @transform_2, window_bounds = array<i64: 16, 1>}, {pipeline_mode = #tpu.pipeline_mode<synchronous>, transform_indices = @transform_3, window_bounds = array<i64: 16, 1>}, {pipeline_mode = #tpu.pipeline_mode<synchronous>, transform_indices = @transform_4, window_bounds = array<i64: 64, 512>}]} {
    %c0 = arith.constant 0 : index
    %c0_0 = arith.constant 0 : index
    %0 = vector.load %arg1[%c0, %c0_0] : memref<64x288xbf16, #tpu.memory_space<vmem>>, vector<64x288xbf16>
    %c0_1 = arith.constant 0 : index
    %c0_2 = arith.constant 0 : index
    %1 = vector.load %arg2[%c0_1, %c0_2] : memref<288x512xbf16, #tpu.memory_space<vmem>>, vector<288x512xbf16>
    %cst = arith.constant dense<0.000000e+00> : vector<64x512xf32>
    %2 = tpu.matmul %0, %1, %cst {dimension_numbers = #tpu.dot_dimension_numbers<[1], [0], [0], [1], [0, 0, 1, 1], [], []>} : vector<64x288xbf16>, vector<288x512xbf16>, vector<64x512xf32> -> vector<64x512xf32>
    %cst_3 = arith.constant dense<0.000000e+00> : vector<64xf32>
    %3 = vector.multi_reduction <add>, %2, %cst_3 [1] : vector<64x512xf32> to vector<64xf32>
    %4 = vector.shape_cast %3 : vector<64xf32> to vector<64x1xf32>
    %5 = arith.mulf %2, %2 : vector<64x512xf32>
    %cst_4 = arith.constant dense<0.000000e+00> : vector<64xf32>
    %6 = vector.multi_reduction <add>, %5, %cst_4 [1] : vector<64x512xf32> to vector<64xf32>
    %7 = vector.shape_cast %6 : vector<64xf32> to vector<64x1xf32>
    %8 = vector.extract_strided_slice %4 {offsets = [0, 0], sizes = [16, 1], strides = [1, 1]} : vector<64x1xf32> to vector<16x1xf32>
    %9 = vector.extract_strided_slice %4 {offsets = [16, 0], sizes = [16, 1], strides = [1, 1]} : vector<64x1xf32> to vector<16x1xf32>
    %10 = arith.addf %8, %9 : vector<16x1xf32>
    %11 = vector.extract_strided_slice %4 {offsets = [32, 0], sizes = [16, 1], strides = [1, 1]} : vector<64x1xf32> to vector<16x1xf32>
    %12 = arith.addf %10, %11 : vector<16x1xf32>
    %13 = vector.extract_strided_slice %4 {offsets = [48, 0], sizes = [16, 1], strides = [1, 1]} : vector<64x1xf32> to vector<16x1xf32>
    %14 = arith.addf %12, %13 : vector<16x1xf32>
    %15 = vector.extract_strided_slice %7 {offsets = [0, 0], sizes = [16, 1], strides = [1, 1]} : vector<64x1xf32> to vector<16x1xf32>
    %16 = vector.extract_strided_slice %7 {offsets = [16, 0], sizes = [16, 1], strides = [1, 1]} : vector<64x1xf32> to vector<16x1xf32>
    %17 = arith.addf %15, %16 : vector<16x1xf32>
    %18 = vector.extract_strided_slice %7 {offsets = [32, 0], sizes = [16, 1], strides = [1, 1]} : vector<64x1xf32> to vector<16x1xf32>
    %19 = arith.addf %17, %18 : vector<16x1xf32>
    %20 = vector.extract_strided_slice %7 {offsets = [48, 0], sizes = [16, 1], strides = [1, 1]} : vector<64x1xf32> to vector<16x1xf32>
    %21 = arith.addf %19, %20 : vector<16x1xf32>
    %cst_5 = arith.constant 2.048000e+03 : f32
    %22 = vector.broadcast %cst_5 : f32 to vector<16x1xf32>
    %23 = arith.divf %14, %22 : vector<16x1xf32>
    %cst_6 = arith.constant 2.048000e+03 : f32
    %24 = vector.broadcast %cst_6 : f32 to vector<16x1xf32>
    %25 = arith.divf %21, %24 : vector<16x1xf32>
    %26 = arith.mulf %23, %23 : vector<16x1xf32>
    %27 = arith.subf %25, %26 : vector<16x1xf32>
    %cst_7 = arith.constant 0.000000e+00 : f32
    %28 = vector.broadcast %cst_7 : f32 to vector<16x1xf32>
    %29 = arith.maximumf %27, %28 : vector<16x1xf32>
    %c0_8 = arith.constant 0 : index
    %c0_9 = arith.constant 0 : index
    %30 = vector.load %arg3[%c0_8, %c0_9] : memref<16x1xf32, #tpu.memory_space<vmem>>, vector<16x1xf32>
    %cst_10 = arith.constant 9.99999974E-6 : f32
    %31 = vector.broadcast %cst_10 : f32 to vector<16x1xf32>
    %32 = arith.addf %29, %31 : vector<16x1xf32>
    %33 = math.rsqrt %32 : vector<16x1xf32>
    %34 = arith.mulf %30, %33 : vector<16x1xf32>
    %c0_11 = arith.constant 0 : index
    %c0_12 = arith.constant 0 : index
    %35 = vector.load %arg4[%c0_11, %c0_12] : memref<16x1xf32, #tpu.memory_space<vmem>>, vector<16x1xf32>
    %36 = arith.mulf %23, %34 : vector<16x1xf32>
    %37 = arith.subf %35, %36 : vector<16x1xf32>
    %38 = tpu.concatenate %34, %34, %34, %34 in 0 : vector<16x1xf32>, vector<16x1xf32>, vector<16x1xf32>, vector<16x1xf32> -> vector<64x1xf32>
    %39 = tpu.concatenate %37, %37, %37, %37 in 0 : vector<16x1xf32>, vector<16x1xf32>, vector<16x1xf32>, vector<16x1xf32> -> vector<64x1xf32>
    %40 = vector.broadcast %38 : vector<64x1xf32> to vector<64x512xf32>
    %41 = arith.mulf %2, %40 : vector<64x512xf32>
    %42 = vector.broadcast %39 : vector<64x1xf32> to vector<64x512xf32>
    %43 = arith.addf %41, %42 : vector<64x512xf32>
    %cst_13 = arith.constant 0.000000e+00 : f32
    %44 = vector.broadcast %cst_13 : f32 to vector<64x512xf32>
    %45 = arith.maximumf %43, %44 : vector<64x512xf32>
    %46 = arith.truncf %45 : vector<64x512xf32> to vector<64x512xbf16>
    %c0_14 = arith.constant 0 : index
    %c0_15 = arith.constant 0 : index
    %47 = vector.load %arg5[%c0_14, %c0_15] : memref<64x512xbf16, #tpu.memory_space<vmem>>, vector<64x512xbf16>
    tpu.vector_store %arg5[%c0_14, %c0_15], %46 {strides = array<i32>} : memref<64x512xbf16, #tpu.memory_space<vmem>>, vector<64x512xbf16>,
    return
  }
  func.func @transform_0(%arg0: i32) -> (i32, i32) {
    %c0_i32 = arith.constant 0 : i32
    %c0_i32_0 = arith.constant 0 : i32
    %c0_i32_1 = arith.constant 0 : i32
    return %c0_i32, %c0_i32_0 : i32, i32
  }
  func.func @transform_1(%arg0: i32) -> (i32, i32) {
    %c0_i32 = arith.constant 0 : i32
    %c0_i32_0 = arith.constant 0 : i32
    %c0_i32_1 = arith.constant 0 : i32
    return %c0_i32, %c0_i32_0 : i32, i32
  }
  func.func @transform_2(%arg0: i32) -> (i32, i32) {
    %c0_i32 = arith.constant 0 : i32
    %c0_i32_0 = arith.constant 0 : i32
    %c0_i32_1 = arith.constant 0 : i32
    return %c0_i32, %c0_i32_0 : i32, i32
  }
  func.func @transform_3(%arg0: i32) -> (i32, i32) {
    %c0_i32 = arith.constant 0 : i32
    %c0_i32_0 = arith.constant 0 : i32
    %c0_i32_1 = arith.constant 0 : i32
    return %c0_i32, %c0_i32_0 : i32, i32
  }
  func.func @transform_4(%arg0: i32) -> (i32, i32) {
    %c0_i32 = arith.constant 0 : i32
    %c0_i32_0 = arith.constant 0 : i32
    %c0_i32_1 = arith.constant 0 : i32
    return %c0_i32, %c0_i32_0 : i32, i32
  }
}

module attributes {stable_mosaic.version = 11 : i64} {
  func.func @_conv_bn_relu_kernel(%arg0: i32, %arg1: memref<64x144xbf16, #tpu.memory_space<vmem>>, %arg2: memref<144x2048xbf16, #tpu.memory_space<vmem>>, %arg3: memref<16x1xf32, #tpu.memory_space<vmem>>, %arg4: memref<16x1xf32, #tpu.memory_space<vmem>>, %arg5: memref<64x2048xbf16, #tpu.memory_space<vmem>>) attributes {dimension_semantics = [#tpu.dimension_semantics<arbitrary>], iteration_bounds = array<i64: 1>, scalar_prefetch = 0 : i64, scratch_operands = 0 : i64, tpu.core_type = #tpu.core_type<tc>, window_params = [{pipeline_mode = #tpu.pipeline_mode<synchronous>, transform_indices = @transform_0, window_bounds = array<i64: 64, 144>}, {pipeline_mode = #tpu.pipeline_mode<synchronous>, transform_indices = @transform_1, window_bounds = array<i64: 144, 2048>}, {pipeline_mode = #tpu.pipeline_mode<synchronous>, transform_indices = @transform_2, window_bounds = array<i64: 16, 1>}, {pipeline_mode = #tpu.pipeline_mode<synchronous>, transform_indices = @transform_3, window_bounds = array<i64: 16, 1>}, {pipeline_mode = #tpu.pipeline_mode<synchronous>, transform_indices = @transform_4, window_bounds = array<i64: 64, 2048>}]} {
    %c0 = arith.constant 0 : index
    %c0_0 = arith.constant 0 : index
    %0 = vector.load %arg1[%c0, %c0_0] : memref<64x144xbf16, #tpu.memory_space<vmem>>, vector<64x144xbf16>
    %c0_1 = arith.constant 0 : index
    %c0_2 = arith.constant 0 : index
    %1 = vector.load %arg2[%c0_1, %c0_2] : memref<144x2048xbf16, #tpu.memory_space<vmem>>, vector<144x2048xbf16>
    %cst = arith.constant dense<0.000000e+00> : vector<64x2048xf32>
    %2 = tpu.matmul %0, %1, %cst {dimension_numbers = #tpu.dot_dimension_numbers<[1], [0], [0], [1], [0, 0, 1, 1], [], []>} : vector<64x144xbf16>, vector<144x2048xbf16>, vector<64x2048xf32> -> vector<64x2048xf32>
    %cst_3 = arith.constant dense<0.000000e+00> : vector<64xf32>
    %3 = vector.multi_reduction <add>, %2, %cst_3 [1] : vector<64x2048xf32> to vector<64xf32>
    %4 = vector.shape_cast %3 : vector<64xf32> to vector<64x1xf32>
    %5 = arith.mulf %2, %2 : vector<64x2048xf32>
    %cst_4 = arith.constant dense<0.000000e+00> : vector<64xf32>
    %6 = vector.multi_reduction <add>, %5, %cst_4 [1] : vector<64x2048xf32> to vector<64xf32>
    %7 = vector.shape_cast %6 : vector<64xf32> to vector<64x1xf32>
    %8 = vector.extract_strided_slice %4 {offsets = [0, 0], sizes = [16, 1], strides = [1, 1]} : vector<64x1xf32> to vector<16x1xf32>
    %9 = vector.extract_strided_slice %4 {offsets = [16, 0], sizes = [16, 1], strides = [1, 1]} : vector<64x1xf32> to vector<16x1xf32>
    %10 = arith.addf %8, %9 : vector<16x1xf32>
    %11 = vector.extract_strided_slice %4 {offsets = [32, 0], sizes = [16, 1], strides = [1, 1]} : vector<64x1xf32> to vector<16x1xf32>
    %12 = arith.addf %10, %11 : vector<16x1xf32>
    %13 = vector.extract_strided_slice %4 {offsets = [48, 0], sizes = [16, 1], strides = [1, 1]} : vector<64x1xf32> to vector<16x1xf32>
    %14 = arith.addf %12, %13 : vector<16x1xf32>
    %15 = vector.extract_strided_slice %7 {offsets = [0, 0], sizes = [16, 1], strides = [1, 1]} : vector<64x1xf32> to vector<16x1xf32>
    %16 = vector.extract_strided_slice %7 {offsets = [16, 0], sizes = [16, 1], strides = [1, 1]} : vector<64x1xf32> to vector<16x1xf32>
    %17 = arith.addf %15, %16 : vector<16x1xf32>
    %18 = vector.extract_strided_slice %7 {offsets = [32, 0], sizes = [16, 1], strides = [1, 1]} : vector<64x1xf32> to vector<16x1xf32>
    %19 = arith.addf %17, %18 : vector<16x1xf32>
    %20 = vector.extract_strided_slice %7 {offsets = [48, 0], sizes = [16, 1], strides = [1, 1]} : vector<64x1xf32> to vector<16x1xf32>
    %21 = arith.addf %19, %20 : vector<16x1xf32>
    %cst_5 = arith.constant 8.192000e+03 : f32
    %22 = vector.broadcast %cst_5 : f32 to vector<16x1xf32>
    %23 = arith.divf %14, %22 : vector<16x1xf32>
    %cst_6 = arith.constant 8.192000e+03 : f32
    %24 = vector.broadcast %cst_6 : f32 to vector<16x1xf32>
    %25 = arith.divf %21, %24 : vector<16x1xf32>
    %26 = arith.mulf %23, %23 : vector<16x1xf32>
    %27 = arith.subf %25, %26 : vector<16x1xf32>
    %cst_7 = arith.constant 0.000000e+00 : f32
    %28 = vector.broadcast %cst_7 : f32 to vector<16x1xf32>
    %29 = arith.maximumf %27, %28 : vector<16x1xf32>
    %c0_8 = arith.constant 0 : index
    %c0_9 = arith.constant 0 : index
    %30 = vector.load %arg3[%c0_8, %c0_9] : memref<16x1xf32, #tpu.memory_space<vmem>>, vector<16x1xf32>
    %cst_10 = arith.constant 9.99999974E-6 : f32
    %31 = vector.broadcast %cst_10 : f32 to vector<16x1xf32>
    %32 = arith.addf %29, %31 : vector<16x1xf32>
    %33 = math.rsqrt %32 : vector<16x1xf32>
    %34 = arith.mulf %30, %33 : vector<16x1xf32>
    %c0_11 = arith.constant 0 : index
    %c0_12 = arith.constant 0 : index
    %35 = vector.load %arg4[%c0_11, %c0_12] : memref<16x1xf32, #tpu.memory_space<vmem>>, vector<16x1xf32>
    %36 = arith.mulf %23, %34 : vector<16x1xf32>
    %37 = arith.subf %35, %36 : vector<16x1xf32>
    %38 = tpu.concatenate %34, %34, %34, %34 in 0 : vector<16x1xf32>, vector<16x1xf32>, vector<16x1xf32>, vector<16x1xf32> -> vector<64x1xf32>
    %39 = tpu.concatenate %37, %37, %37, %37 in 0 : vector<16x1xf32>, vector<16x1xf32>, vector<16x1xf32>, vector<16x1xf32> -> vector<64x1xf32>
    %40 = vector.broadcast %38 : vector<64x1xf32> to vector<64x2048xf32>
    %41 = arith.mulf %2, %40 : vector<64x2048xf32>
    %42 = vector.broadcast %39 : vector<64x1xf32> to vector<64x2048xf32>
    %43 = arith.addf %41, %42 : vector<64x2048xf32>
    %cst_13 = arith.constant 0.000000e+00 : f32
    %44 = vector.broadcast %cst_13 : f32 to vector<64x2048xf32>
    %45 = arith.maximumf %43, %44 : vector<64x2048xf32>
    %46 = arith.truncf %45 : vector<64x2048xf32> to vector<64x2048xbf16>
    %c0_14 = arith.constant 0 : index
    %c0_15 = arith.constant 0 : index
    %47 = vector.load %arg5[%c0_14, %c0_15] : memref<64x2048xbf16, #tpu.memory_space<vmem>>, vector<64x2048xbf16>
    tpu.vector_store %arg5[%c0_14, %c0_15], %46 {strides = array<i32>} : memref<64x2048xbf16, #tpu.memory_space<vmem>>, vector<64x2048xbf16>,
    return
  }
  func.func @transform_0(%arg0: i32) -> (i32, i32) {
    %c0_i32 = arith.constant 0 : i32
    %c0_i32_0 = arith.constant 0 : i32
    %c0_i32_1 = arith.constant 0 : i32
    return %c0_i32, %c0_i32_0 : i32, i32
  }
  func.func @transform_1(%arg0: i32) -> (i32, i32) {
    %c0_i32 = arith.constant 0 : i32
    %c0_i32_0 = arith.constant 0 : i32
    %c0_i32_1 = arith.constant 0 : i32
    return %c0_i32, %c0_i32_0 : i32, i32
  }
  func.func @transform_2(%arg0: i32) -> (i32, i32) {
    %c0_i32 = arith.constant 0 : i32
    %c0_i32_0 = arith.constant 0 : i32
    %c0_i32_1 = arith.constant 0 : i32
    return %c0_i32, %c0_i32_0 : i32, i32
  }
  func.func @transform_3(%arg0: i32) -> (i32, i32) {
    %c0_i32 = arith.constant 0 : i32
    %c0_i32_0 = arith.constant 0 : i32
    %c0_i32_1 = arith.constant 0 : i32
    return %c0_i32, %c0_i32_0 : i32, i32
  }
  func.func @transform_4(%arg0: i32) -> (i32, i32) {
    %c0_i32 = arith.constant 0 : i32
    %c0_i32_0 = arith.constant 0 : i32
    %c0_i32_1 = arith.constant 0 : i32
    return %c0_i32, %c0_i32_0 : i32, i32
  }
}

module attributes {stable_mosaic.version = 11 : i64} {
  func.func @_conv_tanh_kernel(%arg0: i32, %arg1: memref<16x144xbf16, #tpu.memory_space<vmem>>, %arg2: memref<144x2048xbf16, #tpu.memory_space<vmem>>, %arg3: memref<16x2048xf32, #tpu.memory_space<vmem>>) attributes {dimension_semantics = [#tpu.dimension_semantics<parallel>], iteration_bounds = array<i64: 4>, scalar_prefetch = 0 : i64, scratch_operands = 0 : i64, tpu.core_type = #tpu.core_type<tc>, window_params = [{pipeline_mode = #tpu.pipeline_mode<synchronous>, transform_indices = @transform_0, window_bounds = array<i64: 16, 144>}, {transform_indices = @transform_1, window_bounds = array<i64: 144, 2048>}, {transform_indices = @transform_2, window_bounds = array<i64: 16, 2048>}]} {
    %c0 = arith.constant 0 : index
    %c0_0 = arith.constant 0 : index
    %0 = vector.load %arg1[%c0, %c0_0] : memref<16x144xbf16, #tpu.memory_space<vmem>>, vector<16x144xbf16>
    %c0_1 = arith.constant 0 : index
    %c0_2 = arith.constant 0 : index
    %1 = vector.load %arg2[%c0_1, %c0_2] : memref<144x2048xbf16, #tpu.memory_space<vmem>>, vector<144x2048xbf16>
    %cst = arith.constant dense<0.000000e+00> : vector<16x2048xf32>
    %2 = tpu.matmul %0, %1, %cst {dimension_numbers = #tpu.dot_dimension_numbers<[1], [0], [0], [1], [0, 0, 1, 1], [], []>} : vector<16x144xbf16>, vector<144x2048xbf16>, vector<16x2048xf32> -> vector<16x2048xf32>
    %3 = math.tanh %2 : vector<16x2048xf32>
    %c0_3 = arith.constant 0 : index
    %c0_4 = arith.constant 0 : index
    %4 = vector.load %arg3[%c0_3, %c0_4] : memref<16x2048xf32, #tpu.memory_space<vmem>>, vector<16x2048xf32>
    tpu.vector_store %arg3[%c0_3, %c0_4], %3 {strides = array<i32>} : memref<16x2048xf32, #tpu.memory_space<vmem>>, vector<16x2048xf32>,
    return
  }
  func.func @transform_0(%arg0: i32) -> (i32, i32) {
    %c0_i32 = arith.constant 0 : i32
    %c0_i32_0 = arith.constant 0 : i32
    %c0_i32_1 = arith.constant 0 : i32
    return %c0_i32, %c0_i32_0 : i32, i32
  }
  func.func @transform_1(%arg0: i32) -> (i32, i32) {
    %c0_i32 = arith.constant 0 : i32
    %c0_i32_0 = arith.constant 0 : i32
    return %c0_i32, %arg0 : i32, i32
  }
  func.func @transform_2(%arg0: i32) -> (i32, i32) {
    %c0_i32 = arith.constant 0 : i32
    %c0_i32_0 = arith.constant 0 : i32
    return %c0_i32, %arg0 : i32, i32
  }
}

</mosaic_0001>

<bundles_post_ra>
// kernel: generator_forward.5
= control target key start
LH: loop header
LB: loop body
LE: loop exit
PB: predicated region body
PF: predicated region fallthrough
CT: control target
= control target key end

     0   :  { %vm2290_vm0 = vcmask 261120   ;;  %s6047_s1 = inlined_call_operand.vmem [shape: bf16[1152,32], index: 1, kind: input, shape index: {}]   ;;  %s6048_s0 = inlined_call_operand.vmem [shape: bf16[256,1152], index: 0, kind: input, shape index: {}]   ;;  %s6049_s2 = inlined_call_operand.vmem [shape: f32[64,1], index: 2, kind: input, shape index: {}]   ;;  %s6050_s3 = inlined_call_operand.vmem [shape: f32[64,1], index: 3, kind: input, shape index: {}]   ;;  %s6051_s4 = inlined_call_operand.vmem [shape: bf16[256,32], index: 4, kind: output, shape index: {}]  }
   0x1   :  { %v3998_v0 = vld [vmem:[%s6047_s1 + $0x38] sm:$0xff]  ;;  %v3997_v1 = vld [vmem:[%s6047_s1 + $0x30] sm:$0xff]  ;;  %v3996_v2 = vld [vmem:[%s6047_s1 + $0x28] sm:$0xff] }
   0x2   :  { %4063 = vmatpush.bf16.msra.mxu1 %v3998_v0  ;;  %4064 = vmatpush.bf16.msra.mxu2 %v3998_v0  ;;  %v3995_v3 = vld [vmem:[%s6047_s1 + $0x20] sm:$0xff]  ;;  %v3994_v4 = vld [vmem:[%s6047_s1 + $0x18] sm:$0xff]  ;;  %v3993_v5 = vld [vmem:[%s6047_s1 + $0x10] sm:$0xff] }
   0x3   :  { %4065 = vmatpush.bf16.msra.mxu3 %v3998_v0  ;;  %1489 = vmatpush.bf16.msra.mxu0 %v3998_v0  ;;  %v3992_v6 = vld [vmem:[%s6047_s1 + $0x8] sm:$0xff]  ;;  %v3991_v7 = vld [vmem:[%s6047_s1] sm:$0xff]  ;;  %v4014_v16 = vld [vmem:[%s6047_s1 + $0xb8] sm:$0xff] }
   0x4   :  { %v3129_v8 = vld [vmem:[%s6048_s0 + $0x120] sm:$0xf]  ;;  %v3887_v9 = vld [vmem:[%s6048_s0 + $0x140] sm:$0xf0]  ;;  %v4022_v17 = vld [vmem:[%s6047_s1 + $0xf8] sm:$0xff] }
   0x5   :  { %v3273_v10 = vld [vmem:[%s6048_s0 + $0x240] sm:$0xf]  ;;  %v3923_v11 = vld [vmem:[%s6048_s0 + $0x260] sm:$0xf0]  ;;  %v3130_v18 = vor.u32 %v3887_v9, %v3129_v8  ;;  %v4006_v22 = vld [vmem:[%s6047_s1 + $0x78] sm:$0xff] }
   0x6   :  { %4066 = vmatpush.bf16.msra.mxu1 %v3997_v1  ;;  %4067 = vmatpush.bf16.msra.mxu2 %v3997_v1  ;;  %v3417_v12 = vld [vmem:[%s6048_s0 + $0x360] sm:$0xf]  ;;  %v3959_v13 = vld [vmem:[%s6048_s0 + $0x380] sm:$0xf0]  ;;  %v3274_v19 = vor.u32 %v3923_v11, %v3273_v10  ;;  %v4030_v23 = vld [vmem:[%s6047_s1 + $0x138] sm:$0xff] }
   0x7   :  { %4068 = vmatpush.bf16.msra.mxu3 %v3997_v1  ;;  %1490 = vmatpush.bf16.msra.mxu0 %v3997_v1  ;;  %v2985_v14 = vld [vmem:[%s6048_s0] sm:$0xf]  ;;  %v3851_v15 = vld [vmem:[%s6048_s0 + $0x20] sm:$0xf0]  ;;  %v3418_v20 = vor.u32 %v3959_v13, %v3417_v12  ;;  %v4013_v24 = vld [vmem:[%s6047_s1 + $0xb0] sm:$0xff] }
   0x8   :  { %v2986_v21 = vor.u32 %v3851_v15, %v2985_v14  ;;  %v4021_v25 = vld [vmem:[%s6047_s1 + $0xf0] sm:$0xff]  ;;  %v4012_v28 = vld [vmem:[%s6047_s1 + $0xa8] sm:$0xff]  ;;  %v4011_v33 = vld [vmem:[%s6047_s1 + $0xa0] sm:$0xff] }
   0x9   :  { %v4005_v26 = vld [vmem:[%s6047_s1 + $0x70] sm:$0xff]  ;;  %v4020_v29 = vld [vmem:[%s6047_s1 + $0xe8] sm:$0xff]  ;;  %v4019_v34 = vld [vmem:[%s6047_s1 + $0xe0] sm:$0xff] }
   0xa   :  { %4069 = vmatpush.bf16.msra.mxu1 %v3996_v2  ;;  %4070 = vmatpush.bf16.msra.mxu2 %v3996_v2  ;;  %v4029_v27 = vld [vmem:[%s6047_s1 + $0x130] sm:$0xff]  ;;  %v4004_v30 = vld [vmem:[%s6047_s1 + $0x68] sm:$0xff]  ;;  %v4003_v42 = vld [vmem:[%s6047_s1 + $0x60] sm:$0xff] }
   0xb   :  { %4071 = vmatpush.bf16.msra.mxu3 %v3996_v2  ;;  %1491 = vmatpush.bf16.msra.mxu0 %v3996_v2  ;;  %v4028_v31 = vld [vmem:[%s6047_s1 + $0x128] sm:$0xff]  ;;  %v4027_v43 = vld [vmem:[%s6047_s1 + $0x120] sm:$0xff]  ;;  %v4010_v44 = vld [vmem:[%s6047_s1 + $0x98] sm:$0xff] }
   0xc   :  { %v3165_v32 = vld [vmem:[%s6048_s0 + $0x168] sm:$0xf]  ;;  %v3896_v35 = vld [vmem:[%s6048_s0 + $0x188] sm:$0xf0]  ;;  %v4018_v45 = vld [vmem:[%s6047_s1 + $0xd8] sm:$0xff] }
   0xd   :  { %v3309_v36 = vld [vmem:[%s6048_s0 + $0x288] sm:$0xf]  ;;  %v3932_v37 = vld [vmem:[%s6048_s0 + $0x2a8] sm:$0xf0]  ;;  %v3166_v46 = vor.u32 %v3896_v35, %v3165_v32  ;;  %v4002_v50 = vld [vmem:[%s6047_s1 + $0x58] sm:$0xff] }
   0xe   :  { %4072 = vmatpush.bf16.msra.mxu1 %v3995_v3  ;;  %4073 = vmatpush.bf16.msra.mxu2 %v3995_v3  ;;  %v3453_v38 = vld [vmem:[%s6048_s0 + $0x3a8] sm:$0xf]  ;;  %v3968_v39 = vld [vmem:[%s6048_s0 + $0x3c8] sm:$0xf0]  ;;  %v3310_v47 = vor.u32 %v3932_v37, %v3309_v36  ;;  %v4026_v51 = vld [vmem:[%s6047_s1 + $0x118] sm:$0xff] }
   0xf   :  { %4074 = vmatpush.bf16.msra.mxu3 %v3995_v3  ;;  %1492 = vmatpush.bf16.msra.mxu0 %v3995_v3  ;;  %v3021_v40 = vld [vmem:[%s6048_s0 + $0x48] sm:$0xf]  ;;  %v3860_v41 = vld [vmem:[%s6048_s0 + $0x68] sm:$0xf0]  ;;  %v3454_v48 = vor.u32 %v3968_v39, %v3453_v38  ;;  %v4009_v52 = vld [vmem:[%s6047_s1 + $0x90] sm:$0xff] }
  0x10   :  { %v3022_v49 = vor.u32 %v3860_v41, %v3021_v40  ;;  %v4017_v53 = vld [vmem:[%s6047_s1 + $0xd0] sm:$0xff]  ;;  %v4008_v56 = vld [vmem:[%s6047_s1 + $0x88] sm:$0xff]  ;;  %v4007_v61 = vld [vmem:[%s6047_s1 + $0x80] sm:$0xff] }
  0x11   :  { %v4001_v54 = vld [vmem:[%s6047_s1 + $0x50] sm:$0xff]  ;;  %v4016_v57 = vld [vmem:[%s6047_s1 + $0xc8] sm:$0xff]  ;;  %v4015_v62 = vld [vmem:[%s6047_s1 + $0xc0] sm:$0xff] }
  0x12   :  { %4075 = vmatpush.bf16.msra.mxu1 %v3994_v4  ;;  %4076 = vmatpush.bf16.msra.mxu2 %v3994_v4  ;;  %v4025_v55 = vld [vmem:[%s6047_s1 + $0x110] sm:$0xff]  ;;  %v4000_v58 = vld [vmem:[%s6047_s1 + $0x48] sm:$0xff]  ;;  %v4046_v12 = vld [vmem:[%s6047_s1 + $0x1b8] sm:$0xff] }
  0x13   :  { %4077 = vmatpush.bf16.msra.mxu3 %v3994_v4  ;;  %1493 = vmatpush.bf16.msra.mxu0 %v3994_v4  ;;  %v4024_v59 = vld [vmem:[%s6047_s1 + $0x108] sm:$0xff]  ;;  %v3201_v60 = vld [vmem:[%s6048_s0 + $0x1b0] sm:$0xf]  ;;  %v3905_v63 = vld [vmem:[%s6048_s0 + $0x1d0] sm:$0xf0] }
  0x14   :  { %v3345_v0 = vld [vmem:[%s6048_s0 + $0x2d0] sm:$0xf]  ;;  %v3941_v1 = vld [vmem:[%s6048_s0 + $0x2f0] sm:$0xf0]  ;;  %v3202_v8 = vor.u32 %v3905_v63, %v3201_v60  ;;  %v4054_v13 = vld [vmem:[%s6047_s1 + $0x1f8] sm:$0xff] }
  0x15   :  { %v3489_v2 = vld [vmem:[%s6048_s0 + $0x3f0] sm:$0xf]  ;;  %v3977_v3 = vld [vmem:[%s6048_s0 + $0x410] sm:$0xf0]  ;;  %v3346_v9 = vor.u32 %v3941_v1, %v3345_v0  ;;  %v4038_v14 = vld [vmem:[%s6047_s1 + $0x178] sm:$0xff] }
  0x16   :  { %4078 = vmatpush.bf16.msra.mxu1 %v3993_v5  ;;  %4079 = vmatpush.bf16.msra.mxu2 %v3993_v5  ;;  %v3057_v4 = vld [vmem:[%s6048_s0 + $0x90] sm:$0xf]  ;;  %v3490_v10 = vor.u32 %v3977_v3, %v3489_v2  ;;  %v4062_v15 = vld [vmem:[%s6047_s1 + $0x238] sm:$0xff]  ;;  %v3848_v32 = vld [vmem:[%s6048_s0 + $0xc] sm:$0xf] }
  0x17   :  { %4080 = vmatpush.bf16.msra.mxu3 %v3993_v5  ;;  %1494 = vmatpush.bf16.msra.mxu0 %v3993_v5  ;;  %v3869_v5 = vld [vmem:[%s6048_s0 + $0xb0] sm:$0xf0]  ;;  %v3866_v60 = vld [vmem:[%s6048_s0 + $0x9c] sm:$0xf]  ;;  %v3871_v63 = vld [vmem:[%s6048_s0 + $0xc0] sm:$0xf0] }
  0x18   :  { %v3058_v11 = vor.u32 %v3869_v5, %v3057_v4  ;;  %v3853_v35 = vld [vmem:[%s6048_s0 + $0x30] sm:$0xf0]  ;;  %v4044_v4 = vld [vmem:[%s6047_s1 + $0x1a8] sm:$0xff] }
  0x19   :  { %v4045_v40 = vld [vmem:[%s6047_s1 + $0x1b0] sm:$0xff]  ;;  %v4052_v5 = vld [vmem:[%s6047_s1 + $0x1e8] sm:$0xff] }
  0x1a   :  { %4081 = vmatpush.bf16.msra.mxu1 %v3992_v6  ;;  %4082 = vmatpush.bf16.msra.mxu2 %v3992_v6  ;;  %v4053_v41 = vld [vmem:[%s6047_s1 + $0x1f0] sm:$0xff] }
  0x1b   :  { %4083 = vmatpush.bf16.msra.mxu3 %v3992_v6  ;;  %1495 = vmatpush.bf16.msra.mxu0 %v3992_v6  ;;  %v3999_v6 = vld [vmem:[%s6047_s1 + $0x40] sm:$0xff] }
  0x1e   :  { %4084 = vmatpush.bf16.msra.mxu1 %v3991_v7  ;;  %4085 = vmatpush.bf16.msra.mxu2 %v3991_v7 }
  0x1f   :  { %4086 = vmatpush.bf16.msra.mxu3 %v3991_v7  ;;  %1496 = vmatpush.bf16.msra.mxu0 %v3991_v7  ;;  %v4023_v7 = vld [vmem:[%s6047_s1 + $0x100] sm:$0xff] }
  0x21   :  { %1517 = vmatmul.bf16.vlgmr.msra.gmra.mxu1 %v3130_v18  ;;  %1537 = vmatmul.bf16.vlgmr.msra.gmra.mxu2 %v3274_v19  ;;  %v3381_v18 = vld [vmem:[%s6048_s0 + $0x318] sm:$0xf]  ;;  %v3950_v19 = vld [vmem:[%s6048_s0 + $0x338] sm:$0xf0] }
  0x22   :  { %1667 = vmatpush.bf16.msrb.mxu2 %v4014_v16  ;;  %1557 = vmatmul.bf16.vlgmr.msra.gmra.mxu3 %v3418_v20  ;;  %v3237_v16 = vld [vmem:[%s6048_s0 + $0x1f8] sm:$0xf] }
  0x23   :  { %1756 = vmatpush.bf16.msrb.mxu3 %v4022_v17  ;;  %1497 = vmatmul.bf16.vlgmr.msra.gmra.mxu0 %v2986_v21  ;;  %v3914_v17 = vld [vmem:[%s6048_s0 + $0x218] sm:$0xf0]  ;;  %v3525_v20 = vld [vmem:[%s6048_s0 + $0x438] sm:$0xf] }
  0x24   :  { %1578 = vmatpush.bf16.msrb.mxu1 %v4006_v22  ;;  %1845 = vmatpush.bf16.msrb.mxu0 %v4030_v23  ;;  %v3986_v21 = vld [vmem:[%s6048_s0 + $0x458] sm:$0xf0]  ;;  %v3093_v22 = vld [vmem:[%s6048_s0 + $0xd8] sm:$0xf] }
  0x25   :  { %v3878_v23 = vld [vmem:[%s6048_s0 + $0xf8] sm:$0xf0] }
  0x26   :  { %1668 = vmatpush.bf16.msrb.mxu2 %v4013_v24  ;;  %v3238_v24 = vor.u32 %v3914_v17, %v3237_v16 }
  0x27   :  { %1757 = vmatpush.bf16.msrb.mxu3 %v4021_v25  ;;  %v3382_v25 = vor.u32 %v3950_v19, %v3381_v18 }
  0x28   :  { %1579 = vmatpush.bf16.msrb.mxu1 %v4005_v26  ;;  %1846 = vmatpush.bf16.msrb.mxu0 %v4029_v27  ;;  %v3526_v26 = vor.u32 %v3986_v21, %v3525_v20  ;;  %v3094_v27 = vor.u32 %v3878_v23, %v3093_v22  ;;  %v3883_v20 = vld [vmem:[%s6048_s0 + $0x124] sm:$0xf]  ;;  %v3131_v21 = vld [vmem:[%s6048_s0 + $0x144] sm:$0xf0]  ;;  %v3888_v23 = vld [vmem:[%s6048_s0 + $0x148] sm:$0xf0] }
  0x29   :  { %v3137_v22 = vld [vmem:[%s6048_s0 + $0x128] sm:$0xf] }
  0x2a   :  { %1669 = vmatpush.bf16.msrb.mxu2 %v4012_v28  ;;  %v3847_v28 = vld [vmem:[%s6048_s0 + $0x4] sm:$0xf] }
  0x2b   :  { %1758 = vmatpush.bf16.msrb.mxu3 %v4020_v29  ;;  %v2987_v29 = vld [vmem:[%s6048_s0 + $0x24] sm:$0xf0] }
  0x2c   :  { %1580 = vmatpush.bf16.msrb.mxu1 %v4004_v30  ;;  %1847 = vmatpush.bf16.msrb.mxu0 %v4028_v31  ;;  %v2993_v30 = vld [vmem:[%s6048_s0 + $0x8] sm:$0xf]  ;;  %v3852_v31 = vld [vmem:[%s6048_s0 + $0x28] sm:$0xf0]  ;;  %v2990_v36 = vor.u32 %v3847_v28, %v2987_v29  ;;  %v3134_v28 = vor.u32 %v3883_v20, %v3131_v21  ;;  %v3138_v29 = vor.u32 %v3888_v23, %v3137_v22  ;;  %v4034_v20 = vld [vmem:[%s6047_s1 + $0x158] sm:$0xff] }
  0x2d   :  { %v2994_v37 = vor.u32 %v3852_v31, %v2993_v30  ;;  %v4058_v21 = vld [vmem:[%s6047_s1 + $0x218] sm:$0xff]  ;;  %v3239_v23 = vld [vmem:[%s6048_s0 + $0x21c] sm:$0xf0] }
  0x2e   :  { %1670 = vmatpush.bf16.msrb.mxu2 %v4011_v33  ;;  %v2995_v33 = vld [vmem:[%s6048_s0 + $0x2c] sm:$0xf0]  ;;  %v3910_v22 = vld [vmem:[%s6048_s0 + $0x1fc] sm:$0xf] }
  0x2f   :  { %1759 = vmatpush.bf16.msrb.mxu3 %v4019_v34  ;;  %v3001_v34 = vld [vmem:[%s6048_s0 + $0x10] sm:$0xf]  ;;  %v2998_v38 = vor.u32 %v3848_v32, %v2995_v33 }
  0x30   :  { %1581 = vmatpush.bf16.msrb.mxu1 %v4003_v42  ;;  %1848 = vmatpush.bf16.msrb.mxu0 %v4027_v43  ;;  %v3002_v39 = vor.u32 %v3853_v35, %v3001_v34  ;;  %v4037_v42 = vld [vmem:[%s6047_s1 + $0x170] sm:$0xff]  ;;  %v4043_v34 = vld [vmem:[%s6047_s1 + $0x1a0] sm:$0xff] }
  0x31   :  { %1522 = vmatmul.bf16.gmra.mxu1 %v3166_v46  ;;  %1542 = vmatmul.bf16.gmra.mxu2 %v3310_v47  ;;  %v4061_v43 = vld [vmem:[%s6047_s1 + $0x230] sm:$0xff]  ;;  %v4051_v35 = vld [vmem:[%s6047_s1 + $0x1e0] sm:$0xff] }
  0x32   :  { %1671 = vmatpush.bf16.msrb.mxu2 %v4010_v44  ;;  %1562 = vmatmul.bf16.gmra.mxu3 %v3454_v48  ;;  %v3856_v44 = vld [vmem:[%s6048_s0 + $0x4c] sm:$0xf]  ;;  %v3029_v46 = vld [vmem:[%s6048_s0 + $0x50] sm:$0xf]  ;;  %v3861_v47 = vld [vmem:[%s6048_s0 + $0x70] sm:$0xf0] }
  0x33   :  { %1760 = vmatpush.bf16.msrb.mxu3 %v4018_v45  ;;  %1502 = vmatmul.bf16.gmra.mxu0 %v3022_v49  ;;  %v3023_v45 = vld [vmem:[%s6048_s0 + $0x6c] sm:$0xf0]  ;;  %v3857_v48 = vld [vmem:[%s6048_s0 + $0x54] sm:$0xf]  ;;  %v3031_v49 = vld [vmem:[%s6048_s0 + $0x74] sm:$0xf0] }
  0x34   :  { %1582 = vmatpush.bf16.msrb.mxu1 %v4002_v50  ;;  %1849 = vmatpush.bf16.msrb.mxu0 %v4026_v51  ;;  %v3037_v50 = vld [vmem:[%s6048_s0 + $0x58] sm:$0xf]  ;;  %v3862_v51 = vld [vmem:[%s6048_s0 + $0x78] sm:$0xf0] }
  0x36   :  { %1672 = vmatpush.bf16.msrb.mxu2 %v4009_v52  ;;  %v3026_v52 = vor.u32 %v3856_v44, %v3023_v45  ;;  %v3173_v44 = vld [vmem:[%s6048_s0 + $0x170] sm:$0xf]  ;;  %v3897_v45 = vld [vmem:[%s6048_s0 + $0x190] sm:$0xf0] }
  0x37   :  { %1761 = vmatpush.bf16.msrb.mxu3 %v4017_v53  ;;  %v3030_v53 = vor.u32 %v3861_v47, %v3029_v46  ;;  %v3893_v46 = vld [vmem:[%s6048_s0 + $0x174] sm:$0xf]  ;;  %v3175_v47 = vld [vmem:[%s6048_s0 + $0x194] sm:$0xf0] }
  0x38   :  { %1583 = vmatpush.bf16.msrb.mxu1 %v4001_v54  ;;  %1850 = vmatpush.bf16.msrb.mxu0 %v4025_v55  ;;  %v3034_v54 = vor.u32 %v3857_v48, %v3031_v49  ;;  %v3038_v55 = vor.u32 %v3862_v51, %v3037_v50  ;;  %v3181_v48 = vld [vmem:[%s6048_s0 + $0x178] sm:$0xf]  ;;  %v3898_v49 = vld [vmem:[%s6048_s0 + $0x198] sm:$0xf0] }
  0x3a   :  { %1673 = vmatpush.bf16.msrb.mxu2 %v4008_v56  ;;  %v3865_v56 = vld [vmem:[%s6048_s0 + $0x94] sm:$0xf] }
  0x3b   :  { %1762 = vmatpush.bf16.msrb.mxu3 %v4016_v57  ;;  %v3059_v57 = vld [vmem:[%s6048_s0 + $0xb4] sm:$0xf0] }
  0x3c   :  { %1584 = vmatpush.bf16.msrb.mxu1 %v4000_v58  ;;  %1851 = vmatpush.bf16.msrb.mxu0 %v4024_v59  ;;  %v3065_v58 = vld [vmem:[%s6048_s0 + $0x98] sm:$0xf]  ;;  %v3870_v59 = vld [vmem:[%s6048_s0 + $0xb8] sm:$0xf0]  ;;  %v3062_v0 = vor.u32 %v3865_v56, %v3059_v57  ;;  %v3182_v56 = vor.u32 %v3898_v49, %v3181_v48  ;;  %v3919_v48 = vld [vmem:[%s6048_s0 + $0x244] sm:$0xf] }
  0x3d   :  { %v3066_v1 = vor.u32 %v3870_v59, %v3065_v58  ;;  %v3275_v49 = vld [vmem:[%s6048_s0 + $0x264] sm:$0xf0] }
  0x3e   :  { %1674 = vmatpush.bf16.msrb.mxu2 %v4007_v61  ;;  %v3067_v61 = vld [vmem:[%s6048_s0 + $0xbc] sm:$0xf0] }
  0x3f   :  { %1763 = vmatpush.bf16.msrb.mxu3 %v4015_v62  ;;  %v3073_v62 = vld [vmem:[%s6048_s0 + $0xa0] sm:$0xf]  ;;  %v3070_v2 = vor.u32 %v3866_v60, %v3067_v61 }
  0x40   :  { %1585 = vmatpush.bf16.msrb.mxu1 %v3999_v6  ;;  %1852 = vmatpush.bf16.msrb.mxu0 %v4023_v7  ;;  %v3074_v3 = vor.u32 %v3871_v63, %v3073_v62  ;;  %v4036_v6 = vld [vmem:[%s6047_s1 + $0x168] sm:$0xff]  ;;  %v3901_v62 = vld [vmem:[%s6048_s0 + $0x1b4] sm:$0xf]  ;;  %v3203_v63 = vld [vmem:[%s6048_s0 + $0x1d4] sm:$0xf0] }
  0x41   :  { %1527 = vmatmul.bf16.gmra.mxu1 %v3202_v8  ;;  %1547 = vmatmul.bf16.gmra.mxu2 %v3346_v9  ;;  %v4060_v7 = vld [vmem:[%s6047_s1 + $0x228] sm:$0xff]  ;;  %v3874_v8 = vld [vmem:[%s6048_s0 + $0xdc] sm:$0xf]  ;;  %v3095_v9 = vld [vmem:[%s6048_s0 + $0xfc] sm:$0xf0] }
  0x42   :  { %1567 = vmatmul.bf16.gmra.mxu3 %v3490_v10  ;;  %2023 = vmatpush.bf16.msra.mxu2 %v4046_v12  ;;  %v3101_v10 = vld [vmem:[%s6048_s0 + $0xe0] sm:$0xf]  ;;  %v3875_v12 = vld [vmem:[%s6048_s0 + $0xe4] sm:$0xf]  ;;  %v3098_v16 = vor.u32 %v3874_v8, %v3095_v9  ;;  %v3206_v8 = vor.u32 %v3901_v62, %v3203_v63  ;;  %v3289_v62 = vld [vmem:[%s6048_s0 + $0x250] sm:$0xf] }
  0x43   :  { %1507 = vmatmul.bf16.gmra.mxu0 %v3058_v11  ;;  %2112 = vmatpush.bf16.msra.mxu3 %v4054_v13  ;;  %v3879_v11 = vld [vmem:[%s6048_s0 + $0x100] sm:$0xf0]  ;;  %v3103_v13 = vld [vmem:[%s6048_s0 + $0x104] sm:$0xf0]  ;;  %v3925_v63 = vld [vmem:[%s6048_s0 + $0x270] sm:$0xf0] }
  0x44   :  { %1934 = vmatpush.bf16.msra.mxu1 %v4038_v14  ;;  %2201 = vmatpush.bf16.msra.mxu0 %v4062_v15  ;;  %v3109_v14 = vld [vmem:[%s6048_s0 + $0xe8] sm:$0xf]  ;;  %v3880_v15 = vld [vmem:[%s6048_s0 + $0x108] sm:$0xf0]  ;;  %v3102_v17 = vor.u32 %v3879_v11, %v3101_v10  ;;  %v3106_v18 = vor.u32 %v3875_v12, %v3103_v13 }
  0x45   :  { %v3110_v19 = vor.u32 %v3880_v15, %v3109_v14  ;;  %v4042_v14 = vld [vmem:[%s6047_s1 + $0x198] sm:$0xff] }
  0x46   :  { %2024 = vmatpush.bf16.msra.mxu2 %v4045_v40  ;;  %v4050_v15 = vld [vmem:[%s6047_s1 + $0x1d8] sm:$0xff] }
  0x47   :  { %2113 = vmatpush.bf16.msra.mxu3 %v4053_v41  ;;  %v4059_v41 = vld [vmem:[%s6047_s1 + $0x220] sm:$0xff] }
  0x48   :  { %1935 = vmatpush.bf16.msra.mxu1 %v4037_v42  ;;  %2202 = vmatpush.bf16.msra.mxu0 %v4061_v43  ;;  %v3892_v42 = vld [vmem:[%s6048_s0 + $0x16c] sm:$0xf]  ;;  %v3167_v43 = vld [vmem:[%s6048_s0 + $0x18c] sm:$0xf0] }
  0x4a   :  { %2025 = vmatpush.bf16.msra.mxu2 %v4044_v4  ;;  %v3217_v4 = vld [vmem:[%s6048_s0 + $0x1c0] sm:$0xf] }
  0x4b   :  { %2114 = vmatpush.bf16.msra.mxu3 %v4052_v5  ;;  %v3907_v5 = vld [vmem:[%s6048_s0 + $0x1e0] sm:$0xf0] }
  0x4c   :  { %1936 = vmatpush.bf16.msra.mxu1 %v4036_v6  ;;  %2203 = vmatpush.bf16.msra.mxu0 %v4060_v7  ;;  %v3218_v12 = vor.u32 %v3907_v5, %v3217_v4 }
  0x4e   :  { %2026 = vmatpush.bf16.msra.mxu2 %v4043_v34  ;;  %v3242_v34 = vor.u32 %v3910_v22, %v3239_v23 }
  0x4f   :  { %2115 = vmatpush.bf16.msra.mxu3 %v4051_v35 }
  0x50   :  { %2204 = vmatpush.bf16.msra.mxu0 %v4059_v41 }
  0x51   :  { %1532 = vmatmul.bf16.gmra.mxu1 %v3238_v24  ;;  %1552 = vmatmul.bf16.gmra.mxu2 %v3382_v25  ;;  %v3884_v24 = vld [vmem:[%s6048_s0 + $0x12c] sm:$0xf]  ;;  %v3139_v25 = vld [vmem:[%s6048_s0 + $0x14c] sm:$0xf0] }
  0x52   :  { %1572 = vmatmul.bf16.gmra.mxu3 %v3526_v26  ;;  %v3145_v26 = vld [vmem:[%s6048_s0 + $0x130] sm:$0xf]  ;;  %v3142_v31 = vor.u32 %v3884_v24, %v3139_v25  ;;  %2027 = vmatpush.bf16.msra.mxu2 %v4042_v14  ;;  %v3245_v24 = vld [vmem:[%s6048_s0 + $0x200] sm:$0xf]  ;;  %v3915_v25 = vld [vmem:[%s6048_s0 + $0x220] sm:$0xf0] }
  0x53   :  { %1512 = vmatmul.bf16.gmra.mxu0 %v3094_v27  ;;  %v3889_v27 = vld [vmem:[%s6048_s0 + $0x150] sm:$0xf0]  ;;  %2116 = vmatpush.bf16.msra.mxu3 %v4050_v15  ;;  %v3246_v35 = vor.u32 %v3915_v25, %v3245_v24 }
  0x54   :  { %v3146_v32 = vor.u32 %v3889_v27, %v3145_v26  ;;  %2205 = vmatpush.bf16.msra.mxu0 %v4058_v21  ;;  %v3911_v26 = vld [vmem:[%s6048_s0 + $0x204] sm:$0xf]  ;;  %v3247_v27 = vld [vmem:[%s6048_s0 + $0x224] sm:$0xf0]  ;;  %v4049_v14 = vld [vmem:[%s6047_s1 + $0x1d0] sm:$0xff] }
  0x55   :  { %v3250_v41 = vor.u32 %v3911_v26, %v3247_v27  ;;  %v4033_v25 = vld [vmem:[%s6047_s1 + $0x150] sm:$0xff]  ;;  %v3928_v27 = vld [vmem:[%s6048_s0 + $0x28c] sm:$0xf] }
  0x56   :  { %v4057_v26 = vld [vmem:[%s6047_s1 + $0x210] sm:$0xff] }
  0x57   :  { %2117 = vmatpush.bf16.msra.mxu3 %v4049_v14 }
  0x58   :  { %2206 = vmatpush.bf16.msra.mxu0 %v4057_v26  ;;  %v3361_v26 = vld [vmem:[%s6048_s0 + $0x2e0] sm:$0xf] }
  0x61   :  { %1586 = vmatmul.bf16.vlgmr.msrb.gmra.mxu1 %v2990_v36  ;;  %1675 = vmatmul.bf16.vlgmr.msrb.gmra.mxu2 %v2994_v37 }
  0x62   :  { %1764 = vmatmul.bf16.vlgmr.msrb.gmra.mxu3 %v2998_v38  ;;  %v4035_v38 = vld [vmem:[%s6047_s1 + $0x160] sm:$0xff] }
  0x63   :  { %1853 = vmatmul.bf16.vlgmr.msrb.gmra.mxu0 %v3002_v39  ;;  %1937 = vmatpush.bf16.msra.mxu1 %v4035_v38 }
  0x67   :  { %1938 = vmatpush.bf16.msra.mxu1 %v4034_v20 }
  0x6b   :  { %1939 = vmatpush.bf16.msra.mxu1 %v4033_v25  ;;  %v3355_v25 = vld [vmem:[%s6048_s0 + $0x2fc] sm:$0xf0] }
  0x71   :  { %1591 = vmatmul.bf16.gmra.mxu1 %v3026_v52  ;;  %1680 = vmatmul.bf16.gmra.mxu2 %v3030_v53  ;;  %v3170_v52 = vor.u32 %v3892_v42, %v3167_v43  ;;  %v3174_v53 = vor.u32 %v3897_v45, %v3173_v44 }
  0x72   :  { %1769 = vmatmul.bf16.gmra.mxu3 %v3034_v54 }
  0x73   :  { %1858 = vmatmul.bf16.gmra.mxu0 %v3038_v55  ;;  %v3178_v55 = vor.u32 %v3893_v46, %v3175_v47 }
  0x81   :  { %1596 = vmatmul.bf16.gmra.mxu1 %v3062_v0  ;;  %1685 = vmatmul.bf16.gmra.mxu2 %v3066_v1  ;;  %v3209_v0 = vld [vmem:[%s6048_s0 + $0x1b8] sm:$0xf]  ;;  %v3906_v1 = vld [vmem:[%s6048_s0 + $0x1d8] sm:$0xf0] }
  0x82   :  { %1774 = vmatmul.bf16.gmra.mxu3 %v3070_v2  ;;  %v3902_v2 = vld [vmem:[%s6048_s0 + $0x1bc] sm:$0xf]  ;;  %v3210_v9 = vor.u32 %v3906_v1, %v3209_v0 }
  0x83   :  { %1863 = vmatmul.bf16.gmra.mxu0 %v3074_v3  ;;  %v3211_v3 = vld [vmem:[%s6048_s0 + $0x1dc] sm:$0xf0] }
  0x84   :  { %v3214_v11 = vor.u32 %v3902_v2, %v3211_v3  ;;  %v3278_v2 = vor.u32 %v3919_v48, %v3275_v49  ;;  %v3934_v48 = vld [vmem:[%s6048_s0 + $0x2b8] sm:$0xf0] }
  0x91   :  { %1601 = vmatmul.bf16.gmra.mxu1 %v3098_v16  ;;  %1690 = vmatmul.bf16.gmra.mxu2 %v3102_v17 }
  0x92   :  { %1779 = vmatmul.bf16.gmra.mxu3 %v3106_v18 }
  0x93   :  { %1868 = vmatmul.bf16.gmra.mxu0 %v3110_v19 }
  0x9e   :  { %v4509_v30 = vpop.f32.mrf.mxu1 }
  0xa0   :  { %v4511_v33 = vpop.f32.mrf.mxu0 }
  0xa1   :  { %1606 = vmatmul.bf16.gmra.mxu1 %v3134_v28  ;;  %1695 = vmatmul.bf16.gmra.mxu2 %v3138_v29  ;;  %v3253_v28 = vld [vmem:[%s6048_s0 + $0x208] sm:$0xf]  ;;  %v3916_v29 = vld [vmem:[%s6048_s0 + $0x228] sm:$0xf0] }
  0xa2   :  { %1784 = vmatmul.bf16.gmra.mxu3 %v3142_v31  ;;  %v3254_v42 = vor.u32 %v3916_v29, %v3253_v28  ;;  %v3311_v28 = vld [vmem:[%s6048_s0 + $0x2ac] sm:$0xf0] }
  0xa3   :  { %1873 = vmatmul.bf16.gmra.mxu0 %v3146_v32  ;;  %v3317_v29 = vld [vmem:[%s6048_s0 + $0x290] sm:$0xf] }
  0xa4   :  { %v4519_v36 = vpop.f32.mrf.mxu2 }
  0xa5   :  { %v4521_v37 = vpop.f32.mrf.mxu3 }
  0xa6   :  { %v4526_v39 = vpop.f32.mrf.mxu1 }
  0xa8   :  { %v4528_v40 = vpop.f32.mrf.mxu0 }
  0xac   :  { %v4557_v50 = vpop.f32.mrf.mxu2 }
  0xad   :  { %v4559_v51 = vpop.f32.mrf.mxu3 }
  0xae   :  { %v4561_v54 = vpop.f32.mrf.mxu1 }
  0xb0   :  { %v4563_v57 = vpop.f32.mrf.mxu0 }
  0xb1   :  { %1611 = vmatmul.bf16.gmra.mxu1 %v3170_v52  ;;  %1700 = vmatmul.bf16.gmra.mxu2 %v3174_v53  ;;  %v3281_v52 = vld [vmem:[%s6048_s0 + $0x248] sm:$0xf]  ;;  %v3924_v53 = vld [vmem:[%s6048_s0 + $0x268] sm:$0xf0] }
  0xb2   :  { %1789 = vmatmul.bf16.gmra.mxu3 %v3178_v55  ;;  %v3920_v55 = vld [vmem:[%s6048_s0 + $0x24c] sm:$0xf]  ;;  %v3282_v3 = vor.u32 %v3924_v53, %v3281_v52 }
  0xb3   :  { %1878 = vmatmul.bf16.gmra.mxu0 %v3182_v56  ;;  %v3283_v56 = vld [vmem:[%s6048_s0 + $0x26c] sm:$0xf0] }
  0xb4   :  { %v4565_v58 = vpop.f32.mrf.mxu2  ;;  %v3286_v5 = vor.u32 %v3920_v55, %v3283_v56  ;;  %v3314_v55 = vor.u32 %v3928_v27, %v3311_v28  ;;  %v3943_v27 = vld [vmem:[%s6048_s0 + $0x300] sm:$0xf0] }
  0xb5   :  { %v4567_v59 = vpop.f32.mrf.mxu3 }
  0xb6   :  { %v4569_v60 = vpop.f32.mrf.mxu1 }
  0xb8   :  { %v4571_v61 = vpop.f32.mrf.mxu0 }
  0xbc   :  { %v4597_v6 = vpop.f32.mrf.mxu2 }
  0xbd   :  { %v4599_v7 = vpop.f32.mrf.mxu3 }
  0xbe   :  { %v4601_v10 = vpop.f32.mrf.mxu1 }
  0xc0   :  { %v4603_v13 = vpop.f32.mrf.mxu0 }
  0xc1   :  { %1616 = vmatmul.bf16.gmra.mxu1 %v3206_v8  ;;  %1705 = vmatmul.bf16.gmra.mxu2 %v3210_v9  ;;  %v3290_v8 = vor.u32 %v3925_v63, %v3289_v62 }
  0xc2   :  { %1794 = vmatmul.bf16.gmra.mxu3 %v3214_v11 }
  0xc3   :  { %1883 = vmatmul.bf16.gmra.mxu0 %v3218_v12  ;;  %v4041_v12 = vld [vmem:[%s6047_s1 + $0x190] sm:$0xff] }
  0xc4   :  { %v4611_v16 = vpop.f32.mrf.mxu2  ;;  %2028 = vmatpush.bf16.msra.mxu2 %v4041_v12 }
  0xc5   :  { %v4613_v17 = vpop.f32.mrf.mxu3 }
  0xc6   :  { %v4615_v18 = vpop.f32.mrf.mxu1 }
  0xc8   :  { %v4617_v19 = vpop.f32.mrf.mxu0 }
  0xcc   :  { %v4649_v31 = vpop.f32.mrf.mxu2 }
  0xcd   :  { %v4651_v32 = vpop.f32.mrf.mxu3 }
  0xce   :  { %v4653_v38 = vpop.f32.mrf.mxu1 }
  0xd0   :  { %v4655_v43 = vpop.f32.mrf.mxu0 }
  0xd1   :  { %1621 = vmatmul.bf16.gmra.mxu1 %v3242_v34  ;;  %1710 = vmatmul.bf16.gmra.mxu2 %v3246_v35  ;;  %v3933_v34 = vld [vmem:[%s6048_s0 + $0x2b0] sm:$0xf0] }
  0xd2   :  { %1799 = vmatmul.bf16.gmra.mxu3 %v3250_v41  ;;  %v3929_v35 = vld [vmem:[%s6048_s0 + $0x294] sm:$0xf]  ;;  %v3319_v41 = vld [vmem:[%s6048_s0 + $0x2b4] sm:$0xf0]  ;;  %v3318_v56 = vor.u32 %v3933_v34, %v3317_v29 }
  0xd3   :  { %1888 = vmatmul.bf16.gmra.mxu0 %v3254_v42  ;;  %v3325_v42 = vld [vmem:[%s6048_s0 + $0x298] sm:$0xf]  ;;  %v3322_v63 = vor.u32 %v3929_v35, %v3319_v41 }
  0xd4   :  { %v4657_v44 = vpop.f32.mrf.mxu2 }
  0xd5   :  { %v4659_v45 = vpop.f32.mrf.mxu3 }
  0xd6   :  { %v4661_v46 = vpop.f32.mrf.mxu1 }
  0xd8   :  { %v4663_v47 = vpop.f32.mrf.mxu0 }
  0xdc   :  { %v4689_v0 = vpop.f32.mrf.mxu2 }
  0xdd   :  { %v4691_v1 = vpop.f32.mrf.mxu3 }
  0xde   :  { %v1587_v4 = vpop.f32.mrf.mxu1 }
  0xdf   :  { %v1588_v9 = vadd.f32 %v1587_v4, %v4511_v33 }
  0xe0   :  { %v1854_v11 = vpop.f32.mrf.mxu0 }
  0xe1   :  { %1626 = vmatmul.bf16.gmra.mxu1 %v3278_v2  ;;  %1715 = vmatmul.bf16.gmra.mxu2 %v3282_v3  ;;  %v3326_v2 = vor.u32 %v3934_v48, %v3325_v42 }
  0xe2   :  { %1804 = vmatmul.bf16.gmra.mxu3 %v3286_v5 }
  0xe3   :  { %1893 = vmatmul.bf16.gmra.mxu0 %v3290_v8 }
  0xe4   :  { %v1676_v15 = vpop.f32.mrf.mxu2 }
  0xe5   :  { %v1677_v20 = vadd.f32 %v1676_v15, %v1588_v9  ;;  %v1765_v21 = vpop.f32.mrf.mxu3 }
  0xe6   :  { %v1589_v22 = vpop.f32.mrf.mxu1 }
  0xe7   :  { %v1766_v33 = vadd.f32 %v1765_v21, %v1677_v20  ;;  %v1590_v23 = vadd.f32 %v1589_v22, %v4528_v40  ;;  %v3937_v22 = vld [vmem:[%s6048_s0 + $0x2d4] sm:$0xf] }
  0xe8   :  { %v1856_v24 = vpop.f32.mrf.mxu0 }
  0xe9   :  { %v4713_v40 = vadd.f32 %v1854_v11, %v1766_v33 }
  0xec   :  { %v1678_v49 = vpop.f32.mrf.mxu2 }
  0xed   :  { %v1679_v52 = vadd.f32 %v1678_v49, %v1590_v23  ;;  %v1767_v53 = vpop.f32.mrf.mxu3  ;;  %v3353_v23 = vld [vmem:[%s6048_s0 + $0x2d8] sm:$0xf]  ;;  %v3362_v49 = vor.u32 %v3943_v27, %v3361_v26 }
  0xee   :  { %v1592_v62 = vpop.f32.mrf.mxu1 }
  0xef   :  { %v1768_v3 = vadd.f32 %v1767_v53, %v1679_v52  ;;  %v1593_v4 = vadd.f32 %v1592_v62, %v4563_v57  ;;  %v3347_v57 = vld [vmem:[%s6048_s0 + $0x2f4] sm:$0xf0]  ;;  %v4040_v62 = vld [vmem:[%s6047_s1 + $0x188] sm:$0xff] }
  0xf0   :  { %v1859_v5 = vpop.f32.mrf.mxu0  ;;  %v3350_v35 = vor.u32 %v3937_v22, %v3347_v57  ;;  %2029 = vmatpush.bf16.msra.mxu2 %v4040_v62  ;;  %v3951_v22 = vld [vmem:[%s6048_s0 + $0x340] sm:$0xf0] }
  0xf1   :  { %1631 = vmatmul.bf16.gmra.mxu1 %v3314_v55  ;;  %1720 = vmatmul.bf16.gmra.mxu2 %v3318_v56  ;;  %v4734_v8 = vadd.f32 %v1856_v24, %v1768_v3  ;;  %v3942_v24 = vld [vmem:[%s6048_s0 + $0x2f8] sm:$0xf0]  ;;  %v3947_v57 = vld [vmem:[%s6048_s0 + $0x324] sm:$0xf] }
  0xf2   :  { %1809 = vmatmul.bf16.gmra.mxu3 %v3322_v63  ;;  %v3354_v41 = vor.u32 %v3942_v24, %v3353_v23  ;;  %v4048_v63 = vld [vmem:[%s6047_s1 + $0x1c8] sm:$0xff] }
  0xf3   :  { %1898 = vmatmul.bf16.gmra.mxu0 %v3326_v2  ;;  %2118 = vmatpush.bf16.msra.mxu3 %v4048_v63  ;;  %v3391_v23 = vld [vmem:[%s6048_s0 + $0x344] sm:$0xf0] }
  0xf4   :  { %v1681_v9 = vpop.f32.mrf.mxu2  ;;  %v3397_v24 = vld [vmem:[%s6048_s0 + $0x328] sm:$0xf] }
  0xf5   :  { %v1682_v11 = vadd.f32 %v1681_v9, %v1593_v4  ;;  %v1770_v12 = vpop.f32.mrf.mxu3 }
  0xf6   :  { %v1594_v14 = vpop.f32.mrf.mxu1 }
  0xf7   :  { %v1771_v15 = vadd.f32 %v1770_v12, %v1682_v11  ;;  %v1595_v20 = vadd.f32 %v1594_v14, %v4571_v61  ;;  %v3938_v61 = vld [vmem:[%s6048_s0 + $0x2dc] sm:$0xf]  ;;  %v4032_v12 = vld [vmem:[%s6047_s1 + $0x148] sm:$0xff] }
  0xf8   :  { %v1861_v21 = vpop.f32.mrf.mxu0  ;;  %v3358_v48 = vor.u32 %v3938_v61, %v3355_v25  ;;  %v4056_v14 = vld [vmem:[%s6047_s1 + $0x208] sm:$0xff]  ;;  %1940 = vmatpush.bf16.msra.mxu1 %v4032_v12  ;;  %v3427_v12 = vld [vmem:[%s6048_s0 + $0x38c] sm:$0xf0] }
  0xf9   :  { %v4743_v33 = vadd.f32 %v1859_v5, %v1771_v15  ;;  %v3946_v15 = vld [vmem:[%s6048_s0 + $0x31c] sm:$0xf]  ;;  %2207 = vmatpush.bf16.msra.mxu0 %v4056_v14  ;;  %v3952_v61 = vld [vmem:[%s6048_s0 + $0x348] sm:$0xf0]  ;;  %v3433_v14 = vld [vmem:[%s6048_s0 + $0x370] sm:$0xf] }
  0xfc   :  { %v1683_v28 = vpop.f32.mrf.mxu2 }
  0xfd   :  { %v1684_v29 = vadd.f32 %v1683_v28, %v1595_v20  ;;  %v1772_v34 = vpop.f32.mrf.mxu3  ;;  %v3383_v20 = vld [vmem:[%s6048_s0 + $0x33c] sm:$0xf0] }
  0xfe   :  { %v1597_v42 = vpop.f32.mrf.mxu1  ;;  %v3386_v28 = vor.u32 %v3946_v15, %v3383_v20  ;;  %v3961_v15 = vld [vmem:[%s6048_s0 + $0x390] sm:$0xf0] }
  0xff   :  { %v1773_v52 = vadd.f32 %v1772_v34, %v1684_v29  ;;  %v1598_v53 = vadd.f32 %v1597_v42, %v4603_v13 }
 0x100   :  { %v1864_v55 = vpop.f32.mrf.mxu0 }
 0x101   :  { %1636 = vmatmul.bf16.gmra.mxu1 %v3350_v35  ;;  %1725 = vmatmul.bf16.gmra.mxu2 %v3354_v41  ;;  %v4764_v56 = vadd.f32 %v1861_v21, %v1773_v52  ;;  %v3389_v21 = vld [vmem:[%s6048_s0 + $0x320] sm:$0xf]  ;;  %v3394_v35 = vor.u32 %v3947_v57, %v3391_v23  ;;  %v3398_v41 = vor.u32 %v3952_v61, %v3397_v24 }
 0x102   :  { %1814 = vmatmul.bf16.gmra.mxu3 %v3358_v48  ;;  %v3390_v29 = vor.u32 %v3951_v22, %v3389_v21 }
 0x103   :  { %1903 = vmatmul.bf16.gmra.mxu0 %v3362_v49 }
 0x104   :  { %v1686_v2 = vpop.f32.mrf.mxu2 }
 0x105   :  { %v1687_v3 = vadd.f32 %v1686_v2, %v1598_v53  ;;  %v1775_v13 = vpop.f32.mrf.mxu3 }
 0x106   :  { %v1599_v4 = vpop.f32.mrf.mxu1 }
 0x107   :  { %v1776_v5 = vadd.f32 %v1775_v13, %v1687_v3  ;;  %v1600_v9 = vadd.f32 %v1599_v4, %v4617_v19  ;;  %v3955_v4 = vld [vmem:[%s6048_s0 + $0x364] sm:$0xf] }
 0x108   :  { %v1866_v11 = vpop.f32.mrf.mxu0 }
 0x109   :  { %v4785_v19 = vadd.f32 %v1864_v55, %v1776_v5 }
 0x10c   :  { %v1688_v25 = vpop.f32.mrf.mxu2 }
 0x10d   :  { %v1689_v26 = vadd.f32 %v1688_v25, %v1600_v9  ;;  %v1777_v27 = vpop.f32.mrf.mxu3  ;;  %v3425_v9 = vld [vmem:[%s6048_s0 + $0x368] sm:$0xf]  ;;  %v3434_v25 = vor.u32 %v3961_v15, %v3433_v14 }
 0x10e   :  { %v1602_v34 = vpop.f32.mrf.mxu1 }
 0x10f   :  { %v1778_v42 = vadd.f32 %v1777_v27, %v1689_v26  ;;  %v1603_v48 = vadd.f32 %v1602_v34, %v4655_v43  ;;  %v3419_v43 = vld [vmem:[%s6048_s0 + $0x384] sm:$0xf0]  ;;  %v4047_v34 = vld [vmem:[%s6047_s1 + $0x1c0] sm:$0xff] }
 0x110   :  { %v1869_v49 = vpop.f32.mrf.mxu0  ;;  %v3422_v57 = vor.u32 %v3955_v4, %v3419_v43  ;;  %2119 = vmatpush.bf16.msra.mxu3 %v4047_v34  ;;  %v3969_v4 = vld [vmem:[%s6048_s0 + $0x3d0] sm:$0xf0] }
 0x111   :  { %1641 = vmatmul.bf16.gmra.mxu1 %v3386_v28  ;;  %1730 = vmatmul.bf16.gmra.mxu2 %v3390_v29  ;;  %v4806_v52 = vadd.f32 %v1866_v11, %v1778_v42  ;;  %v3960_v11 = vld [vmem:[%s6048_s0 + $0x388] sm:$0xf0]  ;;  %v4039_v29 = vld [vmem:[%s6047_s1 + $0x180] sm:$0xff]  ;;  %v3965_v43 = vld [vmem:[%s6048_s0 + $0x3b4] sm:$0xf] }
 0x112   :  { %1819 = vmatmul.bf16.gmra.mxu3 %v3394_v35  ;;  %v3426_v23 = vor.u32 %v3960_v11, %v3425_v9  ;;  %2030 = vmatpush.bf16.msra.mxu2 %v4039_v29  ;;  %v3463_v11 = vld [vmem:[%s6048_s0 + $0x3d4] sm:$0xf0] }
 0x113   :  { %1908 = vmatmul.bf16.gmra.mxu0 %v3398_v41 }
 0x114   :  { %v1691_v53 = vpop.f32.mrf.mxu2 }
 0x115   :  { %v1692_v55 = vadd.f32 %v1691_v53, %v1603_v48  ;;  %v1780_v62 = vpop.f32.mrf.mxu3 }
 0x116   :  { %v1604_v63 = vpop.f32.mrf.mxu1 }
 0x117   :  { %v1781_v2 = vadd.f32 %v1780_v62, %v1692_v55  ;;  %v1605_v3 = vadd.f32 %v1604_v63, %v4663_v47  ;;  %v3956_v47 = vld [vmem:[%s6048_s0 + $0x36c] sm:$0xf]  ;;  %v4031_v62 = vld [vmem:[%s6047_s1 + $0x140] sm:$0xff] }
 0x118   :  { %v1871_v13 = vpop.f32.mrf.mxu0  ;;  %v3430_v61 = vor.u32 %v3956_v47, %v3427_v12  ;;  %v4055_v63 = vld [vmem:[%s6047_s1 + $0x200] sm:$0xff]  ;;  %1941 = vmatpush.bf16.msra.mxu1 %v4031_v62  ;;  %v3469_v47 = vld [vmem:[%s6048_s0 + $0x3b8] sm:$0xf]  ;;  %v3970_v12 = vld [vmem:[%s6048_s0 + $0x3d8] sm:$0xf0] }
 0x119   :  { %v4815_v5 = vadd.f32 %v1869_v49, %v1781_v2  ;;  %v3455_v2 = vld [vmem:[%s6048_s0 + $0x3cc] sm:$0xf0]  ;;  %2208 = vmatpush.bf16.msra.mxu0 %v4055_v63  ;;  %v3974_v62 = vld [vmem:[%s6048_s0 + $0x3fc] sm:$0xf] }
 0x11c   :  { %v1693_v20 = vpop.f32.mrf.mxu2 }
 0x11d   :  { %v1694_v21 = vadd.f32 %v1693_v20, %v1605_v3  ;;  %v1782_v22 = vpop.f32.mrf.mxu3 }
 0x11e   :  { %v1607_v24 = vpop.f32.mrf.mxu1 }
 0x11f   :  { %v1783_v26 = vadd.f32 %v1782_v22, %v1694_v21  ;;  %v1608_v35 = vadd.f32 %v1607_v24, %v4509_v30  ;;  %v3964_v30 = vld [vmem:[%s6048_s0 + $0x3ac] sm:$0xf] }
 0x120   :  { %v1874_v27 = vpop.f32.mrf.mxu0  ;;  %v3458_v21 = vor.u32 %v3964_v30, %v3455_v2  ;;  %v3499_v30 = vld [vmem:[%s6048_s0 + $0x41c] sm:$0xf0] }
 0x121   :  { %1646 = vmatmul.bf16.gmra.mxu1 %v3422_v57  ;;  %1735 = vmatmul.bf16.gmra.mxu2 %v3426_v23  ;;  %v4835_v28 = vadd.f32 %v1871_v13, %v1783_v26  ;;  %v3461_v13 = vld [vmem:[%s6048_s0 + $0x3b0] sm:$0xf]  ;;  %v3466_v23 = vor.u32 %v3965_v43, %v3463_v11  ;;  %v3505_v2 = vld [vmem:[%s6048_s0 + $0x400] sm:$0xf] }
 0x122   :  { %1824 = vmatmul.bf16.gmra.mxu3 %v3430_v61  ;;  %v3462_v22 = vor.u32 %v3969_v4, %v3461_v13  ;;  %v3979_v13 = vld [vmem:[%s6048_s0 + $0x420] sm:$0xf0] }
 0x123   :  { %1913 = vmatmul.bf16.gmra.mxu0 %v3434_v25 }
 0x124   :  { %v1696_v41 = vpop.f32.mrf.mxu2 }
 0x125   :  { %v1697_v42 = vadd.f32 %v1696_v41, %v1608_v35  ;;  %v1785_v48 = vpop.f32.mrf.mxu3 }
 0x126   :  { %v1609_v49 = vpop.f32.mrf.mxu1 }
 0x127   :  { %v1786_v53 = vadd.f32 %v1785_v48, %v1697_v42  ;;  %v1610_v9 = vadd.f32 %v1609_v49, %v4526_v39  ;;  %v3470_v39 = vor.u32 %v3970_v12, %v3469_v47  ;;  %v3973_v48 = vld [vmem:[%s6048_s0 + $0x3f4] sm:$0xf]  ;;  %v3491_v49 = vld [vmem:[%s6048_s0 + $0x414] sm:$0xf0] }
 0x128   :  { %v1876_v55 = vpop.f32.mrf.mxu0  ;;  %v3494_v11 = vor.u32 %v3973_v48, %v3491_v49  ;;  %v3535_v48 = vld [vmem:[%s6048_s0 + $0x464] sm:$0xf0] }
 0x129   :  { %v4856_v3 = vadd.f32 %v1874_v27, %v1786_v53  ;;  %v3541_v49 = vld [vmem:[%s6048_s0 + $0x448] sm:$0xf] }
 0x12c   :  { %v1698_v14 = vpop.f32.mrf.mxu2 }
 0x12d   :  { %v1699_v15 = vadd.f32 %v1698_v14, %v1610_v9  ;;  %v1787_v20 = vpop.f32.mrf.mxu3  ;;  %v3502_v14 = vor.u32 %v3974_v62, %v3499_v30 }
 0x12e   :  { %v1612_v57 = vpop.f32.mrf.mxu1 }
 0x12f   :  { %v1788_v24 = vadd.f32 %v1787_v20, %v1699_v15  ;;  %v1613_v26 = vadd.f32 %v1612_v57, %v4561_v54  ;;  %v3497_v54 = vld [vmem:[%s6048_s0 + $0x3f8] sm:$0xf] }
 0x130   :  { %v1879_v61 = vpop.f32.mrf.mxu0 }
 0x131   :  { %1651 = vmatmul.bf16.gmra.mxu1 %v3458_v21  ;;  %1740 = vmatmul.bf16.gmra.mxu2 %v3462_v22  ;;  %v4877_v25 = vadd.f32 %v1876_v55, %v1788_v24  ;;  %v3978_v55 = vld [vmem:[%s6048_s0 + $0x418] sm:$0xf0] }
 0x132   :  { %1829 = vmatmul.bf16.gmra.mxu3 %v3466_v23  ;;  %v3498_v47 = vor.u32 %v3978_v55, %v3497_v54  ;;  %v3988_v54 = vld [vmem:[%s6048_s0 + $0x468] sm:$0xf0] }
 0x133   :  { %1918 = vmatmul.bf16.gmra.mxu0 %v3470_v39 }
 0x134   :  { %v1701_v27 = vpop.f32.mrf.mxu2 }
 0x135   :  { %v1702_v29 = vadd.f32 %v1701_v27, %v1613_v26  ;;  %v1790_v34 = vpop.f32.mrf.mxu3  ;;  %v3982_v27 = vld [vmem:[%s6048_s0 + $0x43c] sm:$0xf] }
 0x136   :  { %v1614_v35 = vpop.f32.mrf.mxu1 }
 0x137   :  { %v1791_v41 = vadd.f32 %v1790_v34, %v1702_v29  ;;  %v1615_v63 = vadd.f32 %v1614_v35, %v4569_v60  ;;  %v3506_v60 = vor.u32 %v3979_v13, %v3505_v2  ;;  %v3527_v29 = vld [vmem:[%s6048_s0 + $0x45c] sm:$0xf0]  ;;  %v3987_v35 = vld [vmem:[%s6048_s0 + $0x460] sm:$0xf0] }
 0x138   :  { %v1881_v42 = vpop.f32.mrf.mxu0  ;;  %v3530_v30 = vor.u32 %v3982_v27, %v3527_v29  ;;  %v3011_v27 = vld [vmem:[%s6048_s0 + $0x3c] sm:$0xf0] }
 0x139   :  { %v4886_v53 = vadd.f32 %v1879_v61, %v1791_v41  ;;  %v3983_v41 = vld [vmem:[%s6048_s0 + $0x444] sm:$0xf]  ;;  %v3017_v29 = vld [vmem:[%s6048_s0 + $0x20] sm:$0xf] }
 0x13c   :  { %v1703_v4 = vpop.f32.mrf.mxu2 }
 0x13d   :  { %v1704_v43 = vadd.f32 %v1703_v4, %v1615_v63  ;;  %v1792_v9 = vpop.f32.mrf.mxu3  ;;  %v3538_v4 = vor.u32 %v3983_v41, %v3535_v48 }
 0x13e   :  { %v1617_v12 = vpop.f32.mrf.mxu1 }
 0x13f   :  { %v1793_v15 = vadd.f32 %v1792_v9, %v1704_v43  ;;  %v1618_v22 = vadd.f32 %v1617_v12, %v4601_v10  ;;  %v3533_v10 = vld [vmem:[%s6048_s0 + $0x440] sm:$0xf] }
 0x140   :  { %v1884_v20 = vpop.f32.mrf.mxu0  ;;  %v3534_v2 = vor.u32 %v3987_v35, %v3533_v10  ;;  %v3855_v10 = vld [vmem:[%s6048_s0 + $0x40] sm:$0xf0] }
 0x141   :  { %1656 = vmatmul.bf16.gmra.mxu1 %v3494_v11  ;;  %1745 = vmatmul.bf16.gmra.mxu2 %v3498_v47  ;;  %v4907_v21 = vadd.f32 %v1881_v42, %v1793_v15 }
 0x142   :  { %1834 = vmatmul.bf16.gmra.mxu3 %v3502_v14 }
 0x143   :  { %1923 = vmatmul.bf16.gmra.mxu0 %v3506_v60 }
 0x144   :  { %v1706_v57 = vpop.f32.mrf.mxu2 }
 0x145   :  { %v1707_v23 = vadd.f32 %v1706_v57, %v1618_v22  ;;  %v1795_v39 = vpop.f32.mrf.mxu3  ;;  %v3849_v57 = vld [vmem:[%s6048_s0 + $0x14] sm:$0xf] }
 0x146   :  { %v1619_v24 = vpop.f32.mrf.mxu1 }
 0x147   :  { %v1796_v61 = vadd.f32 %v1795_v39, %v1707_v23  ;;  %v1620_v42 = vadd.f32 %v1619_v24, %v4615_v18  ;;  %v3542_v18 = vor.u32 %v3988_v54, %v3541_v49  ;;  %v3003_v23 = vld [vmem:[%s6048_s0 + $0x34] sm:$0xf0]  ;;  %v3854_v24 = vld [vmem:[%s6048_s0 + $0x38] sm:$0xf0] }
 0x148   :  { %v1886_v26 = vpop.f32.mrf.mxu0  ;;  %v3006_v48 = vor.u32 %v3849_v57, %v3003_v23  ;;  %v3047_v57 = vld [vmem:[%s6048_s0 + $0x84] sm:$0xf0] }
 0x149   :  { %v4916_v34 = vadd.f32 %v1884_v20, %v1796_v61  ;;  %v3850_v61 = vld [vmem:[%s6048_s0 + $0x1c] sm:$0xf]  ;;  %v3053_v23 = vld [vmem:[%s6048_s0 + $0x68] sm:$0xf] }
 0x14c   :  { %v1708_v55 = vpop.f32.mrf.mxu2 }
 0x14d   :  { %v1709_v62 = vadd.f32 %v1708_v55, %v1620_v42  ;;  %v1797_v63 = vpop.f32.mrf.mxu3  ;;  %v3014_v55 = vor.u32 %v3850_v61, %v3011_v27 }
 0x14e   :  { %v1622_v13 = vpop.f32.mrf.mxu1 }
 0x14f   :  { %v1798_v43 = vadd.f32 %v1797_v63, %v1709_v62  ;;  %v1623_v47 = vadd.f32 %v1622_v13, %v4653_v38  ;;  %v3009_v38 = vld [vmem:[%s6048_s0 + $0x18] sm:$0xf] }
 0x150   :  { %v1889_v9 = vpop.f32.mrf.mxu0  ;;  %v3010_v49 = vor.u32 %v3854_v24, %v3009_v38  ;;  %v3864_v38 = vld [vmem:[%s6048_s0 + $0x88] sm:$0xf0] }
 0x151   :  { %1661 = vmatmul.bf16.gmra.mxu1 %v3530_v30  ;;  %1750 = vmatmul.bf16.gmra.mxu2 %v3534_v2  ;;  %v4937_v11 = vadd.f32 %v1886_v26, %v1798_v43 }
 0x152   :  { %1839 = vmatmul.bf16.gmra.mxu3 %v3538_v4 }
 0x153   :  { %1928 = vmatmul.bf16.gmra.mxu0 %v3542_v18 }
 0x154   :  { %v1711_v12 = vpop.f32.mrf.mxu2 }
 0x155   :  { %v1712_v14 = vadd.f32 %v1711_v12, %v1623_v47  ;;  %v1800_v60 = vpop.f32.mrf.mxu3  ;;  %v3858_v12 = vld [vmem:[%s6048_s0 + $0x5c] sm:$0xf] }
 0x156   :  { %v1624_v15 = vpop.f32.mrf.mxu1 }
 0x157   :  { %v1801_v20 = vadd.f32 %v1800_v60, %v1712_v14  ;;  %v1625_v26 = vadd.f32 %v1624_v15, %v4661_v46  ;;  %v3018_v46 = vor.u32 %v3855_v10, %v3017_v29  ;;  %v3039_v14 = vld [vmem:[%s6048_s0 + $0x7c] sm:$0xf0]  ;;  %v3863_v15 = vld [vmem:[%s6048_s0 + $0x80] sm:$0xf0] }
 0x158   :  { %v1891_v22 = vpop.f32.mrf.mxu0  ;;  %v3042_v27 = vor.u32 %v3858_v12, %v3039_v14  ;;  %v3083_v12 = vld [vmem:[%s6048_s0 + $0xcc] sm:$0xf0] }
 0x159   :  { %v4946_v39 = vadd.f32 %v1889_v9, %v1801_v20  ;;  %v3859_v20 = vld [vmem:[%s6048_s0 + $0x64] sm:$0xf]  ;;  %v3089_v14 = vld [vmem:[%s6048_s0 + $0xb0] sm:$0xf] }
 0x15c   :  { %v1713_v35 = vpop.f32.mrf.mxu2 }
 0x15d   :  { %v1714_v41 = vadd.f32 %v1713_v35, %v1625_v26  ;;  %v1802_v42 = vpop.f32.mrf.mxu3  ;;  %v3050_v35 = vor.u32 %v3859_v20, %v3047_v57 }
 0x15e   :  { %v1627_v54 = vpop.f32.mrf.mxu1 }
 0x15f   :  { %v1803_v62 = vadd.f32 %v1802_v42, %v1714_v41  ;;  %v1628_v2 = vadd.f32 %v1627_v54, %v4519_v36  ;;  %v3045_v36 = vld [vmem:[%s6048_s0 + $0x60] sm:$0xf] }
 0x160   :  { %v1894_v63 = vpop.f32.mrf.mxu0  ;;  %v3046_v29 = vor.u32 %v3863_v15, %v3045_v36  ;;  %v3873_v36 = vld [vmem:[%s6048_s0 + $0xd0] sm:$0xf0] }
 0x161   :  { %1942 = vmatmul.bf16.vlgmr.msra.gmra.mxu1 %v3006_v48  ;;  %2031 = vmatmul.bf16.vlgmr.msra.gmra.mxu2 %v3010_v49  ;;  %v4967_v30 = vadd.f32 %v1891_v22, %v1803_v62 }
 0x162   :  { %2120 = vmatmul.bf16.vlgmr.msra.gmra.mxu3 %v3014_v55 }
 0x163   :  { %2209 = vmatmul.bf16.vlgmr.msra.gmra.mxu0 %v3018_v46 }
 0x164   :  { %v1716_v13 = vpop.f32.mrf.mxu2 }
 0x165   :  { %v1717_v4 = vadd.f32 %v1716_v13, %v1628_v2  ;;  %v1805_v18 = vpop.f32.mrf.mxu3  ;;  %v3867_v13 = vld [vmem:[%s6048_s0 + $0xa4] sm:$0xf] }
 0x166   :  { %v1629_v43 = vpop.f32.mrf.mxu1 }
 0x167   :  { %v1806_v9 = vadd.f32 %v1805_v18, %v1717_v4  ;;  %v1630_v22 = vadd.f32 %v1629_v43, %v4557_v50  ;;  %v3054_v50 = vor.u32 %v3864_v38, %v3053_v23  ;;  %v3075_v4 = vld [vmem:[%s6048_s0 + $0xc4] sm:$0xf0]  ;;  %v3872_v43 = vld [vmem:[%s6048_s0 + $0xc8] sm:$0xf0] }
 0x168   :  { %v1896_v47 = vpop.f32.mrf.mxu0  ;;  %v3078_v57 = vor.u32 %v3867_v13, %v3075_v4  ;;  %v3119_v13 = vld [vmem:[%s6048_s0 + $0x114] sm:$0xf0] }
 0x169   :  { %v4976_v60 = vadd.f32 %v1894_v63, %v1806_v9  ;;  %v3868_v9 = vld [vmem:[%s6048_s0 + $0xac] sm:$0xf]  ;;  %v3125_v4 = vld [vmem:[%s6048_s0 + $0xf8] sm:$0xf] }
 0x16c   :  { %v1718_v24 = vpop.f32.mrf.mxu2 }
 0x16d   :  { %v1719_v61 = vadd.f32 %v1718_v24, %v1630_v22  ;;  %v1807_v26 = vpop.f32.mrf.mxu3  ;;  %v3086_v24 = vor.u32 %v3868_v9, %v3083_v12 }
 0x16e   :  { %v1632_v10 = vpop.f32.mrf.mxu1 }
 0x16f   :  { %v1808_v41 = vadd.f32 %v1807_v26, %v1719_v61  ;;  %v1633_v49 = vadd.f32 %v1632_v10, %v4565_v58  ;;  %v3081_v58 = vld [vmem:[%s6048_s0 + $0xa8] sm:$0xf] }
 0x170   :  { %v1899_v42 = vpop.f32.mrf.mxu0  ;;  %v3082_v23 = vor.u32 %v3872_v43, %v3081_v58  ;;  %v3882_v58 = vld [vmem:[%s6048_s0 + $0x118] sm:$0xf0] }
 0x171   :  { %1947 = vmatmul.bf16.gmra.mxu1 %v3042_v27  ;;  %2036 = vmatmul.bf16.gmra.mxu2 %v3046_v29  ;;  %v4997_v48 = vadd.f32 %v1896_v47, %v1808_v41 }
 0x172   :  { %2125 = vmatmul.bf16.gmra.mxu3 %v3050_v35 }
 0x173   :  { %2214 = vmatmul.bf16.gmra.mxu0 %v3054_v50 }
 0x174   :  { %v1721_v54 = vpop.f32.mrf.mxu2 }
 0x175   :  { %v1722_v55 = vadd.f32 %v1721_v54, %v1633_v49  ;;  %v1810_v46 = vpop.f32.mrf.mxu3  ;;  %v3876_v54 = vld [vmem:[%s6048_s0 + $0xec] sm:$0xf] }
 0x176   :  { %v1634_v62 = vpop.f32.mrf.mxu1 }
 0x177   :  { %v1811_v63 = vadd.f32 %v1810_v46, %v1722_v55  ;;  %v1635_v47 = vadd.f32 %v1634_v62, %v4597_v6  ;;  %v3090_v6 = vor.u32 %v3873_v36, %v3089_v14  ;;  %v3111_v55 = vld [vmem:[%s6048_s0 + $0x10c] sm:$0xf0]  ;;  %v3881_v62 = vld [vmem:[%s6048_s0 + $0x110] sm:$0xf0] }
 0x178   :  { %v1901_v2 = vpop.f32.mrf.mxu0  ;;  %v3114_v12 = vor.u32 %v3876_v54, %v3111_v55  ;;  %v3155_v54 = vld [vmem:[%s6048_s0 + $0x15c] sm:$0xf0] }
 0x179   :  { %v5006_v18 = vadd.f32 %v1899_v42, %v1811_v63  ;;  %v3877_v63 = vld [vmem:[%s6048_s0 + $0xf4] sm:$0xf]  ;;  %v3161_v55 = vld [vmem:[%s6048_s0 + $0x140] sm:$0xf] }
 0x17c   :  { %v1723_v15 = vpop.f32.mrf.mxu2 }
 0x17d   :  { %v1724_v20 = vadd.f32 %v1723_v15, %v1635_v47  ;;  %v1812_v22 = vpop.f32.mrf.mxu3  ;;  %v3122_v15 = vor.u32 %v3877_v63, %v3119_v13 }
 0x17e   :  { %v1637_v38 = vpop.f32.mrf.mxu1 }
 0x17f   :  { %v1813_v61 = vadd.f32 %v1812_v22, %v1724_v20  ;;  %v1638_v29 = vadd.f32 %v1637_v38, %v4611_v16  ;;  %v3117_v16 = vld [vmem:[%s6048_s0 + $0xf0] sm:$0xf] }
 0x180   :  { %v1904_v26 = vpop.f32.mrf.mxu0  ;;  %v3118_v14 = vor.u32 %v3881_v62, %v3117_v16  ;;  %v3891_v16 = vld [vmem:[%s6048_s0 + $0x160] sm:$0xf0] }
 0x181   :  { %1952 = vmatmul.bf16.gmra.mxu1 %v3078_v57  ;;  %2041 = vmatmul.bf16.gmra.mxu2 %v3082_v23  ;;  %v5027_v27 = vadd.f32 %v1901_v2, %v1813_v61 }
 0x182   :  { %2130 = vmatmul.bf16.gmra.mxu3 %v3086_v24 }
 0x183   :  { %2219 = vmatmul.bf16.gmra.mxu0 %v3090_v6 }
 0x184   :  { %v1726_v10 = vpop.f32.mrf.mxu2 }
 0x185   :  { %v1727_v35 = vadd.f32 %v1726_v10, %v1638_v29  ;;  %v1815_v50 = vpop.f32.mrf.mxu3  ;;  %v3885_v10 = vld [vmem:[%s6048_s0 + $0x134] sm:$0xf] }
 0x186   :  { %v1639_v41 = vpop.f32.mrf.mxu1 }
 0x187   :  { %v1816_v42 = vadd.f32 %v1815_v50, %v1727_v35  ;;  %v1640_v2 = vadd.f32 %v1639_v41, %v4649_v31  ;;  %v3126_v31 = vor.u32 %v3882_v58, %v3125_v4  ;;  %v3147_v35 = vld [vmem:[%s6048_s0 + $0x154] sm:$0xf0]  ;;  %v3890_v41 = vld [vmem:[%s6048_s0 + $0x158] sm:$0xf0] }
 0x188   :  { %v1906_v49 = vpop.f32.mrf.mxu0  ;;  %v3150_v13 = vor.u32 %v3885_v10, %v3147_v35  ;;  %v3191_v10 = vld [vmem:[%s6048_s0 + $0x1a4] sm:$0xf0] }
 0x189   :  { %v5036_v46 = vadd.f32 %v1904_v26, %v1816_v42  ;;  %v3886_v42 = vld [vmem:[%s6048_s0 + $0x13c] sm:$0xf]  ;;  %v3197_v35 = vld [vmem:[%s6048_s0 + $0x188] sm:$0xf] }
 0x18c   :  { %v1728_v43 = vpop.f32.mrf.mxu2 }
 0x18d   :  { %v1729_v9 = vadd.f32 %v1728_v43, %v1640_v2  ;;  %v1817_v47 = vpop.f32.mrf.mxu3  ;;  %v3158_v43 = vor.u32 %v3886_v42, %v3155_v54 }
 0x18e   :  { %v1642_v36 = vpop.f32.mrf.mxu1 }
 0x18f   :  { %v1818_v20 = vadd.f32 %v1817_v47, %v1729_v9  ;;  %v1643_v23 = vadd.f32 %v1642_v36, %v4657_v44  ;;  %v3153_v44 = vld [vmem:[%s6048_s0 + $0x138] sm:$0xf] }
 0x190   :  { %v1909_v22 = vpop.f32.mrf.mxu0  ;;  %v3154_v4 = vor.u32 %v3890_v41, %v3153_v44  ;;  %v3900_v44 = vld [vmem:[%s6048_s0 + $0x1a8] sm:$0xf0] }
 0x191   :  { %1957 = vmatmul.bf16.gmra.mxu1 %v3114_v12  ;;  %2046 = vmatmul.bf16.gmra.mxu2 %v3118_v14  ;;  %v5057_v57 = vadd.f32 %v1906_v49, %v1818_v20 }
 0x192   :  { %2135 = vmatmul.bf16.gmra.mxu3 %v3122_v15 }
 0x193   :  { %2224 = vmatmul.bf16.gmra.mxu0 %v3126_v31 }
 0x194   :  { %v1731_v38 = vpop.f32.mrf.mxu2 }
 0x195   :  { %v1732_v24 = vadd.f32 %v1731_v38, %v1643_v23  ;;  %v1820_v6 = vpop.f32.mrf.mxu3  ;;  %v3894_v38 = vld [vmem:[%s6048_s0 + $0x17c] sm:$0xf] }
 0x196   :  { %v1644_v61 = vpop.f32.mrf.mxu1 }
 0x197   :  { %v1821_v26 = vadd.f32 %v1820_v6, %v1732_v24  ;;  %v1645_v49 = vadd.f32 %v1644_v61, %v4689_v0  ;;  %v3162_v0 = vor.u32 %v3891_v16, %v3161_v55  ;;  %v3183_v24 = vld [vmem:[%s6048_s0 + $0x19c] sm:$0xf0]  ;;  %v3899_v61 = vld [vmem:[%s6048_s0 + $0x1a0] sm:$0xf0] }
 0x198   :  { %v1911_v29 = vpop.f32.mrf.mxu0  ;;  %v3186_v54 = vor.u32 %v3894_v38, %v3183_v24  ;;  %v3227_v38 = vld [vmem:[%s6048_s0 + $0x1ec] sm:$0xf0] }
 0x199   :  { %v5066_v50 = vadd.f32 %v1909_v22, %v1821_v26  ;;  %v3895_v26 = vld [vmem:[%s6048_s0 + $0x184] sm:$0xf]  ;;  %v3233_v24 = vld [vmem:[%s6048_s0 + $0x1d0] sm:$0xf] }
 0x19c   :  { %v1733_v62 = vpop.f32.mrf.mxu2 }
 0x19d   :  { %v1734_v63 = vadd.f32 %v1733_v62, %v1645_v49  ;;  %v1822_v2 = vpop.f32.mrf.mxu3  ;;  %v3194_v62 = vor.u32 %v3895_v26, %v3191_v10 }
 0x19e   :  { %v1647_v58 = vpop.f32.mrf.mxu1 }
 0x19f   :  { %v1823_v9 = vadd.f32 %v1822_v2, %v1734_v63  ;;  %v1648_v14 = vadd.f32 %v1647_v58, %v4521_v37  ;;  %v3189_v37 = vld [vmem:[%s6048_s0 + $0x180] sm:$0xf] }
 0x1a0   :  { %v1914_v47 = vpop.f32.mrf.mxu0  ;;  %v3190_v55 = vor.u32 %v3899_v61, %v3189_v37  ;;  %v3909_v37 = vld [vmem:[%s6048_s0 + $0x1f0] sm:$0xf0] }
 0x1a1   :  { %1962 = vmatmul.bf16.gmra.mxu1 %v3150_v13  ;;  %2051 = vmatmul.bf16.gmra.mxu2 %v3154_v4  ;;  %v5087_v12 = vadd.f32 %v1911_v29, %v1823_v9 }
 0x1a2   :  { %2140 = vmatmul.bf16.gmra.mxu3 %v3158_v43 }
 0x1a3   :  { %2229 = vmatmul.bf16.gmra.mxu0 %v3162_v0 }
 0x1a4   :  { %v1736_v36 = vpop.f32.mrf.mxu2 }
 0x1a5   :  { %v1737_v15 = vadd.f32 %v1736_v36, %v1648_v14  ;;  %v1825_v31 = vpop.f32.mrf.mxu3  ;;  %v3903_v36 = vld [vmem:[%s6048_s0 + $0x1c4] sm:$0xf] }
 0x1a6   :  { %v1649_v20 = vpop.f32.mrf.mxu1 }
 0x1a7   :  { %v1826_v22 = vadd.f32 %v1825_v31, %v1737_v15  ;;  %v1650_v29 = vadd.f32 %v1649_v20, %v4559_v51  ;;  %v3198_v51 = vor.u32 %v3900_v44, %v3197_v35  ;;  %v3219_v15 = vld [vmem:[%s6048_s0 + $0x1e4] sm:$0xf0]  ;;  %v3908_v20 = vld [vmem:[%s6048_s0 + $0x1e8] sm:$0xf0] }
 0x1a8   :  { %v1916_v23 = vpop.f32.mrf.mxu0  ;;  %v3222_v10 = vor.u32 %v3903_v36, %v3219_v15  ;;  %v3263_v36 = vld [vmem:[%s6048_s0 + $0x234] sm:$0xf0] }
 0x1a9   :  { %v5096_v6 = vadd.f32 %v1914_v47, %v1826_v22  ;;  %v3904_v22 = vld [vmem:[%s6048_s0 + $0x1cc] sm:$0xf]  ;;  %v3269_v15 = vld [vmem:[%s6048_s0 + $0x218] sm:$0xf] }
 0x1ac   :  { %v1738_v41 = vpop.f32.mrf.mxu2 }
 0x1ad   :  { %v1739_v42 = vadd.f32 %v1738_v41, %v1650_v29  ;;  %v1827_v49 = vpop.f32.mrf.mxu3  ;;  %v3230_v41 = vor.u32 %v3904_v22, %v3227_v38 }
 0x1ae   :  { %v1652_v16 = vpop.f32.mrf.mxu1 }
 0x1af   :  { %v1828_v63 = vadd.f32 %v1827_v49, %v1739_v42  ;;  %v1653_v4 = vadd.f32 %v1652_v16, %v4567_v59  ;;  %v3225_v59 = vld [vmem:[%s6048_s0 + $0x1c8] sm:$0xf] }
 0x1b0   :  { %v1919_v2 = vpop.f32.mrf.mxu0  ;;  %v3226_v35 = vor.u32 %v3908_v20, %v3225_v59  ;;  %v3918_v59 = vld [vmem:[%s6048_s0 + $0x238] sm:$0xf0] }
 0x1b1   :  { %1967 = vmatmul.bf16.gmra.mxu1 %v3186_v54  ;;  %2056 = vmatmul.bf16.gmra.mxu2 %v3190_v55  ;;  %v5117_v13 = vadd.f32 %v1916_v23, %v1828_v63 }
 0x1b2   :  { %2145 = vmatmul.bf16.gmra.mxu3 %v3194_v62 }
 0x1b3   :  { %2234 = vmatmul.bf16.gmra.mxu0 %v3198_v51 }
 0x1b4   :  { %v1741_v58 = vpop.f32.mrf.mxu2 }
 0x1b5   :  { %v1742_v43 = vadd.f32 %v1741_v58, %v1653_v4  ;;  %v1830_v0 = vpop.f32.mrf.mxu3  ;;  %v3912_v58 = vld [vmem:[%s6048_s0 + $0x20c] sm:$0xf] }
 0x1b6   :  { %v1654_v9 = vpop.f32.mrf.mxu1 }
 0x1b7   :  { %v1831_v47 = vadd.f32 %v1830_v0, %v1742_v43  ;;  %v1655_v23 = vadd.f32 %v1654_v9, %v4599_v7  ;;  %v3234_v7 = vor.u32 %v3909_v37, %v3233_v24  ;;  %v3255_v43 = vld [vmem:[%s6048_s0 + $0x22c] sm:$0xf0]  ;;  %v3917_v9 = vld [vmem:[%s6048_s0 + $0x230] sm:$0xf0] }
 0x1b8   :  { %v1921_v14 = vpop.f32.mrf.mxu0  ;;  %v3258_v38 = vor.u32 %v3912_v58, %v3255_v43  ;;  %v3299_v58 = vld [vmem:[%s6048_s0 + $0x27c] sm:$0xf0] }
 0x1b9   :  { %v5126_v31 = vadd.f32 %v1919_v2, %v1831_v47  ;;  %v3913_v47 = vld [vmem:[%s6048_s0 + $0x214] sm:$0xf]  ;;  %v3305_v43 = vld [vmem:[%s6048_s0 + $0x260] sm:$0xf] }
 0x1bc   :  { %v1743_v61 = vpop.f32.mrf.mxu2 }
 0x1bd   :  { %v1744_v26 = vadd.f32 %v1743_v61, %v1655_v23  ;;  %v1832_v29 = vpop.f32.mrf.mxu3  ;;  %v3266_v61 = vor.u32 %v3913_v47, %v3263_v36 }
 0x1be   :  { %v1657_v44 = vpop.f32.mrf.mxu1 }
 0x1bf   :  { %v1833_v42 = vadd.f32 %v1832_v29, %v1744_v26  ;;  %v1658_v55 = vadd.f32 %v1657_v44, %v4613_v17  ;;  %v3261_v17 = vld [vmem:[%s6048_s0 + $0x210] sm:$0xf] }
 0x1c0   :  { %v1924_v49 = vpop.f32.mrf.mxu0  ;;  %v3262_v24 = vor.u32 %v3917_v9, %v3261_v17  ;;  %v3927_v17 = vld [vmem:[%s6048_s0 + $0x280] sm:$0xf0] }
 0x1c1   :  { %1972 = vmatmul.bf16.gmra.mxu1 %v3222_v10  ;;  %2061 = vmatmul.bf16.gmra.mxu2 %v3226_v35  ;;  %v5147_v54 = vadd.f32 %v1921_v14, %v1833_v42 }
 0x1c2   :  { %2150 = vmatmul.bf16.gmra.mxu3 %v3230_v41 }
 0x1c3   :  { %2239 = vmatmul.bf16.gmra.mxu0 %v3234_v7 }
 0x1c4   :  { %v1746_v16 = vpop.f32.mrf.mxu2 }
 0x1c5   :  { %v1747_v62 = vadd.f32 %v1746_v16, %v1658_v55  ;;  %v1835_v51 = vpop.f32.mrf.mxu3  ;;  %v3921_v16 = vld [vmem:[%s6048_s0 + $0x254] sm:$0xf] }
 0x1c6   :  { %v1659_v63 = vpop.f32.mrf.mxu1 }
 0x1c7   :  { %v1836_v2 = vadd.f32 %v1835_v51, %v1747_v62  ;;  %v1660_v14 = vadd.f32 %v1659_v63, %v4651_v32  ;;  %v3270_v32 = vor.u32 %v3918_v59, %v3269_v15  ;;  %v3291_v62 = vld [vmem:[%s6048_s0 + $0x274] sm:$0xf0]  ;;  %v3926_v63 = vld [vmem:[%s6048_s0 + $0x278] sm:$0xf0] }
 0x1c8   :  { %v1926_v4 = vpop.f32.mrf.mxu0  ;;  %v3294_v36 = vor.u32 %v3921_v16, %v3291_v62 }
 0x1c9   :  { %v5156_v0 = vadd.f32 %v1924_v49, %v1836_v2  ;;  %v3922_v2 = vld [vmem:[%s6048_s0 + $0x25c] sm:$0xf] }
 0x1cc   :  { %v1748_v20 = vpop.f32.mrf.mxu2 }
 0x1cd   :  { %v1749_v22 = vadd.f32 %v1748_v20, %v1660_v14  ;;  %v1837_v23 = vpop.f32.mrf.mxu3  ;;  %v3302_v20 = vor.u32 %v3922_v2, %v3299_v58  ;;  %v3936_v2 = vld [vmem:[%s6048_s0 + $0x2c8] sm:$0xf0] }
 0x1ce   :  { %v1662_v37 = vpop.f32.mrf.mxu1 }
 0x1cf   :  { %v1838_v26 = vadd.f32 %v1837_v23, %v1749_v22  ;;  %v1663_v35 = vadd.f32 %v1662_v37, %v4659_v45  ;;  %v3297_v45 = vld [vmem:[%s6048_s0 + $0x258] sm:$0xf] }
 0x1d0   :  { %v1929_v29 = vpop.f32.mrf.mxu0  ;;  %v3298_v15 = vor.u32 %v3926_v63, %v3297_v45  ;;  %v3341_v63 = vld [vmem:[%s6048_s0 + $0x2a8] sm:$0xf] }
 0x1d1   :  { %1977 = vmatmul.bf16.gmra.mxu1 %v3258_v38  ;;  %2066 = vmatmul.bf16.gmra.mxu2 %v3262_v24  ;;  %v5177_v10 = vadd.f32 %v1926_v4, %v1838_v26 }
 0x1d2   :  { %2155 = vmatmul.bf16.gmra.mxu3 %v3266_v61 }
 0x1d3   :  { %2244 = vmatmul.bf16.gmra.mxu0 %v3270_v32 }
 0x1d4   :  { %v1751_v44 = vpop.f32.mrf.mxu2 }
 0x1d5   :  { %v1752_v41 = vadd.f32 %v1751_v44, %v1663_v35  ;;  %v1840_v7 = vpop.f32.mrf.mxu3 }
 0x1d6   :  { %v1664_v42 = vpop.f32.mrf.mxu1 }
 0x1d7   :  { %v1841_v49 = vadd.f32 %v1840_v7, %v1752_v41  ;;  %v1665_v4 = vadd.f32 %v1664_v42, %v4691_v1  ;;  %v3306_v1 = vor.u32 %v3927_v17, %v3305_v43  ;;  %v3930_v41 = vld [vmem:[%s6048_s0 + $0x29c] sm:$0xf]  ;;  %v3327_v7 = vld [vmem:[%s6048_s0 + $0x2bc] sm:$0xf0]  ;;  %v3935_v42 = vld [vmem:[%s6048_s0 + $0x2c0] sm:$0xf0] }
 0x1d8   :  { %v1931_v55 = vpop.f32.mrf.mxu0  ;;  %v3330_v17 = vor.u32 %v3930_v41, %v3327_v7  ;;  %v3939_v41 = vld [vmem:[%s6048_s0 + $0x2e4] sm:$0xf]  ;;  %v3369_v7 = vld [vmem:[%s6048_s0 + $0x2e8] sm:$0xf] }
 0x1d9   :  { %v5186_v51 = vadd.f32 %v1929_v29, %v1841_v49  ;;  %v3931_v49 = vld [vmem:[%s6048_s0 + $0x2a4] sm:$0xf] }
 0x1dc   :  { %v1753_v9 = vpop.f32.mrf.mxu2 }
 0x1dd   :  { %v1754_v47 = vadd.f32 %v1753_v9, %v1665_v4  ;;  %v1842_v14 = vpop.f32.mrf.mxu3 }
 0x1de   :  { %v1943_v59 = vpop.f32.mrf.mxu1 }
 0x1df   :  { %v1843_v22 = vadd.f32 %v1842_v14, %v1754_v47  ;;  %v1944_v24 = vadd.f32 %v1943_v59, %v4713_v40  ;;  %v3333_v40 = vld [vmem:[%s6048_s0 + $0x2a0] sm:$0xf] }
 0x1e0   :  { %v2210_v23 = vpop.f32.mrf.mxu0  ;;  %v3334_v9 = vor.u32 %v3935_v42, %v3333_v40  ;;  %v3944_v40 = vld [vmem:[%s6048_s0 + $0x308] sm:$0xf0] }
 0x1e1   :  { %1982 = vmatmul.bf16.gmra.mxu1 %v3294_v36  ;;  %2071 = vmatmul.bf16.gmra.mxu2 %v3298_v15  ;;  %v5207_v38 = vadd.f32 %v1931_v55, %v1843_v22  ;;  %v3335_v55 = vld [vmem:[%s6048_s0 + $0x2c4] sm:$0xf0]  ;;  %v3342_v36 = vor.u32 %v3936_v2, %v3341_v63  ;;  %v3940_v42 = vld [vmem:[%s6048_s0 + $0x2ec] sm:$0xf]  ;;  %v3945_v63 = vld [vmem:[%s6048_s0 + $0x310] sm:$0xf0] }
 0x1e2   :  { %2160 = vmatmul.bf16.gmra.mxu3 %v3302_v20  ;;  %v3338_v14 = vor.u32 %v3931_v49, %v3335_v55  ;;  %v3371_v49 = vld [vmem:[%s6048_s0 + $0x30c] sm:$0xf0] }
 0x1e3   :  { %2249 = vmatmul.bf16.gmra.mxu0 %v3306_v1 }
 0x1e4   :  { %v2032_v37 = vpop.f32.mrf.mxu2 }
 0x1e5   :  { %v2033_v61 = vadd.f32 %v2032_v37, %v1944_v24  ;;  %v2121_v32 = vpop.f32.mrf.mxu3 }
 0x1e6   :  { %v1945_v26 = vpop.f32.mrf.mxu1 }
 0x1e7   :  { %v2122_v29 = vadd.f32 %v2121_v32, %v2033_v61  ;;  %v1946_v16 = vadd.f32 %v1945_v26, %v4734_v8 }
 0x1e8   :  { %v2212_v35 = vpop.f32.mrf.mxu0 }
 0x1e9   :  { %v5210_v44 = vadd.f32 %v2210_v23, %v2122_v29 }
 0x1eb   :  { %v2291_v62 = vsel %vm2290_vm0, %v5210_v44, 0.0  ;;  %v2387_v45 = vmul.f32 %v5210_v44, %v5210_v44 }
 0x1ec   :  { %v2034_v4 = vpop.f32.mrf.mxu2  ;;  %2292 = vadd.xlane.f32.xlu0 %v2291_v62 }
 0x1ed   :  { %v2035_v58 = vadd.f32 %v2034_v4, %v1946_v16  ;;  %v2123_v43 = vpop.f32.mrf.mxu3  ;;  %v2419_v8 = vsel %vm2290_vm0, %v2387_v45, 0.0  ;;  %v3377_v45 = vld [vmem:[%s6048_s0 + $0x2f0] sm:$0xf] }
 0x1ee   :  { %v1948_v47 = vpop.f32.mrf.mxu1  ;;  %2420 = vadd.xlane.f32.xlu2 %v2419_v8 }
 0x1ef   :  { %v2124_v15 = vadd.f32 %v2123_v43, %v2035_v58  ;;  %v1949_v1 = vadd.f32 %v1948_v47, %v4743_v33  ;;  %v3363_v33 = vld [vmem:[%s6048_s0 + $0x304] sm:$0xf0] }
 0x1f0   :  { %v2215_v59 = vpop.f32.mrf.mxu0  ;;  %v3366_v43 = vor.u32 %v3939_v41, %v3363_v33  ;;  %v3399_v33 = vld [vmem:[%s6048_s0 + $0x34c] sm:$0xf0] }
 0x1f1   :  { %v5242_v20 = vadd.f32 %v2212_v35, %v2124_v15  ;;  %1987 = vmatmul.bf16.gmra.mxu1 %v3330_v17  ;;  %2076 = vmatmul.bf16.gmra.mxu2 %v3334_v9  ;;  %v3374_v17 = vor.u32 %v3940_v42, %v3371_v49  ;;  %v3378_v9 = vor.u32 %v3945_v63, %v3377_v45  ;;  %v3949_v42 = vld [vmem:[%s6048_s0 + $0x334] sm:$0xf]  ;;  %v3407_v49 = vld [vmem:[%s6048_s0 + $0x354] sm:$0xf0]  ;;  %v3954_v63 = vld [vmem:[%s6048_s0 + $0x358] sm:$0xf0] }
 0x1f2   :  { %2165 = vmatmul.bf16.gmra.mxu3 %v3338_v14  ;;  %v3413_v45 = vld [vmem:[%s6048_s0 + $0x338] sm:$0xf] }
 0x1f3   :  { %2254 = vmatmul.bf16.gmra.mxu0 %v3342_v36  ;;  %v2294_v22 = vsel %vm2290_vm0, %v5242_v20, 0.0  ;;  %v2388_v29 = vmul.f32 %v5242_v20, %v5242_v20 }
 0x1f4   :  { %v2037_v23 = vpop.f32.mrf.mxu2  ;;  %2295 = vadd.xlane.f32.xlu0 %v2294_v22 }
 0x1f5   :  { %v2038_v24 = vadd.f32 %v2037_v23, %v1949_v1  ;;  %v2126_v37 = vpop.f32.mrf.mxu3  ;;  %v2422_v62 = vsel %vm2290_vm0, %v2388_v29, 0.0 }
 0x1f6   :  { %v1950_v61 = vpop.f32.mrf.mxu1 }
 0x1f7   :  { %v2127_v32 = vadd.f32 %v2126_v37, %v2038_v24  ;;  %v1951_v55 = vadd.f32 %v1950_v61, %v4764_v56  ;;  %v3370_v56 = vor.u32 %v3944_v40, %v3369_v7  ;;  %v3405_v7 = vld [vmem:[%s6048_s0 + $0x330] sm:$0xf]  ;;  %v3953_v40 = vld [vmem:[%s6048_s0 + $0x350] sm:$0xf0] }
 0x1f8   :  { %v2217_v26 = vpop.f32.mrf.mxu0 }
 0x1f9   :  { %v5249_v35 = vadd.f32 %v2215_v59, %v2127_v32 }
 0x1fb   :  { %v2297_v16 = vsel %vm2290_vm0, %v5249_v35, 0.0  ;;  %v2389_v36 = vmul.f32 %v5249_v35, %v5249_v35 }
 0x1fc   :  { %v2039_v2 = vpop.f32.mrf.mxu2  ;;  %2298 = vadd.xlane.f32.xlu1 %v2297_v16  ;;  %2423 = vadd.xlane.f32.xlu0 %v2422_v62 }
 0x1fd   :  { %v2040_v4 = vadd.f32 %v2039_v2, %v1951_v55  ;;  %v2128_v58 = vpop.f32.mrf.mxu3  ;;  %v2425_v1 = vsel %vm2290_vm0, %v2389_v36, 0.0 }
 0x1fe   :  { %v1953_v8 = vpop.f32.mrf.mxu1 }
 0x1ff   :  { %v2129_v47 = vadd.f32 %v2128_v58, %v2040_v4  ;;  %v1954_v59 = vadd.f32 %v1953_v8, %v4785_v19  ;;  %v3948_v19 = vld [vmem:[%s6048_s0 + $0x32c] sm:$0xf]  ;;  %v3406_v8 = vor.u32 %v3953_v40, %v3405_v7  ;;  %v3435_v7 = vld [vmem:[%s6048_s0 + $0x394] sm:$0xf0] }
 0x200   :  { %v2220_v14 = vpop.f32.mrf.mxu0  ;;  %v3402_v4 = vor.u32 %v3948_v19, %v3399_v33  ;;  %v3441_v40 = vld [vmem:[%s6048_s0 + $0x378] sm:$0xf] }
 0x201   :  { %v5281_v15 = vadd.f32 %v2217_v26, %v2129_v47  ;;  %1992 = vmatmul.bf16.gmra.mxu1 %v3366_v43  ;;  %2081 = vmatmul.bf16.gmra.mxu2 %v3370_v56  ;;  %v3414_v47 = vor.u32 %v3954_v63, %v3413_v45  ;;  %v3449_v63 = vld [vmem:[%s6048_s0 + $0x380] sm:$0xf] }
 0x202   :  { %2170 = vmatmul.bf16.gmra.mxu3 %v3374_v17 }
 0x203   :  { %2259 = vmatmul.bf16.gmra.mxu0 %v3378_v9  ;;  %v2390_v22 = vmul.f32 %v5281_v15, %v5281_v15  ;;  %v2300_v16 = vsel %vm2290_vm0, %v5281_v15, 0.0  ;;  %v3410_v9 = vor.u32 %v3949_v42, %v3407_v49  ;;  %v3962_v42 = vld [vmem:[%s6048_s0 + $0x398] sm:$0xf0] }
 0x204   :  { %v2042_v23 = vpop.f32.mrf.mxu2  ;;  %2426 = vadd.xlane.f32.xlu1 %v2425_v1  ;;  %v3958_v49 = vld [vmem:[%s6048_s0 + $0x37c] sm:$0xf] }
 0x205   :  { %v2043_v24 = vadd.f32 %v2042_v23, %v1954_v59  ;;  %v2131_v37 = vpop.f32.mrf.mxu3  ;;  %v2428_v61 = vsel %vm2290_vm0, %v2390_v22, 0.0 }
 0x206   :  { %v1955_v32 = vpop.f32.mrf.mxu1  ;;  %2429 = vadd.xlane.f32.xlu2 %v2428_v61 }
 0x207   :  { %v2132_v26 = vadd.f32 %v2131_v37, %v2043_v24  ;;  %v1956_v55 = vadd.f32 %v1955_v32, %v4806_v52 }
 0x208   :  { %v2222_v29 = vpop.f32.mrf.mxu0 }
 0x209   :  { %v5288_v41 = vadd.f32 %v2220_v14, %v2132_v26 }
 0x20b   :  { %v2391_v62 = vmul.f32 %v5288_v41, %v5288_v41  ;;  %v2303_v52 = vsel %vm2290_vm0, %v5288_v41, 0.0 }
 0x20c   :  { %v2044_v2 = vpop.f32.mrf.mxu2  ;;  %2301 = vadd.xlane.f32.xlu1 %v2300_v16 }
 0x20d   :  { %v2045_v58 = vadd.f32 %v2044_v2, %v1956_v55  ;;  %v2133_v43 = vpop.f32.mrf.mxu3  ;;  %v2431_v56 = vsel %vm2290_vm0, %v2391_v62, 0.0  ;;  %v3443_v55 = vld [vmem:[%s6048_s0 + $0x39c] sm:$0xf0]  ;;  %v3963_v2 = vld [vmem:[%s6048_s0 + $0x3a0] sm:$0xf0] }
 0x20e   :  { %v1958_v17 = vpop.f32.mrf.mxu1  ;;  %2304 = vadd.xlane.f32.xlu2 %v2303_v52  ;;  %2432 = vadd.xlane.f32.xlu0 %v2431_v56  ;;  %v3442_v56 = vor.u32 %v3962_v42, %v3441_v40  ;;  %v3477_v40 = vld [vmem:[%s6048_s0 + $0x3c0] sm:$0xf]  ;;  %v3971_v42 = vld [vmem:[%s6048_s0 + $0x3e0] sm:$0xf0] }
 0x20f   :  { %v2134_v14 = vadd.f32 %v2133_v43, %v2045_v58  ;;  %v1959_v1 = vadd.f32 %v1958_v17, %v4815_v5  ;;  %v3957_v5 = vld [vmem:[%s6048_s0 + $0x374] sm:$0xf]  ;;  %v3446_v17 = vor.u32 %v3958_v49, %v3443_v55  ;;  %v3967_v49 = vld [vmem:[%s6048_s0 + $0x3c4] sm:$0xf]  ;;  %v3479_v55 = vld [vmem:[%s6048_s0 + $0x3e4] sm:$0xf0] }
 0x210   :  { %v2225_v36 = vpop.f32.mrf.mxu0  ;;  %v3438_v52 = vor.u32 %v3957_v5, %v3435_v7  ;;  %v3471_v7 = vld [vmem:[%s6048_s0 + $0x3dc] sm:$0xf0] }
 0x211   :  { %v5322_v59 = vadd.f32 %v2222_v29, %v2134_v14  ;;  %1997 = vmatmul.bf16.gmra.mxu1 %v3402_v4  ;;  %2086 = vmatmul.bf16.gmra.mxu2 %v3406_v8 }
 0x212   :  { %2175 = vmatmul.bf16.gmra.mxu3 %v3410_v9  ;;  %v3450_v9 = vor.u32 %v3963_v2, %v3449_v63  ;;  %v3485_v63 = vld [vmem:[%s6048_s0 + $0x3c8] sm:$0xf]  ;;  %v3972_v2 = vld [vmem:[%s6048_s0 + $0x3e8] sm:$0xf0] }
 0x213   :  { %6065 = vst [vmem:[#allocation2_spill] sm:$0xff] %v5322_v59  ;;  %2264 = vmatmul.bf16.gmra.mxu0 %v3414_v47  ;;  %v2392_v22 = vmul.f32 %v5322_v59, %v5322_v59  ;;  %v2306_v32 = vsel %vm2290_vm0, %v5322_v59, 0.0 }
 0x214   :  { %v2047_v23 = vpop.f32.mrf.mxu2 }
 0x215   :  { %v2048_v24 = vadd.f32 %v2047_v23, %v1959_v1  ;;  %v2136_v37 = vpop.f32.mrf.mxu3  ;;  %v2434_v61 = vsel %vm2290_vm0, %v2392_v22, 0.0 }
 0x216   :  { %v1960_v26 = vpop.f32.mrf.mxu1  ;;  %2435 = vadd.xlane.f32.xlu1 %v2434_v61  ;;  %2307 = vadd.xlane.f32.xlu2 %v2306_v32 }
 0x217   :  { %v2137_v29 = vadd.f32 %v2136_v37, %v2048_v24  ;;  %v1961_v16 = vadd.f32 %v1960_v26, %v4835_v28 }
 0x218   :  { %v2227_v19 = vpop.f32.mrf.mxu0 }
 0x219   :  { %v5330_v33 = vadd.f32 %v2225_v36, %v2137_v29 }
 0x21b   :  { %6066 = vst [vmem:[#allocation3_spill] sm:$0xff] %v5330_v33  ;;  %v2309_v62 = vsel %vm2290_vm0, %v5330_v33, 0.0  ;;  %v2393_v45 = vmul.f32 %v5330_v33, %v5330_v33 }
 0x21c   :  { %v2049_v4 = vpop.f32.mrf.mxu2  ;;  %2310 = vadd.xlane.f32.xlu0 %v2309_v62 }
 0x21d   :  { %v2050_v58 = vadd.f32 %v2049_v4, %v1961_v16  ;;  %v2138_v43 = vpop.f32.mrf.mxu3  ;;  %v2437_v28 = vsel %vm2290_vm0, %v2393_v45, 0.0 }
 0x21e   :  { %v1963_v8 = vpop.f32.mrf.mxu1  ;;  %2438 = vadd.xlane.f32.xlu2 %v2437_v28 }
 0x21f   :  { %v2139_v47 = vadd.f32 %v2138_v43, %v2050_v58  ;;  %v1964_v1 = vadd.f32 %v1963_v8, %v4856_v3  ;;  %v3966_v3 = vld [vmem:[%s6048_s0 + $0x3bc] sm:$0xf]  ;;  %v3482_v8 = vor.u32 %v3967_v49, %v3479_v55  ;;  %v3976_v49 = vld [vmem:[%s6048_s0 + $0x40c] sm:$0xf]  ;;  %v3515_v55 = vld [vmem:[%s6048_s0 + $0x42c] sm:$0xf0] }
 0x220   :  { %v2230_v14 = vpop.f32.mrf.mxu0  ;;  %v3474_v28 = vor.u32 %v3966_v3, %v3471_v7  ;;  %v3507_v7 = vld [vmem:[%s6048_s0 + $0x424] sm:$0xf0] }
 0x221   :  { %v5362_v36 = vadd.f32 %v2227_v19, %v2139_v47  ;;  %2002 = vmatmul.bf16.gmra.mxu1 %v3438_v52  ;;  %2091 = vmatmul.bf16.gmra.mxu2 %v3442_v56  ;;  %v3478_v52 = vor.u32 %v3971_v42, %v3477_v40  ;;  %v3513_v40 = vld [vmem:[%s6048_s0 + $0x408] sm:$0xf]  ;;  %v3980_v42 = vld [vmem:[%s6048_s0 + $0x428] sm:$0xf0] }
 0x222   :  { %2180 = vmatmul.bf16.gmra.mxu3 %v3446_v17  ;;  %v3486_v17 = vor.u32 %v3972_v2, %v3485_v63  ;;  %v3521_v63 = vld [vmem:[%s6048_s0 + $0x410] sm:$0xf]  ;;  %v3981_v2 = vld [vmem:[%s6048_s0 + $0x430] sm:$0xf0] }
 0x223   :  { %6067 = vst [vmem:[#allocation4_spill] sm:$0xff] %v5362_v36  ;;  %2269 = vmatmul.bf16.gmra.mxu0 %v3450_v9  ;;  %v2312_v22 = vsel %vm2290_vm0, %v5362_v36, 0.0  ;;  %v2394_v23 = vmul.f32 %v5362_v36, %v5362_v36 }
 0x224   :  { %v2052_v24 = vpop.f32.mrf.mxu2  ;;  %2313 = vadd.xlane.f32.xlu1 %v2312_v22 }
 0x225   :  { %v2053_v37 = vadd.f32 %v2052_v24, %v1964_v1  ;;  %v2141_v61 = vpop.f32.mrf.mxu3  ;;  %v2440_v32 = vsel %vm2290_vm0, %v2394_v23, 0.0 }
 0x226   :  { %v1965_v26 = vpop.f32.mrf.mxu1  ;;  %2441 = vadd.xlane.f32.xlu0 %v2440_v32 }
 0x227   :  { %v2142_v29 = vadd.f32 %v2141_v61, %v2053_v37  ;;  %v1966_v16 = vadd.f32 %v1965_v26, %v4877_v25 }
 0x228   :  { %v2232_v19 = vpop.f32.mrf.mxu0 }
 0x229   :  { %v5370_v5 = vadd.f32 %v2230_v14, %v2142_v29 }
 0x22b   :  { %v2315_v62 = vsel %vm2290_vm0, %v5370_v5, 0.0  ;;  %v2395_v45 = vmul.f32 %v5370_v5, %v5370_v5 }
 0x22c   :  { %v2054_v4 = vpop.f32.mrf.mxu2  ;;  %2316 = vadd.xlane.f32.xlu2 %v2315_v62 }
 0x22d   :  { %v2055_v58 = vadd.f32 %v2054_v4, %v1966_v16  ;;  %v2143_v43 = vpop.f32.mrf.mxu3  ;;  %v2443_v25 = vsel %vm2290_vm0, %v2395_v45, 0.0 }
 0x22e   :  { %v1968_v56 = vpop.f32.mrf.mxu1  ;;  %2444 = vadd.xlane.f32.xlu1 %v2443_v25 }
 0x22f   :  { %v2144_v9 = vadd.f32 %v2143_v43, %v2055_v58  ;;  %v1969_v1 = vadd.f32 %v1968_v56, %v4886_v53  ;;  %v3975_v53 = vld [vmem:[%s6048_s0 + $0x404] sm:$0xf]  ;;  %v3518_v56 = vor.u32 %v3976_v49, %v3515_v55  ;;  %v3985_v49 = vld [vmem:[%s6048_s0 + $0x454] sm:$0xf]  ;;  %v3551_v55 = vld [vmem:[%s6048_s0 + $0x474] sm:$0xf0] }
 0x230   :  { %v2235_v47 = vpop.f32.mrf.mxu0  ;;  %v3510_v25 = vor.u32 %v3975_v53, %v3507_v7  ;;  %v3543_v7 = vld [vmem:[%s6048_s0 + $0x46c] sm:$0xf0] }
 0x231   :  { %v5402_v14 = vadd.f32 %v2232_v19, %v2144_v9  ;;  %2007 = vmatmul.bf16.gmra.mxu1 %v3474_v28  ;;  %2096 = vmatmul.bf16.gmra.mxu2 %v3478_v52  ;;  %v3514_v28 = vor.u32 %v3980_v42, %v3513_v40  ;;  %v3549_v40 = vld [vmem:[%s6048_s0 + $0x450] sm:$0xf]  ;;  %v3989_v42 = vld [vmem:[%s6048_s0 + $0x470] sm:$0xf0] }
 0x232   :  { %2185 = vmatmul.bf16.gmra.mxu3 %v3482_v8  ;;  %v3522_v8 = vor.u32 %v3981_v2, %v3521_v63  ;;  %v3557_v63 = vld [vmem:[%s6048_s0 + $0x458] sm:$0xf]  ;;  %v3990_v2 = vld [vmem:[%s6048_s0 + $0x478] sm:$0xf0] }
 0x233   :  { %2274 = vmatmul.bf16.gmra.mxu0 %v3486_v17  ;;  %v2318_v22 = vsel %vm2290_vm0, %v5402_v14, 0.0  ;;  %v2396_v23 = vmul.f32 %v5402_v14, %v5402_v14 }
 0x234   :  { %v2057_v24 = vpop.f32.mrf.mxu2  ;;  %2319 = vadd.xlane.f32.xlu0 %v2318_v22 }
 0x235   :  { %v2058_v37 = vadd.f32 %v2057_v24, %v1969_v1  ;;  %v2146_v61 = vpop.f32.mrf.mxu3  ;;  %v2446_v32 = vsel %vm2290_vm0, %v2396_v23, 0.0 }
 0x236   :  { %v1970_v26 = vpop.f32.mrf.mxu1  ;;  %2447 = vadd.xlane.f32.xlu2 %v2446_v32 }
 0x237   :  { %v2147_v29 = vadd.f32 %v2146_v61, %v2058_v37  ;;  %v1971_v16 = vadd.f32 %v1970_v26, %v4907_v21 }
 0x238   :  { %v2237_v19 = vpop.f32.mrf.mxu0 }
 0x239   :  { %v5410_v3 = vadd.f32 %v2235_v47, %v2147_v29 }
 0x23b   :  { %v2321_v62 = vsel %vm2290_vm0, %v5410_v3, 0.0  ;;  %v2397_v45 = vmul.f32 %v5410_v3, %v5410_v3 }
 0x23c   :  { %v2059_v4 = vpop.f32.mrf.mxu2  ;;  %2322 = vadd.xlane.f32.xlu1 %v2321_v62 }
 0x23d   :  { %v2060_v58 = vadd.f32 %v2059_v4, %v1971_v16  ;;  %v2148_v43 = vpop.f32.mrf.mxu3  ;;  %v2449_v21 = vsel %vm2290_vm0, %v2397_v45, 0.0 }
 0x23e   :  { %v1973_v52 = vpop.f32.mrf.mxu1  ;;  %2450 = vadd.xlane.f32.xlu0 %v2449_v21 }
 0x23f   :  { %v2149_v17 = vadd.f32 %v2148_v43, %v2060_v58  ;;  %v1974_v1 = vadd.f32 %v1973_v52, %v4916_v34  ;;  %v3984_v34 = vld [vmem:[%s6048_s0 + $0x44c] sm:$0xf]  ;;  %v3554_v52 = vor.u32 %v3985_v49, %v3551_v55 }
 0x240   :  { %v2240_v9 = vpop.f32.mrf.mxu0  ;;  %v3546_v21 = vor.u32 %v3984_v34, %v3543_v7 }
 0x241   :  { %v5442_v47 = vadd.f32 %v2237_v19, %v2149_v17  ;;  %2012 = vmatmul.bf16.gmra.mxu1 %v3510_v25  ;;  %2101 = vmatmul.bf16.gmra.mxu2 %v3514_v28  ;;  %v3550_v25 = vor.u32 %v3989_v42, %v3549_v40 }
 0x242   :  { %2190 = vmatmul.bf16.gmra.mxu3 %v3518_v56  ;;  %v3558_v56 = vor.u32 %v3990_v2, %v3557_v63 }
 0x243   :  { %2279 = vmatmul.bf16.gmra.mxu0 %v3522_v8  ;;  %v2324_v22 = vsel %vm2290_vm0, %v5442_v47, 0.0  ;;  %v2398_v23 = vmul.f32 %v5442_v47, %v5442_v47 }
 0x244   :  { %v2062_v24 = vpop.f32.mrf.mxu2  ;;  %2325 = vadd.xlane.f32.xlu2 %v2324_v22 }
 0x245   :  { %v2063_v37 = vadd.f32 %v2062_v24, %v1974_v1  ;;  %v2151_v61 = vpop.f32.mrf.mxu3  ;;  %v2452_v32 = vsel %vm2290_vm0, %v2398_v23, 0.0 }
 0x246   :  { %v1975_v26 = vpop.f32.mrf.mxu1  ;;  %2453 = vadd.xlane.f32.xlu1 %v2452_v32 }
 0x247   :  { %v2152_v29 = vadd.f32 %v2151_v61, %v2063_v37  ;;  %v1976_v16 = vadd.f32 %v1975_v26, %v4937_v11 }
 0x248   :  { %v2242_v19 = vpop.f32.mrf.mxu0 }
 0x249   :  { %v5450_v53 = vadd.f32 %v2240_v9, %v2152_v29 }
 0x24b   :  { %v2327_v62 = vsel %vm2290_vm0, %v5450_v53, 0.0  ;;  %v2399_v45 = vmul.f32 %v5450_v53, %v5450_v53 }
 0x24c   :  { %v2064_v4 = vpop.f32.mrf.mxu2  ;;  %2328 = vadd.xlane.f32.xlu0 %v2327_v62 }
 0x24d   :  { %v2065_v58 = vadd.f32 %v2064_v4, %v1976_v16  ;;  %v2153_v43 = vpop.f32.mrf.mxu3  ;;  %v2455_v11 = vsel %vm2290_vm0, %v2399_v45, 0.0 }
 0x24e   :  { %v1978_v28 = vpop.f32.mrf.mxu1  ;;  %2456 = vadd.xlane.f32.xlu2 %v2455_v11 }
 0x24f   :  { %v2154_v8 = vadd.f32 %v2153_v43, %v2065_v58  ;;  %v1979_v1 = vadd.f32 %v1978_v28, %v4946_v39 }
 0x250   :  { %v2245_v17 = vpop.f32.mrf.mxu0 }
 0x251   :  { %v5482_v9 = vadd.f32 %v2242_v19, %v2154_v8  ;;  %2017 = vmatmul.bf16.gmra.mxu1 %v3546_v21  ;;  %2106 = vmatmul.bf16.gmra.mxu2 %v3550_v25 }
 0x252   :  { %2195 = vmatmul.bf16.gmra.mxu3 %v3554_v52 }
 0x253   :  { %6068 = vst [vmem:[#allocation5_spill] sm:$0xff] %v5482_v9  ;;  %2284 = vmatmul.bf16.gmra.mxu0 %v3558_v56  ;;  %v2330_v22 = vsel %vm2290_vm0, %v5482_v9, 0.0  ;;  %v2400_v23 = vmul.f32 %v5482_v9, %v5482_v9 }
 0x254   :  { %v2067_v24 = vpop.f32.mrf.mxu2  ;;  %2331 = vadd.xlane.f32.xlu1 %v2330_v22 }
 0x255   :  { %v2068_v37 = vadd.f32 %v2067_v24, %v1979_v1  ;;  %v2156_v61 = vpop.f32.mrf.mxu3  ;;  %v2458_v32 = vsel %vm2290_vm0, %v2400_v23, 0.0 }
 0x256   :  { %v1980_v26 = vpop.f32.mrf.mxu1  ;;  %2459 = vadd.xlane.f32.xlu0 %v2458_v32 }
 0x257   :  { %v2157_v29 = vadd.f32 %v2156_v61, %v2068_v37  ;;  %v1981_v39 = vadd.f32 %v1980_v26, %v4967_v30 }
 0x258   :  { %v2247_v19 = vpop.f32.mrf.mxu0 }
 0x259   :  { %v5490_v34 = vadd.f32 %v2245_v17, %v2157_v29 }
 0x25b   :  { %6069 = vst [vmem:[#allocation6_spill] sm:$0xff] %v5490_v34  ;;  %v2333_v7 = vsel %vm2290_vm0, %v5490_v34, 0.0  ;;  %v2401_v40 = vmul.f32 %v5490_v34, %v5490_v34 }
 0x25c   :  { %v2069_v42 = vpop.f32.mrf.mxu2  ;;  %2334 = vadd.xlane.f32.xlu2 %v2333_v7 }
 0x25d   :  { %v2070_v49 = vadd.f32 %v2069_v42, %v1981_v39  ;;  %v2158_v55 = vpop.f32.mrf.mxu3  ;;  %v2461_v16 = vsel %vm2290_vm0, %v2401_v40, 0.0 }
 0x25e   :  { %v1983_v62 = vpop.f32.mrf.mxu1  ;;  %2462 = vadd.xlane.f32.xlu1 %v2461_v16 }
 0x25f   :  { %v2159_v45 = vadd.f32 %v2158_v55, %v2070_v49  ;;  %v1984_v30 = vadd.f32 %v1983_v62, %v4976_v60 }
 0x260   :  { %v2250_v63 = vpop.f32.mrf.mxu0 }
 0x261   :  { %v5498_v2 = vadd.f32 %v2247_v19, %v2159_v45  ;;  %v5514_v29 = vpop.xlane.xlu2 %2420 }
 0x263   :  { %6070 = vst [vmem:[#allocation7_spill] sm:$0xff] %v5498_v2  ;;  %v2336_v4 = vsel %vm2290_vm0, %v5498_v2, 0.0  ;;  %v2402_v58 = vmul.f32 %v5498_v2, %v5498_v2 }
 0x264   :  { %v2072_v43 = vpop.f32.mrf.mxu2  ;;  %2337 = vadd.xlane.f32.xlu0 %v2336_v4 }
 0x265   :  { %v2073_v11 = vadd.f32 %v2072_v43, %v1984_v30  ;;  %v2161_v21 = vpop.f32.mrf.mxu3  ;;  %v2464_v25 = vsel %vm2290_vm0, %v2402_v58, 0.0 }
 0x266   :  { %v1985_v28 = vpop.f32.mrf.mxu1  ;;  %2465 = vadd.xlane.f32.xlu2 %v2464_v25 }
 0x267   :  { %v2162_v52 = vadd.f32 %v2161_v21, %v2073_v11  ;;  %v1986_v60 = vadd.f32 %v1985_v28, %v4997_v48  ;;  %v5518_v48 = vpop.xlane.xlu0 %2292 }
 0x268   :  { %v2252_v56 = vpop.f32.mrf.mxu0 }
 0x269   :  { %v5506_v8 = vadd.f32 %v2250_v63, %v2162_v52 }
 0x26b   :  { %v2339_v17 = vsel %vm2290_vm0, %v5506_v8, 0.0  ;;  %v2403_v1 = vmul.f32 %v5506_v8, %v5506_v8 }
 0x26c   :  { %v2074_v22 = vpop.f32.mrf.mxu2  ;;  %2340 = vadd.xlane.f32.xlu1 %v2339_v17 }
 0x26d   :  { %v2075_v23 = vadd.f32 %v2074_v22, %v1986_v60  ;;  %v2163_v24 = vpop.f32.mrf.mxu3  ;;  %v2467_v37 = vsel %vm2290_vm0, %v2403_v1, 0.0 }
 0x26e   :  { %v1988_v61 = vpop.f32.mrf.mxu1  ;;  %2468 = vadd.xlane.f32.xlu0 %v2467_v37 }
 0x26f   :  { %v2164_v32 = vadd.f32 %v2163_v24, %v2075_v23  ;;  %v1989_v39 = vadd.f32 %v1988_v61, %v5006_v18  ;;  %v5525_v49 = vpop.xlane.xlu1 %2298  ;;  %v5537_v25 = vpop.xlane.xlu0 %2295 }
 0x270   :  { %v2255_v26 = vpop.f32.mrf.mxu0 }
 0x271   :  { %v5516_v19 = vadd.f32 %v2252_v56, %v2164_v32 }
 0x273   :  { %v2342_v7 = vsel %vm2290_vm0, %v5516_v19, 0.0  ;;  %v2404_v40 = vmul.f32 %v5516_v19, %v5516_v19 }
 0x274   :  { %v2077_v42 = vpop.f32.mrf.mxu2  ;;  %2343 = vadd.xlane.f32.xlu2 %v2342_v7 }
 0x275   :  { %v2078_v55 = vadd.f32 %v2077_v42, %v1989_v39  ;;  %v2166_v16 = vpop.f32.mrf.mxu3  ;;  %v2470_v62 = vsel %vm2290_vm0, %v2404_v40, 0.0 }
 0x276   :  { %v1990_v45 = vpop.f32.mrf.mxu1  ;;  %2471 = vadd.xlane.f32.xlu1 %v2470_v62 }
 0x277   :  { %v2167_v63 = vadd.f32 %v2166_v16, %v2078_v55  ;;  %v1991_v58 = vadd.f32 %v1990_v45, %v5027_v27  ;;  %v5540_v17 = vpop.xlane.xlu1 %2426  ;;  %v5552_v42 = vpop.xlane.xlu0 %2423 }
 0x278   :  { %v2257_v30 = vpop.f32.mrf.mxu0 }
 0x279   :  { %v5528_v4 = vadd.f32 %v2255_v26, %v2167_v63  ;;  %v5530_v18 = vpop.xlane.xlu2 %2429 }
 0x27b   :  { %v2345_v43 = vsel %vm2290_vm0, %v5528_v4, 0.0  ;;  %v2405_v11 = vmul.f32 %v5528_v4, %v5528_v4 }
 0x27c   :  { %v2079_v21 = vpop.f32.mrf.mxu2  ;;  %2346 = vadd.xlane.f32.xlu0 %v2345_v43 }
 0x27d   :  { %v2080_v28 = vadd.f32 %v2079_v21, %v1991_v58  ;;  %v2168_v52 = vpop.f32.mrf.mxu3  ;;  %v2473_v56 = vsel %vm2290_vm0, %v2405_v11, 0.0 }
 0x27e   :  { %v1993_v60 = vpop.f32.mrf.mxu1  ;;  %2474 = vadd.xlane.f32.xlu2 %v2473_v56 }
 0x27f   :  { %v2169_v1 = vadd.f32 %v2168_v52, %v2080_v28  ;;  %v1994_v23 = vadd.f32 %v1993_v60, %v5036_v46  ;;  %v5554_v16 = vpop.xlane.xlu1 %2301 }
 0x280   :  { %v2260_v27 = vpop.f32.mrf.mxu0 }
 0x281   :  { %v5542_v22 = vadd.f32 %v2257_v30, %v2169_v1  ;;  %v5545_v24 = vpop.xlane.xlu2 %2304  ;;  %v5566_v56 = vpop.xlane.xlu0 %2432 }
 0x283   :  { %v2348_v37 = vsel %vm2290_vm0, %v5542_v22, 0.0  ;;  %v2406_v61 = vmul.f32 %v5542_v22, %v5542_v22 }
 0x284   :  { %v2082_v32 = vpop.f32.mrf.mxu2  ;;  %2349 = vadd.xlane.f32.xlu1 %v2348_v37 }
 0x285   :  { %v2083_v26 = vadd.f32 %v2082_v32, %v1994_v23  ;;  %v2171_v39 = vpop.f32.mrf.mxu3  ;;  %v2476_v7 = vsel %vm2290_vm0, %v2406_v61, 0.0 }
 0x286   :  { %v1995_v40 = vpop.f32.mrf.mxu1  ;;  %2477 = vadd.xlane.f32.xlu0 %v2476_v7 }
 0x287   :  { %v2172_v55 = vadd.f32 %v2171_v39, %v2083_v26  ;;  %v1996_v45 = vadd.f32 %v1995_v40, %v5057_v57 }
 0x288   :  { %v2262_v46 = vpop.f32.mrf.mxu0 }
 0x289   :  { %v5556_v62 = vadd.f32 %v2260_v27, %v2172_v55  ;;  %v5563_v43 = vpop.xlane.xlu2 %2307  ;;  %v5568_v1 = vpop.xlane.xlu1 %2435 }
 0x28b   :  { %v2351_v63 = vsel %vm2290_vm0, %v5556_v62, 0.0  ;;  %v2407_v30 = vmul.f32 %v5556_v62, %v5556_v62 }
 0x28c   :  { %v2084_v58 = vpop.f32.mrf.mxu2  ;;  %2352 = vadd.xlane.f32.xlu2 %v2351_v63 }
 0x28d   :  { %v2085_v11 = vadd.f32 %v2084_v58, %v1996_v45  ;;  %v2173_v21 = vpop.f32.mrf.mxu3  ;;  %v2479_v28 = vsel %vm2290_vm0, %v2407_v30, 0.0 }
 0x28e   :  { %v1998_v52 = vpop.f32.mrf.mxu1  ;;  %2480 = vadd.xlane.f32.xlu1 %v2479_v28 }
 0x28f   :  { %v2174_v60 = vadd.f32 %v2173_v21, %v2085_v11  ;;  %v1999_v23 = vadd.f32 %v1998_v52, %v5066_v50  ;;  %v5578_v55 = vpop.xlane.xlu0 %2310 }
 0x290   :  { %v2265_v57 = vpop.f32.mrf.mxu0 }
 0x291   :  { %v5570_v27 = vadd.f32 %v2262_v46, %v2174_v60  ;;  %v5580_v46 = vpop.xlane.xlu2 %2438 }
 0x293   :  { %6071 = vst [vmem:[#allocation8_spill] sm:$0xff] %v5570_v27  ;;  %v2354_v37 = vsel %vm2290_vm0, %v5570_v27, 0.0  ;;  %v2408_v61 = vmul.f32 %v5570_v27, %v5570_v27 }
 0x294   :  { %v2087_v32 = vpop.f32.mrf.mxu2  ;;  %2355 = vadd.xlane.f32.xlu0 %v2354_v37 }
 0x295   :  { %v2088_v26 = vadd.f32 %v2087_v32, %v1999_v23  ;;  %v2176_v39 = vpop.f32.mrf.mxu3  ;;  %v2482_v7 = vsel %vm2290_vm0, %v2408_v61, 0.0 }
 0x296   :  { %v2000_v40 = vpop.f32.mrf.mxu1  ;;  %2483 = vadd.xlane.f32.xlu2 %v2482_v7 }
 0x297   :  { %v2177_v45 = vadd.f32 %v2176_v39, %v2088_v26  ;;  %v5584_v30 = vpop.xlane.xlu1 %2313  ;;  %v2001_v58 = vadd.f32 %v2000_v40, %v5087_v12 }
 0x298   :  { %v2267_v50 = vpop.f32.mrf.mxu0 }
 0x299   :  { %v5582_v63 = vadd.f32 %v2265_v57, %v2177_v45  ;;  %v5592_v57 = vpop.xlane.xlu0 %2441 }
 0x29b   :  { %6072 = vst [vmem:[#allocation9_spill] sm:$0xff] %v5582_v63  ;;  %v2357_v11 = vsel %vm2290_vm0, %v5582_v63, 0.0  ;;  %v2409_v21 = vmul.f32 %v5582_v63, %v5582_v63 }
 0x29c   :  { %v2089_v28 = vpop.f32.mrf.mxu2  ;;  %2358 = vadd.xlane.f32.xlu1 %v2357_v11 }
 0x29d   :  { %v2090_v52 = vadd.f32 %v2089_v28, %v2001_v58  ;;  %v2178_v60 = vpop.f32.mrf.mxu3  ;;  %v2485_v23 = vsel %vm2290_vm0, %v2409_v21, 0.0 }
 0x29e   :  { %v2003_v37 = vpop.f32.mrf.mxu1  ;;  %2486 = vadd.xlane.f32.xlu0 %v2485_v23 }
 0x29f   :  { %v2179_v61 = vadd.f32 %v2178_v60, %v2090_v52  ;;  %v2317_v32 = vpop.xlane.xlu2 %2316  ;;  %v2004_v45 = vadd.f32 %v2003_v37, %v5096_v6 }
 0x2a0   :  { %v5595_v12 = vadd.f32 %v2317_v32, %v5518_v48  ;;  %v2270_v26 = vpop.f32.mrf.mxu0 }
 0x2a1   :  { %v5597_v39 = vadd.f32 %v2267_v50, %v2179_v61  ;;  %v2445_v7 = vpop.xlane.xlu1 %2444 }
 0x2a2   :  { %v5600_v40 = vadd.f32 %v2445_v7, %v5514_v29 }
 0x2a3   :  { %6073 = vst [vmem:[#allocation10_spill] sm:$0xff] %v5597_v39  ;;  %v2360_v58 = vsel %vm2290_vm0, %v5597_v39, 0.0  ;;  %v2410_v11 = vmul.f32 %v5597_v39, %v5597_v39 }
 0x2a4   :  { %v2092_v21 = vpop.f32.mrf.mxu2  ;;  %2361 = vadd.xlane.f32.xlu2 %v2360_v58 }
 0x2a5   :  { %v2093_v28 = vadd.f32 %v2092_v21, %v2004_v45  ;;  %v2181_v48 = vpop.f32.mrf.mxu3  ;;  %v2488_v52 = vsel %vm2290_vm0, %v2410_v11, 0.0 }
 0x2a6   :  { %v2005_v50 = vpop.f32.mrf.mxu1  ;;  %2489 = vadd.xlane.f32.xlu1 %v2488_v52 }
 0x2a7   :  { %v2182_v60 = vadd.f32 %v2181_v48, %v2093_v28  ;;  %v2320_v23 = vpop.xlane.xlu0 %2319  ;;  %v2006_v7 = vadd.f32 %v2005_v50, %v5117_v13 }
 0x2a8   :  { %v5609_v29 = vadd.f32 %v2320_v23, %v5537_v25  ;;  %v2272_v6 = vpop.f32.mrf.mxu0 }
 0x2a9   :  { %v5611_v37 = vadd.f32 %v2270_v26, %v2182_v60  ;;  %v2448_v61 = vpop.xlane.xlu2 %2447 }
 0x2aa   :  { %v5614_v32 = vadd.f32 %v2448_v61, %v5552_v42 }
 0x2ab   :  { %v2363_v45 = vsel %vm2290_vm0, %v5611_v37, 0.0  ;;  %v2411_v58 = vmul.f32 %v5611_v37, %v5611_v37 }
 0x2ac   :  { %v2094_v11 = vpop.f32.mrf.mxu2  ;;  %2364 = vadd.xlane.f32.xlu0 %v2363_v45 }
 0x2ad   :  { %v2095_v21 = vadd.f32 %v2094_v11, %v2006_v7  ;;  %v2183_v25 = vpop.f32.mrf.mxu3  ;;  %v2491_v28 = vsel %vm2290_vm0, %v2411_v58, 0.0 }
 0x2ae   :  { %v2008_v26 = vpop.f32.mrf.mxu1  ;;  %2492 = vadd.xlane.f32.xlu2 %v2491_v28 }
 0x2af   :  { %v2184_v48 = vadd.f32 %v2183_v25, %v2095_v21  ;;  %v2323_v52 = vpop.xlane.xlu1 %2322  ;;  %v2009_v61 = vadd.f32 %v2008_v26, %v5126_v31 }
 0x2b0   :  { %v5623_v42 = vadd.f32 %v2323_v52, %v5525_v49  ;;  %v2275_v13 = vpop.f32.mrf.mxu0 }
 0x2b1   :  { %v5625_v50 = vadd.f32 %v2272_v6, %v2184_v48  ;;  %v2451_v60 = vpop.xlane.xlu0 %2450 }
 0x2b2   :  { %v5628_v23 = vadd.f32 %v2451_v60, %v5540_v17 }
 0x2b3   :  { %v2366_v7 = vsel %vm2290_vm0, %v5625_v50, 0.0  ;;  %v2412_v45 = vmul.f32 %v5625_v50, %v5625_v50 }
 0x2b4   :  { %v2097_v58 = vpop.f32.mrf.mxu2  ;;  %2367 = vadd.xlane.f32.xlu1 %v2366_v7 }
 0x2b5   :  { %v2098_v11 = vadd.f32 %v2097_v58, %v2009_v61  ;;  %v2186_v49 = vpop.f32.mrf.mxu3  ;;  %v2494_v21 = vsel %vm2290_vm0, %v2412_v45, 0.0 }
 0x2b6   :  { %v2010_v6 = vpop.f32.mrf.mxu1  ;;  %2495 = vadd.xlane.f32.xlu0 %v2494_v21 }
 0x2b7   :  { %v2187_v25 = vadd.f32 %v2186_v49, %v2098_v11  ;;  %v2326_v28 = vpop.xlane.xlu2 %2325  ;;  %v2011_v60 = vadd.f32 %v2010_v6, %v5147_v54 }
 0x2b8   :  { %v5637_v17 = vadd.f32 %v2326_v28, %v5554_v16  ;;  %v2277_v31 = vpop.f32.mrf.mxu0 }
 0x2b9   :  { %v5639_v26 = vadd.f32 %v2275_v13, %v2187_v25  ;;  %v2454_v48 = vpop.xlane.xlu1 %2453 }
 0x2ba   :  { %v5642_v52 = vadd.f32 %v2454_v48, %v5530_v18 }
 0x2bb   :  { %v2369_v61 = vsel %vm2290_vm0, %v5639_v26, 0.0  ;;  %v2413_v7 = vmul.f32 %v5639_v26, %v5639_v26 }
 0x2bc   :  { %v2099_v45 = vpop.f32.mrf.mxu2  ;;  %2370 = vadd.xlane.f32.xlu2 %v2369_v61 }
 0x2bd   :  { %v2100_v58 = vadd.f32 %v2099_v45, %v2011_v60  ;;  %v2188_v16 = vpop.f32.mrf.mxu3  ;;  %v2497_v11 = vsel %vm2290_vm0, %v2413_v7, 0.0 }
 0x2be   :  { %v2013_v13 = vpop.f32.mrf.mxu1  ;;  %2498 = vadd.xlane.f32.xlu1 %v2497_v11 }
 0x2bf   :  { %v2189_v49 = vadd.f32 %v2188_v16, %v2100_v58  ;;  %v2329_v21 = vpop.xlane.xlu0 %2328  ;;  %v2014_v48 = vadd.f32 %v2013_v13, %v5156_v0 }
 0x2c0   :  { %v5651_v18 = vadd.f32 %v2329_v21, %v5545_v24  ;;  %v2280_v25 = vpop.f32.mrf.mxu0 }
 0x2c1   :  { %v5653_v54 = vadd.f32 %v2277_v31, %v2189_v49  ;;  %v2457_v6 = vpop.xlane.xlu2 %2456 }
 0x2c2   :  { %v5656_v28 = vadd.f32 %v2457_v6, %v5566_v56 }
 0x2c3   :  { %v2372_v60 = vsel %vm2290_vm0, %v5653_v54, 0.0  ;;  %v2414_v61 = vmul.f32 %v5653_v54, %v5653_v54 }
 0x2c4   :  { %v2102_v7 = vpop.f32.mrf.mxu2  ;;  %2373 = vadd.xlane.f32.xlu0 %v2372_v60 }
 0x2c5   :  { %v2103_v45 = vadd.f32 %v2102_v7, %v2014_v48  ;;  %v2191_v24 = vpop.f32.mrf.mxu3  ;;  %v2500_v31 = vsel %vm2290_vm0, %v2414_v61, 0.0 }
 0x2c6   :  { %v2015_v58 = vpop.f32.mrf.mxu1  ;;  %2501 = vadd.xlane.f32.xlu2 %v2500_v31 }
 0x2c7   :  { %v2192_v16 = vadd.f32 %v2191_v24, %v2103_v45  ;;  %v2332_v11 = vpop.xlane.xlu1 %2331  ;;  %v2016_v21 = vadd.f32 %v2015_v58, %v5177_v10 }
 0x2c8   :  { %v5665_v56 = vadd.f32 %v2332_v11, %v5563_v43  ;;  %v2282_v60 = vpop.f32.mrf.mxu0 }
 0x2c9   :  { %v5667_v0 = vadd.f32 %v2280_v25, %v2192_v16  ;;  %v2460_v13 = vpop.xlane.xlu0 %2459 }
 0x2ca   :  { %v5670_v49 = vadd.f32 %v2460_v13, %v5568_v1 }
 0x2cb   :  { %6074 = vst [vmem:[#allocation11_spill] sm:$0xff] %v5667_v0  ;;  %v2375_v6 = vsel %vm2290_vm0, %v5667_v0, 0.0  ;;  %v2415_v48 = vmul.f32 %v5667_v0, %v5667_v0 }
 0x2cc   :  { %v2104_v61 = vpop.f32.mrf.mxu2  ;;  %2376 = vadd.xlane.f32.xlu1 %v2375_v6 }
 0x2cd   :  { %v2105_v7 = vadd.f32 %v2104_v61, %v2016_v21  ;;  %v2193_v43 = vpop.f32.mrf.mxu3  ;;  %v2503_v25 = vsel %vm2290_vm0, %v2415_v48, 0.0 }
 0x2ce   :  { %v2018_v45 = vpop.f32.mrf.mxu1  ;;  %2504 = vadd.xlane.f32.xlu0 %v2503_v25 }
 0x2cf   :  { %v2194_v24 = vadd.f32 %v2193_v43, %v2105_v7  ;;  %v2335_v1 = vpop.xlane.xlu2 %2334  ;;  %v2019_v11 = vadd.f32 %v2018_v45, %v5186_v51 }
 0x2d0   :  { %v5679_v31 = vadd.f32 %v2335_v1, %v5578_v55 }
 0x2d1   :  { %v5681_v10 = vadd.f32 %v2282_v60, %v2194_v24  ;;  %v2463_v58 = vpop.xlane.xlu1 %2462  ;;  %v2285_v60 = vpop.f32.mrf.mxu0 }
 0x2d2   :  { %v5684_v16 = vadd.f32 %v2463_v58, %v5580_v46 }
 0x2d3   :  { %6075 = vst [vmem:[#allocation12_spill] sm:$0xff] %v5681_v10  ;;  %v2378_v13 = vsel %vm2290_vm0, %v5681_v10, 0.0  ;;  %v2416_v21 = vmul.f32 %v5681_v10, %v5681_v10 }
 0x2d4   :  { %v2107_v6 = vpop.f32.mrf.mxu2  ;;  %2379 = vadd.xlane.f32.xlu2 %v2378_v13 }
 0x2d5   :  { %v2108_v48 = vadd.f32 %v2107_v6, %v2019_v11  ;;  %v2196_v61 = vpop.f32.mrf.mxu3  ;;  %v2506_v55 = vsel %vm2290_vm0, %v2416_v21, 0.0 }
 0x2d6   :  { %2507 = vadd.xlane.f32.xlu1 %v2506_v55  ;;  %v2020_v46 = vpop.f32.mrf.mxu1 }
 0x2d7   :  { %v2197_v7 = vadd.f32 %v2196_v61, %v2108_v48  ;;  %v2338_v43 = vpop.xlane.xlu0 %2337  ;;  %v2021_v1 = vadd.f32 %v2020_v46, %v5207_v38 }
 0x2d8   :  { %v5693_v25 = vadd.f32 %v2338_v43, %v5584_v30 }
 0x2d9   :  { %v5695_v51 = vadd.f32 %v2285_v60, %v2197_v7  ;;  %v2466_v45 = vpop.xlane.xlu2 %2465  ;;  %v2287_v61 = vpop.f32.mrf.mxu0 }
 0x2da   :  { %v5698_v24 = vadd.f32 %v2466_v45, %v5592_v57 }
 0x2db   :  { %6076 = vst [vmem:[#allocation13_spill] sm:$0xff] %v5695_v51  ;;  %v2381_v58 = vsel %vm2290_vm0, %v5695_v51, 0.0  ;;  %v2417_v11 = vmul.f32 %v5695_v51, %v5695_v51 }
 0x2dc   :  { %v2109_v13 = vpop.f32.mrf.mxu2  ;;  %2382 = vadd.xlane.f32.xlu0 %v2381_v58 }
 0x2dd   :  { %v2110_v21 = vadd.f32 %v2109_v13, %v2021_v1  ;;  %v2509_v30 = vsel %vm2290_vm0, %v2417_v11, 0.0  ;;  %v2198_v6 = vpop.f32.mrf.mxu3  ;;  %v4110_v11 = vmov 128.0  }
 0x2de   :  { %2510 = vadd.xlane.f32.xlu2 %v2509_v30  ;;  %4092 = vrcp.f32 %v4110_v11 }
 0x2df   :  { %v2199_v48 = vadd.f32 %v2198_v6, %v2110_v21  ;;  %v2341_v7 = vpop.xlane.xlu1 %2340 }
 0x2e0   :  { %v2523_v51 = vadd.f32 %v5595_v12, %v2341_v7 }
 0x2e1   :  { %v5706_v55 = vadd.f32 %v2287_v61, %v2199_v48  ;;  %v2469_v43 = vpop.xlane.xlu0 %2468 }
 0x2e2   :  { %v2547_v10 = vadd.f32 %v5600_v40, %v2469_v43 }
 0x2e3   :  { %6077 = vst [vmem:[#allocation14_spill] sm:$0xff] %v5706_v55  ;;  %v2384_v38 = vsel %vm2290_vm0, %v5706_v55, 0.0  ;;  %v2418_v57 = vmul.f32 %v5706_v55, %v5706_v55 }
 0x2e4   :  { %2385 = vadd.xlane.f32.xlu1 %v2384_v38  ;;  %v4093_v6 = vpop.eup %4092 }
 0x2e5   :  { %v2512_v60 = vsel %vm2290_vm0, %v2418_v57, 0.0  ;;  %v2564_v38 = vmul.f32 128.0, %v4093_v6  ;;  %vm2568_vm1 = vweird.f32 %v4093_v6 }
 0x2e6   :  { %2513 = vadd.xlane.f32.xlu0 %v2512_v60 }
 0x2e7   :  { %v2344_v46 = vpop.xlane.xlu2 %2343  ;;  %v2565_v60 = vsub.f32 1.0, %v2564_v38  ;;  %v4111_v38 = vmov 0  }
 0x2e8   :  { %4089 = vset.pattern.permute.xlu1 %v4111_v38  ;;  %4090 = vset.pattern.permute.xlu2 %v4111_v38 }
 0x2e9   :  { %v2472_v45 = vpop.xlane.xlu1 %2471  ;;  %v2566_v2 = vmul.f32 %v4093_v6, %v2565_v60  ;;  %4091 = vset.pattern.permute.xlu0 %v4111_v38 }
 0x2eb   :  { %v2567_v11 = vadd.f32 %v4093_v6, %v2566_v2 }
 0x2ed   :  { %v5730_v34 = vsel %vm2568_vm1, %v4093_v6, %v2567_v11  ;;  %v2524_v6 = vadd.f32 %v5609_v29, %v2344_v46 }
 0x2ef   :  { %v2347_v1 = vpop.xlane.xlu0 %2346 }
 0x2f0   :  { %v2525_v29 = vadd.f32 %v5623_v42, %v2347_v1 }
 0x2f1   :  { %v2475_v58 = vpop.xlane.xlu2 %2474 }
 0x2f7   :  { %v2350_v13 = vpop.xlane.xlu1 %2349 }
 0x2f9   :  { %v2478_v21 = vpop.xlane.xlu0 %2477 }
 0x2ff   :  { %v5713_v30 = vpop.xlane.xlu2 %2352 }
 0x301   :  { %v5715_v48 = vpop.xlane.xlu1 %2480 }
 0x307   :  { %v5717_v61 = vpop.xlane.xlu0 %2355 }
 0x309   :  { %v5719_v57 = vpop.xlane.xlu2 %2483 }
 0x30f   :  { %v5721_v55 = vpop.xlane.xlu1 %2358 }
 0x311   :  { %v5723_v39 = vpop.xlane.xlu0 %2486 }
 0x317   :  { %v5725_v36 = vpop.xlane.xlu2 %2361 }
 0x319   :  { %v5728_v63 = vpop.xlane.xlu1 %2489 }
 0x31f   :  { %v2365_v33 = vpop.xlane.xlu0 %2364 }
 0x320   :  { %v2531_v27 = vadd.f32 %v2523_v51, %v2365_v33  ;;  %v2548_v33 = vadd.f32 %v5614_v32, %v2472_v45  ;;  %v2549_v32 = vadd.f32 %v5628_v23, %v2475_v58 }
 0x321   :  { %v2493_v9 = vpop.xlane.xlu2 %2492 }
 0x322   :  { %v5734_v60 = vmul.f32 %v5730_v34, %v2531_v27  ;;  %v2555_v2 = vadd.f32 %v2547_v10, %v2493_v9 }
 0x324   :  { %v2586_v12 = vmul.f32 %v5734_v60, %v5734_v60  ;;  %v2578_v7 = vmul.f32 %v5730_v34, %v2555_v2 }
 0x326   :  { %v2594_v11 = vsub.f32 %v2578_v7, %v2586_v12 }
 0x327   :  { %v2368_v59 = vpop.xlane.xlu1 %2367 }
 0x328   :  { %v2602_v40 = vmax.f32 %v2594_v11, 0.0  ;;  %v2532_v51 = vadd.f32 %v2524_v6, %v2368_v59 }
 0x329   :  { %v2496_v43 = vpop.xlane.xlu0 %2495 }
 0x32a   :  { %v2618_v0 = vadd.f32 1e-05, %v2602_v40  ;;  %v5742_v38 = vmul.f32 %v5730_v34, %v2532_v51  ;;  %v2556_v27 = vadd.f32 %v2548_v33, %v2496_v43  ;;  %v2526_v43 = vadd.f32 %v5637_v17, %v2350_v13  ;;  %v2610_v17 = vld [vmem:[%s6049_s2] sm:$0xff] }
 0x32c   :  { %4094 = vrsqrt.f32 %v2618_v0  ;;  %v2587_v9 = vmul.f32 %v5742_v38, %v5742_v38  ;;  %v2579_v10 = vmul.f32 %v5730_v34, %v2556_v27  ;;  %vm2632_vm3 = vweird.f32 %v2618_v0 }
 0x32e   :  { %v2595_v46 = vsub.f32 %v2579_v10, %v2587_v9  ;;  %v2550_v9 = vadd.f32 %v5642_v52, %v2478_v21 }
 0x32f   :  { %v2371_v2 = vpop.xlane.xlu2 %2370 }
 0x330   :  { %v2603_v45 = vmax.f32 %v2595_v46, 0.0  ;;  %v2533_v59 = vadd.f32 %v2525_v29, %v2371_v2 }
 0x331   :  { %v2499_v12 = vpop.xlane.xlu1 %2498 }
 0x332   :  { %v4095_v7 = vpop.eup %4094  ;;  %v2619_v6 = vadd.f32 1e-05, %v2603_v45  ;;  %v5750_v11 = vmul.f32 %v5730_v34, %v2533_v59  ;;  %v2557_v33 = vadd.f32 %v2549_v32, %v2499_v12 }
 0x333   :  { %v2627_v40 = vmul.f32 %v4095_v7, %v2618_v0  ;;  %vm2633_vm2 = vweird.f32 %v4095_v7  ;;  %v2551_v0 = vadd.f32 %v5656_v28, %v5715_v48  ;;  %v2714_v28 = vld [vmem:[%s6050_s3] sm:$0xff]  ;;  %v2611_v48 = vld [vmem:[%s6049_s2 + $0x8] sm:$0xff] }
 0x334   :  { %4096 = vrsqrt.f32 %v2619_v6  ;;  %v2588_v51 = vmul.f32 %v5750_v11, %v5750_v11  ;;  %v2580_v42 = vmul.f32 %v5730_v34, %v2557_v33  ;;  %vm2634_vm4 = vmor %vm2632_vm3, %vm2633_vm2  ;;  %vm2642_vm6 = vweird.f32 %v2619_v6 }
 0x335   :  { %v2628_v1 = vmul.f32 %v4095_v7, %v2627_v40 }
 0x336   :  { %v2596_v23 = vsub.f32 %v2580_v42, %v2588_v51  ;;  %v2527_v42 = vadd.f32 %v5651_v18, %v5713_v30 }
 0x337   :  { %v2374_v58 = vpop.xlane.xlu0 %2373  ;;  %v2629_v27 = vmul.f32 0.5, %v2628_v1 }
 0x338   :  { %v2604_v10 = vmax.f32 %v2596_v23, 0.0  ;;  %v2534_v29 = vadd.f32 %v2526_v43, %v2374_v58 }
 0x339   :  { %v2502_v46 = vpop.xlane.xlu2 %2501  ;;  %v2630_v2 = vsub.f32 1.5, %v2629_v27 }
 0x33a   :  { %v4097_v32 = vpop.eup %4096  ;;  %v5757_v45 = vadd.f32 1e-05, %v2604_v10  ;;  %v5760_v59 = vmul.f32 %v5730_v34, %v2534_v29  ;;  %v2558_v12 = vadd.f32 %v2550_v9, %v2502_v46 }
 0x33b   :  { %v2637_v33 = vmul.f32 %v4097_v32, %v2619_v6  ;;  %v2631_v13 = vmul.f32 %v4095_v7, %v2630_v2  ;;  %vm2643_vm5 = vweird.f32 %v4097_v32  ;;  %v2715_v6 = vld [vmem:[%s6050_s3 + $0x8] sm:$0xff] }
 0x33c   :  { %4098 = vrsqrt.f32 %v5757_v45  ;;  %v2589_v52 = vmul.f32 %v5760_v59, %v5760_v59  ;;  %v2581_v21 = vmul.f32 %v5730_v34, %v2558_v12  ;;  %vm2644_vm7 = vmor %vm2642_vm6, %vm2643_vm5  ;;  %vm2652_vm9 = vweird.f32 %v5757_v45 }
 0x33d   :  { %v2638_v40 = vmul.f32 %v4097_v32, %v2637_v33  ;;  %v2635_v51 = vsel %vm2634_vm4, %v4095_v7, %v2631_v13 }
 0x33e   :  { %v2597_v1 = vsub.f32 %v2581_v21, %v2589_v52  ;;  %v2706_v43 = vmul.f32 %v2635_v51, %v2610_v17  ;;  %v2528_v21 = vadd.f32 %v5665_v56, %v5717_v61 }
 0x33f   :  { %v2377_v23 = vpop.xlane.xlu1 %2376  ;;  %v2639_v58 = vmul.f32 0.5, %v2638_v40 }
 0x340   :  { %v2605_v27 = vmax.f32 %v2597_v1, 0.0  ;;  %v2535_v9 = vadd.f32 %v2527_v42, %v2377_v23  ;;  %2740 = vperm.xlu1 %4089, %v2706_v43   ;;  %v2722_v10 = vmul.f32 %v2706_v43, %v5734_v60  ;;  %v2552_v23 = vadd.f32 %v5670_v49, %v5719_v57  ;;  %v2612_v57 = vld [vmem:[%s6049_s2 + $0x10] sm:$0xff] }
 0x341   :  { %v2505_v29 = vpop.xlane.xlu0 %2504  ;;  %v2640_v46 = vsub.f32 1.5, %v2639_v58 }
 0x342   :  { %v4099_v2 = vpop.eup %4098  ;;  %v5774_v7 = vadd.f32 1e-05, %v2605_v27  ;;  %v5777_v18 = vmul.f32 %v5730_v34, %v2535_v9  ;;  %v2559_v30 = vadd.f32 %v2551_v0, %v2505_v29  ;;  %v2730_v51 = vsub.f32 %v2714_v28, %v2722_v10 }
 0x343   :  { %v2647_v12 = vmul.f32 %v4099_v2, %v5757_v45  ;;  %v2641_v60 = vmul.f32 %v4097_v32, %v2640_v46  ;;  %vm2653_vm8 = vweird.f32 %v4099_v2  ;;  %v2529_v45 = vadd.f32 %v5679_v31, %v5721_v55 }
 0x344   :  { %4100 = vrsqrt.f32 %v5774_v7  ;;  %v2590_v33 = vmul.f32 %v5777_v18, %v5777_v18  ;;  %v2582_v17 = vmul.f32 %v5730_v34, %v2559_v30  ;;  %vm2654_vm10 = vmor %vm2652_vm9, %vm2653_vm8  ;;  %vm2662_vm12 = vweird.f32 %v5774_v7 }
 0x345   :  { %v2648_v13 = vmul.f32 %v4099_v2, %v2647_v12  ;;  %v2645_v52 = vsel %vm2644_vm7, %v4097_v32, %v2641_v60 }
 0x346   :  { %v2598_v40 = vsub.f32 %v2582_v17, %v2590_v33  ;;  %v2707_v42 = vmul.f32 %v2645_v52, %v2611_v48 }
 0x347   :  { %v2649_v1 = vmul.f32 0.5, %v2648_v13  ;;  %v2380_v43 = vpop.xlane.xlu2 %2379  ;;  %v2716_v13 = vld [vmem:[%s6050_s3 + $0x10] sm:$0xff] }
 0x348   :  { %v2606_v58 = vmax.f32 %v2598_v40, 0.0  ;;  %v2536_v0 = vadd.f32 %v2528_v21, %v2380_v43  ;;  %2812 = vperm.xlu1 %4089, %v2730_v51   ;;  %2745 = vperm.xlu2 %4090, %v2707_v42   ;;  %v2723_v32 = vmul.f32 %v2707_v42, %v5742_v38  ;;  %v2553_v21 = vadd.f32 %v5684_v16, %v5723_v39  ;;  %v2613_v39 = vld [vmem:[%s6049_s2 + $0x18] sm:$0xff] }
 0x349   :  { %v2650_v27 = vsub.f32 1.5, %v2649_v1  ;;  %v2508_v56 = vpop.xlane.xlu1 %2507 }
 0x34a   :  { %v4101_v61 = vpop.eup %4100  ;;  %v5798_v9 = vadd.f32 1e-05, %v2606_v58  ;;  %v5801_v10 = vmul.f32 %v5730_v34, %v2536_v0  ;;  %v2560_v29 = vadd.f32 %v2552_v23, %v2508_v56  ;;  %v2731_v46 = vsub.f32 %v2715_v6, %v2723_v32 }
 0x34b   :  { %v2657_v49 = vmul.f32 %v4101_v61, %v5774_v7  ;;  %v2651_v38 = vmul.f32 %v4099_v2, %v2650_v27  ;;  %vm2663_vm11 = vweird.f32 %v4101_v61  ;;  %v2530_v56 = vadd.f32 %v5693_v25, %v5725_v36  ;;  %v2717_v7 = vld [vmem:[%s6050_s3 + $0x18] sm:$0xff] }
 0x34c   :  { %4102 = vrsqrt.f32 %v5798_v9  ;;  %v2591_v30 = vmul.f32 %v5801_v10, %v5801_v10  ;;  %v2583_v12 = vmul.f32 %v5730_v34, %v2560_v29  ;;  %2817 = vperm.xlu0 %4091, %v2731_v46   ;;  %vm2664_vm13 = vmor %vm2662_vm12, %vm2663_vm11  ;;  %vm2672_vm15 = vweird.f32 %v5798_v9 }
 0x34d   :  { %v2658_v28 = vmul.f32 %v4101_v61, %v2657_v49  ;;  %v2655_v48 = vsel %vm2654_vm10, %v4099_v2, %v2651_v38  ;;  %v2554_v38 = vadd.f32 %v5698_v24, %v5728_v63  ;;  %v2614_v63 = vld [vmem:[%s6049_s2 + $0x20] sm:$0xff]  ;;  %vm2946_vm10 = vcmask 257024  }
 0x34e   :  { %v2599_v60 = vsub.f32 %v2583_v12, %v2591_v30  ;;  %v2708_v33 = vmul.f32 %v2655_v48, %v2612_v57 }
 0x34f   :  { %v2383_v17 = vpop.xlane.xlu0 %2382  ;;  %v2659_v52 = vmul.f32 0.5, %v2658_v28 }
 0x350   :  { %v2607_v40 = vmax.f32 %v2599_v60, 0.0  ;;  %v2537_v51 = vadd.f32 %v2529_v45, %v2383_v17  ;;  %v2724_v42 = vmul.f32 %v2708_v33, %v5750_v11 }
 0x351   :  { %v2511_v1 = vpop.xlane.xlu2 %2510  ;;  %v2660_v2 = vsub.f32 1.5, %v2659_v52 }
 0x352   :  { %v4103_v43 = vpop.eup %4102  ;;  %v5820_v31 = vadd.f32 1e-05, %v2607_v40  ;;  %v5823_v55 = vmul.f32 %v5730_v34, %v2537_v51  ;;  %v2561_v6 = vadd.f32 %v2553_v21, %v2511_v1  ;;  %v2732_v23 = vsub.f32 %v2716_v13, %v2724_v42  ;;  %v2718_v42 = vld [vmem:[%s6050_s3 + $0x20] sm:$0xff] }
 0x353   :  { %v2667_v58 = vmul.f32 %v4103_v43, %v5798_v9  ;;  %v2661_v16 = vmul.f32 %v4101_v61, %v2660_v2  ;;  %vm2673_vm14 = vweird.f32 %v4103_v43 }
 0x354   :  { %4104 = vrsqrt.f32 %v5820_v31  ;;  %v2592_v11 = vmul.f32 %v5823_v55, %v5823_v55  ;;  %v2584_v0 = vmul.f32 %v5730_v34, %v2561_v6  ;;  %2822 = vperm.xlu2 %4090, %v2732_v23   ;;  %2750 = vperm.xlu0 %4091, %v2708_v33   ;;  %vm2674_vm0 = vmor %vm2672_vm15, %vm2673_vm14  ;;  %vm2682_vm2 = vweird.f32 %v5820_v31 }
 0x355   :  { %v2668_v32 = vmul.f32 %v4103_v43, %v2667_v58  ;;  %v2665_v27 = vsel %vm2664_vm13, %v4101_v61, %v2661_v16 }
 0x356   :  { %v2600_v29 = vsub.f32 %v2584_v0, %v2592_v11  ;;  %v2709_v46 = vmul.f32 %v2665_v27, %v2613_v39 }
 0x357   :  { %v2386_v49 = vpop.xlane.xlu1 %2385  ;;  %v2669_v57 = vmul.f32 0.5, %v2668_v32 }
 0x358   :  { %v2608_v30 = vmax.f32 %v2600_v29, 0.0  ;;  %v2538_v12 = vadd.f32 %v2530_v56, %v2386_v49  ;;  %v2725_v28 = vmul.f32 %v2709_v46, %v5760_v59  ;;  %v2616_v49 = vld [vmem:[%s6049_s2 + $0x30] sm:$0xff] }
 0x359   :  { %v2514_v48 = vpop.xlane.xlu0 %2513  ;;  %v2670_v61 = vsub.f32 1.5, %v2669_v57 }
 0x35a   :  { %v4105_v45 = vpop.eup %4104  ;;  %v2624_v36 = vadd.f32 1e-05, %v2608_v30  ;;  %v5844_v25 = vmul.f32 %v5730_v34, %v2538_v12  ;;  %v2562_v60 = vadd.f32 %v2554_v38, %v2514_v48  ;;  %v2733_v33 = vsub.f32 %v2717_v7, %v2725_v28  ;;  %v2617_v48 = vld [vmem:[%s6049_s2 + $0x38] sm:$0xff] }
 0x35b   :  { %v2677_v17 = vmul.f32 %v4105_v45, %v5820_v31  ;;  %v2671_v24 = vmul.f32 %v4103_v43, %v2670_v61  ;;  %vm2683_vm1 = vweird.f32 %v4105_v45 }
 0x35c   :  { %4106 = vrsqrt.f32 %v2624_v36  ;;  %v2593_v59 = vmul.f32 %v5844_v25, %v5844_v25  ;;  %v2585_v13 = vmul.f32 %v5730_v34, %v2562_v60  ;;  %2755 = vperm.xlu2 %4090, %v2709_v46   ;;  %2827 = vperm.xlu1 %4089, %v2733_v33   ;;  %vm2684_vm3 = vmor %vm2682_vm2, %vm2683_vm1  ;;  %vm2692_vm5 = vweird.f32 %v2624_v36 }
 0x35d   :  { %v2678_v52 = vmul.f32 %v4105_v45, %v2677_v17  ;;  %v2675_v21 = vsel %vm2674_vm0, %v4103_v43, %v2671_v24  ;;  %v2615_v43 = vld [vmem:[%s6049_s2 + $0x28] sm:$0xff] }
 0x35e   :  { %v2601_v40 = vsub.f32 %v2585_v13, %v2593_v59  ;;  %v2710_v51 = vmul.f32 %v2675_v21, %v2614_v63  ;;  %v2719_v63 = vld [vmem:[%s6050_s3 + $0x28] sm:$0xff] }
 0x35f   :  { %v2679_v1 = vmul.f32 0.5, %v2678_v52 }
 0x360   :  { %v2609_v9 = vmax.f32 %v2601_v40, 0.0  ;;  %v2726_v2 = vmul.f32 %v2710_v51, %v5777_v18 }
 0x361   :  { %v2680_v6 = vsub.f32 1.5, %v2679_v1 }
 0x362   :  { %v4107_v23 = vpop.eup %4106  ;;  %v2625_v34 = vadd.f32 1e-05, %v2609_v9  ;;  %v2734_v58 = vsub.f32 %v2718_v42, %v2726_v2 }
 0x363   :  { %v2687_v39 = vmul.f32 %v4107_v23, %v2624_v36  ;;  %v2681_v16 = vmul.f32 %v4105_v45, %v2680_v6  ;;  %vm2693_vm4 = vweird.f32 %v4107_v23 }
 0x364   :  { %4108 = vrsqrt.f32 %v2625_v34  ;;  %2760 = vperm.xlu1 %4089, %v2710_v51   ;;  %2832 = vperm.xlu0 %4091, %v2734_v58   ;;  %vm2694_vm6 = vmor %vm2692_vm5, %vm2693_vm4  ;;  %vm2702_vm8 = vweird.f32 %v2625_v34 }
 0x365   :  { %v2688_v11 = vmul.f32 %v4107_v23, %v2687_v39  ;;  %v2685_v0 = vsel %vm2684_vm3, %v4105_v45, %v2681_v16 }
 0x366   :  { %v2711_v18 = vmul.f32 %v2685_v0, %v2615_v43 }
 0x367   :  { %v2689_v32 = vmul.f32 0.5, %v2688_v11 }
 0x368   :  { %2765 = vperm.xlu2 %4090, %v2711_v18   ;;  %v2727_v27 = vmul.f32 %v2711_v18, %v5801_v10  ;;  %v2720_v10 = vld [vmem:[%s6050_s3 + $0x30] sm:$0xff] }
 0x369   :  { %v2690_v56 = vsub.f32 1.5, %v2689_v32 }
 0x36a   :  { %v4109_v29 = vpop.eup %4108  ;;  %v2735_v24 = vsub.f32 %v2719_v63, %v2727_v27 }
 0x36b   :  { %v2697_v46 = vmul.f32 %v4109_v29, %v2625_v34  ;;  %v2691_v31 = vmul.f32 %v4107_v23, %v2690_v56  ;;  %vm2703_vm7 = vweird.f32 %v4109_v29 }
 0x36c   :  { %vm2704_vm9 = vmor %vm2702_vm8, %vm2703_vm7 }
 0x36d   :  { %v2698_v7 = vmul.f32 %v4109_v29, %v2697_v46  ;;  %v2695_v57 = vsel %vm2694_vm6, %v4107_v23, %v2691_v31 }
 0x36e   :  { %v2712_v38 = vmul.f32 %v2695_v57, %v2616_v49 }
 0x36f   :  { %v2699_v30 = vmul.f32 0.5, %v2698_v7 }
 0x370   :  { %2770 = vperm.xlu1 %4089, %v2712_v38   ;;  %v2728_v12 = vmul.f32 %v2712_v38, %v5823_v55  ;;  %v2721_v55 = vld [vmem:[%s6050_s3 + $0x38] sm:$0xff] }
 0x371   :  { %v2700_v28 = vsub.f32 1.5, %v2699_v30 }
 0x372   :  { %v2736_v36 = vsub.f32 %v2720_v10, %v2728_v12 }
 0x373   :  { %v2701_v61 = vmul.f32 %v4109_v29, %v2700_v28 }
 0x375   :  { %v2705_v45 = vsel %vm2704_vm9, %v4109_v29, %v2701_v61 }
 0x376   :  { %v2713_v60 = vmul.f32 %v2705_v45, %v2617_v48 }
 0x378   :  { %2842 = vperm.xlu1 %4089, %v2736_v36   ;;  %2775 = vperm.xlu2 %4090, %v2713_v60   ;;  %v2729_v33 = vmul.f32 %v2713_v60, %v5844_v25 }
 0x37a   :  { %v2737_v17 = vsub.f32 %v2721_v55, %v2729_v33 }
 0x37c   :  { %2847 = vperm.xlu0 %4091, %v2737_v17  }
 0x380   :  { %2837 = vperm.xlu2 %4090, %v2735_v24  }
 0x3a2   :  { %v2746_v59 = vpop.permute.xlu2 %2745 }
 0x3a3   :  { %v2779_v43 = vmul.f32 %v2746_v59, %v5242_v20 }
 0x3ae   :  { %v2823_v52 = vpop.permute.xlu2 %2822 }
 0x3b2   :  { %v2741_v13 = vpop.permute.xlu1 %2740 }
 0x3b3   :  { %v2778_v21 = vmul.f32 %v2741_v13, %v5210_v44  ;;  %v2786_v40 = vmul.f32 %v2741_v13, %v5370_v5  ;;  %v2794_v51 = vmul.f32 %v2741_v13, %v5506_v8  ;;  %v2802_v42 = vmul.f32 %v2741_v13, %v5611_v37 }
 0x3b4   :  { %v2787_v44 = vmul.f32 %v2746_v59, %v5402_v14  ;;  %v2795_v5 = vmul.f32 %v2746_v59, %v5516_v19  ;;  %v2803_v8 = vmul.f32 %v2746_v59, %v5625_v50 }
 0x3b6   :  { %v2756_v20 = vpop.permute.xlu2 %2755 }
 0x3b7   :  { %v2789_v33 = vmul.f32 %v2756_v20, %v5442_v47  ;;  %v2797_v17 = vmul.f32 %v2756_v20, %v5542_v22  ;;  %v2805_v63 = vmul.f32 %v2756_v20, %v5653_v54 }
 0x3ba   :  { %v2813_v25 = vpop.permute.xlu1 %2812 }
 0x3bb   :  { %v2850_v1 = vadd.f32 %v2813_v25, %v2778_v21  ;;  %v2858_v9 = vadd.f32 %v2813_v25, %v2786_v40  ;;  %v2866_v2 = vadd.f32 %v2813_v25, %v2794_v51  ;;  %v2874_v6 = vadd.f32 %v2813_v25, %v2802_v42 }
 0x3bd   :  { %v2882_v23 = vmax.f32 %v2850_v1, 0.0  ;;  %v2890_v34 = vmax.f32 %v2858_v9, 0.0  ;;  %v2898_v58 = vmax.f32 %v2866_v2, 0.0  ;;  %v2906_v39 = vmax.f32 %v2874_v6, 0.0 }
 0x3be   :  { %v2818_v16 = vpop.permute.xlu0 %2817 }
 0x3bf   :  { %v2914_v37 = vpack.c.bf16 %v2882_v23, %v2882_v23  ;;  %v2922_v11 = vpack.c.bf16 %v2890_v34, %v2890_v34  ;;  %v2930_v0 = vpack.c.bf16 %v2898_v58, %v2898_v58  ;;  %v2938_v18 = vpack.c.bf16 %v2906_v39, %v2906_v39 }
 0x3c0   :  { %v2851_v32 = vadd.f32 %v2818_v16, %v2779_v43  ;;  %v2859_v27 = vadd.f32 %v2818_v16, %v2787_v44  ;;  %v2867_v56 = vadd.f32 %v2818_v16, %v2795_v5  ;;  %v2875_v29 = vadd.f32 %v2818_v16, %v2803_v8  ;;  %v6078_v44 = vld [vmem:[#allocation11_spill] sm:$0xff] }
 0x3c1   :  { %2947 = vst.msk [vmem:[%s6051_s4] sm:$0xf] %vm2946_vm10, %v2914_v37 }
 0x3c2   :  { %2955 = vst.msk [vmem:[%s6051_s4 + $0x20] sm:$0xf] %vm2946_vm10, %v2922_v11  ;;  %v2883_v14 = vmax.f32 %v2851_v32, 0.0  ;;  %v2891_v19 = vmax.f32 %v2859_v27, 0.0  ;;  %v2899_v50 = vmax.f32 %v2867_v56, 0.0  ;;  %v2907_v46 = vmax.f32 %v2875_v29, 0.0  ;;  %v2766_v36 = vpop.permute.xlu2 %2765 }
 0x3c3   :  { %2963 = vst.msk [vmem:[%s6051_s4 + $0x40] sm:$0xf] %vm2946_vm10, %v2930_v0  ;;  %v6080_v27 = vld [vmem:[#allocation5_spill] sm:$0xff]  ;;  %v6081_v56 = vld [vmem:[#allocation8_spill] sm:$0xff] }
 0x3c4   :  { %2971 = vst.msk [vmem:[%s6051_s4 + $0x60] sm:$0xf] %vm2946_vm10, %v2938_v18  ;;  %v2915_v49 = vpack.c.bf16 %v2883_v14, %v2883_v14  ;;  %v2923_v31 = vpack.c.bf16 %v2891_v19, %v2891_v19  ;;  %v2931_v7 = vpack.c.bf16 %v2899_v50, %v2899_v50  ;;  %v2939_v57 = vpack.c.bf16 %v2907_v46, %v2907_v46  ;;  %v6079_v18 = vld [vmem:[#allocation2_spill] sm:$0xff]  ;;  %v6082_v29 = vld [vmem:[#allocation12_spill] sm:$0xff] }
 0x3c5   :  { %v2783_v32 = vmul.f32 %v2766_v36, %v6079_v18 }
 0x3c6   :  { %2948 = vst.msk [vmem:[%s6051_s4 + $0x4] sm:$0xf] %vm2946_vm10, %v2915_v49  ;;  %v2751_v38 = vpop.permute.xlu0 %2750 }
 0x3c7   :  { %2956 = vst.msk [vmem:[%s6051_s4 + $0x24] sm:$0xf] %vm2946_vm10, %v2923_v31  ;;  %v2780_v30 = vmul.f32 %v2751_v38, %v5249_v35  ;;  %v2788_v12 = vmul.f32 %v2751_v38, %v5410_v3  ;;  %v2796_v28 = vmul.f32 %v2751_v38, %v5528_v4  ;;  %v2804_v10 = vmul.f32 %v2751_v38, %v5639_v26 }
 0x3c8   :  { %2964 = vst.msk [vmem:[%s6051_s4 + $0x44] sm:$0xf] %vm2946_vm10, %v2931_v7  ;;  %v2781_v26 = vmul.f32 %v2756_v20, %v5281_v15 }
 0x3c9   :  { %2972 = vst.msk [vmem:[%s6051_s4 + $0x64] sm:$0xf] %vm2946_vm10, %v2939_v57  ;;  %v2852_v48 = vadd.f32 %v2823_v52, %v2780_v30  ;;  %v2860_v61 = vadd.f32 %v2823_v52, %v2788_v12  ;;  %v2868_v45 = vadd.f32 %v2823_v52, %v2796_v28  ;;  %v2876_v35 = vadd.f32 %v2823_v52, %v2804_v10 }
 0x3cb   :  { %v2884_v3 = vmax.f32 %v2852_v48, 0.0  ;;  %v2892_v60 = vmax.f32 %v2860_v61, 0.0  ;;  %v2900_v4 = vmax.f32 %v2868_v45, 0.0  ;;  %v2908_v55 = vmax.f32 %v2876_v35, 0.0 }
 0x3cd   :  { %v2916_v24 = vpack.c.bf16 %v2884_v3, %v2884_v3  ;;  %v2924_v59 = vpack.c.bf16 %v2892_v60, %v2892_v60  ;;  %v2932_v13 = vpack.c.bf16 %v2900_v4, %v2900_v4  ;;  %v2940_v21 = vpack.c.bf16 %v2908_v55, %v2908_v55  ;;  %v6083_v55 = vld [vmem:[#allocation3_spill] sm:$0xff] }
 0x3ce   :  { %v2828_v40 = vpop.permute.xlu1 %2827 }
 0x3cf   :  { %2949 = vst.msk [vmem:[%s6051_s4 + $0x8] sm:$0xf] %vm2946_vm10, %v2916_v24  ;;  %v2853_v52 = vadd.f32 %v2828_v40, %v2781_v26  ;;  %v2861_v51 = vadd.f32 %v2828_v40, %v2789_v33  ;;  %v2869_v42 = vadd.f32 %v2828_v40, %v2797_v17  ;;  %v2877_v15 = vadd.f32 %v2828_v40, %v2805_v63  ;;  %v6084_v33 = vld [vmem:[#allocation6_spill] sm:$0xff]  ;;  %v6085_v63 = vld [vmem:[#allocation9_spill] sm:$0xff] }
 0x3d0   :  { %2957 = vst.msk [vmem:[%s6051_s4 + $0x28] sm:$0xf] %vm2946_vm10, %v2924_v59  ;;  %v6086_v59 = vld [vmem:[#allocation13_spill] sm:$0xff] }
 0x3d1   :  { %2965 = vst.msk [vmem:[%s6051_s4 + $0x48] sm:$0xf] %vm2946_vm10, %v2932_v13  ;;  %v2885_v47 = vmax.f32 %v2853_v52, 0.0  ;;  %v2893_v22 = vmax.f32 %v2861_v51, 0.0  ;;  %v2901_v54 = vmax.f32 %v2869_v42, 0.0  ;;  %v2909_v25 = vmax.f32 %v2877_v15, 0.0 }
 0x3d2   :  { %2973 = vst.msk [vmem:[%s6051_s4 + $0x68] sm:$0xf] %vm2946_vm10, %v2940_v21  ;;  %v5945_v1 = vpop.permute.xlu2 %2775 }
 0x3d3   :  { %v2917_v9 = vpack.c.bf16 %v2885_v47, %v2885_v47  ;;  %v2925_v2 = vpack.c.bf16 %v2893_v22, %v2893_v22  ;;  %v2933_v6 = vpack.c.bf16 %v2901_v54, %v2901_v54  ;;  %v2941_v23 = vpack.c.bf16 %v2909_v25, %v2909_v25  ;;  %v6087_v25 = vld [vmem:[#allocation4_spill] sm:$0xff] }
 0x3d5   :  { %2950 = vst.msk [vmem:[%s6051_s4 + $0xc] sm:$0xf] %vm2946_vm10, %v2917_v9  ;;  %v2785_v9 = vmul.f32 %v5945_v1, %v6087_v25 }
 0x3d6   :  { %2958 = vst.msk [vmem:[%s6051_s4 + $0x2c] sm:$0xf] %vm2946_vm10, %v2925_v2  ;;  %v2761_v34 = vpop.permute.xlu1 %2760  ;;  %v2833_v8 = vpop.permute.xlu0 %2832  ;;  %v6088_v2 = vld [vmem:[#allocation7_spill] sm:$0xff] }
 0x3d7   :  { %2966 = vst.msk [vmem:[%s6051_s4 + $0x4c] sm:$0xf] %vm2946_vm10, %v2933_v6  ;;  %v2782_v58 = vmul.f32 %v2761_v34, %v5288_v41  ;;  %v2790_v39 = vmul.f32 %v2761_v34, %v5450_v53  ;;  %v2798_v43 = vmul.f32 %v2761_v34, %v5556_v62  ;;  %v2806_v5 = vmul.f32 %v2761_v34, %v6078_v44 }
 0x3d8   :  { %2974 = vst.msk [vmem:[%s6051_s4 + $0x6c] sm:$0xf] %vm2946_vm10, %v2941_v23  ;;  %v2791_v41 = vmul.f32 %v2766_v36, %v6080_v27  ;;  %v2799_v53 = vmul.f32 %v2766_v36, %v6081_v56  ;;  %v2807_v62 = vmul.f32 %v2766_v36, %v6082_v29  ;;  %v2793_v6 = vmul.f32 %v5945_v1, %v6088_v2  ;;  %v6089_v23 = vld [vmem:[#allocation10_spill] sm:$0xff] }
 0x3d9   :  { %v2854_v16 = vadd.f32 %v2833_v8, %v2782_v58  ;;  %v2862_v37 = vadd.f32 %v2833_v8, %v2790_v39  ;;  %v2870_v11 = vadd.f32 %v2833_v8, %v2798_v43  ;;  %v2878_v0 = vadd.f32 %v2833_v8, %v2806_v5  ;;  %v6090_v58 = vld [vmem:[#allocation14_spill] sm:$0xff] }
 0x3da   :  { %v2838_v20 = vpop.permute.xlu2 %2837  ;;  %v2801_v34 = vmul.f32 %v5945_v1, %v6089_v23  ;;  %v2809_v39 = vmul.f32 %v5945_v1, %v6090_v58 }
 0x3db   :  { %v2886_v14 = vmax.f32 %v2854_v16, 0.0  ;;  %v2894_v19 = vmax.f32 %v2862_v37, 0.0  ;;  %v2902_v50 = vmax.f32 %v2870_v11, 0.0  ;;  %v2910_v46 = vmax.f32 %v2878_v0, 0.0 }
 0x3dc   :  { %v2855_v49 = vadd.f32 %v2838_v20, %v2783_v32  ;;  %v2863_v31 = vadd.f32 %v2838_v20, %v2791_v41  ;;  %v2871_v7 = vadd.f32 %v2838_v20, %v2799_v53  ;;  %v2879_v57 = vadd.f32 %v2838_v20, %v2807_v62 }
 0x3dd   :  { %v2918_v38 = vpack.c.bf16 %v2886_v14, %v2886_v14  ;;  %v2926_v30 = vpack.c.bf16 %v2894_v19, %v2894_v19  ;;  %v2934_v12 = vpack.c.bf16 %v2902_v50, %v2902_v50  ;;  %v2942_v28 = vpack.c.bf16 %v2910_v46, %v2910_v46 }
 0x3de   :  { %v2887_v10 = vmax.f32 %v2855_v49, 0.0  ;;  %v2895_v48 = vmax.f32 %v2863_v31, 0.0  ;;  %v2903_v61 = vmax.f32 %v2871_v7, 0.0  ;;  %v2911_v45 = vmax.f32 %v2879_v57, 0.0 }
 0x3df   :  { %2951 = vst.msk [vmem:[%s6051_s4 + $0x10] sm:$0xf] %vm2946_vm10, %v2918_v38 }
 0x3e0   :  { %2959 = vst.msk [vmem:[%s6051_s4 + $0x30] sm:$0xf] %vm2946_vm10, %v2926_v30  ;;  %v2919_v35 = vpack.c.bf16 %v2887_v10, %v2887_v10  ;;  %v2927_v36 = vpack.c.bf16 %v2895_v48, %v2895_v48  ;;  %v2935_v3 = vpack.c.bf16 %v2903_v61, %v2903_v61  ;;  %v2943_v60 = vpack.c.bf16 %v2911_v45, %v2911_v45 }
 0x3e1   :  { %2967 = vst.msk [vmem:[%s6051_s4 + $0x50] sm:$0xf] %vm2946_vm10, %v2934_v12 }
 0x3e2   :  { %2975 = vst.msk [vmem:[%s6051_s4 + $0x70] sm:$0xf] %vm2946_vm10, %v2942_v28  ;;  %v2771_v4 = vpop.permute.xlu1 %2770 }
 0x3e3   :  { %2952 = vst.msk [vmem:[%s6051_s4 + $0x14] sm:$0xf] %vm2946_vm10, %v2919_v35  ;;  %v2784_v26 = vmul.f32 %v2771_v4, %v6083_v55  ;;  %v2792_v17 = vmul.f32 %v2771_v4, %v6084_v33  ;;  %v2800_v24 = vmul.f32 %v2771_v4, %v6085_v63  ;;  %v2808_v13 = vmul.f32 %v2771_v4, %v6086_v59 }
 0x3e4   :  { %2960 = vst.msk [vmem:[%s6051_s4 + $0x34] sm:$0xf] %vm2946_vm10, %v2927_v36 }
 0x3e5   :  { %2968 = vst.msk [vmem:[%s6051_s4 + $0x54] sm:$0xf] %vm2946_vm10, %v2935_v3 }
 0x3e6   :  { %2976 = vst.msk [vmem:[%s6051_s4 + $0x74] sm:$0xf] %vm2946_vm10, %v2943_v60 }
 0x3ea   :  { %v2843_v21 = vpop.permute.xlu1 %2842 }
 0x3eb   :  { %v2856_v40 = vadd.f32 %v2843_v21, %v2784_v26  ;;  %v2864_v52 = vadd.f32 %v2843_v21, %v2792_v17  ;;  %v2872_v51 = vadd.f32 %v2843_v21, %v2800_v24  ;;  %v2880_v42 = vadd.f32 %v2843_v21, %v2808_v13 }
 0x3ed   :  { %v2888_v15 = vmax.f32 %v2856_v40, 0.0  ;;  %v2896_v47 = vmax.f32 %v2864_v52, 0.0  ;;  %v2904_v22 = vmax.f32 %v2872_v51, 0.0  ;;  %v2912_v54 = vmax.f32 %v2880_v42, 0.0 }
 0x3ee   :  { %v2848_v43 = vpop.permute.xlu0 %2847 }
 0x3ef   :  { %v2920_v44 = vpack.c.bf16 %v2888_v15, %v2888_v15  ;;  %v2928_v5 = vpack.c.bf16 %v2896_v47, %v2896_v47  ;;  %v2936_v8 = vpack.c.bf16 %v2904_v22, %v2904_v22  ;;  %v2944_v16 = vpack.c.bf16 %v2912_v54, %v2912_v54 }
 0x3f0   :  { %v2857_v37 = vadd.f32 %v2848_v43, %v2785_v9  ;;  %v2865_v11 = vadd.f32 %v2848_v43, %v2793_v6  ;;  %v2873_v0 = vadd.f32 %v2848_v43, %v2801_v34  ;;  %v2881_v18 = vadd.f32 %v2848_v43, %v2809_v39 }
 0x3f1   :  { %2953 = vst.msk [vmem:[%s6051_s4 + $0x18] sm:$0xf] %vm2946_vm10, %v2920_v44 }
 0x3f2   :  { %2961 = vst.msk [vmem:[%s6051_s4 + $0x38] sm:$0xf] %vm2946_vm10, %v2928_v5  ;;  %v2889_v1 = vmax.f32 %v2857_v37, 0.0  ;;  %v2897_v32 = vmax.f32 %v2865_v11, 0.0  ;;  %v2905_v27 = vmax.f32 %v2873_v0, 0.0  ;;  %v2913_v41 = vmax.f32 %v2881_v18, 0.0 }
 0x3f3   :  { %2969 = vst.msk [vmem:[%s6051_s4 + $0x58] sm:$0xf] %vm2946_vm10, %v2936_v8 }
 0x3f4   :  { %2977 = vst.msk [vmem:[%s6051_s4 + $0x78] sm:$0xf] %vm2946_vm10, %v2944_v16  ;;  %v2921_v56 = vpack.c.bf16 %v2889_v1, %v2889_v1  ;;  %v2929_v53 = vpack.c.bf16 %v2897_v32, %v2897_v32  ;;  %v2937_v29 = vpack.c.bf16 %v2905_v27, %v2905_v27  ;;  %v2945_v62 = vpack.c.bf16 %v2913_v41, %v2913_v41 }
 0x3f6   :  { %2954 = vst.msk [vmem:[%s6051_s4 + $0x1c] sm:$0xf] %vm2946_vm10, %v2921_v56 }
 0x3f7   :  { %2962 = vst.msk [vmem:[%s6051_s4 + $0x3c] sm:$0xf] %vm2946_vm10, %v2929_v53 }
 0x3f8   :  { %2970 = vst.msk [vmem:[%s6051_s4 + $0x5c] sm:$0xf] %vm2946_vm10, %v2937_v29 }
 0x3f9   :  { %2978 = vst.msk [vmem:[%s6051_s4 + $0x7c] sm:$0xf] %vm2946_vm10, %v2945_v62 }

// kernel: generator_forward.6
= control target key start
LH: loop header
LB: loop body
LE: loop exit
PB: predicated region body
PF: predicated region fallthrough
CT: control target
= control target key end

     0   :  { %vm554_vm0 = vcmask 523264   ;;  %s2219_s1 = inlined_call_operand.vmem [shape: bf16[576,128], index: 1, kind: input, shape index: {}]   ;;  %s2220_s0 = inlined_call_operand.vmem [shape: bf16[128,576], index: 0, kind: input, shape index: {}]   ;;  %s2221_s2 = inlined_call_operand.vmem [shape: f32[32,1], index: 2, kind: input, shape index: {}]   ;;  %s2222_s3 = inlined_call_operand.vmem [shape: f32[32,1], index: 3, kind: input, shape index: {}]   ;;  %s2223_s4 = inlined_call_operand.vmem [shape: bf16[128,128], index: 4, kind: output, shape index: {}]  }
   0x1   :  { %v1502_v0 = vld [vmem:[%s2219_s1 + $0x38] sm:$0xff]  ;;  %v1501_v1 = vld [vmem:[%s2219_s1 + $0x30] sm:$0xff]  ;;  %v1500_v2 = vld [vmem:[%s2219_s1 + $0x28] sm:$0xff] }
   0x2   :  { %1578 = vmatpush.bf16.msra.mxu1 %v1502_v0  ;;  %1579 = vmatpush.bf16.msra.mxu2 %v1502_v0  ;;  %v1499_v3 = vld [vmem:[%s2219_s1 + $0x20] sm:$0xff]  ;;  %v1498_v4 = vld [vmem:[%s2219_s1 + $0x18] sm:$0xff]  ;;  %v1497_v5 = vld [vmem:[%s2219_s1 + $0x10] sm:$0xff] }
   0x3   :  { %1580 = vmatpush.bf16.msra.mxu3 %v1502_v0  ;;  %579 = vmatpush.bf16.msra.mxu0 %v1502_v0  ;;  %v1496_v6 = vld [vmem:[%s2219_s1 + $0x8] sm:$0xff]  ;;  %v1495_v7 = vld [vmem:[%s2219_s1] sm:$0xff]  ;;  %v1185_v8 = vld [vmem:[%s2220_s0 + $0x50] sm:$0xf] }
   0x4   :  { %v1467_v9 = vld [vmem:[%s2220_s0 + $0x60] sm:$0xf0]  ;;  %v1225_v10 = vld [vmem:[%s2220_s0 + $0xa0] sm:$0xf]  ;;  %v1477_v11 = vld [vmem:[%s2220_s0 + $0xb0] sm:$0xf0] }
   0x5   :  { %v1265_v12 = vld [vmem:[%s2220_s0 + $0xf0] sm:$0xf]  ;;  %v1487_v13 = vld [vmem:[%s2220_s0 + $0x100] sm:$0xf0]  ;;  %v1145_v14 = vld [vmem:[%s2220_s0] sm:$0xf]  ;;  %v1186_v18 = vor.u32 %v1467_v9, %v1185_v8  ;;  %v1226_v19 = vor.u32 %v1477_v11, %v1225_v10 }
   0x6   :  { %1581 = vmatpush.bf16.msra.mxu1 %v1501_v1  ;;  %1582 = vmatpush.bf16.msra.mxu2 %v1501_v1  ;;  %v1457_v15 = vld [vmem:[%s2220_s0 + $0x10] sm:$0xf0]  ;;  %v1518_v16 = vld [vmem:[%s2219_s1 + $0xb8] sm:$0xff]  ;;  %v1266_v20 = vor.u32 %v1487_v13, %v1265_v12  ;;  %v1516_v28 = vld [vmem:[%s2219_s1 + $0xa8] sm:$0xff] }
   0x7   :  { %1583 = vmatpush.bf16.msra.mxu3 %v1501_v1  ;;  %580 = vmatpush.bf16.msra.mxu0 %v1501_v1  ;;  %v1510_v17 = vld [vmem:[%s2219_s1 + $0x78] sm:$0xff]  ;;  %v1146_v21 = vor.u32 %v1457_v15, %v1145_v14  ;;  %v1517_v24 = vld [vmem:[%s2219_s1 + $0xb0] sm:$0xff]  ;;  %v1508_v29 = vld [vmem:[%s2219_s1 + $0x68] sm:$0xff] }
   0x8   :  { %v1526_v22 = vld [vmem:[%s2219_s1 + $0xf8] sm:$0xff]  ;;  %v1509_v25 = vld [vmem:[%s2219_s1 + $0x70] sm:$0xff]  ;;  %v1524_v30 = vld [vmem:[%s2219_s1 + $0xe8] sm:$0xff] }
   0x9   :  { %v1530_v23 = vld [vmem:[%s2219_s1 + $0x118] sm:$0xff]  ;;  %v1525_v26 = vld [vmem:[%s2219_s1 + $0xf0] sm:$0xff]  ;;  %v1528_v31 = vld [vmem:[%s2219_s1 + $0x108] sm:$0xff] }
   0xa   :  { %1584 = vmatpush.bf16.msra.mxu1 %v1500_v2  ;;  %1585 = vmatpush.bf16.msra.mxu2 %v1500_v2  ;;  %v1529_v27 = vld [vmem:[%s2219_s1 + $0x110] sm:$0xff]  ;;  %v1515_v32 = vld [vmem:[%s2219_s1 + $0xa0] sm:$0xff]  ;;  %v1205_v35 = vld [vmem:[%s2220_s0 + $0x78] sm:$0xf] }
   0xb   :  { %1586 = vmatpush.bf16.msra.mxu3 %v1500_v2  ;;  %581 = vmatpush.bf16.msra.mxu0 %v1500_v2  ;;  %v1507_v33 = vld [vmem:[%s2219_s1 + $0x60] sm:$0xff]  ;;  %v1472_v36 = vld [vmem:[%s2220_s0 + $0x88] sm:$0xf0]  ;;  %v1245_v37 = vld [vmem:[%s2220_s0 + $0xc8] sm:$0xf] }
   0xc   :  { %v1523_v34 = vld [vmem:[%s2219_s1 + $0xe0] sm:$0xff]  ;;  %v1482_v38 = vld [vmem:[%s2220_s0 + $0xd8] sm:$0xf0]  ;;  %v1285_v39 = vld [vmem:[%s2220_s0 + $0x118] sm:$0xf]  ;;  %v1206_v46 = vor.u32 %v1472_v36, %v1205_v35 }
   0xd   :  { %v1492_v40 = vld [vmem:[%s2220_s0 + $0x128] sm:$0xf0]  ;;  %v1165_v41 = vld [vmem:[%s2220_s0 + $0x28] sm:$0xf]  ;;  %v1462_v42 = vld [vmem:[%s2220_s0 + $0x38] sm:$0xf0]  ;;  %v1246_v47 = vor.u32 %v1482_v38, %v1245_v37 }
   0xe   :  { %1587 = vmatpush.bf16.msra.mxu1 %v1499_v3  ;;  %1588 = vmatpush.bf16.msra.mxu2 %v1499_v3  ;;  %v1527_v43 = vld [vmem:[%s2219_s1 + $0x100] sm:$0xff]  ;;  %v1514_v44 = vld [vmem:[%s2219_s1 + $0x98] sm:$0xff]  ;;  %v1286_v48 = vor.u32 %v1492_v40, %v1285_v39  ;;  %v1166_v49 = vor.u32 %v1462_v42, %v1165_v41  ;;  %v1513_v51 = vld [vmem:[%s2219_s1 + $0x90] sm:$0xff] }
   0xf   :  { %1589 = vmatpush.bf16.msra.mxu3 %v1499_v3  ;;  %582 = vmatpush.bf16.msra.mxu0 %v1499_v3  ;;  %v1506_v45 = vld [vmem:[%s2219_s1 + $0x58] sm:$0xff]  ;;  %v1505_v52 = vld [vmem:[%s2219_s1 + $0x50] sm:$0xff]  ;;  %v1512_v54 = vld [vmem:[%s2219_s1 + $0x88] sm:$0xff] }
  0x10   :  { %v1522_v50 = vld [vmem:[%s2219_s1 + $0xd8] sm:$0xff]  ;;  %v1521_v53 = vld [vmem:[%s2219_s1 + $0xd0] sm:$0xff]  ;;  %v1504_v55 = vld [vmem:[%s2219_s1 + $0x48] sm:$0xff] }
  0x11   :  { %v1520_v56 = vld [vmem:[%s2219_s1 + $0xc8] sm:$0xff]  ;;  %v1511_v57 = vld [vmem:[%s2219_s1 + $0x80] sm:$0xff]  ;;  %v1147_v61 = vld [vmem:[%s2220_s0 + $0x14] sm:$0xf0] }
  0x12   :  { %1590 = vmatpush.bf16.msra.mxu1 %v1498_v4  ;;  %1591 = vmatpush.bf16.msra.mxu2 %v1498_v4  ;;  %v1503_v58 = vld [vmem:[%s2219_s1 + $0x40] sm:$0xff]  ;;  %v1153_v62 = vld [vmem:[%s2220_s0 + $0x8] sm:$0xf]  ;;  %v1458_v63 = vld [vmem:[%s2220_s0 + $0x18] sm:$0xf0] }
  0x13   :  { %1592 = vmatpush.bf16.msra.mxu3 %v1498_v4  ;;  %583 = vmatpush.bf16.msra.mxu0 %v1498_v4  ;;  %v1519_v59 = vld [vmem:[%s2219_s1 + $0xc0] sm:$0xff]  ;;  %v1456_v0 = vld [vmem:[%s2220_s0 + $0xc] sm:$0xf]  ;;  %v1161_v2 = vld [vmem:[%s2220_s0 + $0x10] sm:$0xf] }
  0x14   :  { %v1455_v60 = vld [vmem:[%s2220_s0 + $0x4] sm:$0xf]  ;;  %v1155_v1 = vld [vmem:[%s2220_s0 + $0x1c] sm:$0xf0]  ;;  %v1460_v8 = vld [vmem:[%s2220_s0 + $0x2c] sm:$0xf] }
  0x15   :  { %v1459_v3 = vld [vmem:[%s2220_s0 + $0x20] sm:$0xf0]  ;;  %v1150_v4 = vor.u32 %v1455_v60, %v1147_v61  ;;  %v1167_v9 = vld [vmem:[%s2220_s0 + $0x3c] sm:$0xf0]  ;;  %v1173_v10 = vld [vmem:[%s2220_s0 + $0x30] sm:$0xf] }
  0x16   :  { %1593 = vmatpush.bf16.msra.mxu1 %v1497_v5  ;;  %1594 = vmatpush.bf16.msra.mxu2 %v1497_v5  ;;  %v1463_v11 = vld [vmem:[%s2220_s0 + $0x40] sm:$0xf0]  ;;  %v1461_v12 = vld [vmem:[%s2220_s0 + $0x34] sm:$0xf]  ;;  %v1175_v13 = vld [vmem:[%s2220_s0 + $0x44] sm:$0xf0] }
  0x17   :  { %1595 = vmatpush.bf16.msra.mxu3 %v1497_v5  ;;  %584 = vmatpush.bf16.msra.mxu0 %v1497_v5  ;;  %v1154_v5 = vor.u32 %v1458_v63, %v1153_v62  ;;  %v1181_v14 = vld [vmem:[%s2220_s0 + $0x38] sm:$0xf]  ;;  %v1464_v15 = vld [vmem:[%s2220_s0 + $0x48] sm:$0xf0]  ;;  %v1473_v35 = vld [vmem:[%s2220_s0 + $0x90] sm:$0xf0] }
  0x18   :  { %v1471_v36 = vld [vmem:[%s2220_s0 + $0x84] sm:$0xf]  ;;  %v1215_v37 = vld [vmem:[%s2220_s0 + $0x94] sm:$0xf0]  ;;  %v1221_v38 = vld [vmem:[%s2220_s0 + $0x88] sm:$0xf] }
  0x19   :  { %v1474_v39 = vld [vmem:[%s2220_s0 + $0x98] sm:$0xf0]  ;;  %v1218_v42 = vor.u32 %v1471_v36, %v1215_v37  ;;  %v1481_v60 = vld [vmem:[%s2220_s0 + $0xd4] sm:$0xf]  ;;  %v1255_v61 = vld [vmem:[%s2220_s0 + $0xe4] sm:$0xf0] }
  0x1a   :  { %1596 = vmatpush.bf16.msra.mxu1 %v1496_v6  ;;  %1597 = vmatpush.bf16.msra.mxu2 %v1496_v6  ;;  %v1261_v62 = vld [vmem:[%s2220_s0 + $0xd8] sm:$0xf]  ;;  %v1484_v63 = vld [vmem:[%s2220_s0 + $0xe8] sm:$0xf0] }
  0x1b   :  { %1598 = vmatpush.bf16.msra.mxu3 %v1496_v6  ;;  %585 = vmatpush.bf16.msra.mxu0 %v1496_v6  ;;  %v1158_v6 = vor.u32 %v1456_v0, %v1155_v1 }
  0x1e   :  { %1599 = vmatpush.bf16.msra.mxu1 %v1495_v7  ;;  %1600 = vmatpush.bf16.msra.mxu2 %v1495_v7 }
  0x1f   :  { %1601 = vmatpush.bf16.msra.mxu3 %v1495_v7  ;;  %586 = vmatpush.bf16.msra.mxu0 %v1495_v7  ;;  %v1162_v7 = vor.u32 %v1459_v3, %v1161_v2  ;;  %v1258_v2 = vor.u32 %v1481_v60, %v1255_v61  ;;  %v1262_v3 = vor.u32 %v1484_v63, %v1261_v62 }
  0x21   :  { %597 = vmatmul.bf16.vlgmr.msra.gmra.mxu1 %v1186_v18  ;;  %607 = vmatmul.bf16.vlgmr.msra.gmra.mxu2 %v1226_v19  ;;  %v1178_v18 = vor.u32 %v1461_v12, %v1175_v13  ;;  %v1182_v19 = vor.u32 %v1464_v15, %v1181_v14 }
  0x22   :  { %677 = vmatpush.bf16.msrb.mxu2 %v1518_v16  ;;  %628 = vmatpush.bf16.msrb.mxu1 %v1510_v17  ;;  %v1170_v16 = vor.u32 %v1460_v8, %v1167_v9  ;;  %v1174_v17 = vor.u32 %v1463_v11, %v1173_v10  ;;  %v1486_v8 = vld [vmem:[%s2220_s0 + $0xfc] sm:$0xf]  ;;  %v1275_v9 = vld [vmem:[%s2220_s0 + $0x10c] sm:$0xf0]  ;;  %v1281_v10 = vld [vmem:[%s2220_s0 + $0x100] sm:$0xf] }
  0x23   :  { %617 = vmatmul.bf16.vlgmr.msra.gmra.mxu3 %v1266_v20  ;;  %587 = vmatmul.bf16.vlgmr.msra.gmra.mxu0 %v1146_v21  ;;  %v1465_v20 = vld [vmem:[%s2220_s0 + $0x54] sm:$0xf]  ;;  %v1187_v21 = vld [vmem:[%s2220_s0 + $0x64] sm:$0xf0]  ;;  %v1278_v15 = vor.u32 %v1486_v8, %v1275_v9 }
  0x24   :  { %726 = vmatpush.bf16.msrb.mxu3 %v1526_v22  ;;  %779 = vmatpush.bf16.msrb.mxu0 %v1530_v23  ;;  %v1193_v22 = vld [vmem:[%s2220_s0 + $0x58] sm:$0xf]  ;;  %v1468_v23 = vld [vmem:[%s2220_s0 + $0x68] sm:$0xf0]  ;;  %v1489_v11 = vld [vmem:[%s2220_s0 + $0x110] sm:$0xf0] }
  0x26   :  { %678 = vmatpush.bf16.msrb.mxu2 %v1517_v24  ;;  %629 = vmatpush.bf16.msrb.mxu1 %v1509_v25  ;;  %v1466_v24 = vld [vmem:[%s2220_s0 + $0x5c] sm:$0xf]  ;;  %v1195_v25 = vld [vmem:[%s2220_s0 + $0x6c] sm:$0xf0] }
  0x28   :  { %727 = vmatpush.bf16.msrb.mxu3 %v1525_v26  ;;  %780 = vmatpush.bf16.msrb.mxu0 %v1529_v27  ;;  %v1201_v26 = vld [vmem:[%s2220_s0 + $0x60] sm:$0xf]  ;;  %v1469_v27 = vld [vmem:[%s2220_s0 + $0x70] sm:$0xf0] }
  0x2a   :  { %679 = vmatpush.bf16.msrb.mxu2 %v1516_v28  ;;  %630 = vmatpush.bf16.msrb.mxu1 %v1508_v29  ;;  %v1190_v28 = vor.u32 %v1465_v20, %v1187_v21  ;;  %v1194_v29 = vor.u32 %v1468_v23, %v1193_v22  ;;  %v1490_v22 = vld [vmem:[%s2220_s0 + $0x11c] sm:$0xf]  ;;  %v1287_v23 = vld [vmem:[%s2220_s0 + $0x12c] sm:$0xf0] }
  0x2c   :  { %728 = vmatpush.bf16.msrb.mxu3 %v1524_v30  ;;  %781 = vmatpush.bf16.msrb.mxu0 %v1528_v31  ;;  %v1198_v30 = vor.u32 %v1466_v24, %v1195_v25  ;;  %v1202_v31 = vor.u32 %v1469_v27, %v1201_v26  ;;  %v1293_v24 = vld [vmem:[%s2220_s0 + $0x120] sm:$0xf]  ;;  %v1493_v25 = vld [vmem:[%s2220_s0 + $0x130] sm:$0xf0]  ;;  %v1491_v26 = vld [vmem:[%s2220_s0 + $0x124] sm:$0xf] }
  0x2d   :  { %v1295_v27 = vld [vmem:[%s2220_s0 + $0x134] sm:$0xf0] }
  0x2e   :  { %680 = vmatpush.bf16.msrb.mxu2 %v1515_v32  ;;  %631 = vmatpush.bf16.msrb.mxu1 %v1507_v33  ;;  %v1470_v32 = vld [vmem:[%s2220_s0 + $0x7c] sm:$0xf]  ;;  %v1207_v33 = vld [vmem:[%s2220_s0 + $0x8c] sm:$0xf0] }
  0x2f   :  { %v1210_v40 = vor.u32 %v1470_v32, %v1207_v33  ;;  %v1290_v32 = vor.u32 %v1490_v22, %v1287_v23  ;;  %v1294_v33 = vor.u32 %v1493_v25, %v1293_v24 }
  0x30   :  { %729 = vmatpush.bf16.msrb.mxu3 %v1523_v34  ;;  %782 = vmatpush.bf16.msrb.mxu0 %v1527_v43  ;;  %v1213_v34 = vld [vmem:[%s2220_s0 + $0x80] sm:$0xf]  ;;  %v1222_v43 = vor.u32 %v1474_v39, %v1221_v38 }
  0x31   :  { %602 = vmatmul.bf16.gmra.mxu1 %v1206_v46  ;;  %612 = vmatmul.bf16.gmra.mxu2 %v1246_v47  ;;  %v1214_v41 = vor.u32 %v1473_v35, %v1213_v34  ;;  %v1233_v46 = vld [vmem:[%s2220_s0 + $0xa8] sm:$0xf]  ;;  %v1478_v47 = vld [vmem:[%s2220_s0 + $0xb8] sm:$0xf0]  ;;  %v1298_v35 = vor.u32 %v1491_v26, %v1295_v27 }
  0x32   :  { %681 = vmatpush.bf16.msrb.mxu2 %v1514_v44  ;;  %632 = vmatpush.bf16.msrb.mxu1 %v1506_v45  ;;  %v1475_v44 = vld [vmem:[%s2220_s0 + $0xa4] sm:$0xf]  ;;  %v1227_v45 = vld [vmem:[%s2220_s0 + $0xb4] sm:$0xf0] }
  0x33   :  { %622 = vmatmul.bf16.gmra.mxu3 %v1286_v48  ;;  %592 = vmatmul.bf16.gmra.mxu0 %v1166_v49  ;;  %v1476_v48 = vld [vmem:[%s2220_s0 + $0xac] sm:$0xf]  ;;  %v1235_v49 = vld [vmem:[%s2220_s0 + $0xbc] sm:$0xf0] }
  0x34   :  { %730 = vmatpush.bf16.msrb.mxu3 %v1522_v50  ;;  %v1241_v50 = vld [vmem:[%s2220_s0 + $0xb0] sm:$0xf] }
  0x36   :  { %682 = vmatpush.bf16.msrb.mxu2 %v1513_v51  ;;  %633 = vmatpush.bf16.msrb.mxu1 %v1505_v52  ;;  %v1479_v51 = vld [vmem:[%s2220_s0 + $0xc0] sm:$0xf0]  ;;  %v1230_v52 = vor.u32 %v1475_v44, %v1227_v45 }
  0x38   :  { %731 = vmatpush.bf16.msrb.mxu3 %v1521_v53  ;;  %v1234_v53 = vor.u32 %v1478_v47, %v1233_v46 }
  0x3a   :  { %683 = vmatpush.bf16.msrb.mxu2 %v1512_v54  ;;  %634 = vmatpush.bf16.msrb.mxu1 %v1504_v55  ;;  %v1238_v54 = vor.u32 %v1476_v48, %v1235_v49  ;;  %v1242_v55 = vor.u32 %v1479_v51, %v1241_v50 }
  0x3c   :  { %732 = vmatpush.bf16.msrb.mxu3 %v1520_v56  ;;  %v1480_v56 = vld [vmem:[%s2220_s0 + $0xcc] sm:$0xf] }
  0x3e   :  { %684 = vmatpush.bf16.msrb.mxu2 %v1511_v57  ;;  %635 = vmatpush.bf16.msrb.mxu1 %v1503_v58  ;;  %v1247_v57 = vld [vmem:[%s2220_s0 + $0xdc] sm:$0xf0]  ;;  %v1253_v58 = vld [vmem:[%s2220_s0 + $0xd0] sm:$0xf] }
  0x3f   :  { %v1250_v0 = vor.u32 %v1480_v56, %v1247_v57 }
  0x40   :  { %733 = vmatpush.bf16.msrb.mxu3 %v1519_v59  ;;  %v1483_v59 = vld [vmem:[%s2220_s0 + $0xe0] sm:$0xf0] }
  0x41   :  { %636 = vmatmul.bf16.vlgmr.msrb.gmra.mxu1 %v1150_v4  ;;  %685 = vmatmul.bf16.vlgmr.msrb.gmra.mxu2 %v1154_v5  ;;  %v1254_v1 = vor.u32 %v1483_v59, %v1253_v58  ;;  %v1485_v4 = vld [vmem:[%s2220_s0 + $0xf4] sm:$0xf]  ;;  %v1267_v5 = vld [vmem:[%s2220_s0 + $0x104] sm:$0xf0] }
  0x42   :  { %v1270_v12 = vor.u32 %v1485_v4, %v1267_v5 }
  0x43   :  { %734 = vmatmul.bf16.vlgmr.msrb.gmra.mxu3 %v1158_v6  ;;  %1447 = vmatmul.msk.bf16.vlgmr.msrb.gmra.mxu0 %vm554_vm0, %v1162_v7  ;;  %v1273_v6 = vld [vmem:[%s2220_s0 + $0xf8] sm:$0xf]  ;;  %v1488_v7 = vld [vmem:[%s2220_s0 + $0x108] sm:$0xf0] }
  0x44   :  { %v1274_v13 = vor.u32 %v1488_v7, %v1273_v6 }
  0x51   :  { %641 = vmatmul.bf16.gmra.mxu1 %v1170_v16  ;;  %690 = vmatmul.bf16.gmra.mxu2 %v1174_v17  ;;  %v1282_v16 = vor.u32 %v1489_v11, %v1281_v10 }
  0x53   :  { %739 = vmatmul.bf16.gmra.mxu3 %v1178_v18  ;;  %1448 = vmatmul.msk.bf16.gmra.mxu0 %vm554_vm0, %v1182_v19 }
  0x61   :  { %646 = vmatmul.bf16.gmra.mxu1 %v1190_v28  ;;  %695 = vmatmul.bf16.gmra.mxu2 %v1194_v29  ;;  %v1301_v28 = vld [vmem:[%s2220_s0 + $0x128] sm:$0xf]  ;;  %v1494_v29 = vld [vmem:[%s2220_s0 + $0x138] sm:$0xf0] }
  0x62   :  { %v1302_v36 = vor.u32 %v1494_v29, %v1301_v28 }
  0x63   :  { %744 = vmatmul.bf16.gmra.mxu3 %v1198_v30  ;;  %1449 = vmatmul.msk.bf16.gmra.mxu0 %vm554_vm0, %v1202_v31 }
  0x71   :  { %651 = vmatmul.bf16.gmra.mxu1 %v1210_v40  ;;  %700 = vmatmul.bf16.gmra.mxu2 %v1214_v41 }
  0x73   :  { %749 = vmatmul.bf16.gmra.mxu3 %v1218_v42  ;;  %1450 = vmatmul.msk.bf16.gmra.mxu0 %vm554_vm0, %v1222_v43 }
  0x81   :  { %656 = vmatmul.bf16.gmra.mxu1 %v1230_v52  ;;  %705 = vmatmul.bf16.gmra.mxu2 %v1234_v53 }
  0x83   :  { %754 = vmatmul.bf16.gmra.mxu3 %v1238_v54  ;;  %1451 = vmatmul.msk.bf16.gmra.mxu0 %vm554_vm0, %v1242_v55 }
  0x91   :  { %661 = vmatmul.bf16.gmra.mxu1 %v1250_v0  ;;  %710 = vmatmul.bf16.gmra.mxu2 %v1254_v1 }
  0x93   :  { %759 = vmatmul.bf16.gmra.mxu3 %v1258_v2  ;;  %1452 = vmatmul.msk.bf16.gmra.mxu0 %vm554_vm0, %v1262_v3 }
  0x9e   :  { %v1974_v14 = vpop.f32.mrf.mxu1 }
  0xa0   :  { %v588_v17 = vpop.f32.mrf.mxu0 }
  0xa1   :  { %666 = vmatmul.bf16.gmra.mxu1 %v1270_v12  ;;  %715 = vmatmul.bf16.gmra.mxu2 %v1274_v13 }
  0xa3   :  { %764 = vmatmul.bf16.gmra.mxu3 %v1278_v15  ;;  %1453 = vmatmul.msk.bf16.gmra.mxu0 %vm554_vm0, %v1282_v16 }
  0xa4   :  { %v1977_v18 = vpop.f32.mrf.mxu2 }
  0xa6   :  { %v1979_v19 = vpop.f32.mrf.mxu3  ;;  %v1981_v20 = vpop.f32.mrf.mxu1 }
  0xa8   :  { %v590_v21 = vpop.f32.mrf.mxu0 }
  0xac   :  { %v2007_v30 = vpop.f32.mrf.mxu2 }
  0xae   :  { %v2009_v31 = vpop.f32.mrf.mxu3  ;;  %v2011_v34 = vpop.f32.mrf.mxu1 }
  0xb0   :  { %v593_v37 = vpop.f32.mrf.mxu0 }
  0xb1   :  { %671 = vmatmul.bf16.gmra.mxu1 %v1290_v32  ;;  %720 = vmatmul.bf16.gmra.mxu2 %v1294_v33 }
  0xb3   :  { %769 = vmatmul.bf16.gmra.mxu3 %v1298_v35  ;;  %1454 = vmatmul.msk.bf16.gmra.mxu0 %vm554_vm0, %v1302_v36 }
  0xb4   :  { %v2014_v38 = vpop.f32.mrf.mxu2 }
  0xb6   :  { %v2016_v39 = vpop.f32.mrf.mxu3  ;;  %v2018_v40 = vpop.f32.mrf.mxu1 }
  0xb8   :  { %v595_v41 = vpop.f32.mrf.mxu0 }
  0xbc   :  { %v2020_v42 = vpop.f32.mrf.mxu2 }
  0xbe   :  { %v2022_v43 = vpop.f32.mrf.mxu3  ;;  %v637_v44 = vpop.f32.mrf.mxu1 }
  0xbf   :  { %v638_v46 = vadd.f32 %v637_v44, %v588_v17 }
  0xc0   :  { %v784_v45 = vpop.f32.mrf.mxu0 }
  0xc4   :  { %v686_v47 = vpop.f32.mrf.mxu2 }
  0xc5   :  { %v687_v48 = vadd.f32 %v686_v47, %v638_v46 }
  0xc6   :  { %v735_v49 = vpop.f32.mrf.mxu3  ;;  %v639_v50 = vpop.f32.mrf.mxu1 }
  0xc7   :  { %v736_v51 = vadd.f32 %v735_v49, %v687_v48  ;;  %v640_v54 = vadd.f32 %v639_v50, %v590_v21 }
  0xc8   :  { %v786_v52 = vpop.f32.mrf.mxu0 }
  0xc9   :  { %v2024_v53 = vadd.f32 %v784_v45, %v736_v51 }
  0xcb   :  { %824 = vadd.xlane.f32.xlu0 %v2024_v53  ;;  %v856_v62 = vmul.f32 %v2024_v53, %v2024_v53 }
  0xcc   :  { %v688_v55 = vpop.f32.mrf.mxu2 }
  0xcd   :  { %v689_v56 = vadd.f32 %v688_v55, %v640_v54 }
  0xce   :  { %v737_v57 = vpop.f32.mrf.mxu3  ;;  %v642_v58 = vpop.f32.mrf.mxu1 }
  0xcf   :  { %v738_v59 = vadd.f32 %v737_v57, %v689_v56  ;;  %v643_v63 = vadd.f32 %v642_v58, %v593_v37 }
  0xd0   :  { %v789_v60 = vpop.f32.mrf.mxu0 }
  0xd1   :  { %v2027_v61 = vadd.f32 %v786_v52, %v738_v59 }
  0xd3   :  { %872 = vadd.xlane.f32.xlu0 %v856_v62  ;;  %v857_v0 = vmul.f32 %v2027_v61, %v2027_v61 }
  0xd4   :  { %v691_v1 = vpop.f32.mrf.mxu2 }
  0xd5   :  { %v692_v2 = vadd.f32 %v691_v1, %v643_v63  ;;  %874 = vadd.xlane.f32.xlu1 %v857_v0 }
  0xd6   :  { %v740_v3 = vpop.f32.mrf.mxu3  ;;  %v644_v4 = vpop.f32.mrf.mxu1 }
  0xd7   :  { %v741_v5 = vadd.f32 %v740_v3, %v692_v2  ;;  %v645_v8 = vadd.f32 %v644_v4, %v595_v41 }
  0xd8   :  { %v791_v6 = vpop.f32.mrf.mxu0 }
  0xd9   :  { %v2033_v7 = vadd.f32 %v789_v60, %v741_v5 }
  0xdb   :  { %826 = vadd.xlane.f32.xlu0 %v2027_v61  ;;  %v858_v9 = vmul.f32 %v2033_v7, %v2033_v7 }
  0xdc   :  { %v693_v10 = vpop.f32.mrf.mxu2 }
  0xdd   :  { %v694_v11 = vadd.f32 %v693_v10, %v645_v8  ;;  %876 = vadd.xlane.f32.xlu2 %v858_v9  ;;  %828 = vadd.xlane.f32.xlu1 %v2033_v7 }
  0xde   :  { %v742_v12 = vpop.f32.mrf.mxu3  ;;  %v647_v13 = vpop.f32.mrf.mxu1 }
  0xdf   :  { %v743_v15 = vadd.f32 %v742_v12, %v694_v11  ;;  %v648_v21 = vadd.f32 %v647_v13, %v1974_v14 }
  0xe0   :  { %v794_v16 = vpop.f32.mrf.mxu0 }
  0xe1   :  { %v2039_v17 = vadd.f32 %v791_v6, %v743_v15 }
  0xe3   :  { %v859_v22 = vmul.f32 %v2039_v17, %v2039_v17 }
  0xe4   :  { %v696_v23 = vpop.f32.mrf.mxu2 }
  0xe5   :  { %v697_v24 = vadd.f32 %v696_v23, %v648_v21  ;;  %830 = vadd.xlane.f32.xlu1 %v2039_v17  ;;  %878 = vadd.xlane.f32.xlu0 %v859_v22 }
  0xe6   :  { %v745_v25 = vpop.f32.mrf.mxu3  ;;  %v649_v26 = vpop.f32.mrf.mxu1 }
  0xe7   :  { %v746_v27 = vadd.f32 %v745_v25, %v697_v24  ;;  %v650_v32 = vadd.f32 %v649_v26, %v1981_v20 }
  0xe8   :  { %v796_v28 = vpop.f32.mrf.mxu0 }
  0xe9   :  { %v2045_v29 = vadd.f32 %v794_v16, %v746_v27 }
  0xeb   :  { %832 = vadd.xlane.f32.xlu2 %v2045_v29  ;;  %v860_v14 = vmul.f32 %v2045_v29, %v2045_v29 }
  0xec   :  { %v698_v33 = vpop.f32.mrf.mxu2 }
  0xed   :  { %v699_v35 = vadd.f32 %v698_v33, %v650_v32  ;;  %880 = vadd.xlane.f32.xlu1 %v860_v14 }
  0xee   :  { %v747_v36 = vpop.f32.mrf.mxu3  ;;  %v652_v37 = vpop.f32.mrf.mxu1 }
  0xef   :  { %v748_v41 = vadd.f32 %v747_v36, %v699_v35  ;;  %v653_v46 = vadd.f32 %v652_v37, %v2011_v34 }
  0xf0   :  { %v799_v44 = vpop.f32.mrf.mxu0 }
  0xf1   :  { %v2051_v45 = vadd.f32 %v796_v28, %v748_v41 }
  0xf3   :  { %834 = vadd.xlane.f32.xlu2 %v2051_v45  ;;  %v861_v54 = vmul.f32 %v2051_v45, %v2051_v45 }
  0xf4   :  { %v701_v47 = vpop.f32.mrf.mxu2 }
  0xf5   :  { %v702_v20 = vadd.f32 %v701_v47, %v653_v46 }
  0xf6   :  { %v750_v48 = vpop.f32.mrf.mxu3  ;;  %v654_v49 = vpop.f32.mrf.mxu1 }
  0xf7   :  { %v751_v50 = vadd.f32 %v750_v48, %v702_v20  ;;  %v655_v55 = vadd.f32 %v654_v49, %v2018_v40 }
  0xf8   :  { %v801_v51 = vpop.f32.mrf.mxu0 }
  0xf9   :  { %v2055_v52 = vadd.f32 %v799_v44, %v751_v50 }
  0xfb   :  { %882 = vadd.xlane.f32.xlu2 %v861_v54  ;;  %836 = vadd.xlane.f32.xlu0 %v2055_v52  ;;  %v862_v63 = vmul.f32 %v2055_v52, %v2055_v52 }
  0xfc   :  { %v703_v56 = vpop.f32.mrf.mxu2 }
  0xfd   :  { %v704_v34 = vadd.f32 %v703_v56, %v655_v55 }
  0xfe   :  { %v752_v57 = vpop.f32.mrf.mxu3  ;;  %v657_v58 = vpop.f32.mrf.mxu1 }
  0xff   :  { %v753_v59 = vadd.f32 %v752_v57, %v704_v34  ;;  %v658_v0 = vadd.f32 %v657_v58, %v1977_v18 }
 0x100   :  { %v804_v60 = vpop.f32.mrf.mxu0 }
 0x101   :  { %v2061_v62 = vadd.f32 %v801_v51, %v753_v59 }
 0x103   :  { %838 = vadd.xlane.f32.xlu1 %v2061_v62  ;;  %884 = vadd.xlane.f32.xlu0 %v862_v63  ;;  %v863_v8 = vmul.f32 %v2061_v62, %v2061_v62 }
 0x104   :  { %v706_v40 = vpop.f32.mrf.mxu2 }
 0x105   :  { %v707_v1 = vadd.f32 %v706_v40, %v658_v0 }
 0x106   :  { %v755_v2 = vpop.f32.mrf.mxu3  ;;  %v659_v3 = vpop.f32.mrf.mxu1 }
 0x107   :  { %v756_v4 = vadd.f32 %v755_v2, %v707_v1  ;;  %v660_v9 = vadd.f32 %v659_v3, %v2007_v30 }
 0x108   :  { %v806_v5 = vpop.f32.mrf.mxu0 }
 0x109   :  { %v2067_v6 = vadd.f32 %v804_v60, %v756_v4 }
 0x10b   :  { %840 = vadd.xlane.f32.xlu2 %v2067_v6  ;;  %886 = vadd.xlane.f32.xlu1 %v863_v8  ;;  %v864_v18 = vmul.f32 %v2067_v6, %v2067_v6 }
 0x10c   :  { %v708_v10 = vpop.f32.mrf.mxu2 }
 0x10d   :  { %v709_v11 = vadd.f32 %v708_v10, %v660_v9  ;;  %888 = vadd.xlane.f32.xlu0 %v864_v18 }
 0x10e   :  { %v757_v12 = vpop.f32.mrf.mxu3  ;;  %v662_v13 = vpop.f32.mrf.mxu1 }
 0x10f   :  { %v758_v15 = vadd.f32 %v757_v12, %v709_v11  ;;  %v663_v22 = vadd.f32 %v662_v13, %v2014_v38 }
 0x110   :  { %v809_v16 = vpop.f32.mrf.mxu0 }
 0x111   :  { %v2075_v21 = vadd.f32 %v806_v5, %v758_v15 }
 0x113   :  { %v865_v30 = vmul.f32 %v2075_v21, %v2075_v21 }
 0x114   :  { %v711_v23 = vpop.f32.mrf.mxu2 }
 0x115   :  { %v712_v24 = vadd.f32 %v711_v23, %v663_v22  ;;  %890 = vadd.xlane.f32.xlu1 %v865_v30  ;;  %842 = vadd.xlane.f32.xlu0 %v2075_v21 }
 0x116   :  { %v760_v25 = vpop.f32.mrf.mxu3  ;;  %v664_v26 = vpop.f32.mrf.mxu1 }
 0x117   :  { %v761_v27 = vadd.f32 %v760_v25, %v712_v24  ;;  %v665_v14 = vadd.f32 %v664_v26, %v2020_v42 }
 0x118   :  { %v811_v28 = vpop.f32.mrf.mxu0 }
 0x119   :  { %v2081_v32 = vadd.f32 %v809_v16, %v761_v27 }
 0x11b   :  { %v866_v33 = vmul.f32 %v2081_v32, %v2081_v32 }
 0x11c   :  { %v713_v38 = vpop.f32.mrf.mxu2 }
 0x11d   :  { %v714_v35 = vadd.f32 %v713_v38, %v665_v14  ;;  %892 = vadd.xlane.f32.xlu2 %v866_v33  ;;  %844 = vadd.xlane.f32.xlu1 %v2081_v32 }
 0x11e   :  { %v762_v36 = vpop.f32.mrf.mxu3  ;;  %v667_v37 = vpop.f32.mrf.mxu1 }
 0x11f   :  { %v763_v41 = vadd.f32 %v762_v36, %v714_v35  ;;  %v668_v47 = vadd.f32 %v667_v37, %v1979_v19 }
 0x120   :  { %v814_v46 = vpop.f32.mrf.mxu0 }
 0x121   :  { %v2087_v44 = vadd.f32 %v811_v28, %v763_v41 }
 0x123   :  { %v867_v20 = vmul.f32 %v2087_v44, %v2087_v44 }
 0x124   :  { %v716_v42 = vpop.f32.mrf.mxu2 }
 0x125   :  { %v717_v48 = vadd.f32 %v716_v42, %v668_v47  ;;  %846 = vadd.xlane.f32.xlu2 %v2087_v44  ;;  %894 = vadd.xlane.f32.xlu0 %v867_v20 }
 0x126   :  { %v765_v49 = vpop.f32.mrf.mxu3  ;;  %v669_v50 = vpop.f32.mrf.mxu1 }
 0x127   :  { %v766_v51 = vadd.f32 %v765_v49, %v717_v48  ;;  %v670_v55 = vadd.f32 %v669_v50, %v2009_v31 }
 0x128   :  { %v816_v34 = vpop.f32.mrf.mxu0 }
 0x129   :  { %v2093_v54 = vadd.f32 %v814_v46, %v766_v51  ;;  %v1617_v46 = vmov 512.0  }
 0x12a   :  { %1607 = vrcp.f32 %v1617_v46 }
 0x12b   :  { %v868_v56 = vmul.f32 %v2093_v54, %v2093_v54 }
 0x12c   :  { %v718_v19 = vpop.f32.mrf.mxu2 }
 0x12d   :  { %v719_v57 = vadd.f32 %v718_v19, %v670_v55  ;;  %848 = vadd.xlane.f32.xlu2 %v2093_v54  ;;  %896 = vadd.xlane.f32.xlu1 %v868_v56 }
 0x12e   :  { %v767_v58 = vpop.f32.mrf.mxu3  ;;  %v672_v59 = vpop.f32.mrf.mxu1 }
 0x12f   :  { %v768_v60 = vadd.f32 %v767_v58, %v719_v57  ;;  %v673_v0 = vadd.f32 %v672_v59, %v2016_v39 }
 0x130   :  { %v819_v2 = vpop.f32.mrf.mxu0  ;;  %v1608_v20 = vpop.eup %1607 }
 0x131   :  { %v2099_v63 = vadd.f32 %v816_v34, %v768_v60  ;;  %v929_v50 = vmul.f32 512.0, %v1608_v20  ;;  %vm933_vm1 = vweird.f32 %v1608_v20 }
 0x133   :  { %850 = vadd.xlane.f32.xlu0 %v2099_v63  ;;  %v930_v51 = vsub.f32 1.0, %v929_v50 }
 0x134   :  { %v721_v40 = vpop.f32.mrf.mxu2 }
 0x135   :  { %v722_v31 = vadd.f32 %v721_v40, %v673_v0  ;;  %v931_v19 = vmul.f32 %v1608_v20, %v930_v51 }
 0x136   :  { %v770_v1 = vpop.f32.mrf.mxu3  ;;  %v674_v4 = vpop.f32.mrf.mxu1 }
 0x137   :  { %v771_v3 = vadd.f32 %v770_v1, %v722_v31  ;;  %v675_v8 = vadd.f32 %v674_v4, %v2022_v43  ;;  %v869_v43 = vmul.f32 %v2099_v63, %v2099_v63  ;;  %v932_v57 = vadd.f32 %v1608_v20, %v931_v19 }
 0x138   :  { %v821_v12 = vpop.f32.mrf.mxu0 }
 0x139   :  { %v2103_v5 = vadd.f32 %v819_v2, %v771_v3  ;;  %v2122_v31 = vsel %vm933_vm1, %v1608_v20, %v932_v57 }
 0x13b   :  { %852 = vadd.xlane.f32.xlu1 %v2103_v5  ;;  %v870_v9 = vmul.f32 %v2103_v5, %v2103_v5 }
 0x13c   :  { %v723_v18 = vpop.f32.mrf.mxu2 }
 0x13d   :  { %v724_v10 = vadd.f32 %v723_v18, %v675_v8  ;;  %900 = vadd.xlane.f32.xlu0 %v870_v9  ;;  %v1618_v8 = vmov 0  }
 0x13e   :  { %v772_v39 = vpop.f32.mrf.mxu3  ;;  %v825_v22 = vpop.xlane.xlu0 %824  ;;  %1604 = vset.pattern.permute.xlu2 %v1618_v8  ;;  %1605 = vset.pattern.permute.xlu0 %v1618_v8 }
 0x13f   :  { %v773_v11 = vadd.f32 %v772_v39, %v724_v10  ;;  %1606 = vset.pattern.permute.xlu1 %v1618_v8 }
 0x141   :  { %v2109_v13 = vadd.f32 %v821_v12, %v773_v11 }
 0x143   :  { %854 = vadd.xlane.f32.xlu2 %v2109_v13  ;;  %v871_v15 = vmul.f32 %v2109_v13, %v2109_v13 }
 0x145   :  { %902 = vadd.xlane.f32.xlu1 %v871_v15 }
 0x146   :  { %v873_v23 = vpop.xlane.xlu0 %872 }
 0x148   :  { %v2116_v16 = vpop.xlane.xlu1 %874 }
 0x14b   :  { %898 = vadd.xlane.f32.xlu2 %v869_v43 }
 0x14e   :  { %v827_v26 = vpop.xlane.xlu0 %826 }
 0x150   :  { %v829_v30 = vpop.xlane.xlu1 %828  ;;  %v877_v24 = vpop.xlane.xlu2 %876 }
 0x158   :  { %v831_v25 = vpop.xlane.xlu1 %830  ;;  %v879_v28 = vpop.xlane.xlu0 %878 }
 0x15e   :  { %v833_v27 = vpop.xlane.xlu2 %832 }
 0x15f   :  { %v904_v58 = vadd.f32 %v833_v27, %v825_v22 }
 0x160   :  { %v881_v14 = vpop.xlane.xlu1 %880 }
 0x161   :  { %v916_v59 = vadd.f32 %v881_v14, %v873_v23 }
 0x166   :  { %v835_v33 = vpop.xlane.xlu2 %834 }
 0x16e   :  { %v837_v38 = vpop.xlane.xlu0 %836  ;;  %v2118_v36 = vpop.xlane.xlu2 %882 }
 0x16f   :  { %v906_v15 = vadd.f32 %v837_v38, %v829_v30  ;;  %v905_v38 = vadd.f32 %v835_v33, %v827_v26  ;;  %v917_v26 = vadd.f32 %v2118_v36, %v2116_v16 }
 0x176   :  { %v839_v35 = vpop.xlane.xlu1 %838  ;;  %v885_v37 = vpop.xlane.xlu0 %884 }
 0x177   :  { %v918_v22 = vadd.f32 %v885_v37, %v877_v24  ;;  %v907_v51 = vadd.f32 %v839_v35, %v831_v25 }
 0x17e   :  { %v887_v41 = vpop.xlane.xlu1 %886  ;;  %v841_v47 = vpop.xlane.xlu2 %840 }
 0x17f   :  { %v908_v60 = vadd.f32 %v904_v58, %v841_v47  ;;  %v919_v24 = vadd.f32 %v887_v41, %v879_v28  ;;  %v955_v41 = vld [vmem:[%s2221_s2] sm:$0xff] }
 0x180   :  { %v889_v42 = vpop.xlane.xlu0 %888 }
 0x181   :  { %v920_v0 = vadd.f32 %v916_v59, %v889_v42 }
 0x188   :  { %v2120_v48 = vpop.xlane.xlu1 %890  ;;  %v843_v55 = vpop.xlane.xlu0 %842 }
 0x189   :  { %v909_v59 = vadd.f32 %v905_v38, %v843_v55 }
 0x190   :  { %v893_v49 = vpop.xlane.xlu2 %892  ;;  %v845_v56 = vpop.xlane.xlu1 %844 }
 0x191   :  { %v910_v23 = vadd.f32 %v906_v15, %v845_v56  ;;  %v922_v14 = vadd.f32 %v918_v22, %v893_v49 }
 0x198   :  { %v847_v34 = vpop.xlane.xlu2 %846  ;;  %v895_v40 = vpop.xlane.xlu0 %894 }
 0x199   :  { %v911_v37 = vadd.f32 %v907_v51, %v847_v34  ;;  %v921_v34 = vadd.f32 %v917_v26, %v2120_v48 }
 0x1a0   :  { %v849_v1 = vpop.xlane.xlu2 %848  ;;  %v897_v2 = vpop.xlane.xlu1 %896 }
 0x1a1   :  { %v912_v3 = vadd.f32 %v908_v60, %v849_v1  ;;  %v924_v4 = vadd.f32 %v920_v0, %v897_v2  ;;  %v923_v60 = vadd.f32 %v919_v24, %v895_v40 }
 0x1a3   :  { %v2125_v9 = vmul.f32 %v2122_v31, %v912_v3  ;;  %v939_v10 = vmul.f32 %v2122_v31, %v924_v4 }
 0x1a5   :  { %v943_v18 = vmul.f32 %v2125_v9, %v2125_v9 }
 0x1a6   :  { %v851_v11 = vpop.xlane.xlu0 %850 }
 0x1a7   :  { %v947_v39 = vsub.f32 %v939_v10, %v943_v18  ;;  %v913_v4 = vadd.f32 %v909_v59, %v851_v11 }
 0x1a9   :  { %v951_v12 = vmax.f32 %v947_v39, 0.0  ;;  %v2149_v40 = vmul.f32 %v2122_v31, %v913_v4 }
 0x1ab   :  { %v959_v43 = vadd.f32 1e-05, %v951_v12  ;;  %v944_v22 = vmul.f32 %v2149_v40, %v2149_v40 }
 0x1ad   :  { %1609 = vrsqrt.f32 %v959_v43  ;;  %vm969_vm3 = vweird.f32 %v959_v43 }
 0x1ae   :  { %v853_v27 = vpop.xlane.xlu1 %852 }
 0x1af   :  { %v914_v46 = vadd.f32 %v910_v23, %v853_v27 }
 0x1b0   :  { %v901_v47 = vpop.xlane.xlu0 %900 }
 0x1b1   :  { %v2131_v20 = vmul.f32 %v2122_v31, %v914_v46  ;;  %v926_v42 = vadd.f32 %v922_v14, %v901_v47  ;;  %v1007_v47 = vld [vmem:[%s2222_s3] sm:$0xff] }
 0x1b3   :  { %v1610_v50 = vpop.eup %1609  ;;  %v945_v19 = vmul.f32 %v2131_v20, %v2131_v20  ;;  %v941_v57 = vmul.f32 %v2122_v31, %v926_v42 }
 0x1b4   :  { %v964_v30 = vmul.f32 %v1610_v50, %v959_v43  ;;  %vm970_vm2 = vweird.f32 %v1610_v50 }
 0x1b5   :  { %v949_v56 = vsub.f32 %v941_v57, %v945_v19  ;;  %vm971_vm4 = vmor %vm969_vm3, %vm970_vm2 }
 0x1b6   :  { %v965_v58 = vmul.f32 %v1610_v50, %v964_v30  ;;  %v855_v49 = vpop.xlane.xlu2 %854 }
 0x1b7   :  { %v953_v0 = vmax.f32 %v949_v56, 0.0  ;;  %v915_v1 = vadd.f32 %v911_v37, %v855_v49 }
 0x1b8   :  { %v903_v2 = vpop.xlane.xlu1 %902  ;;  %v966_v3 = vmul.f32 0.5, %v965_v58 }
 0x1b9   :  { %v961_v25 = vadd.f32 1e-05, %v953_v0  ;;  %v2137_v35 = vmul.f32 %v2122_v31, %v915_v1  ;;  %v927_v8 = vadd.f32 %v923_v60, %v903_v2  ;;  %v958_v2 = vld [vmem:[%s2221_s2 + $0x18] sm:$0xff] }
 0x1ba   :  { %v967_v18 = vsub.f32 1.5, %v966_v3 }
 0x1bb   :  { %1611 = vrsqrt.f32 %v961_v25  ;;  %v946_v28 = vmul.f32 %v2137_v35, %v2137_v35  ;;  %v942_v33 = vmul.f32 %v2122_v31, %v927_v8  ;;  %vm989_vm6 = vweird.f32 %v961_v25 }
 0x1bc   :  { %v968_v55 = vmul.f32 %v1610_v50, %v967_v18 }
 0x1bd   :  { %v950_v10 = vsub.f32 %v942_v33, %v946_v28  ;;  %v1009_v33 = vld [vmem:[%s2222_s3 + $0x10] sm:$0xff] }
 0x1be   :  { %v899_v16 = vpop.xlane.xlu2 %898  ;;  %v972_v36 = vsel %vm971_vm4, %v1610_v50, %v968_v55  ;;  %v1008_v55 = vld [vmem:[%s2222_s3 + $0x8] sm:$0xff] }
 0x1bf   :  { %v954_v39 = vmax.f32 %v950_v10, 0.0  ;;  %v925_v11 = vadd.f32 %v921_v34, %v899_v16  ;;  %v1003_v12 = vmul.f32 %v972_v36, %v955_v41 }
 0x1c1   :  { %v1612_v15 = vpop.eup %1611  ;;  %v962_v23 = vadd.f32 1e-05, %v954_v39  ;;  %v940_v27 = vmul.f32 %v2122_v31, %v925_v11  ;;  %1021 = vperm.xlu2 %1604, %v1003_v12   ;;  %v1011_v14 = vmul.f32 %v1003_v12, %v2125_v9  ;;  %v957_v9 = vld [vmem:[%s2221_s2 + $0x10] sm:$0xff]  ;;  %v1010_v39 = vld [vmem:[%s2222_s3 + $0x18] sm:$0xff] }
 0x1c2   :  { %v984_v43 = vmul.f32 %v1612_v15, %v961_v25  ;;  %vm990_vm5 = vweird.f32 %v1612_v15 }
 0x1c3   :  { %1613 = vrsqrt.f32 %v962_v23  ;;  %v948_v48 = vsub.f32 %v940_v27, %v944_v22  ;;  %v1015_v19 = vsub.f32 %v1007_v47, %v1011_v14  ;;  %vm991_vm7 = vmor %vm989_vm6, %vm990_vm5  ;;  %vm999_vm9 = vweird.f32 %v962_v23 }
 0x1c4   :  { %v985_v46 = vmul.f32 %v1612_v15, %v984_v43 }
 0x1c5   :  { %v952_v42 = vmax.f32 %v948_v48, 0.0 }
 0x1c6   :  { %v986_v50 = vmul.f32 0.5, %v985_v46 }
 0x1c7   :  { %v960_v51 = vadd.f32 1e-05, %v952_v42 }
 0x1c8   :  { %v987_v57 = vsub.f32 1.5, %v986_v50 }
 0x1c9   :  { %v1614_v30 = vpop.eup %1613  ;;  %1615 = vrsqrt.f32 %v960_v51  ;;  %1057 = vperm.xlu2 %1604, %v1015_v19   ;;  %vm979_vm12 = vweird.f32 %v960_v51 }
 0x1ca   :  { %v994_v31 = vmul.f32 %v1614_v30, %v962_v23  ;;  %v988_v38 = vmul.f32 %v1612_v15, %v987_v57  ;;  %vm1000_vm8 = vweird.f32 %v1614_v30 }
 0x1cb   :  { %vm1001_vm10 = vmor %vm999_vm9, %vm1000_vm8 }
 0x1cc   :  { %v995_v24 = vmul.f32 %v1614_v30, %v994_v31  ;;  %v992_v37 = vsel %vm991_vm7, %v1612_v15, %v988_v38 }
 0x1cd   :  { %v1005_v56 = vmul.f32 %v992_v37, %v957_v9 }
 0x1ce   :  { %v996_v58 = vmul.f32 0.5, %v995_v24 }
 0x1cf   :  { %v1616_v49 = vpop.eup %1615  ;;  %v1013_v59 = vmul.f32 %v1005_v56, %v2131_v20  ;;  %v956_v20 = vld [vmem:[%s2221_s2 + $0x8] sm:$0xff] }
 0x1d0   :  { %v974_v60 = vmul.f32 %v1616_v49, %v960_v51  ;;  %v997_v0 = vsub.f32 1.5, %v996_v58  ;;  %vm980_vm11 = vweird.f32 %v1616_v49 }
 0x1d1   :  { %vm981_vm13 = vmor %vm979_vm12, %vm980_vm11  ;;  %v1017_v34 = vsub.f32 %v1009_v33, %v1013_v59 }
 0x1d2   :  { %v975_v1 = vmul.f32 %v1616_v49, %v974_v60  ;;  %v998_v3 = vmul.f32 %v1614_v30, %v997_v0 }
 0x1d4   :  { %v1002_v4 = vsel %vm1001_vm10, %v1614_v30, %v998_v3  ;;  %v976_v25 = vmul.f32 0.5, %v975_v1 }
 0x1d5   :  { %v1006_v8 = vmul.f32 %v1002_v4, %v958_v2 }
 0x1d6   :  { %v977_v18 = vsub.f32 1.5, %v976_v25 }
 0x1d7   :  { %1036 = vperm.xlu2 %1604, %v1006_v8   ;;  %v1014_v36 = vmul.f32 %v1006_v8, %v2137_v35 }
 0x1d8   :  { %v978_v26 = vmul.f32 %v1616_v49, %v977_v18 }
 0x1d9   :  { %v1018_v11 = vsub.f32 %v1010_v39, %v1014_v36 }
 0x1da   :  { %v982_v28 = vsel %vm981_vm13, %v1616_v49, %v978_v26 }
 0x1db   :  { %v1004_v41 = vmul.f32 %v982_v28, %v956_v20 }
 0x1dd   :  { %1026 = vperm.xlu0 %1605, %v1004_v41   ;;  %v1012_v10 = vmul.f32 %v1004_v41, %v2149_v40 }
 0x1df   :  { %1067 = vperm.xlu2 %1604, %v1017_v34   ;;  %v1016_v16 = vsub.f32 %v1008_v55, %v1012_v10 }
 0x1e1   :  { %1062 = vperm.xlu1 %1606, %v1016_v16  }
 0x1e9   :  { %1031 = vperm.xlu1 %1606, %v1005_v56  }
 0x1f1   :  { %1072 = vperm.xlu1 %1606, %v1018_v11  }
 0x21b   :  { %v1022_v12 = vpop.permute.xlu2 %1021 }
 0x21c   :  { %v1039_v22 = vmul.f32 %v1022_v12, %v2024_v53  ;;  %v1043_v23 = vmul.f32 %v1022_v12, %v2045_v29  ;;  %v1047_v40 = vmul.f32 %v1022_v12, %v2067_v6  ;;  %v1051_v43 = vmul.f32 %v1022_v12, %v2093_v54 }
 0x223   :  { %v1058_v15 = vpop.permute.xlu2 %1057 }
 0x224   :  { %v1075_v48 = vadd.f32 %v1058_v15, %v1039_v22  ;;  %v1079_v14 = vadd.f32 %v1058_v15, %v1043_v23  ;;  %v1083_v35 = vadd.f32 %v1058_v15, %v1047_v40  ;;  %v1087_v51 = vadd.f32 %v1058_v15, %v1051_v43 }
 0x226   :  { %v1091_v30 = vmax.f32 %v1075_v48, 0.0  ;;  %v1095_v31 = vmax.f32 %v1079_v14, 0.0  ;;  %v1099_v54 = vmax.f32 %v1083_v35, 0.0  ;;  %v1103_v56 = vmax.f32 %v1087_v51, 0.0 }
 0x231   :  { %v1037_v9 = vpop.permute.xlu2 %1036 }
 0x232   :  { %v1042_v8 = vmul.f32 %v1037_v9, %v2039_v17  ;;  %v1046_v18 = vmul.f32 %v1037_v9, %v2061_v62  ;;  %v1050_v20 = vmul.f32 %v1037_v9, %v2087_v44  ;;  %v1054_v26 = vmul.f32 %v1037_v9, %v2109_v13 }
 0x239   :  { %v1068_v2 = vpop.permute.xlu2 %1067 }
 0x24f   :  { %v1027_v27 = vpop.permute.xlu0 %1026 }
 0x250   :  { %v1040_v46 = vmul.f32 %v1027_v27, %v2027_v61  ;;  %v1044_v47 = vmul.f32 %v1027_v27, %v2051_v45  ;;  %v1048_v42 = vmul.f32 %v1027_v27, %v2075_v21  ;;  %v1052_v50 = vmul.f32 %v1027_v27, %v2099_v63 }
 0x253   :  { %v1063_v53 = vpop.permute.xlu1 %1062 }
 0x254   :  { %v1076_v19 = vadd.f32 %v1063_v53, %v1040_v46  ;;  %v1080_v29 = vadd.f32 %v1063_v53, %v1044_v47  ;;  %v1084_v57 = vadd.f32 %v1063_v53, %v1048_v42  ;;  %v1088_v6 = vadd.f32 %v1063_v53, %v1052_v50 }
 0x256   :  { %v1092_v38 = vmax.f32 %v1076_v19, 0.0  ;;  %v1096_v24 = vmax.f32 %v1080_v29, 0.0  ;;  %v1100_v37 = vmax.f32 %v1084_v57, 0.0  ;;  %v1104_v61 = vmax.f32 %v1088_v6, 0.0 }
 0x258   :  { %v1534_v45 = vpack.c.bf16 %v1092_v38, %v1091_v30  ;;  %v1544_v58 = vpack.c.bf16 %v1096_v24, %v1095_v31  ;;  %v1554_v21 = vpack.c.bf16 %v1100_v37, %v1099_v54  ;;  %v1564_v49 = vpack.c.bf16 %v1104_v61, %v1103_v56 }
 0x25a   :  { %1535 = vst [vmem:[%s2223_s4] sm:$0xff] %v1534_v45  }
 0x25b   :  { %1572 = vst [vmem:[%s2223_s4 + $0x10] sm:$0xff] %v1544_v58   ;;  %v1032_v63 = vpop.permute.xlu1 %1031 }
 0x25c   :  { %1574 = vst [vmem:[%s2223_s4 + $0x20] sm:$0xff] %v1554_v21   ;;  %v1041_v59 = vmul.f32 %v1032_v63, %v2033_v7  ;;  %v1045_v60 = vmul.f32 %v1032_v63, %v2055_v52  ;;  %v1049_v0 = vmul.f32 %v1032_v63, %v2081_v32  ;;  %v1053_v1 = vmul.f32 %v1032_v63, %v2103_v5 }
 0x25d   :  { %1576 = vst [vmem:[%s2223_s4 + $0x30] sm:$0xff] %v1564_v49  }
 0x25e   :  { %v1077_v3 = vadd.f32 %v1068_v2, %v1041_v59  ;;  %v1081_v4 = vadd.f32 %v1068_v2, %v1045_v60  ;;  %v1085_v25 = vadd.f32 %v1068_v2, %v1049_v0  ;;  %v1089_v28 = vadd.f32 %v1068_v2, %v1053_v1 }
 0x260   :  { %v1093_v55 = vmax.f32 %v1077_v3, 0.0  ;;  %v1097_v5 = vmax.f32 %v1081_v4, 0.0  ;;  %v1101_v34 = vmax.f32 %v1085_v25, 0.0  ;;  %v1105_v17 = vmax.f32 %v1089_v28, 0.0 }
 0x263   :  { %v1073_v7 = vpop.permute.xlu1 %1072 }
 0x264   :  { %v1078_v33 = vadd.f32 %v1073_v7, %v1042_v8  ;;  %v1082_v52 = vadd.f32 %v1073_v7, %v1046_v18  ;;  %v1086_v41 = vadd.f32 %v1073_v7, %v1050_v20  ;;  %v1090_v32 = vadd.f32 %v1073_v7, %v1054_v26 }
 0x266   :  { %v1094_v10 = vmax.f32 %v1078_v33, 0.0  ;;  %v1098_v16 = vmax.f32 %v1082_v52, 0.0  ;;  %v1102_v36 = vmax.f32 %v1086_v41, 0.0  ;;  %v1106_v39 = vmax.f32 %v1090_v32, 0.0 }
 0x268   :  { %v1539_v11 = vpack.c.bf16 %v1094_v10, %v1093_v55  ;;  %v1549_v62 = vpack.c.bf16 %v1098_v16, %v1097_v5  ;;  %v1559_v12 = vpack.c.bf16 %v1102_v36, %v1101_v34  ;;  %v1569_v44 = vpack.c.bf16 %v1106_v39, %v1105_v17 }
 0x26a   :  { %1571 = vst [vmem:[%s2223_s4 + $0x8] sm:$0xff] %v1539_v11  }
 0x26b   :  { %1573 = vst [vmem:[%s2223_s4 + $0x18] sm:$0xff] %v1549_v62  }
 0x26c   :  { %1575 = vst [vmem:[%s2223_s4 + $0x28] sm:$0xff] %v1559_v12  }
 0x26d   :  { %1577 = vst [vmem:[%s2223_s4 + $0x38] sm:$0xff] %v1569_v44  }

// kernel: generator_forward.7
= control target key start
LH: loop header
LB: loop body
LE: loop exit
PB: predicated region body
PF: predicated region fallthrough
CT: control target
= control target key end

     0   :  { %vm526_vm0 = vcmask 261120   ;;  %s2614_s1 = inlined_call_operand.vmem [shape: bf16[288,512], index: 1, kind: input, shape index: {}]   ;;  %s2615_s0 = inlined_call_operand.vmem [shape: bf16[64,288], index: 0, kind: input, shape index: {}]   ;;  %s2616_s2 = inlined_call_operand.vmem [shape: f32[16,1], index: 2, kind: input, shape index: {}]   ;;  %s2617_s3 = inlined_call_operand.vmem [shape: f32[16,1], index: 3, kind: input, shape index: {}]   ;;  %s2618_s4 = inlined_call_operand.vmem [shape: bf16[64,512], index: 4, kind: output, shape index: {}]  }
   0x1   :  { %v1374_v0 = vld [vmem:[%s2614_s1 + $0xe0] sm:$0xf]  ;;  %v1606_v1 = vld [vmem:[%s2614_s1 + $0xec] sm:$0xf0]  ;;  %v1604_v9 = vld [vmem:[%s2614_s1 + $0xe4] sm:$0xf] }
   0x2   :  { %v1502_v2 = vld [vmem:[%s2614_s1 + $0x1e0] sm:$0xf]  ;;  %v1375_v3 = vor.u32 %v1606_v1, %v1374_v0  ;;  %v1638_v4 = vld [vmem:[%s2614_s1 + $0x1ec] sm:$0xf0]  ;;  %v1376_v10 = vld [vmem:[%s2614_s1 + $0xf0] sm:$0xf0] }
   0x3   :  { %v1534_v5 = vld [vmem:[%s2614_s1 + $0x220] sm:$0xf]  ;;  %v1646_v6 = vld [vmem:[%s2614_s1 + $0x22c] sm:$0xf0]  ;;  %v1503_v7 = vor.u32 %v1638_v4, %v1502_v2  ;;  %v1379_v12 = vor.u32 %v1604_v9, %v1376_v10  ;;  %v1600_v20 = vld [vmem:[%s2614_s1 + $0xc4] sm:$0xf] }
   0x4   :  { %v1535_v8 = vor.u32 %v1646_v6, %v1534_v5  ;;  %v1358_v11 = vld [vmem:[%s2614_s1 + $0xc0] sm:$0xf]  ;;  %539 = vmatpush.bf16.msra.mxu0 %v1375_v3  ;;  %v1602_v13 = vld [vmem:[%s2614_s1 + $0xcc] sm:$0xf0]  ;;  %v1360_v22 = vld [vmem:[%s2614_s1 + $0xd0] sm:$0xf0] }
   0x5   :  { %v1486_v14 = vld [vmem:[%s2614_s1 + $0x1c0] sm:$0xf]  ;;  %v1634_v15 = vld [vmem:[%s2614_s1 + $0x1cc] sm:$0xf0]  ;;  %568 = vmatpush.bf16.msra.mxu1 %v1503_v7  ;;  %v1359_v16 = vor.u32 %v1602_v13, %v1358_v11  ;;  %626 = vmatpush.bf16.msra.mxu3 %v1379_v12  ;;  %v1222_v23 = vld [vmem:[%s2615_s0 + $0x8] sm:$0xf]  ;;  %v1363_v25 = vor.u32 %v1600_v20, %v1360_v22 }
   0x6   :  { %603 = vmatpush.bf16.msra.mxu2 %v1535_v8  ;;  %v1487_v17 = vor.u32 %v1634_v15, %v1486_v14  ;;  %v1518_v18 = vld [vmem:[%s2614_s1 + $0x200] sm:$0xf]  ;;  %v1642_v19 = vld [vmem:[%s2614_s1 + $0x20c] sm:$0xf0]  ;;  %v1566_v24 = vld [vmem:[%s2615_s0 + $0x10] sm:$0xf0] }
   0x7   :  { %v1519_v21 = vor.u32 %v1642_v19, %v1518_v18  ;;  %v1342_v26 = vld [vmem:[%s2614_s1 + $0xa0] sm:$0xf]  ;;  %v1598_v27 = vld [vmem:[%s2614_s1 + $0xac] sm:$0xf0]  ;;  %v1749_v29 = vor.u32 %v1566_v24, %v1222_v23  ;;  %v1596_v32 = vld [vmem:[%s2614_s1 + $0xa4] sm:$0xf] }
   0x8   :  { %v1470_v28 = vld [vmem:[%s2614_s1 + $0x1a0] sm:$0xf]  ;;  %540 = vmatpush.bf16.msra.mxu0 %v1359_v16  ;;  %v1343_v30 = vor.u32 %v1598_v27, %v1342_v26  ;;  %v1630_v31 = vld [vmem:[%s2614_s1 + $0x1ac] sm:$0xf0]  ;;  %v1344_v33 = vld [vmem:[%s2614_s1 + $0xb0] sm:$0xf0] }
   0x9   :  { %569 = vmatpush.bf16.msra.mxu1 %v1487_v17  ;;  %v1471_v34 = vor.u32 %v1630_v31, %v1470_v28  ;;  %v1326_v35 = vld [vmem:[%s2614_s1 + $0x80] sm:$0xf]  ;;  %v1594_v36 = vld [vmem:[%s2614_s1 + $0x8c] sm:$0xf0]  ;;  %627 = vmatpush.bf16.msra.mxu3 %v1363_v25  ;;  %v1347_v37 = vor.u32 %v1596_v32, %v1344_v33  ;;  %v1592_v40 = vld [vmem:[%s2614_s1 + $0x84] sm:$0xf] }
   0xa   :  { %604 = vmatpush.bf16.msra.mxu2 %v1519_v21  ;;  %v1454_v38 = vld [vmem:[%s2614_s1 + $0x180] sm:$0xf]  ;;  %v1626_v39 = vld [vmem:[%s2614_s1 + $0x18c] sm:$0xf0]  ;;  %v1328_v41 = vld [vmem:[%s2614_s1 + $0x90] sm:$0xf0]  ;;  %v1327_v42 = vor.u32 %v1594_v36, %v1326_v35 }
   0xb   :  { %v1455_v43 = vor.u32 %v1626_v39, %v1454_v38  ;;  %v1310_v44 = vld [vmem:[%s2614_s1 + $0x60] sm:$0xf]  ;;  %v1590_v45 = vld [vmem:[%s2614_s1 + $0x6c] sm:$0xf0]  ;;  %v1331_v46 = vor.u32 %v1592_v40, %v1328_v41  ;;  %v1588_v49 = vld [vmem:[%s2614_s1 + $0x64] sm:$0xf] }
   0xc   :  { %541 = vmatpush.bf16.msra.mxu0 %v1343_v30  ;;  %v1438_v47 = vld [vmem:[%s2614_s1 + $0x160] sm:$0xf]  ;;  %v1622_v48 = vld [vmem:[%s2614_s1 + $0x16c] sm:$0xf0]  ;;  %v1312_v50 = vld [vmem:[%s2614_s1 + $0x70] sm:$0xf0]  ;;  %v1311_v51 = vor.u32 %v1590_v45, %v1310_v44 }
   0xd   :  { %1548 = vmatmul.msk.bf16.vlgmr.msra.gmra.mxu2 %vm526_vm0, %v1749_v29  ;;  %570 = vmatpush.bf16.msra.mxu1 %v1471_v34  ;;  %v1439_v52 = vor.u32 %v1622_v48, %v1438_v47  ;;  %v1294_v53 = vld [vmem:[%s2614_s1 + $0x40] sm:$0xf]  ;;  %v1586_v54 = vld [vmem:[%s2614_s1 + $0x4c] sm:$0xf0]  ;;  %v1315_v55 = vor.u32 %v1588_v49, %v1312_v50  ;;  %v1584_v58 = vld [vmem:[%s2614_s1 + $0x44] sm:$0xf] }
   0xe   :  { %628 = vmatpush.bf16.msra.mxu3 %v1347_v37  ;;  %v1422_v56 = vld [vmem:[%s2614_s1 + $0x140] sm:$0xf]  ;;  %v1618_v57 = vld [vmem:[%s2614_s1 + $0x14c] sm:$0xf0]  ;;  %v1296_v59 = vld [vmem:[%s2614_s1 + $0x50] sm:$0xf0]  ;;  %v1295_v61 = vor.u32 %v1586_v54, %v1294_v53 }
   0xf   :  { %v1636_v60 = vld [vmem:[%s2614_s1 + $0x1e4] sm:$0xf]  ;;  %v1234_v62 = vld [vmem:[%s2615_s0 + $0x20] sm:$0xf]  ;;  %v1569_v63 = vld [vmem:[%s2615_s0 + $0x28] sm:$0xf0]  ;;  %v1423_v1 = vor.u32 %v1618_v57, %v1422_v56  ;;  %v1299_v6 = vor.u32 %v1584_v58, %v1296_v59 }
  0x10   :  { %542 = vmatpush.bf16.msra.mxu0 %v1327_v42  ;;  %v1504_v0 = vld [vmem:[%s2614_s1 + $0x1f0] sm:$0xf0]  ;;  %v1278_v2 = vld [vmem:[%s2614_s1 + $0x20] sm:$0xf]  ;;  %v1582_v3 = vld [vmem:[%s2614_s1 + $0x2c] sm:$0xf0]  ;;  %v1855_v13 = vor.u32 %v1569_v63, %v1234_v62 }
  0x11   :  { %571 = vmatpush.bf16.msra.mxu1 %v1455_v43  ;;  %v1406_v4 = vld [vmem:[%s2614_s1 + $0x120] sm:$0xf]  ;;  %v1507_v5 = vor.u32 %v1636_v60, %v1504_v0  ;;  %v1614_v7 = vld [vmem:[%s2614_s1 + $0x12c] sm:$0xf0]  ;;  %v1580_v8 = vld [vmem:[%s2614_s1 + $0x24] sm:$0xf]  ;;  %v1279_v14 = vor.u32 %v1582_v3, %v1278_v2 }
  0x12   :  { %629 = vmatpush.bf16.msra.mxu3 %v1331_v46  ;;  %v1280_v9 = vld [vmem:[%s2614_s1 + $0x30] sm:$0xf0]  ;;  %v1262_v10 = vld [vmem:[%s2614_s1] sm:$0xf]  ;;  %v1578_v11 = vld [vmem:[%s2614_s1 + $0xc] sm:$0xf0]  ;;  %v1407_v18 = vor.u32 %v1614_v7, %v1406_v4 }
  0x13   :  { %655 = vmatpush.bf16.msrb.mxu2 %v1507_v5  ;;  %v1632_v12 = vld [vmem:[%s2614_s1 + $0x1c4] sm:$0xf]  ;;  %v1390_v15 = vld [vmem:[%s2614_s1 + $0x100] sm:$0xf]  ;;  %v1610_v16 = vld [vmem:[%s2614_s1 + $0x10c] sm:$0xf0]  ;;  %v1283_v23 = vor.u32 %v1580_v8, %v1280_v9  ;;  %v1263_v32 = vor.u32 %v1578_v11, %v1262_v10 }
  0x14   :  { %543 = vmatpush.bf16.msra.mxu0 %v1311_v51  ;;  %v1488_v17 = vld [vmem:[%s2614_s1 + $0x1d0] sm:$0xf0]  ;;  %v1576_v19 = vld [vmem:[%s2614_s1 + $0x4] sm:$0xf]  ;;  %v1214_v27 = vld [vmem:[%s2615_s0] sm:$0xf]  ;;  %v1391_v36 = vor.u32 %v1610_v16, %v1390_v15 }
  0x15   :  { %572 = vmatpush.bf16.msra.mxu1 %v1439_v52  ;;  %v1264_v20 = vld [vmem:[%s2614_s1 + $0x10] sm:$0xf0]  ;;  %v1644_v21 = vld [vmem:[%s2614_s1 + $0x224] sm:$0xf]  ;;  %v1491_v22 = vor.u32 %v1632_v12, %v1488_v17  ;;  %v1382_v28 = vld [vmem:[%s2614_s1 + $0xe8] sm:$0xf] }
  0x16   :  { %630 = vmatpush.bf16.msra.mxu3 %v1315_v55  ;;  %v1536_v24 = vld [vmem:[%s2614_s1 + $0x230] sm:$0xf0]  ;;  %v1628_v25 = vld [vmem:[%s2614_s1 + $0x1a4] sm:$0xf]  ;;  %v1607_v30 = vld [vmem:[%s2614_s1 + $0xf4] sm:$0xf0]  ;;  %v1267_v41 = vor.u32 %v1576_v19, %v1264_v20 }
  0x17   :  { %v1472_v26 = vld [vmem:[%s2614_s1 + $0x1b0] sm:$0xf0]  ;;  %656 = vmatpush.bf16.msrb.mxu2 %v1491_v22  ;;  %v1565_v33 = vld [vmem:[%s2615_s0 + $0x8] sm:$0xf0]  ;;  %v1510_v34 = vld [vmem:[%s2614_s1 + $0x1e8] sm:$0xf]  ;;  %v1539_v39 = vor.u32 %v1644_v21, %v1536_v24  ;;  %v1383_v42 = vor.u32 %v1607_v30, %v1382_v28 }
  0x18   :  { %544 = vmatpush.bf16.msra.mxu0 %v1295_v61  ;;  %v1475_v31 = vor.u32 %v1628_v25, %v1472_v26  ;;  %v1639_v35 = vld [vmem:[%s2614_s1 + $0x1f4] sm:$0xf0]  ;;  %v1564_v37 = vld [vmem:[%s2615_s0 + $0x4] sm:$0xf]  ;;  %v1216_v38 = vld [vmem:[%s2615_s0 + $0xc] sm:$0xf0]  ;;  %v1916_v44 = vor.u32 %v1565_v33, %v1214_v27 }
  0x19   :  { %573 = vmatpush.bf16.msra.mxu1 %v1423_v1  ;;  %v1624_v40 = vld [vmem:[%s2614_s1 + $0x184] sm:$0xf]  ;;  %v1456_v43 = vld [vmem:[%s2614_s1 + $0x190] sm:$0xf0]  ;;  %v1511_v45 = vor.u32 %v1639_v35, %v1510_v34  ;;  %v1366_v46 = vld [vmem:[%s2614_s1 + $0xc8] sm:$0xf]  ;;  %v1924_v48 = vor.u32 %v1564_v37, %v1216_v38 }
  0x1a   :  { %631 = vmatpush.bf16.msra.mxu3 %v1299_v6  ;;  %v1603_v47 = vld [vmem:[%s2614_s1 + $0xd4] sm:$0xf0]  ;;  %v1494_v49 = vld [vmem:[%s2614_s1 + $0x1c8] sm:$0xf]  ;;  %v1459_v51 = vor.u32 %v1624_v40, %v1456_v43  ;;  %v1620_v52 = vld [vmem:[%s2614_s1 + $0x164] sm:$0xf] }
  0x1b   :  { %657 = vmatpush.bf16.msrb.mxu2 %v1475_v31  ;;  %v1635_v50 = vld [vmem:[%s2614_s1 + $0x1d4] sm:$0xf0]  ;;  %v1440_v53 = vld [vmem:[%s2614_s1 + $0x170] sm:$0xf0]  ;;  %v1367_v54 = vor.u32 %v1603_v47, %v1366_v46  ;;  %v1350_v56 = vld [vmem:[%s2614_s1 + $0xa8] sm:$0xf] }
  0x1c   :  { %545 = vmatpush.bf16.msra.mxu0 %v1279_v14  ;;  %v1495_v55 = vor.u32 %v1635_v50, %v1494_v49  ;;  %v1599_v57 = vld [vmem:[%s2614_s1 + $0xb4] sm:$0xf0]  ;;  %v1478_v58 = vld [vmem:[%s2614_s1 + $0x1a8] sm:$0xf]  ;;  %v1443_v60 = vor.u32 %v1620_v52, %v1440_v53  ;;  %v1572_v62 = vld [vmem:[%s2615_s0 + $0x40] sm:$0xf0] }
  0x1d   :  { %1549 = vmatmul.msk.bf16.gmra.mxu2 %vm526_vm0, %v1855_v13  ;;  %574 = vmatpush.bf16.msra.mxu1 %v1407_v18  ;;  %v1631_v59 = vld [vmem:[%s2614_s1 + $0x1b4] sm:$0xf0]  ;;  %v1640_v63 = vld [vmem:[%s2614_s1 + $0x204] sm:$0xf]  ;;  %v1351_v0 = vor.u32 %v1599_v57, %v1350_v56  ;;  %v1424_v2 = vld [vmem:[%s2614_s1 + $0x150] sm:$0xf0] }
  0x1e   :  { %632 = vmatpush.bf16.msra.mxu3 %v1283_v23  ;;  %v1246_v61 = vld [vmem:[%s2615_s0 + $0x38] sm:$0xf]  ;;  %v1616_v1 = vld [vmem:[%s2614_s1 + $0x144] sm:$0xf]  ;;  %v1520_v3 = vld [vmem:[%s2614_s1 + $0x210] sm:$0xf0]  ;;  %v1479_v4 = vor.u32 %v1631_v59, %v1478_v58 }
  0x1f   :  { %658 = vmatpush.bf16.msrb.mxu2 %v1459_v51  ;;  %v1334_v5 = vld [vmem:[%s2614_s1 + $0x88] sm:$0xf]  ;;  %v1595_v6 = vld [vmem:[%s2614_s1 + $0x94] sm:$0xf0]  ;;  %v1523_v7 = vor.u32 %v1640_v63, %v1520_v3  ;;  %v1977_v8 = vor.u32 %v1572_v62, %v1246_v61  ;;  %v1427_v11 = vor.u32 %v1616_v1, %v1424_v2  ;;  %v1612_v14 = vld [vmem:[%s2614_s1 + $0x124] sm:$0xf] }
  0x20   :  { %546 = vmatpush.bf16.msra.mxu0 %v1263_v32  ;;  %v1462_v9 = vld [vmem:[%s2614_s1 + $0x188] sm:$0xf]  ;;  %v1627_v10 = vld [vmem:[%s2614_s1 + $0x194] sm:$0xf0]  ;;  %v1335_v12 = vor.u32 %v1595_v6, %v1334_v5  ;;  %v1408_v15 = vld [vmem:[%s2614_s1 + $0x130] sm:$0xf0] }
  0x21   :  { %575 = vmatpush.bf16.msra.mxu1 %v1391_v36  ;;  %v1226_v16 = vld [vmem:[%s2615_s0 + $0x18] sm:$0xf]  ;;  %v1463_v17 = vor.u32 %v1627_v10, %v1462_v9  ;;  %v1318_v18 = vld [vmem:[%s2614_s1 + $0x68] sm:$0xf]  ;;  %v1568_v20 = vld [vmem:[%s2615_s0 + $0x20] sm:$0xf0]  ;;  %v1411_v25 = vor.u32 %v1612_v14, %v1408_v15 }
  0x22   :  { %633 = vmatpush.bf16.msra.mxu3 %v1267_v41  ;;  %v1591_v19 = vld [vmem:[%s2614_s1 + $0x74] sm:$0xf0]  ;;  %v1446_v21 = vld [vmem:[%s2614_s1 + $0x168] sm:$0xf]  ;;  %v1567_v23 = vld [vmem:[%s2615_s0 + $0x1c] sm:$0xf]  ;;  %v2023_v30 = vor.u32 %v1568_v20, %v1226_v16 }
  0x23   :  { %547 = vmatmul.bf16.vlgmr.msra.gmra.mxu0 %v1916_v44  ;;  %659 = vmatpush.bf16.msrb.mxu2 %v1443_v60  ;;  %v1623_v22 = vld [vmem:[%s2614_s1 + $0x174] sm:$0xf0]  ;;  %v1228_v24 = vld [vmem:[%s2615_s0 + $0x24] sm:$0xf0]  ;;  %v1319_v26 = vor.u32 %v1591_v19, %v1318_v18  ;;  %v1608_v27 = vld [vmem:[%s2614_s1 + $0x104] sm:$0xf] }
  0x24   :  { %690 = vmatpush.bf16.msrb.mxu0 %v1539_v39  ;;  %576 = vmatmul.bf16.vlgmr.msra.gmra.mxu1 %v1924_v48  ;;  %v1392_v28 = vld [vmem:[%s2614_s1 + $0x110] sm:$0xf0]  ;;  %v1447_v31 = vor.u32 %v1623_v22, %v1446_v21  ;;  %v1302_v32 = vld [vmem:[%s2614_s1 + $0x48] sm:$0xf]  ;;  %v1587_v33 = vld [vmem:[%s2614_s1 + $0x54] sm:$0xf0]  ;;  %v2031_v34 = vor.u32 %v1567_v23, %v1228_v24 }
  0x25   :  { %713 = vmatpush.bf16.msrb.mxu1 %v1383_v42  ;;  %634 = vmatmul.bf16.vlgmr.msra.gmra.mxu3 %v1916_v44  ;;  %v1430_v35 = vld [vmem:[%s2614_s1 + $0x148] sm:$0xf]  ;;  %v1619_v36 = vld [vmem:[%s2614_s1 + $0x154] sm:$0xf0]  ;;  %v1395_v37 = vor.u32 %v1608_v27, %v1392_v28  ;;  %v1303_v38 = vor.u32 %v1587_v33, %v1302_v32  ;;  %v1258_v40 = vld [vmem:[%s2615_s0 + $0x50] sm:$0xf] }
  0x26   :  { %742 = vmatpush.bf16.msrb.mxu3 %v1511_v45  ;;  %v1431_v39 = vor.u32 %v1619_v36, %v1430_v35  ;;  %v1575_v41 = vld [vmem:[%s2615_s0 + $0x58] sm:$0xf0]  ;;  %v1414_v42 = vld [vmem:[%s2614_s1 + $0x128] sm:$0xf]  ;;  %v1615_v43 = vld [vmem:[%s2614_s1 + $0x134] sm:$0xf0] }
  0x27   :  { %660 = vmatpush.bf16.msrb.mxu2 %v1427_v11  ;;  %v1286_v45 = vld [vmem:[%s2614_s1 + $0x28] sm:$0xf]  ;;  %v1583_v46 = vld [vmem:[%s2614_s1 + $0x34] sm:$0xf0]  ;;  %v1415_v47 = vor.u32 %v1615_v43, %v1414_v42  ;;  %v2060_v50 = vor.u32 %v1575_v41, %v1258_v40  ;;  %v1238_v51 = vld [vmem:[%s2615_s0 + $0x30] sm:$0xf] }
  0x28   :  { %691 = vmatpush.bf16.msrb.mxu0 %v1523_v7  ;;  %v1287_v49 = vor.u32 %v1583_v46, %v1286_v45  ;;  %v1571_v52 = vld [vmem:[%s2615_s0 + $0x38] sm:$0xf0]  ;;  %v1570_v53 = vld [vmem:[%s2615_s0 + $0x34] sm:$0xf]  ;;  %v1611_v56 = vld [vmem:[%s2614_s1 + $0x114] sm:$0xf0] }
  0x29   :  { %714 = vmatpush.bf16.msrb.mxu1 %v1367_v54  ;;  %v1240_v54 = vld [vmem:[%s2615_s0 + $0x3c] sm:$0xf0]  ;;  %v1270_v57 = vld [vmem:[%s2614_s1 + $0x8] sm:$0xf]  ;;  %v1579_v59 = vld [vmem:[%s2614_s1 + $0x14] sm:$0xf0] }
  0x2a   :  { %743 = vmatpush.bf16.msrb.mxu3 %v1495_v55  ;;  %v1398_v55 = vld [vmem:[%s2614_s1 + $0x108] sm:$0xf]  ;;  %v1647_v61 = vld [vmem:[%s2614_s1 + $0x234] sm:$0xf0]  ;;  %v1271_v62 = vor.u32 %v1579_v59, %v1270_v57  ;;  %v2096_v1 = vor.u32 %v1570_v53, %v1240_v54  ;;  %v1645_v2 = vld [vmem:[%s2614_s1 + $0x22c] sm:$0xf] }
  0x2b   :  { %661 = vmatpush.bf16.msrb.mxu2 %v1411_v25  ;;  %v1399_v58 = vor.u32 %v1611_v56, %v1398_v55  ;;  %v1542_v60 = vld [vmem:[%s2614_s1 + $0x228] sm:$0xf]  ;;  %v1544_v3 = vld [vmem:[%s2614_s1 + $0x238] sm:$0xf0]  ;;  %v1637_v7 = vld [vmem:[%s2614_s1 + $0x1ec] sm:$0xf] }
  0x2c   :  { %v1543_v63 = vor.u32 %v1647_v61, %v1542_v60  ;;  %v1547_v5 = vor.u32 %v1645_v2, %v1544_v3  ;;  %v1384_v6 = vld [vmem:[%s2614_s1 + $0xf8] sm:$0xf0]  ;;  %v1574_v14 = vld [vmem:[%s2615_s0 + $0x50] sm:$0xf0]  ;;  %v1601_v15 = vld [vmem:[%s2614_s1 + $0xcc] sm:$0xf] }
  0x2d   :  { %715 = vmatpush.bf16.msrb.mxu1 %v1351_v0  ;;  %1550 = vmatmul.msk.bf16.gmra.mxu2 %vm526_vm0, %v1977_v8  ;;  %v2094_v0 = vor.u32 %v1571_v52, %v1238_v51  ;;  %v1512_v9 = vld [vmem:[%s2614_s1 + $0x1f8] sm:$0xf0]  ;;  %v1573_v18 = vld [vmem:[%s2615_s0 + $0x4c] sm:$0xf]  ;;  %v1252_v19 = vld [vmem:[%s2615_s0 + $0x54] sm:$0xf0] }
  0x2e   :  { %744 = vmatpush.bf16.msrb.mxu3 %v1479_v4  ;;  %v1605_v4 = vld [vmem:[%s2614_s1 + $0xec] sm:$0xf]  ;;  %v1515_v11 = vor.u32 %v1637_v7, %v1512_v9  ;;  %v1368_v16 = vld [vmem:[%s2614_s1 + $0xd8] sm:$0xf0]  ;;  %v2146_v24 = vor.u32 %v1573_v18, %v1252_v19  ;;  %v1643_v40 = vld [vmem:[%s2614_s1 + $0x214] sm:$0xf0] }
  0x2f   :  { %662 = vmatpush.bf16.msrb.mxu2 %v1395_v37  ;;  %v1387_v10 = vor.u32 %v1605_v4, %v1384_v6  ;;  %v1371_v20 = vor.u32 %v1601_v15, %v1368_v16  ;;  %v1496_v21 = vld [vmem:[%s2614_s1 + $0x1d8] sm:$0xf0]  ;;  %v1597_v25 = vld [vmem:[%s2614_s1 + $0xac] sm:$0xf] }
  0x30   :  { %v1629_v27 = vld [vmem:[%s2614_s1 + $0x1ac] sm:$0xf]  ;;  %v1336_v35 = vld [vmem:[%s2614_s1 + $0x98] sm:$0xf0] }
  0x31   :  { %716 = vmatpush.bf16.msrb.mxu1 %v1335_v12  ;;  %800 = vmatpush.bf16.msra.mxu0 %v1387_v10  ;;  %v1250_v12 = vld [vmem:[%s2615_s0 + $0x48] sm:$0xf]  ;;  %v1593_v33 = vld [vmem:[%s2614_s1 + $0x8c] sm:$0xf]  ;;  %v1528_v45 = vld [vmem:[%s2614_s1 + $0x218] sm:$0xf0] }
  0x32   :  { %745 = vmatpush.bf16.msrb.mxu3 %v1463_v17  ;;  %v1633_v17 = vld [vmem:[%s2614_s1 + $0x1cc] sm:$0xf]  ;;  %v2144_v23 = vor.u32 %v1574_v14, %v1250_v12  ;;  %v1339_v37 = vor.u32 %v1593_v33, %v1336_v35  ;;  %v1448_v52 = vld [vmem:[%s2614_s1 + $0x178] sm:$0xf0] }
  0x33   :  { %552 = vmatmul.bf16.gmra.mxu0 %v2023_v30  ;;  %777 = vmatpush.bf16.msra.mxu2 %v1543_v63  ;;  %v1499_v22 = vor.u32 %v1633_v17, %v1496_v21  ;;  %v1625_v36 = vld [vmem:[%s2614_s1 + $0x18c] sm:$0xf]  ;;  %v1304_v56 = vld [vmem:[%s2614_s1 + $0x58] sm:$0xf0] }
  0x34   :  { %581 = vmatmul.bf16.gmra.mxu1 %v2031_v34  ;;  %v1641_v43 = vld [vmem:[%s2614_s1 + $0x20c] sm:$0xf]  ;;  %v1432_v59 = vld [vmem:[%s2614_s1 + $0x158] sm:$0xf0] }
  0x35   :  { %717 = vmatpush.bf16.msrb.mxu1 %v1319_v26  ;;  %639 = vmatmul.bf16.gmra.mxu3 %v2023_v30  ;;  %v1352_v26 = vld [vmem:[%s2614_s1 + $0xb8] sm:$0xf0]  ;;  %v1589_v46 = vld [vmem:[%s2614_s1 + $0x6c] sm:$0xf] }
  0x36   :  { %746 = vmatpush.bf16.msrb.mxu3 %v1447_v31  ;;  %801 = vmatpush.bf16.msra.mxu0 %v1371_v20  ;;  %v1355_v28 = vor.u32 %v1597_v25, %v1352_v26  ;;  %v1480_v31 = vld [vmem:[%s2614_s1 + $0x1b8] sm:$0xf0]  ;;  %v1621_v51 = vld [vmem:[%s2614_s1 + $0x16c] sm:$0xf] }
  0x37   :  { %v1483_v32 = vor.u32 %v1629_v27, %v1480_v31  ;;  %v1451_v54 = vor.u32 %v1621_v51, %v1448_v52  ;;  %v1585_v55 = vld [vmem:[%s2614_s1 + $0x4c] sm:$0xf]  ;;  %v1416_v3 = vld [vmem:[%s2614_s1 + $0x138] sm:$0xf0] }
  0x38   :  { %v1617_v57 = vld [vmem:[%s2614_s1 + $0x14c] sm:$0xf]  ;;  %v1272_v6 = vld [vmem:[%s2614_s1 + $0x18] sm:$0xf0] }
  0x39   :  { %718 = vmatpush.bf16.msrb.mxu1 %v1303_v38  ;;  %v1464_v38 = vld [vmem:[%s2614_s1 + $0x198] sm:$0xf0]  ;;  %v1435_v60 = vor.u32 %v1617_v57, %v1432_v59  ;;  %v1581_v61 = vld [vmem:[%s2614_s1 + $0x2c] sm:$0xf] }
  0x3a   :  { %747 = vmatpush.bf16.msrb.mxu3 %v1431_v39  ;;  %802 = vmatpush.bf16.msra.mxu0 %v1355_v28  ;;  %v1526_v39 = vld [vmem:[%s2614_s1 + $0x208] sm:$0xf]  ;;  %v1467_v41 = vor.u32 %v1625_v36, %v1464_v38  ;;  %v1613_v63 = vld [vmem:[%s2614_s1 + $0x12c] sm:$0xf]  ;;  %v1400_v10 = vld [vmem:[%s2614_s1 + $0x118] sm:$0xf0] }
  0x3b   :  { %v1527_v42 = vor.u32 %v1643_v40, %v1526_v39  ;;  %v1419_v4 = vor.u32 %v1613_v63, %v1416_v3  ;;  %v1609_v7 = vld [vmem:[%s2614_s1 + $0x10c] sm:$0xf] }
  0x3d   :  { %719 = vmatpush.bf16.msrb.mxu1 %v1287_v49  ;;  %1551 = vmatmul.msk.bf16.gmra.mxu2 %vm526_vm0, %v2060_v50  ;;  %v1320_v49 = vld [vmem:[%s2614_s1 + $0x78] sm:$0xf0] }
  0x3e   :  { %748 = vmatpush.bf16.msrb.mxu3 %v1415_v47  ;;  %803 = vmatpush.bf16.msra.mxu0 %v1339_v37  ;;  %v1531_v47 = vor.u32 %v1641_v43, %v1528_v45  ;;  %v1323_v53 = vor.u32 %v1589_v46, %v1320_v49 }
  0x3f   :  { %778 = vmatpush.bf16.msra.mxu2 %v1527_v42 }
  0x41   :  { %720 = vmatpush.bf16.msrb.mxu1 %v1271_v62  ;;  %v1288_v62 = vld [vmem:[%s2614_s1 + $0x38] sm:$0xf0] }
  0x42   :  { %749 = vmatpush.bf16.msrb.mxu3 %v1399_v58  ;;  %804 = vmatpush.bf16.msra.mxu0 %v1323_v53  ;;  %v1307_v58 = vor.u32 %v1585_v55, %v1304_v56  ;;  %v1291_v2 = vor.u32 %v1581_v61, %v1288_v62 }
  0x43   :  { %557 = vmatmul.bf16.gmra.mxu0 %v2094_v0 }
  0x44   :  { %586 = vmatmul.bf16.gmra.mxu1 %v2096_v1 }
  0x45   :  { %644 = vmatmul.bf16.gmra.mxu3 %v2094_v0  ;;  %829 = vmatpush.bf16.msra.mxu1 %v1515_v11  ;;  %v1403_v11 = vor.u32 %v1609_v7, %v1400_v10 }
  0x46   :  { %864 = vmatpush.bf16.msra.mxu3 %v1547_v5  ;;  %805 = vmatpush.bf16.msra.mxu0 %v1307_v58  ;;  %v1577_v5 = vld [vmem:[%s2614_s1 + $0xc] sm:$0xf] }
  0x47   :  { %v1275_v9 = vor.u32 %v1577_v5, %v1272_v6 }
  0x49   :  { %830 = vmatpush.bf16.msra.mxu1 %v1499_v22 }
  0x4a   :  { %865 = vmatpush.bf16.msra.mxu3 %v1531_v47  ;;  %806 = vmatpush.bf16.msra.mxu0 %v1291_v2 }
  0x4d   :  { %663 = vmatmul.bf16.vlgmr.msrb.gmra.mxu2 %v1924_v48  ;;  %831 = vmatpush.bf16.msra.mxu1 %v1483_v32 }
  0x4e   :  { %807 = vmatpush.bf16.msra.mxu0 %v1275_v9 }
  0x51   :  { %832 = vmatpush.bf16.msra.mxu1 %v1467_v41 }
  0x53   :  { %562 = vmatmul.bf16.gmra.mxu0 %v2144_v23 }
  0x54   :  { %591 = vmatmul.bf16.gmra.mxu1 %v2146_v24 }
  0x55   :  { %649 = vmatmul.bf16.gmra.mxu3 %v2144_v23  ;;  %833 = vmatpush.bf16.msra.mxu1 %v1451_v54 }
  0x59   :  { %834 = vmatpush.bf16.msra.mxu1 %v1435_v60 }
  0x5d   :  { %668 = vmatmul.bf16.gmra.mxu2 %v2031_v34  ;;  %835 = vmatpush.bf16.msra.mxu1 %v1419_v4 }
  0x61   :  { %836 = vmatpush.bf16.msra.mxu1 %v1403_v11 }
  0x63   :  { %1552 = vmatmul.msk.bf16.vlgmr.msrb.gmra.mxu0 %vm526_vm0, %v1749_v29 }
  0x64   :  { %721 = vmatmul.bf16.vlgmr.msrb.gmra.mxu1 %v1916_v44 }
  0x65   :  { %750 = vmatmul.bf16.vlgmr.msrb.gmra.mxu3 %v1924_v48 }
  0x6d   :  { %673 = vmatmul.bf16.gmra.mxu2 %v2096_v1 }
  0x73   :  { %1553 = vmatmul.msk.bf16.gmra.mxu0 %vm526_vm0, %v1855_v13 }
  0x74   :  { %726 = vmatmul.bf16.gmra.mxu1 %v2023_v30 }
  0x75   :  { %755 = vmatmul.bf16.gmra.mxu3 %v2031_v34 }
  0x7d   :  { %678 = vmatmul.bf16.gmra.mxu2 %v2146_v24 }
  0x83   :  { %1554 = vmatmul.msk.bf16.gmra.mxu0 %vm526_vm0, %v1977_v8 }
  0x84   :  { %731 = vmatmul.bf16.gmra.mxu1 %v2094_v0 }
  0x85   :  { %760 = vmatmul.bf16.gmra.mxu3 %v2096_v1 }
  0x8d   :  { %1556 = vmatmul.msk.bf16.vlgmr.msra.gmra.mxu2 %vm526_vm0, %v1749_v29 }
  0x90   :  { %v606_v12 = vpop.f32.mrf.mxu2 }
  0x93   :  { %1555 = vmatmul.msk.bf16.gmra.mxu0 %vm526_vm0, %v2060_v50 }
  0x94   :  { %736 = vmatmul.bf16.gmra.mxu1 %v2144_v23 }
  0x95   :  { %765 = vmatmul.bf16.gmra.mxu3 %v2146_v24 }
  0x98   :  { %v608_v14 = vpop.f32.mrf.mxu2 }
  0x9d   :  { %1557 = vmatmul.msk.bf16.gmra.mxu2 %vm526_vm0, %v1855_v13 }
  0xa0   :  { %v611_v15 = vpop.f32.mrf.mxu2  ;;  %v548_v16 = vpop.f32.mrf.mxu0 }
  0xa1   :  { %v577_v17 = vpop.f32.mrf.mxu1 }
  0xa2   :  { %v578_v18 = vadd.f32 %v577_v17, %v548_v16 }
  0xa3   :  { %808 = vmatmul.bf16.vlgmr.msra.gmra.mxu0 %v1916_v44 }
  0xa4   :  { %v2259_v19 = vadd.f32 %v606_v12, %v578_v18  ;;  %837 = vmatmul.bf16.vlgmr.msra.gmra.mxu1 %v1924_v48 }
  0xa5   :  { %1560 = vmatmul.msk.bf16.vlgmr.msra.gmra.mxu3 %vm526_vm0, %v1749_v29 }
  0xa8   :  { %v613_v20 = vpop.f32.mrf.mxu2  ;;  %v2264_v21 = vpop.f32.mrf.mxu3 }
  0xa9   :  { %v550_v22 = vpop.f32.mrf.mxu0  ;;  %v579_v25 = vpop.f32.mrf.mxu1 }
  0xaa   :  { %v580_v26 = vadd.f32 %v579_v25, %v550_v22 }
  0xac   :  { %v2266_v27 = vadd.f32 %v608_v14, %v580_v26 }
  0xad   :  { %1558 = vmatmul.msk.bf16.gmra.mxu2 %vm526_vm0, %v1977_v8 }
  0xb0   :  { %v616_v28 = vpop.f32.mrf.mxu2  ;;  %v2270_v44 = vpop.f32.mrf.mxu3 }
  0xb1   :  { %v553_v31 = vpop.f32.mrf.mxu0  ;;  %v582_v32 = vpop.f32.mrf.mxu1 }
  0xb2   :  { %v583_v48 = vadd.f32 %v582_v32, %v553_v31 }
  0xb3   :  { %813 = vmatmul.bf16.gmra.mxu0 %v2023_v30 }
  0xb4   :  { %v2273_v29 = vadd.f32 %v611_v15, %v583_v48  ;;  %842 = vmatmul.bf16.gmra.mxu1 %v2031_v34 }
  0xb5   :  { %1561 = vmatmul.msk.bf16.gmra.mxu3 %vm526_vm0, %v1855_v13 }
  0xb8   :  { %v618_v33 = vpop.f32.mrf.mxu2  ;;  %v2278_v35 = vpop.f32.mrf.mxu3 }
  0xb9   :  { %v555_v36 = vpop.f32.mrf.mxu0  ;;  %v584_v37 = vpop.f32.mrf.mxu1 }
  0xba   :  { %v585_v38 = vadd.f32 %v584_v37, %v555_v36 }
  0xbc   :  { %v2280_v39 = vadd.f32 %v613_v20, %v585_v38 }
  0xbd   :  { %1559 = vmatmul.msk.bf16.gmra.mxu2 %vm526_vm0, %v2060_v50 }
  0xc0   :  { %v621_v40 = vpop.f32.mrf.mxu2  ;;  %v2284_v30 = vpop.f32.mrf.mxu3 }
  0xc1   :  { %v558_v41 = vpop.f32.mrf.mxu0  ;;  %v587_v42 = vpop.f32.mrf.mxu1 }
  0xc2   :  { %v588_v34 = vadd.f32 %v587_v42, %v558_v41 }
  0xc3   :  { %818 = vmatmul.bf16.gmra.mxu0 %v2094_v0 }
  0xc4   :  { %v2287_v13 = vadd.f32 %v616_v28, %v588_v34  ;;  %847 = vmatmul.bf16.gmra.mxu1 %v2096_v1 }
  0xc5   :  { %1562 = vmatmul.msk.bf16.gmra.mxu3 %vm526_vm0, %v1977_v8 }
  0xc8   :  { %v623_v43 = vpop.f32.mrf.mxu2  ;;  %v2292_v45 = vpop.f32.mrf.mxu3 }
  0xc9   :  { %v560_v46 = vpop.f32.mrf.mxu0  ;;  %v589_v47 = vpop.f32.mrf.mxu1 }
  0xca   :  { %v590_v49 = vadd.f32 %v589_v47, %v560_v46 }
  0xcc   :  { %v2294_v51 = vadd.f32 %v618_v33, %v590_v49 }
  0xd0   :  { %v664_v52 = vpop.f32.mrf.mxu2  ;;  %v2296_v53 = vpop.f32.mrf.mxu3 }
  0xd1   :  { %v563_v54 = vpop.f32.mrf.mxu0  ;;  %v592_v0 = vpop.f32.mrf.mxu1  ;;  %v665_v41 = vadd.f32 %v664_v52, %v2264_v21 }
  0xd2   :  { %v593_v55 = vadd.f32 %v592_v0, %v563_v54 }
  0xd3   :  { %823 = vmatmul.bf16.gmra.mxu0 %v2144_v23 }
  0xd4   :  { %v2299_v1 = vadd.f32 %v621_v40, %v593_v55  ;;  %852 = vmatmul.bf16.gmra.mxu1 %v2146_v24 }
  0xd5   :  { %1563 = vmatmul.msk.bf16.gmra.mxu3 %vm526_vm0, %v2060_v50 }
  0xd8   :  { %v666_v8 = vpop.f32.mrf.mxu2  ;;  %v2304_v56 = vpop.f32.mrf.mxu3 }
  0xd9   :  { %v565_v57 = vpop.f32.mrf.mxu0  ;;  %v594_v58 = vpop.f32.mrf.mxu1  ;;  %v667_v54 = vadd.f32 %v666_v8, %v2270_v44  ;;  %v927_v8 = vmul.f32 %v2259_v19, %v2259_v19 }
  0xda   :  { %v595_v59 = vadd.f32 %v594_v58, %v565_v57 }
  0xdc   :  { %v2306_v60 = vadd.f32 %v623_v43, %v595_v59 }
  0xde   :  { %2620 = vst [vmem:[#allocation2_spill] sm:$0xff] %v2306_v60 }
  0xe0   :  { %v669_v61 = vpop.f32.mrf.mxu2  ;;  %v2308_v62 = vpop.f32.mrf.mxu3 }
  0xe1   :  { %v693_v63 = vpop.f32.mrf.mxu0  ;;  %v722_v23 = vpop.f32.mrf.mxu1 }
  0xe2   :  { %v2351_v34 = vadd.f32 %v693_v63, %v665_v41 }
  0xe4   :  { %v887_v0 = vadd.f32 %v2351_v34, %v2259_v19  ;;  %v928_v63 = vmul.f32 %v2351_v34, %v2351_v34 }
  0xe6   :  { %v959_v41 = vadd.f32 %v928_v63, %v927_v8 }
  0xe8   :  { %v2310_v2 = vpop.f32.mrf.mxu2  ;;  %v751_v3 = vpop.f32.mrf.mxu3 }
  0xe9   :  { %v695_v24 = vpop.f32.mrf.mxu0  ;;  %v724_v4 = vpop.f32.mrf.mxu1  ;;  %v752_v43 = vadd.f32 %v751_v3, %v722_v23 }
  0xea   :  { %v2358_v58 = vadd.f32 %v695_v24, %v667_v54 }
  0xec   :  { %v932_v3 = vmul.f32 %v2358_v58, %v2358_v58 }
  0xf0   :  { %v2312_v5 = vpop.f32.mrf.mxu2  ;;  %v753_v50 = vpop.f32.mrf.mxu3 }
  0xf1   :  { %v698_v6 = vpop.f32.mrf.mxu0  ;;  %v727_v7 = vpop.f32.mrf.mxu1  ;;  %v754_v59 = vadd.f32 %v753_v50, %v724_v4  ;;  %v670_v4 = vadd.f32 %v669_v61, %v2278_v35  ;;  %v931_v50 = vmul.f32 %v2266_v27, %v2266_v27 }
  0xf8   :  { %v2314_v9 = vpop.f32.mrf.mxu2  ;;  %v756_v10 = vpop.f32.mrf.mxu3 }
  0xf9   :  { %v2316_v11 = vpop.f32.mrf.mxu0  ;;  %v2318_v12 = vpop.f32.mrf.mxu1 }
 0x100   :  { %v2320_v14 = vpop.f32.mrf.mxu2  ;;  %v2322_v15 = vpop.f32.mrf.mxu3 }
 0x101   :  { %v2324_v16 = vpop.f32.mrf.mxu0  ;;  %v2326_v17 = vpop.f32.mrf.mxu1 }
 0x108   :  { %v2328_v18 = vpop.f32.mrf.mxu2  ;;  %v2330_v20 = vpop.f32.mrf.mxu3 }
 0x109   :  { %v2332_v22 = vpop.f32.mrf.mxu0  ;;  %v2334_v25 = vpop.f32.mrf.mxu1 }
 0x110   :  { %v2336_v26 = vpop.f32.mrf.mxu3  ;;  %v780_v31 = vpop.f32.mrf.mxu2 }
 0x111   :  { %v2338_v28 = vpop.f32.mrf.mxu0  ;;  %v2340_v32 = vpop.f32.mrf.mxu1  ;;  %v2353_v46 = vadd.f32 %v780_v31, %v752_v43  ;;  %v2381_v43 = vadd.f32 %v698_v6, %v670_v4 }
 0x113   :  { %v888_v52 = vadd.f32 %v887_v0, %v2353_v46  ;;  %v929_v24 = vmul.f32 %v2353_v46, %v2353_v46  ;;  %v757_v0 = vadd.f32 %v756_v10, %v727_v7  ;;  %v935_v7 = vmul.f32 %v2273_v29, %v2273_v29 }
 0x114   :  { %v672_v10 = vadd.f32 %v2310_v2, %v2284_v30 }
 0x115   :  { %v960_v61 = vadd.f32 %v959_v41, %v929_v24  ;;  %v897_v24 = vadd.f32 %v2381_v43, %v2273_v29  ;;  %v759_v41 = vadd.f32 %v2322_v15, %v2318_v12 }
 0x118   :  { %v2342_v48 = vpop.f32.mrf.mxu3  ;;  %v782_v37 = vpop.f32.mrf.mxu2 }
 0x119   :  { %v2344_v33 = vpop.f32.mrf.mxu0  ;;  %v2346_v36 = vpop.f32.mrf.mxu1  ;;  %v2365_v23 = vadd.f32 %v782_v37, %v754_v59  ;;  %v964_v59 = vadd.f32 %v932_v3, %v931_v50 }
 0x120   :  { %v2348_v38 = vpop.f32.mrf.mxu3  ;;  %v785_v47 = vpop.f32.mrf.mxu2 }
 0x121   :  { %v809_v40 = vpop.f32.mrf.mxu0  ;;  %v838_v42 = vpop.f32.mrf.mxu1 }
 0x122   :  { %v839_v49 = vadd.f32 %v838_v42, %v809_v40  ;;  %v933_v42 = vmul.f32 %v2365_v23, %v2365_v23 }
 0x124   :  { %v965_v63 = vadd.f32 %v964_v59, %v933_v42 }
 0x128   :  { %v867_v55 = vpop.f32.mrf.mxu3  ;;  %v787_v31 = vpop.f32.mrf.mxu2 }
 0x129   :  { %v811_v57 = vpop.f32.mrf.mxu0  ;;  %v2360_v60 = vadd.f32 %v867_v55, %v839_v49  ;;  %v840_v21 = vpop.f32.mrf.mxu1 }
 0x12a   :  { %v841_v37 = vadd.f32 %v840_v21, %v811_v57 }
 0x12b   :  { %v889_v44 = vadd.f32 %v888_v52, %v2360_v60  ;;  %v930_v40 = vmul.f32 %v2360_v60, %v2360_v60  ;;  %v2385_v52 = vadd.f32 %v785_v47, %v757_v0  ;;  %v892_v47 = vadd.f32 %v2358_v58, %v2266_v27 }
 0x12c   :  { %v2410_v0 = vadd.f32 %v787_v31, %v759_v41  ;;  %v675_v31 = vadd.f32 %v2312_v5, %v2292_v45 }
 0x12d   :  { %890 = vadd.xlane.f32.xlu0 %v889_v44  ;;  %v961_v57 = vadd.f32 %v960_v61, %v930_v40  ;;  %v936_v44 = vmul.f32 %v2381_v43, %v2381_v43  ;;  %v937_v3 = vmul.f32 %v2385_v52, %v2385_v52  ;;  %v2402_v40 = vadd.f32 %v2316_v11, %v672_v10 }
 0x12e   :  { %v893_v42 = vadd.f32 %v892_v47, %v2365_v23  ;;  %v762_v10 = vadd.f32 %v2330_v20, %v2326_v17  ;;  %v943_v20 = vmul.f32 %v2287_v13, %v2287_v13 }
 0x12f   :  { %v940_v59 = vmul.f32 %v2402_v40, %v2402_v40 }
 0x130   :  { %v869_v49 = vpop.f32.mrf.mxu3 }
 0x131   :  { %v814_v54 = vpop.f32.mrf.mxu0  ;;  %v2383_v55 = vadd.f32 %v869_v49, %v841_v37  ;;  %v843_v35 = vpop.f32.mrf.mxu1  ;;  %v969_v37 = vadd.f32 %v936_v44, %v935_v7  ;;  %v902_v44 = vadd.f32 %v2402_v40, %v2280_v39  ;;  %v2427_v7 = vadd.f32 %v2324_v16, %v675_v31 }
 0x132   :  { %v844_v6 = vadd.f32 %v843_v35, %v814_v54  ;;  %v790_v49 = vpop.f32.mrf.mxu2  ;;  %v898_v54 = vadd.f32 %v897_v24, %v2385_v52  ;;  %v764_v31 = vadd.f32 %v2336_v26, %v2334_v25  ;;  %v680_v25 = vadd.f32 %v2320_v14, %v2304_v56 }
 0x133   :  { %v934_v21 = vmul.f32 %v2383_v55, %v2383_v55  ;;  %v894_v35 = vadd.f32 %v893_v42, %v2383_v55  ;;  %v970_v11 = vadd.f32 %v969_v37, %v937_v3  ;;  %v2433_v3 = vadd.f32 %v790_v49, %v762_v10 }
 0x134   :  { %v903_v24 = vadd.f32 %v902_v44, %v2410_v0  ;;  %v944_v16 = vmul.f32 %v2427_v7, %v2427_v7  ;;  %v907_v42 = vadd.f32 %v2427_v7, %v2287_v13  ;;  %v682_v56 = vadd.f32 %v2328_v18, %v2308_v62 }
 0x135   :  { %962 = vadd.xlane.f32.xlu0 %v961_v57  ;;  %v966_v8 = vadd.f32 %v965_v63, %v934_v21  ;;  %v939_v57 = vmul.f32 %v2280_v39, %v2280_v39  ;;  %v941_v21 = vmul.f32 %v2410_v0, %v2410_v0  ;;  %v945_v49 = vmul.f32 %v2433_v3, %v2433_v3 }
 0x136   :  { %v947_v18 = vmul.f32 %v2294_v51, %v2294_v51 }
 0x137   :  { %967 = vadd.xlane.f32.xlu1 %v966_v8  ;;  %v974_v5 = vadd.f32 %v940_v59, %v939_v57 }
 0x138   :  { %v872_v4 = vpop.f32.mrf.mxu3 }
 0x139   :  { %v816_v50 = vpop.f32.mrf.mxu0  ;;  %v2406_v30 = vadd.f32 %v872_v4, %v844_v6  ;;  %v845_v2 = vpop.f32.mrf.mxu1 }
 0x13a   :  { %v846_v63 = vadd.f32 %v845_v2, %v816_v50  ;;  %v975_v50 = vadd.f32 %v974_v5, %v941_v21  ;;  %v792_v37 = vpop.f32.mrf.mxu2 }
 0x13b   :  { %v938_v61 = vmul.f32 %v2406_v30, %v2406_v30  ;;  %v899_v15 = vadd.f32 %v898_v54, %v2406_v30  ;;  %v677_v54 = vadd.f32 %v2314_v9, %v2296_v53  ;;  %v2460_v9 = vadd.f32 %v792_v37, %v764_v31 }
 0x13d   :  { %895 = vadd.xlane.f32.xlu0 %v894_v35  ;;  %v971_v12 = vadd.f32 %v970_v11, %v938_v61  ;;  %v2453_v57 = vadd.f32 %v2332_v22, %v677_v54 }
 0x13f   :  { %972 = vadd.xlane.f32.xlu2 %v971_v12  ;;  %900 = vadd.xlane.f32.xlu1 %v899_v15  ;;  %v908_v12 = vadd.f32 %v907_v42, %v2433_v3  ;;  %v979_v15 = vadd.f32 %v944_v16, %v943_v20  ;;  %v948_v42 = vmul.f32 %v2453_v57, %v2453_v57 }
 0x140   :  { %v874_v6 = vpop.f32.mrf.mxu3 }
 0x141   :  { %v819_v8 = vpop.f32.mrf.mxu0  ;;  %v2431_v47 = vadd.f32 %v874_v6, %v846_v63  ;;  %v848_v45 = vpop.f32.mrf.mxu1  ;;  %v980_v53 = vadd.f32 %v979_v15, %v945_v49 }
 0x142   :  { %v849_v41 = vadd.f32 %v848_v45, %v819_v8  ;;  %v795_v6 = vpop.f32.mrf.mxu2  ;;  %v912_v8 = vadd.f32 %v2453_v57, %v2294_v51 }
 0x143   :  { %v942_v4 = vmul.f32 %v2431_v47, %v2431_v47  ;;  %v904_v2 = vadd.f32 %v903_v24, %v2431_v47 }
 0x144   :  { %v913_v45 = vadd.f32 %v912_v8, %v2460_v9 }
 0x145   :  { %v976_v17 = vadd.f32 %v975_v50, %v942_v4  ;;  %v2470_v4 = vadd.f32 %v2338_v28, %v680_v25  ;;  %v767_v50 = vadd.f32 %v2342_v48, %v2340_v32  ;;  %v2482_v28 = vadd.f32 %v2344_v33, %v682_v56 }
 0x146   :  { %v769_v32 = vadd.f32 %v2348_v38, %v2346_v36  ;;  %v949_v36 = vmul.f32 %v2460_v9, %v2460_v9  ;;  %v2621_v38 = vld [vmem:[#allocation2_spill] sm:$0xff] }
 0x147   :  { %905 = vadd.xlane.f32.xlu1 %v904_v2  ;;  %977 = vadd.xlane.f32.xlu0 %v976_v17  ;;  %v2475_v16 = vadd.f32 %v795_v6, %v767_v50  ;;  %v917_v14 = vadd.f32 %v2470_v4, %v2299_v1 }
 0x148   :  { %v877_v35 = vpop.f32.mrf.mxu3 }
 0x149   :  { %v821_v61 = vpop.f32.mrf.mxu0  ;;  %v2449_v11 = vadd.f32 %v877_v35, %v849_v41  ;;  %v850_v59 = vpop.f32.mrf.mxu1  ;;  %v918_v20 = vadd.f32 %v917_v14, %v2475_v16  ;;  %v956_v35 = vmul.f32 %v2482_v28, %v2482_v28  ;;  %v953_v50 = vmul.f32 %v2475_v16, %v2475_v16 }
 0x14a   :  { %v851_v10 = vadd.f32 %v850_v59, %v821_v61  ;;  %v797_v2 = vpop.f32.mrf.mxu2  ;;  %v955_v61 = vmul.f32 %v2621_v38, %v2621_v38  ;;  %v984_v59 = vadd.f32 %v948_v42, %v947_v18 }
 0x14b   :  { %v909_v21 = vadd.f32 %v908_v12, %v2449_v11  ;;  %v946_v63 = vmul.f32 %v2449_v11, %v2449_v11  ;;  %v2491_v49 = vadd.f32 %v797_v2, %v769_v32  ;;  %v922_v12 = vadd.f32 %v2482_v28, %v2621_v38 }
 0x14c   :  { %v985_v6 = vadd.f32 %v984_v59, %v949_v36  ;;  %v994_v8 = vadd.f32 %v956_v35, %v955_v61 }
 0x14d   :  { %910 = vadd.xlane.f32.xlu2 %v909_v21  ;;  %v981_v44 = vadd.f32 %v980_v53, %v946_v63  ;;  %v957_v15 = vmul.f32 %v2491_v49, %v2491_v49 }
 0x14f   :  { %982 = vadd.xlane.f32.xlu0 %v981_v44  ;;  %v923_v44 = vadd.f32 %v922_v12, %v2491_v49 }
 0x150   :  { %v879_v22 = vpop.f32.mrf.mxu3 }
 0x151   :  { %v2466_v26 = vadd.f32 %v879_v22, %v851_v10  ;;  %v824_v5 = vpop.f32.mrf.mxu0  ;;  %v853_v24 = vpop.f32.mrf.mxu1  ;;  %v952_v10 = vmul.f32 %v2470_v4, %v2470_v4 }
 0x152   :  { %v854_v41 = vadd.f32 %v853_v24, %v824_v5  ;;  %v995_v5 = vadd.f32 %v994_v8, %v957_v15  ;;  %v951_v24 = vmul.f32 %v2299_v1, %v2299_v1 }
 0x153   :  { %v914_v37 = vadd.f32 %v913_v45, %v2466_v26  ;;  %v950_v21 = vmul.f32 %v2466_v26, %v2466_v26 }
 0x154   :  { %v989_v56 = vadd.f32 %v952_v10, %v951_v24 }
 0x155   :  { %915 = vadd.xlane.f32.xlu2 %v914_v37  ;;  %v986_v25 = vadd.f32 %v985_v6, %v950_v21  ;;  %v1660_v6 = vmov 0  }
 0x156   :  { %v990_v14 = vadd.f32 %v989_v56, %v953_v50  ;;  %1651 = vset.pattern.permute.xlu2 %v1660_v6  ;;  %1650 = vset.pattern.permute.xlu1 %v1660_v6 }
 0x157   :  { %1652 = vset.pattern.permute.xlu0 %v1660_v6 }
 0x158   :  { %v882_v17 = vpop.f32.mrf.mxu3 }
 0x159   :  { %v2486_v48 = vadd.f32 %v882_v17, %v854_v41  ;;  %v826_v54 = vpop.f32.mrf.mxu0  ;;  %v855_v33 = vpop.f32.mrf.mxu1 }
 0x15a   :  { %v856_v31 = vadd.f32 %v855_v33, %v826_v54  ;;  %v1659_v54 = vmov 2048.0  }
 0x15b   :  { %v919_v62 = vadd.f32 %v918_v20, %v2486_v48  ;;  %v954_v41 = vmul.f32 %v2486_v48, %v2486_v48  ;;  %1653 = vrcp.f32 %v1659_v54 }
 0x15d   :  { %920 = vadd.xlane.f32.xlu1 %v919_v62  ;;  %v991_v2 = vadd.f32 %v990_v14, %v954_v41 }
 0x160   :  { %v884_v63 = vpop.f32.mrf.mxu3 }
 0x161   :  { %v2508_v53 = vadd.f32 %v884_v63, %v856_v31  ;;  %v1654_v35 = vpop.eup %1653 }
 0x162   :  { %v1012_v59 = vmul.f32 2048.0, %v1654_v35  ;;  %vm1016_vm1 = vweird.f32 %v1654_v35 }
 0x163   :  { %v924_v22 = vadd.f32 %v923_v44, %v2508_v53  ;;  %v958_v45 = vmul.f32 %v2508_v53, %v2508_v53 }
 0x164   :  { %v1013_v12 = vsub.f32 1.0, %v1012_v59 }
 0x165   :  { %925 = vadd.xlane.f32.xlu2 %v924_v22  ;;  %987 = vadd.xlane.f32.xlu1 %v986_v25  ;;  %v996_v37 = vadd.f32 %v995_v5, %v958_v45 }
 0x166   :  { %v1014_v63 = vmul.f32 %v1654_v35, %v1013_v12 }
 0x167   :  { %997 = vadd.xlane.f32.xlu0 %v996_v37 }
 0x168   :  { %v1015_v8 = vadd.f32 %v1654_v35, %v1014_v63 }
 0x16a   :  { %v1017_v41 = vsel %vm1016_vm1, %v1654_v35, %v1015_v8 }
 0x16d   :  { %992 = vadd.xlane.f32.xlu2 %v991_v2 }
 0x1a0   :  { %v891_v17 = vpop.xlane.xlu0 %890 }
 0x1a8   :  { %v963_v20 = vpop.xlane.xlu0 %962 }
 0x1aa   :  { %v968_v32 = vpop.xlane.xlu1 %967 }
 0x1b0   :  { %v896_v18 = vpop.xlane.xlu0 %895 }
 0x1b2   :  { %v973_v42 = vpop.xlane.xlu2 %972  ;;  %v901_v62 = vpop.xlane.xlu1 %900 }
 0x1b3   :  { %v999_v10 = vadd.f32 %v901_v62, %v891_v17 }
 0x1ba   :  { %v906_v36 = vpop.xlane.xlu1 %905  ;;  %v978_v61 = vpop.xlane.xlu0 %977 }
 0x1bb   :  { %v1000_v44 = vadd.f32 %v906_v36, %v896_v18  ;;  %v1006_v22 = vadd.f32 %v978_v61, %v968_v32  ;;  %v1005_v18 = vadd.f32 %v973_v42, %v963_v20 }
 0x1c0   :  { %v911_v33 = vpop.xlane.xlu2 %910 }
 0x1c1   :  { %v1001_v24 = vadd.f32 %v999_v10, %v911_v33 }
 0x1c2   :  { %v983_v21 = vpop.xlane.xlu0 %982 }
 0x1c3   :  { %v1007_v12 = vadd.f32 %v1005_v18, %v983_v21 }
 0x1c8   :  { %v916_v15 = vpop.xlane.xlu2 %915 }
 0x1c9   :  { %v1002_v25 = vadd.f32 %v1000_v44, %v916_v15 }
 0x1d0   :  { %v921_v31 = vpop.xlane.xlu1 %920 }
 0x1d1   :  { %v1003_v14 = vadd.f32 %v1001_v24, %v921_v31 }
 0x1d3   :  { %v1018_v63 = vmul.f32 %v1017_v41, %v1003_v14  ;;  %v1028_v14 = vld [vmem:[%s2616_s2] sm:$0xff] }
 0x1d5   :  { %v1022_v61 = vmul.f32 %v1018_v63, %v1018_v63 }
 0x1d8   :  { %v926_v45 = vpop.xlane.xlu2 %925  ;;  %v988_v5 = vpop.xlane.xlu1 %987 }
 0x1d9   :  { %v1004_v50 = vadd.f32 %v1002_v25, %v926_v45  ;;  %v1008_v37 = vadd.f32 %v1006_v22, %v988_v5  ;;  %v1029_v5 = vld [vmem:[%s2616_s2 + $0x8] sm:$0xff] }
 0x1da   :  { %v998_v56 = vpop.xlane.xlu0 %997 }
 0x1db   :  { %v1019_v2 = vmul.f32 %v1017_v41, %v1004_v50  ;;  %v1010_v54 = vadd.f32 %v1008_v37, %v998_v56 }
 0x1dd   :  { %v1023_v36 = vmul.f32 %v1019_v2, %v1019_v2  ;;  %v1021_v59 = vmul.f32 %v1017_v41, %v1010_v54 }
 0x1df   :  { %v1025_v6 = vsub.f32 %v1021_v59, %v1023_v36  ;;  %v1055_v59 = vld [vmem:[%s2617_s3 + $0x8] sm:$0xff] }
 0x1e0   :  { %v993_v17 = vpop.xlane.xlu2 %992 }
 0x1e1   :  { %v1027_v32 = vmax.f32 %v1025_v6, 0.0  ;;  %v1009_v62 = vadd.f32 %v1007_v12, %v993_v17  ;;  %v1054_v6 = vld [vmem:[%s2617_s3] sm:$0xff] }
 0x1e3   :  { %v1031_v15 = vadd.f32 1e-05, %v1027_v32  ;;  %v1020_v44 = vmul.f32 %v1017_v41, %v1009_v62 }
 0x1e5   :  { %1655 = vrsqrt.f32 %v1031_v15  ;;  %v1024_v33 = vsub.f32 %v1020_v44, %v1022_v61  ;;  %vm1048_vm3 = vweird.f32 %v1031_v15 }
 0x1e7   :  { %v1026_v10 = vmax.f32 %v1024_v33, 0.0 }
 0x1e9   :  { %v1030_v35 = vadd.f32 1e-05, %v1026_v10 }
 0x1eb   :  { %v1656_v8 = vpop.eup %1655  ;;  %1657 = vrsqrt.f32 %v1030_v35  ;;  %vm1038_vm6 = vweird.f32 %v1030_v35 }
 0x1ec   :  { %v1043_v31 = vmul.f32 %v1656_v8, %v1031_v15  ;;  %vm1049_vm2 = vweird.f32 %v1656_v8 }
 0x1ed   :  { %vm1050_vm4 = vmor %vm1048_vm3, %vm1049_vm2 }
 0x1ee   :  { %v1044_v22 = vmul.f32 %v1656_v8, %v1043_v31 }
 0x1f0   :  { %v1045_v20 = vmul.f32 0.5, %v1044_v22 }
 0x1f1   :  { %v1658_v42 = vpop.eup %1657 }
 0x1f2   :  { %v1033_v25 = vmul.f32 %v1658_v42, %v1030_v35  ;;  %v1046_v21 = vsub.f32 1.5, %v1045_v20  ;;  %vm1039_vm5 = vweird.f32 %v1658_v42 }
 0x1f3   :  { %vm1040_vm7 = vmor %vm1038_vm6, %vm1039_vm5 }
 0x1f4   :  { %v1034_v45 = vmul.f32 %v1658_v42, %v1033_v25  ;;  %v1047_v24 = vmul.f32 %v1656_v8, %v1046_v21 }
 0x1f6   :  { %v1051_v50 = vsel %vm1050_vm4, %v1656_v8, %v1047_v24  ;;  %v1035_v37 = vmul.f32 0.5, %v1034_v45 }
 0x1f7   :  { %v1053_v41 = vmul.f32 %v1051_v50, %v1029_v5 }
 0x1f8   :  { %v1036_v56 = vsub.f32 1.5, %v1035_v37 }
 0x1f9   :  { %1067 = vperm.xlu2 %1651, %v1053_v41   ;;  %v1057_v18 = vmul.f32 %v1053_v41, %v1019_v2 }
 0x1fa   :  { %v1037_v54 = vmul.f32 %v1658_v42, %v1036_v56 }
 0x1fb   :  { %v1059_v17 = vsub.f32 %v1055_v59, %v1057_v18 }
 0x1fc   :  { %v1041_v36 = vsel %vm1040_vm7, %v1658_v42, %v1037_v54 }
 0x1fd   :  { %v1052_v12 = vmul.f32 %v1041_v36, %v1028_v14 }
 0x1ff   :  { %1062 = vperm.xlu1 %1650, %v1052_v12   ;;  %v1056_v32 = vmul.f32 %v1052_v12, %v1018_v63 }
 0x201   :  { %1109 = vperm.xlu2 %1651, %v1059_v17   ;;  %v1058_v62 = vsub.f32 %v1054_v6, %v1056_v32 }
 0x203   :  { %1104 = vperm.xlu0 %1652, %v1058_v62  }
 0x253   :  { %v1068_v61 = vpop.permute.xlu2 %1067 }
 0x254   :  { %v1074_v15 = vmul.f32 %v1068_v61, %v2266_v27  ;;  %v1075_v2 = vmul.f32 %v1068_v61, %v2358_v58  ;;  %v1076_v44 = vmul.f32 %v1068_v61, %v2365_v23  ;;  %v1077_v33 = vmul.f32 %v1068_v61, %v2383_v55 }
 0x255   :  { %v1082_v10 = vmul.f32 %v1068_v61, %v2280_v39  ;;  %v1083_v35 = vmul.f32 %v1068_v61, %v2402_v40  ;;  %v1084_v8 = vmul.f32 %v1068_v61, %v2410_v0  ;;  %v1085_v63 = vmul.f32 %v1068_v61, %v2431_v47 }
 0x256   :  { %v1090_v31 = vmul.f32 %v1068_v61, %v2294_v51  ;;  %v1091_v22 = vmul.f32 %v1068_v61, %v2453_v57  ;;  %v1092_v27 = vmul.f32 %v1068_v61, %v2460_v9  ;;  %v1093_v58 = vmul.f32 %v1068_v61, %v2466_v26 }
 0x257   :  { %v1098_v23 = vmul.f32 %v1068_v61, %v2621_v38  ;;  %v1099_v55 = vmul.f32 %v1068_v61, %v2482_v28  ;;  %v1100_v39 = vmul.f32 %v1068_v61, %v2491_v49  ;;  %v1101_v40 = vmul.f32 %v1068_v61, %v2508_v53 }
 0x25b   :  { %v1110_v20 = vpop.permute.xlu2 %1109 }
 0x25c   :  { %v1116_v0 = vadd.f32 %v1110_v20, %v1074_v15  ;;  %v1117_v42 = vadd.f32 %v1110_v20, %v1075_v2  ;;  %v1118_v47 = vadd.f32 %v1110_v20, %v1076_v44  ;;  %v1119_v25 = vadd.f32 %v1110_v20, %v1077_v33 }
 0x25d   :  { %v1124_v51 = vadd.f32 %v1110_v20, %v1082_v10  ;;  %v1125_v21 = vadd.f32 %v1110_v20, %v1083_v35  ;;  %v1126_v57 = vadd.f32 %v1110_v20, %v1084_v8  ;;  %v1127_v45 = vadd.f32 %v1110_v20, %v1085_v63 }
 0x25e   :  { %v1132_v9 = vadd.f32 %v1110_v20, %v1090_v31  ;;  %v1133_v5 = vadd.f32 %v1110_v20, %v1091_v22  ;;  %v1134_v26 = vadd.f32 %v1110_v20, %v1092_v27  ;;  %v1135_v24 = vadd.f32 %v1110_v20, %v1093_v58 }
 0x25f   :  { %v1140_v38 = vadd.f32 %v1110_v20, %v1098_v23  ;;  %v1141_v50 = vadd.f32 %v1110_v20, %v1099_v55  ;;  %v1142_v28 = vadd.f32 %v1110_v20, %v1100_v39  ;;  %v1143_v37 = vadd.f32 %v1110_v20, %v1101_v40 }
 0x260   :  { %v1148_v49 = vmax.f32 %v1116_v0, 0.0  ;;  %v1149_v41 = vmax.f32 %v1117_v42, 0.0  ;;  %v1150_v53 = vmax.f32 %v1118_v47, 0.0  ;;  %v1151_v56 = vmax.f32 %v1119_v25, 0.0 }
 0x261   :  { %v1156_v14 = vmax.f32 %v1124_v51, 0.0  ;;  %v1157_v54 = vmax.f32 %v1125_v21, 0.0  ;;  %v1158_v18 = vmax.f32 %v1126_v57, 0.0  ;;  %v1159_v36 = vmax.f32 %v1127_v45, 0.0 }
 0x262   :  { %v1164_v59 = vmax.f32 %v1132_v9, 0.0  ;;  %v1165_v12 = vmax.f32 %v1133_v5, 0.0  ;;  %v1166_v6 = vmax.f32 %v1134_v26, 0.0  ;;  %v1167_v17 = vmax.f32 %v1135_v24, 0.0 }
 0x263   :  { %v1172_v32 = vmax.f32 %v1140_v38, 0.0  ;;  %v1173_v62 = vmax.f32 %v1141_v50, 0.0  ;;  %v1178_v61 = vpack.c.bf16 %v1149_v41, %v1148_v49  ;;  %v1179_v15 = vpack.c.bf16 %v1151_v56, %v1150_v53 }
 0x264   :  { %v1182_v2 = vpack.c.bf16 %v1157_v54, %v1156_v14  ;;  %v1174_v44 = vmax.f32 %v1142_v28, 0.0  ;;  %v1175_v33 = vmax.f32 %v1143_v37, 0.0  ;;  %v1183_v10 = vpack.c.bf16 %v1159_v36, %v1158_v18 }
 0x265   :  { %v1186_v35 = vpack.c.bf16 %v1165_v12, %v1164_v59  ;;  %1194 = vst [vmem:[%s2618_s4 + $0x10] sm:$0xff] %v1178_v61  ;;  %v1187_v8 = vpack.c.bf16 %v1167_v17, %v1166_v6  ;;  %v1190_v63 = vpack.c.bf16 %v1173_v62, %v1172_v32 }
 0x266   :  { %1195 = vst [vmem:[%s2618_s4 + $0x18] sm:$0xff] %v1179_v15  ;;  %v1191_v31 = vpack.c.bf16 %v1175_v33, %v1174_v44 }
 0x267   :  { %1198 = vst [vmem:[%s2618_s4 + $0x30] sm:$0xff] %v1182_v2 }
 0x268   :  { %1199 = vst [vmem:[%s2618_s4 + $0x38] sm:$0xff] %v1183_v10 }
 0x269   :  { %1202 = vst [vmem:[%s2618_s4 + $0x50] sm:$0xff] %v1186_v35 }
 0x26a   :  { %1203 = vst [vmem:[%s2618_s4 + $0x58] sm:$0xff] %v1187_v8 }
 0x26b   :  { %1206 = vst [vmem:[%s2618_s4 + $0x70] sm:$0xff] %v1190_v63 }
 0x26c   :  { %1207 = vst [vmem:[%s2618_s4 + $0x78] sm:$0xff] %v1191_v31 }
 0x271   :  { %v1063_v22 = vpop.permute.xlu1 %1062 }
 0x272   :  { %v1070_v27 = vmul.f32 %v1063_v22, %v2259_v19  ;;  %v1071_v58 = vmul.f32 %v1063_v22, %v2351_v34  ;;  %v1072_v23 = vmul.f32 %v1063_v22, %v2353_v46  ;;  %v1073_v55 = vmul.f32 %v1063_v22, %v2360_v60 }
 0x273   :  { %v1078_v39 = vmul.f32 %v1063_v22, %v2273_v29  ;;  %v1079_v40 = vmul.f32 %v1063_v22, %v2381_v43  ;;  %v1080_v20 = vmul.f32 %v1063_v22, %v2385_v52  ;;  %v1081_v0 = vmul.f32 %v1063_v22, %v2406_v30 }
 0x274   :  { %v1086_v42 = vmul.f32 %v1063_v22, %v2287_v13  ;;  %v1087_v47 = vmul.f32 %v1063_v22, %v2427_v7  ;;  %v1088_v19 = vmul.f32 %v1063_v22, %v2433_v3  ;;  %v1089_v34 = vmul.f32 %v1063_v22, %v2449_v11 }
 0x275   :  { %v1094_v46 = vmul.f32 %v1063_v22, %v2299_v1  ;;  %v1095_v60 = vmul.f32 %v1063_v22, %v2470_v4  ;;  %v1096_v29 = vmul.f32 %v1063_v22, %v2475_v16  ;;  %v1097_v43 = vmul.f32 %v1063_v22, %v2486_v48  ;;  %v1105_v25 = vpop.permute.xlu0 %1104 }
 0x276   :  { %v1112_v52 = vadd.f32 %v1105_v25, %v1070_v27  ;;  %v1113_v51 = vadd.f32 %v1105_v25, %v1071_v58  ;;  %v1114_v30 = vadd.f32 %v1105_v25, %v1072_v23  ;;  %v1115_v21 = vadd.f32 %v1105_v25, %v1073_v55 }
 0x277   :  { %v1120_v13 = vadd.f32 %v1105_v25, %v1078_v39  ;;  %v1121_v57 = vadd.f32 %v1105_v25, %v1079_v40  ;;  %v1122_v7 = vadd.f32 %v1105_v25, %v1080_v20  ;;  %v1123_v45 = vadd.f32 %v1105_v25, %v1081_v0 }
 0x278   :  { %v1128_v3 = vadd.f32 %v1105_v25, %v1086_v42  ;;  %v1129_v9 = vadd.f32 %v1105_v25, %v1087_v47  ;;  %v1130_v11 = vadd.f32 %v1105_v25, %v1088_v19  ;;  %v1131_v5 = vadd.f32 %v1105_v25, %v1089_v34 }
 0x279   :  { %v1136_v1 = vadd.f32 %v1105_v25, %v1094_v46  ;;  %v1137_v26 = vadd.f32 %v1105_v25, %v1095_v60  ;;  %v1138_v4 = vadd.f32 %v1105_v25, %v1096_v29  ;;  %v1139_v24 = vadd.f32 %v1105_v25, %v1097_v43 }
 0x27a   :  { %v1144_v16 = vmax.f32 %v1112_v52, 0.0  ;;  %v1145_v38 = vmax.f32 %v1113_v51, 0.0  ;;  %v1146_v48 = vmax.f32 %v1114_v30, 0.0  ;;  %v1147_v50 = vmax.f32 %v1115_v21, 0.0 }
 0x27b   :  { %v1152_v28 = vmax.f32 %v1120_v13, 0.0  ;;  %v1153_v37 = vmax.f32 %v1121_v57, 0.0  ;;  %v1154_v49 = vmax.f32 %v1122_v7, 0.0  ;;  %v1155_v41 = vmax.f32 %v1123_v45, 0.0 }
 0x27c   :  { %v1160_v53 = vmax.f32 %v1128_v3, 0.0  ;;  %v1161_v56 = vmax.f32 %v1129_v9, 0.0  ;;  %v1162_v14 = vmax.f32 %v1130_v11, 0.0  ;;  %v1163_v54 = vmax.f32 %v1131_v5, 0.0 }
 0x27d   :  { %v1168_v18 = vmax.f32 %v1136_v1, 0.0  ;;  %v1169_v36 = vmax.f32 %v1137_v26, 0.0  ;;  %v1176_v59 = vpack.c.bf16 %v1145_v38, %v1144_v16  ;;  %v1177_v12 = vpack.c.bf16 %v1147_v50, %v1146_v48 }
 0x27e   :  { %v1180_v6 = vpack.c.bf16 %v1153_v37, %v1152_v28  ;;  %v1170_v17 = vmax.f32 %v1138_v4, 0.0  ;;  %v1171_v32 = vmax.f32 %v1139_v24, 0.0  ;;  %v1181_v62 = vpack.c.bf16 %v1155_v41, %v1154_v49 }
 0x27f   :  { %v1184_v61 = vpack.c.bf16 %v1161_v56, %v1160_v53  ;;  %1192 = vst [vmem:[%s2618_s4] sm:$0xff] %v1176_v59  ;;  %v1185_v15 = vpack.c.bf16 %v1163_v54, %v1162_v14  ;;  %v1188_v2 = vpack.c.bf16 %v1169_v36, %v1168_v18 }
 0x280   :  { %1193 = vst [vmem:[%s2618_s4 + $0x8] sm:$0xff] %v1177_v12  ;;  %v1189_v44 = vpack.c.bf16 %v1171_v32, %v1170_v17 }
 0x281   :  { %1196 = vst [vmem:[%s2618_s4 + $0x20] sm:$0xff] %v1180_v6 }
 0x282   :  { %1197 = vst [vmem:[%s2618_s4 + $0x28] sm:$0xff] %v1181_v62 }
 0x283   :  { %1200 = vst [vmem:[%s2618_s4 + $0x40] sm:$0xff] %v1184_v61 }
 0x284   :  { %1201 = vst [vmem:[%s2618_s4 + $0x48] sm:$0xff] %v1185_v15 }
 0x285   :  { %1204 = vst [vmem:[%s2618_s4 + $0x60] sm:$0xff] %v1188_v2 }
 0x286   :  { %1205 = vst [vmem:[%s2618_s4 + $0x68] sm:$0xff] %v1189_v44 }

// kernel: generator_forward.8
= control target key start
LH: loop header
LB: loop body
LE: loop exit
PB: predicated region body
PF: predicated region fallthrough
CT: control target
= control target key end

     0   :  { %vm926_vm0 = vcmask 130048   ;;  %s6925_s1 = inlined_call_operand.vmem [shape: bf16[144,2048], index: 1, kind: input, shape index: {}]   ;;  %s6926_s0 = inlined_call_operand.vmem [shape: bf16[64,144], index: 0, kind: input, shape index: {}]   ;;  %s6927_s2 = inlined_call_operand.vmem [shape: f32[16,1], index: 2, kind: input, shape index: {}]   ;;  %s6928_s3 = inlined_call_operand.vmem [shape: f32[16,1], index: 3, kind: input, shape index: {}]   ;;  %s6929_s4 = inlined_call_operand.vmem [shape: bf16[64,2048], index: 4, kind: output, shape index: {}]  }
   0x1   :  { %v3346_v0 = vld [vmem:[%s6925_s1 + $0x380] sm:$0xf]  ;;  %v3656_v2 = vld [vmem:[%s6925_s1 + $0x384] sm:$0xf]  ;;  %v2868_v10 = vld [vmem:[%s6926_s0 + $0x8] sm:$0xf0] }
   0x2   :  { %v3664_v1 = vld [vmem:[%s6925_s1 + $0x3bc] sm:$0xf0]  ;;  %v3348_v4 = vld [vmem:[%s6925_s1 + $0x3c0] sm:$0xf0]  ;;  %v3418_v37 = vld [vmem:[%s6925_s1 + $0x408] sm:$0xf] }
   0x3   :  { %v3347_v3 = vor.u32 %v3664_v1, %v3346_v0  ;;  %v3672_v5 = vld [vmem:[%s6925_s1 + $0x404] sm:$0xf]  ;;  %v3351_v7 = vor.u32 %v3656_v2, %v3348_v4  ;;  %v3282_v11 = vld [vmem:[%s6925_s1 + $0x300] sm:$0xf]  ;;  %v3681_v38 = vld [vmem:[%s6925_s1 + $0x444] sm:$0xf0] }
   0x4   :  { %v3412_v6 = vld [vmem:[%s6925_s1 + $0x440] sm:$0xf0]  ;;  %v3648_v13 = vld [vmem:[%s6925_s1 + $0x33c] sm:$0xf0]  ;;  %v3538_v39 = vld [vmem:[%s6926_s0 + $0x14] sm:$0xf]  ;;  %v3419_v40 = vor.u32 %v3681_v38, %v3418_v37 }
   0x5   :  { %v3415_v8 = vor.u32 %v3672_v5, %v3412_v6  ;;  %v3536_v9 = vld [vmem:[%s6926_s0 + $0x4] sm:$0xf]  ;;  %939 = vmatpush.bf16.msra.mxu0 %v3347_v3  ;;  %997 = vmatpush.bf16.msra.mxu2 %v3351_v7  ;;  %v3283_v16 = vor.u32 %v3648_v13, %v3282_v11  ;;  %v3410_v18 = vld [vmem:[%s6925_s1 + $0x400] sm:$0xf]  ;;  %v2876_v42 = vld [vmem:[%s6926_s0 + $0x18] sm:$0xf0] }
   0x6   :  { %v3753_v12 = vor.u32 %v3536_v9, %v2868_v10  ;;  %v3640_v14 = vld [vmem:[%s6925_s1 + $0x304] sm:$0xf]  ;;  %v3680_v19 = vld [vmem:[%s6925_s1 + $0x43c] sm:$0xf0]  ;;  %v3354_v47 = vld [vmem:[%s6925_s1 + $0x388] sm:$0xf]  ;;  %v3846_v53 = vor.u32 %v3538_v39, %v2876_v42 }
   0x7   :  { %v3284_v15 = vld [vmem:[%s6925_s1 + $0x340] sm:$0xf0]  ;;  %1033 = vmatpush.bf16.msra.mxu3 %v3415_v8  ;;  %v3218_v20 = vld [vmem:[%s6925_s1 + $0x280] sm:$0xf]  ;;  %v3411_v21 = vor.u32 %v3680_v19, %v3410_v18  ;;  %v3665_v48 = vld [vmem:[%s6925_s1 + $0x3c4] sm:$0xf0] }
   0x8   :  { %v3287_v17 = vor.u32 %v3640_v14, %v3284_v15  ;;  %v3632_v22 = vld [vmem:[%s6925_s1 + $0x2bc] sm:$0xf0]  ;;  %v3624_v23 = vld [vmem:[%s6925_s1 + $0x284] sm:$0xf]  ;;  %v3355_v50 = vor.u32 %v3665_v48, %v3354_v47  ;;  %v3290_v51 = vld [vmem:[%s6925_s1 + $0x308] sm:$0xf] }
   0x9   :  { %v3220_v24 = vld [vmem:[%s6925_s1 + $0x2c0] sm:$0xf0]  ;;  %940 = vmatpush.bf16.msra.mxu0 %v3283_v16  ;;  %v3219_v25 = vor.u32 %v3632_v22, %v3218_v20  ;;  %975 = vmatpush.bf16.msra.mxu1 %v3411_v21  ;;  %v3154_v27 = vld [vmem:[%s6925_s1 + $0x200] sm:$0xf]  ;;  %v3649_v52 = vld [vmem:[%s6925_s1 + $0x344] sm:$0xf0] }
   0xa   :  { %3476 = vmatmul.msk.bf16.vlgmr.msra.gmra.mxu3 %vm926_vm0, %v3753_v12  ;;  %998 = vmatpush.bf16.msra.mxu2 %v3287_v17  ;;  %v3223_v26 = vor.u32 %v3624_v23, %v3220_v24  ;;  %v3616_v28 = vld [vmem:[%s6925_s1 + $0x23c] sm:$0xf0]  ;;  %v3608_v29 = vld [vmem:[%s6925_s1 + $0x204] sm:$0xf]  ;;  %v3291_v59 = vor.u32 %v3649_v52, %v3290_v51  ;;  %v3226_v61 = vld [vmem:[%s6925_s1 + $0x288] sm:$0xf] }
   0xb   :  { %v3156_v30 = vld [vmem:[%s6925_s1 + $0x240] sm:$0xf0]  ;;  %v3155_v31 = vor.u32 %v3616_v28, %v3154_v27  ;;  %v3090_v33 = vld [vmem:[%s6925_s1 + $0x180] sm:$0xf]  ;;  %1091 = vmatpush.bf16.msrb.mxu3 %v3419_v40  ;;  %v3633_v62 = vld [vmem:[%s6925_s1 + $0x2c4] sm:$0xf0] }
   0xc   :  { %3472 = vmatmul.msk.bf16.vlgmr.msra.gmra.mxu1 %vm926_vm0, %v3753_v12  ;;  %v3159_v32 = vor.u32 %v3608_v29, %v3156_v30  ;;  %v3600_v34 = vld [vmem:[%s6925_s1 + $0x1bc] sm:$0xf0]  ;;  %v3592_v35 = vld [vmem:[%s6925_s1 + $0x184] sm:$0xf]  ;;  %v3227_v5 = vor.u32 %v3633_v62, %v3226_v61  ;;  %v3673_v6 = vld [vmem:[%s6925_s1 + $0x40c] sm:$0xf] }
   0xd   :  { %941 = vmatpush.bf16.msra.mxu0 %v3219_v25  ;;  %v3092_v36 = vld [vmem:[%s6925_s1 + $0x1c0] sm:$0xf0]  ;;  %v3091_v41 = vor.u32 %v3600_v34, %v3090_v33  ;;  %v3026_v43 = vld [vmem:[%s6925_s1 + $0x100] sm:$0xf]  ;;  %1055 = vmatpush.bf16.msrb.mxu1 %v3355_v50  ;;  %v3657_v7 = vld [vmem:[%s6925_s1 + $0x38c] sm:$0xf] }
   0xe   :  { %999 = vmatpush.bf16.msra.mxu2 %v3223_v26  ;;  %v3584_v44 = vld [vmem:[%s6925_s1 + $0x13c] sm:$0xf0]  ;;  %v3095_v45 = vor.u32 %v3592_v35, %v3092_v36  ;;  %v3576_v46 = vld [vmem:[%s6925_s1 + $0x104] sm:$0xf]  ;;  %v3356_v8 = vld [vmem:[%s6925_s1 + $0x3c8] sm:$0xf0] }
   0xf   :  { %v3028_v49 = vld [vmem:[%s6925_s1 + $0x140] sm:$0xf0]  ;;  %v3027_v54 = vor.u32 %v3584_v44, %v3026_v43  ;;  %v2962_v56 = vld [vmem:[%s6925_s1 + $0x80] sm:$0xf]  ;;  %v3420_v9 = vld [vmem:[%s6925_s1 + $0x448] sm:$0xf0]  ;;  %v3359_v17 = vor.u32 %v3657_v7, %v3356_v8 }
  0x10   :  { %v3031_v55 = vor.u32 %v3576_v46, %v3028_v49  ;;  %v3568_v57 = vld [vmem:[%s6925_s1 + $0xbc] sm:$0xf0]  ;;  %v3560_v58 = vld [vmem:[%s6925_s1 + $0x84] sm:$0xf]  ;;  %v3162_v10 = vld [vmem:[%s6925_s1 + $0x208] sm:$0xf]  ;;  %v3423_v18 = vor.u32 %v3673_v6, %v3420_v9 }
  0x11   :  { %942 = vmatpush.bf16.msra.mxu0 %v3155_v31  ;;  %v2964_v60 = vld [vmem:[%s6925_s1 + $0xc0] sm:$0xf0]  ;;  %v2963_v63 = vor.u32 %v3568_v57, %v2962_v56  ;;  %v2898_v0 = vld [vmem:[%s6925_s1] sm:$0xf]  ;;  %1056 = vmatpush.bf16.msrb.mxu1 %v3291_v59  ;;  %v3617_v11 = vld [vmem:[%s6925_s1 + $0x244] sm:$0xf0] }
  0x12   :  { %1000 = vmatpush.bf16.msra.mxu2 %v3159_v32  ;;  %v2967_v1 = vor.u32 %v3560_v58, %v2964_v60  ;;  %v3552_v2 = vld [vmem:[%s6925_s1 + $0x3c] sm:$0xf0]  ;;  %v3544_v3 = vld [vmem:[%s6925_s1 + $0x4] sm:$0xf]  ;;  %v3537_v15 = vld [vmem:[%s6926_s0 + $0x4] sm:$0xf0]  ;;  %v3163_v21 = vor.u32 %v3617_v11, %v3162_v10 }
  0x13   :  { %v2900_v4 = vld [vmem:[%s6925_s1 + $0x40] sm:$0xf0]  ;;  %v2899_v13 = vor.u32 %v3552_v2, %v2898_v0  ;;  %v2866_v14 = vld [vmem:[%s6926_s0] sm:$0xf]  ;;  %v3641_v19 = vld [vmem:[%s6925_s1 + $0x30c] sm:$0xf] }
  0x14   :  { %v2903_v16 = vor.u32 %v3544_v3, %v2900_v4  ;;  %v3292_v20 = vld [vmem:[%s6925_s1 + $0x348] sm:$0xf0]  ;;  %v3912_v22 = vor.u32 %v3537_v15, %v2866_v14  ;;  %v3098_v23 = vld [vmem:[%s6925_s1 + $0x188] sm:$0xf]  ;;  %v3540_v25 = vld [vmem:[%s6926_s0 + $0x24] sm:$0xf] }
  0x15   :  { %943 = vmatpush.bf16.msra.mxu0 %v3091_v41  ;;  %1057 = vmatpush.bf16.msrb.mxu1 %v3227_v5  ;;  %v3601_v24 = vld [vmem:[%s6925_s1 + $0x1c4] sm:$0xf0]  ;;  %v2884_v26 = vld [vmem:[%s6926_s0 + $0x28] sm:$0xf0]  ;;  %v3295_v27 = vor.u32 %v3641_v19, %v3292_v20  ;;  %v2874_v46 = vld [vmem:[%s6926_s0 + $0x10] sm:$0xf] }
  0x16   :  { %1001 = vmatpush.bf16.msra.mxu2 %v3095_v45  ;;  %v3625_v28 = vld [vmem:[%s6925_s1 + $0x28c] sm:$0xf]  ;;  %v3099_v30 = vor.u32 %v3601_v24, %v3098_v23  ;;  %v3034_v31 = vld [vmem:[%s6925_s1 + $0x108] sm:$0xf]  ;;  %v3940_v33 = vor.u32 %v3540_v25, %v2884_v26  ;;  %v3539_v47 = vld [vmem:[%s6926_s0 + $0x14] sm:$0xf0] }
  0x17   :  { %v3228_v29 = vld [vmem:[%s6925_s1 + $0x2c8] sm:$0xf0]  ;;  %v3585_v32 = vld [vmem:[%s6925_s1 + $0x144] sm:$0xf0]  ;;  %v3982_v52 = vor.u32 %v3539_v47, %v2874_v46  ;;  %v2882_v61 = vld [vmem:[%s6926_s0 + $0x20] sm:$0xf] }
  0x18   :  { %v3231_v34 = vor.u32 %v3625_v28, %v3228_v29  ;;  %v3609_v35 = vld [vmem:[%s6925_s1 + $0x20c] sm:$0xf]  ;;  %v3035_v37 = vor.u32 %v3585_v32, %v3034_v31  ;;  %v2970_v38 = vld [vmem:[%s6925_s1 + $0x88] sm:$0xf]  ;;  %v3682_v3 = vld [vmem:[%s6925_s1 + $0x44c] sm:$0xf0] }
  0x19   :  { %944 = vmatpush.bf16.msra.mxu0 %v3027_v54  ;;  %1058 = vmatpush.bf16.msrb.mxu1 %v3163_v21  ;;  %v3164_v36 = vld [vmem:[%s6925_s1 + $0x248] sm:$0xf0]  ;;  %v3569_v39 = vld [vmem:[%s6925_s1 + $0xc4] sm:$0xf0]  ;;  %v3542_v54 = vld [vmem:[%s6926_s0 + $0x34] sm:$0xf] }
  0x1a   :  { %3477 = vmatmul.msk.bf16.gmra.mxu3 %vm926_vm0, %v3846_v53  ;;  %1002 = vmatpush.bf16.msra.mxu2 %v3031_v55  ;;  %v3167_v40 = vor.u32 %v3609_v35, %v3164_v36  ;;  %v2971_v41 = vor.u32 %v3569_v39, %v2970_v38  ;;  %v3593_v42 = vld [vmem:[%s6925_s1 + $0x18c] sm:$0xf]  ;;  %v2906_v44 = vld [vmem:[%s6925_s1 + $0x8] sm:$0xf]  ;;  %v2892_v55 = vld [vmem:[%s6926_s0 + $0x38] sm:$0xf0] }
  0x1b   :  { %v3100_v43 = vld [vmem:[%s6925_s1 + $0x1c8] sm:$0xf0]  ;;  %v3553_v45 = vld [vmem:[%s6925_s1 + $0x44] sm:$0xf0]  ;;  %v3992_v57 = vor.u32 %v3542_v54, %v2892_v55  ;;  %v3674_v6 = vld [vmem:[%s6925_s1 + $0x414] sm:$0xf] }
  0x1c   :  { %3473 = vmatmul.msk.bf16.gmra.mxu1 %vm926_vm0, %v3846_v53  ;;  %v3103_v48 = vor.u32 %v3593_v42, %v3100_v43  ;;  %v2907_v49 = vor.u32 %v3553_v45, %v2906_v44  ;;  %v3577_v50 = vld [vmem:[%s6925_s1 + $0x10c] sm:$0xf]  ;;  %v3541_v62 = vld [vmem:[%s6926_s0 + $0x24] sm:$0xf0]  ;;  %v3428_v7 = vld [vmem:[%s6925_s1 + $0x450] sm:$0xf0] }
  0x1d   :  { %945 = vmatpush.bf16.msra.mxu0 %v2963_v63  ;;  %1059 = vmatpush.bf16.msrb.mxu1 %v3099_v30  ;;  %v3036_v51 = vld [vmem:[%s6925_s1 + $0x148] sm:$0xf0]  ;;  %v4022_v5 = vor.u32 %v3541_v62, %v2882_v61  ;;  %v3431_v8 = vor.u32 %v3674_v6, %v3428_v7  ;;  %v3362_v9 = vld [vmem:[%s6925_s1 + $0x390] sm:$0xf]  ;;  %v3658_v11 = vld [vmem:[%s6925_s1 + $0x394] sm:$0xf] }
  0x1e   :  { %1003 = vmatpush.bf16.msra.mxu2 %v2967_v1  ;;  %v3039_v56 = vor.u32 %v3577_v50, %v3036_v51  ;;  %v3561_v58 = vld [vmem:[%s6925_s1 + $0x8c] sm:$0xf]  ;;  %v3426_v1 = vld [vmem:[%s6925_s1 + $0x410] sm:$0xf]  ;;  %v3364_v14 = vld [vmem:[%s6925_s1 + $0x3d0] sm:$0xf0] }
  0x1f   :  { %v2972_v59 = vld [vmem:[%s6925_s1 + $0xc8] sm:$0xf0]  ;;  %v3427_v4 = vor.u32 %v3682_v3, %v3426_v1  ;;  %v3666_v10 = vld [vmem:[%s6925_s1 + $0x3cc] sm:$0xf0]  ;;  %v3367_v15 = vor.u32 %v3658_v11, %v3364_v14  ;;  %v3642_v20 = vld [vmem:[%s6925_s1 + $0x314] sm:$0xf] }
  0x20   :  { %v2975_v60 = vor.u32 %v3561_v58, %v2972_v59  ;;  %v3545_v63 = vld [vmem:[%s6925_s1 + $0xc] sm:$0xf]  ;;  %v3650_v19 = vld [vmem:[%s6925_s1 + $0x34c] sm:$0xf0]  ;;  %v3300_v23 = vld [vmem:[%s6925_s1 + $0x350] sm:$0xf0] }
  0x21   :  { %946 = vmatpush.bf16.msra.mxu0 %v2899_v13  ;;  %1060 = vmatpush.bf16.msrb.mxu1 %v3035_v37  ;;  %v2908_v0 = vld [vmem:[%s6925_s1 + $0x48] sm:$0xf0]  ;;  %v3363_v13 = vor.u32 %v3666_v10, %v3362_v9  ;;  %v3303_v24 = vor.u32 %v3642_v20, %v3300_v23  ;;  %v3234_v26 = vld [vmem:[%s6925_s1 + $0x290] sm:$0xf]  ;;  %v3626_v29 = vld [vmem:[%s6925_s1 + $0x294] sm:$0xf] }
  0x22   :  { %1004 = vmatpush.bf16.msra.mxu2 %v2903_v16  ;;  %v2911_v2 = vor.u32 %v3545_v63, %v2908_v0  ;;  %1207 = vmatpush.bf16.msra.mxu3 %v3427_v4  ;;  %v2890_v16 = vld [vmem:[%s6926_s0 + $0x30] sm:$0xf]  ;;  %v3236_v30 = vld [vmem:[%s6925_s1 + $0x2d0] sm:$0xf0]  ;;  %v3683_v3 = vld [vmem:[%s6925_s1 + $0x454] sm:$0xf0] }
  0x23   :  { %v3170_v31 = vld [vmem:[%s6925_s1 + $0x210] sm:$0xf]  ;;  %v3239_v32 = vor.u32 %v3626_v29, %v3236_v30  ;;  %v3610_v38 = vld [vmem:[%s6925_s1 + $0x214] sm:$0xf]  ;;  %v3675_v6 = vld [vmem:[%s6925_s1 + $0x41c] sm:$0xf] }
  0x24   :  { %947 = vmatmul.bf16.vlgmr.msra.gmra.mxu0 %v3912_v22  ;;  %v3106_v36 = vld [vmem:[%s6925_s1 + $0x190] sm:$0xf]  ;;  %v3044_v58 = vld [vmem:[%s6925_s1 + $0x150] sm:$0xf0]  ;;  %v3436_v7 = vld [vmem:[%s6925_s1 + $0x458] sm:$0xf0] }
  0x25   :  { %1113 = vmatpush.bf16.msrb.mxu0 %v3359_v17  ;;  %1005 = vmatmul.bf16.vlgmr.msra.gmra.mxu2 %v3912_v22  ;;  %v3543_v17 = vld [vmem:[%s6926_s0 + $0x34] sm:$0xf0]  ;;  %v3602_v37 = vld [vmem:[%s6925_s1 + $0x1cc] sm:$0xf0]  ;;  %v2980_v61 = vld [vmem:[%s6925_s1 + $0xd0] sm:$0xf0] }
  0x26   :  { %1149 = vmatpush.bf16.msrb.mxu2 %v3423_v18  ;;  %1061 = vmatpush.bf16.msrb.mxu1 %v2971_v41  ;;  %v3298_v18 = vld [vmem:[%s6925_s1 + $0x310] sm:$0xf]  ;;  %v4065_v25 = vor.u32 %v3543_v17, %v2890_v16  ;;  %v3107_v39 = vor.u32 %v3602_v37, %v3106_v36  ;;  %v3546_v63 = vld [vmem:[%s6925_s1 + $0x14] sm:$0xf]  ;;  %v3370_v11 = vld [vmem:[%s6925_s1 + $0x398] sm:$0xf] }
  0x27   :  { %v3299_v21 = vor.u32 %v3650_v19, %v3298_v18  ;;  %v3042_v42 = vld [vmem:[%s6925_s1 + $0x110] sm:$0xf]  ;;  %v2916_v0 = vld [vmem:[%s6925_s1 + $0x50] sm:$0xf0]  ;;  %v3659_v14 = vld [vmem:[%s6925_s1 + $0x39c] sm:$0xf] }
  0x28   :  { %v3586_v43 = vld [vmem:[%s6925_s1 + $0x14c] sm:$0xf0]  ;;  %v2919_v1 = vor.u32 %v3546_v63, %v2916_v0  ;;  %v3372_v16 = vld [vmem:[%s6925_s1 + $0x3d8] sm:$0xf0]  ;;  %v3306_v18 = vld [vmem:[%s6925_s1 + $0x318] sm:$0xf] }
  0x29   :  { %1114 = vmatpush.bf16.msrb.mxu0 %v3295_v27  ;;  %v3634_v27 = vld [vmem:[%s6925_s1 + $0x2cc] sm:$0xf0]  ;;  %v3043_v44 = vor.u32 %v3586_v43, %v3042_v42  ;;  %v3375_v17 = vor.u32 %v3659_v14, %v3372_v16  ;;  %v3651_v19 = vld [vmem:[%s6925_s1 + $0x354] sm:$0xf0]  ;;  %v3627_v37 = vld [vmem:[%s6925_s1 + $0x29c] sm:$0xf] }
  0x2a   :  { %3478 = vmatmul.msk.bf16.gmra.mxu3 %vm926_vm0, %v3940_v33  ;;  %1062 = vmatpush.bf16.msrb.mxu1 %v2907_v49  ;;  %v3235_v28 = vor.u32 %v3634_v27, %v3234_v26  ;;  %v2978_v45 = vld [vmem:[%s6925_s1 + $0x90] sm:$0xf]  ;;  %v3108_v49 = vld [vmem:[%s6925_s1 + $0x1d0] sm:$0xf0]  ;;  %v3308_v26 = vld [vmem:[%s6925_s1 + $0x358] sm:$0xf0] }
  0x2b   :  { %1265 = vmatpush.bf16.msra.mxu2 %v3431_v8  ;;  %v3570_v46 = vld [vmem:[%s6925_s1 + $0xcc] sm:$0xf0]  ;;  %v3439_v8 = vor.u32 %v3675_v6, %v3436_v7  ;;  %v3242_v27 = vld [vmem:[%s6925_s1 + $0x298] sm:$0xf]  ;;  %v3116_v6 = vld [vmem:[%s6925_s1 + $0x1d8] sm:$0xf0] }
  0x2c   :  { %3474 = vmatmul.msk.bf16.gmra.mxu1 %vm926_vm0, %v3940_v33  ;;  %v2979_v47 = vor.u32 %v3570_v46, %v2978_v45  ;;  %v2914_v50 = vld [vmem:[%s6925_s1 + $0x10] sm:$0xf]  ;;  %v3635_v29 = vld [vmem:[%s6925_s1 + $0x2d4] sm:$0xf0]  ;;  %v3052_v16 = vld [vmem:[%s6925_s1 + $0x158] sm:$0xf0] }
  0x2d   :  { %1115 = vmatpush.bf16.msrb.mxu0 %v3231_v34  ;;  %v3618_v34 = vld [vmem:[%s6925_s1 + $0x24c] sm:$0xf0]  ;;  %v3243_v30 = vor.u32 %v3635_v29, %v3242_v27  ;;  %v3587_v45 = vld [vmem:[%s6925_s1 + $0x154] sm:$0xf0]  ;;  %v3547_v29 = vld [vmem:[%s6925_s1 + $0x1c] sm:$0xf] }
  0x2e   :  { %1171 = vmatpush.bf16.msra.mxu1 %v3363_v13  ;;  %v3171_v35 = vor.u32 %v3618_v34, %v3170_v31  ;;  %v3554_v54 = vld [vmem:[%s6925_s1 + $0x4c] sm:$0xf0]  ;;  %v3667_v13 = vld [vmem:[%s6925_s1 + $0x3d4] sm:$0xf0] }
  0x2f   :  { %v2915_v55 = vor.u32 %v3554_v54, %v2914_v50  ;;  %v3178_v31 = vld [vmem:[%s6925_s1 + $0x218] sm:$0xf]  ;;  %v3611_v50 = vld [vmem:[%s6925_s1 + $0x21c] sm:$0xf] }
  0x30   :  { %v2986_v54 = vld [vmem:[%s6925_s1 + $0x98] sm:$0xf] }
  0x31   :  { %1116 = vmatpush.bf16.msrb.mxu0 %v3167_v40  ;;  %v3172_v40 = vld [vmem:[%s6925_s1 + $0x250] sm:$0xf0]  ;;  %v3555_v63 = vld [vmem:[%s6925_s1 + $0x54] sm:$0xf0] }
  0x32   :  { %1172 = vmatpush.bf16.msra.mxu1 %v3299_v21  ;;  %v3175_v41 = vor.u32 %v3610_v38, %v3172_v40  ;;  %v3307_v21 = vor.u32 %v3651_v19, %v3306_v18  ;;  %v3244_v38 = vld [vmem:[%s6925_s1 + $0x2d8] sm:$0xf0] }
  0x33   :  { %v3247_v40 = vor.u32 %v3627_v37, %v3244_v38 }
  0x34   :  { %952 = vmatmul.bf16.gmra.mxu0 %v3982_v52 }
  0x35   :  { %1117 = vmatpush.bf16.msrb.mxu0 %v3103_v48  ;;  %1010 = vmatmul.bf16.gmra.mxu2 %v3982_v52  ;;  %v3594_v48 = vld [vmem:[%s6925_s1 + $0x194] sm:$0xf] }
  0x36   :  { %1173 = vmatpush.bf16.msra.mxu1 %v3235_v28  ;;  %v3111_v51 = vor.u32 %v3594_v48, %v3108_v49 }
  0x39   :  { %1118 = vmatpush.bf16.msrb.mxu0 %v3039_v56  ;;  %v3578_v56 = vld [vmem:[%s6925_s1 + $0x114] sm:$0xf] }
  0x3a   :  { %3479 = vmatmul.msk.bf16.gmra.mxu3 %vm926_vm0, %v3992_v57  ;;  %1174 = vmatpush.bf16.msra.mxu1 %v3171_v35  ;;  %v3047_v59 = vor.u32 %v3578_v56, %v3044_v58  ;;  %v3571_v56 = vld [vmem:[%s6925_s1 + $0xd4] sm:$0xf0] }
  0x3b   :  { %v2987_v58 = vor.u32 %v3571_v56, %v2986_v54  ;;  %v3668_v56 = vld [vmem:[%s6925_s1 + $0x3dc] sm:$0xf0] }
  0x3c   :  { %3475 = vmatmul.msk.bf16.gmra.mxu1 %vm926_vm0, %v3992_v57 }
  0x3d   :  { %1119 = vmatpush.bf16.msrb.mxu0 %v2975_v60  ;;  %v3562_v60 = vld [vmem:[%s6925_s1 + $0x94] sm:$0xf] }
  0x3e   :  { %1175 = vmatpush.bf16.msra.mxu1 %v3107_v39  ;;  %v2983_v62 = vor.u32 %v3562_v60, %v2980_v61  ;;  %v3114_v39 = vld [vmem:[%s6925_s1 + $0x198] sm:$0xf] }
  0x41   :  { %1120 = vmatpush.bf16.msrb.mxu0 %v2911_v2  ;;  %v3434_v2 = vld [vmem:[%s6925_s1 + $0x418] sm:$0xf] }
  0x42   :  { %1176 = vmatpush.bf16.msra.mxu1 %v3043_v44  ;;  %v3435_v4 = vor.u32 %v3683_v3, %v3434_v2  ;;  %v3050_v44 = vld [vmem:[%s6925_s1 + $0x118] sm:$0xf] }
  0x43   :  { %v3051_v48 = vor.u32 %v3587_v45, %v3050_v44  ;;  %v3676_v45 = vld [vmem:[%s6925_s1 + $0x424] sm:$0xf] }
  0x44   :  { %957 = vmatmul.bf16.gmra.mxu0 %v4022_v5 }
  0x45   :  { %1015 = vmatmul.bf16.gmra.mxu2 %v4022_v5  ;;  %1229 = vmatpush.bf16.msra.mxu0 %v3367_v15  ;;  %v3371_v15 = vor.u32 %v3667_v13, %v3370_v11 }
  0x46   :  { %1177 = vmatpush.bf16.msra.mxu1 %v2979_v47 }
  0x49   :  { %1230 = vmatpush.bf16.msra.mxu0 %v3303_v24  ;;  %v3643_v24 = vld [vmem:[%s6925_s1 + $0x31c] sm:$0xf] }
  0x4a   :  { %3480 = vmatmul.msk.bf16.vlgmr.msrb.gmra.mxu3 %vm926_vm0, %v3753_v12  ;;  %1178 = vmatpush.bf16.msra.mxu1 %v2915_v55  ;;  %v3311_v28 = vor.u32 %v3643_v24, %v3308_v26  ;;  %v3563_v24 = vld [vmem:[%s6925_s1 + $0x9c] sm:$0xf] }
  0x4b   :  { %1323 = vmatpush.bf16.msrb.mxu3 %v3435_v4  ;;  %v3595_v4 = vld [vmem:[%s6925_s1 + $0x19c] sm:$0xf] }
  0x4c   :  { %1063 = vmatmul.bf16.vlgmr.msrb.gmra.mxu1 %v3912_v22  ;;  %v3119_v7 = vor.u32 %v3595_v4, %v3116_v6  ;;  %v2988_v26 = vld [vmem:[%s6925_s1 + $0xd8] sm:$0xf0]  ;;  %v3652_v4 = vld [vmem:[%s6925_s1 + $0x35c] sm:$0xf0] }
  0x4d   :  { %1231 = vmatpush.bf16.msra.mxu0 %v3239_v32  ;;  %v3619_v32 = vld [vmem:[%s6925_s1 + $0x254] sm:$0xf0] }
  0x4e   :  { %1287 = vmatpush.bf16.msrb.mxu1 %v3371_v15  ;;  %v3179_v35 = vor.u32 %v3619_v32, %v3178_v31  ;;  %v3579_v15 = vld [vmem:[%s6925_s1 + $0x11c] sm:$0xf] }
  0x51   :  { %1232 = vmatpush.bf16.msra.mxu0 %v3175_v41  ;;  %v3603_v41 = vld [vmem:[%s6925_s1 + $0x1d4] sm:$0xf0] }
  0x52   :  { %1288 = vmatpush.bf16.msrb.mxu1 %v3307_v21  ;;  %v3115_v42 = vor.u32 %v3603_v41, %v3114_v39  ;;  %v3442_v39 = vld [vmem:[%s6925_s1 + $0x420] sm:$0xf] }
  0x54   :  { %962 = vmatmul.bf16.gmra.mxu0 %v4065_v25 }
  0x55   :  { %1020 = vmatmul.bf16.gmra.mxu2 %v4065_v25  ;;  %1233 = vmatpush.bf16.msra.mxu0 %v3111_v51  ;;  %v3180_v51 = vld [vmem:[%s6925_s1 + $0x258] sm:$0xf0] }
  0x56   :  { %1289 = vmatpush.bf16.msrb.mxu1 %v3243_v30  ;;  %v3183_v55 = vor.u32 %v3611_v50, %v3180_v51  ;;  %v2924_v30 = vld [vmem:[%s6925_s1 + $0x58] sm:$0xf0] }
  0x57   :  { %v2927_v32 = vor.u32 %v3547_v29, %v2924_v30  ;;  %v3620_v29 = vld [vmem:[%s6925_s1 + $0x25c] sm:$0xf0] }
  0x59   :  { %1234 = vmatpush.bf16.msra.mxu0 %v3047_v59 }
  0x5a   :  { %3481 = vmatmul.msk.bf16.gmra.mxu3 %vm926_vm0, %v3846_v53  ;;  %1290 = vmatpush.bf16.msrb.mxu1 %v3179_v35 }
  0x5c   :  { %1068 = vmatmul.bf16.gmra.mxu1 %v3982_v52 }
  0x5d   :  { %1235 = vmatpush.bf16.msra.mxu0 %v2983_v62  ;;  %v2922_v62 = vld [vmem:[%s6925_s1 + $0x18] sm:$0xf] }
  0x5e   :  { %1291 = vmatpush.bf16.msrb.mxu1 %v3115_v42  ;;  %v2923_v2 = vor.u32 %v3555_v63, %v2922_v62 }
  0x61   :  { %1236 = vmatpush.bf16.msra.mxu0 %v2919_v1 }
  0x62   :  { %1292 = vmatpush.bf16.msrb.mxu1 %v3051_v48 }
  0x64   :  { %1121 = vmatmul.bf16.vlgmr.msrb.gmra.mxu0 %v3912_v22 }
  0x65   :  { %3484 = vmatmul.msk.bf16.vlgmr.msrb.gmra.mxu2 %vm926_vm0, %v3753_v12  ;;  %1345 = vmatpush.bf16.msrb.mxu0 %v3375_v17  ;;  %v3055_v17 = vor.u32 %v3579_v15, %v3052_v16  ;;  %v3316_v15 = vld [vmem:[%s6925_s1 + $0x360] sm:$0xf0]  ;;  %v3250_v16 = vld [vmem:[%s6925_s1 + $0x2a0] sm:$0xf] }
  0x66   :  { %1381 = vmatpush.bf16.msrb.mxu2 %v3439_v8  ;;  %1293 = vmatpush.bf16.msrb.mxu1 %v2987_v58  ;;  %v3660_v58 = vld [vmem:[%s6925_s1 + $0x3a4] sm:$0xf] }
  0x69   :  { %1346 = vmatpush.bf16.msrb.mxu0 %v3311_v28  ;;  %v2991_v28 = vor.u32 %v3563_v24, %v2988_v26 }
  0x6a   :  { %3482 = vmatmul.msk.bf16.gmra.mxu3 %vm926_vm0, %v3940_v33  ;;  %1294 = vmatpush.bf16.msrb.mxu1 %v2923_v2 }
  0x6c   :  { %1073 = vmatmul.bf16.gmra.mxu1 %v4022_v5 }
  0x6d   :  { %1347 = vmatpush.bf16.msrb.mxu0 %v3247_v40  ;;  %v3684_v40 = vld [vmem:[%s6925_s1 + $0x45c] sm:$0xf0] }
  0x6e   :  { %v3443_v41 = vor.u32 %v3684_v40, %v3442_v39  ;;  %v3628_v39 = vld [vmem:[%s6925_s1 + $0x2a4] sm:$0xf] }
  0x6f   :  { %v3252_v40 = vld [vmem:[%s6925_s1 + $0x2e0] sm:$0xf0] }
  0x71   :  { %1348 = vmatpush.bf16.msrb.mxu0 %v3183_v55  ;;  %v3378_v55 = vld [vmem:[%s6925_s1 + $0x3a0] sm:$0xf] }
  0x74   :  { %1126 = vmatmul.bf16.gmra.mxu0 %v3982_v52 }
  0x75   :  { %3485 = vmatmul.msk.bf16.gmra.mxu2 %vm926_vm0, %v3846_v53  ;;  %1349 = vmatpush.bf16.msrb.mxu0 %v3119_v7 }
  0x79   :  { %1350 = vmatpush.bf16.msrb.mxu0 %v3055_v17 }
  0x7a   :  { %3483 = vmatmul.msk.bf16.gmra.mxu3 %vm926_vm0, %v3992_v57 }
  0x7c   :  { %1078 = vmatmul.bf16.gmra.mxu1 %v4065_v25 }
  0x7d   :  { %1351 = vmatpush.bf16.msrb.mxu0 %v2991_v28  ;;  %v3186_v28 = vld [vmem:[%s6925_s1 + $0x220] sm:$0xf] }
  0x81   :  { %1352 = vmatpush.bf16.msrb.mxu0 %v2927_v32  ;;  %v3187_v32 = vor.u32 %v3620_v29, %v3186_v28 }
  0x84   :  { %1131 = vmatmul.bf16.gmra.mxu0 %v4022_v5 }
  0x85   :  { %3486 = vmatmul.msk.bf16.gmra.mxu2 %vm926_vm0, %v3940_v33 }
  0x89   :  { %v977_v9 = vpop.f32.mrf.mxu1 }
  0x8a   :  { %3488 = vmatmul.msk.bf16.vlgmr.msra.gmra.mxu3 %vm926_vm0, %v3753_v12 }
  0x8b   :  { %1439 = vmatpush.bf16.msra.mxu3 %v3443_v41  ;;  %v3255_v41 = vor.u32 %v3628_v39, %v3252_v40  ;;  %v3580_v40 = vld [vmem:[%s6925_s1 + $0x124] sm:$0xf] }
  0x8c   :  { %1179 = vmatmul.bf16.vlgmr.msra.gmra.mxu1 %v3912_v22 }
  0x8d   :  { %v1035_v10 = vpop.f32.mrf.mxu3 }
  0x91   :  { %v979_v20 = vpop.f32.mrf.mxu1 }
  0x94   :  { %1136 = vmatmul.bf16.gmra.mxu0 %v4065_v25 }
  0x95   :  { %v4192_v23 = vpop.f32.mrf.mxu3  ;;  %3487 = vmatmul.msk.bf16.gmra.mxu2 %vm926_vm0, %v3992_v57 }
  0x99   :  { %v982_v34 = vpop.f32.mrf.mxu1 }
  0x9a   :  { %3489 = vmatmul.msk.bf16.gmra.mxu3 %vm926_vm0, %v3846_v53 }
  0x9c   :  { %1184 = vmatmul.bf16.gmra.mxu1 %v3982_v52 }
  0x9d   :  { %v1040_v36 = vpop.f32.mrf.mxu3 }
  0xa1   :  { %v948_v43 = vpop.f32.mrf.mxu0  ;;  %v984_v47 = vpop.f32.mrf.mxu1 }
  0xa2   :  { %v4236_v46 = vadd.f32 %v977_v9, %v948_v43 }
  0xa4   :  { %7077 = vst [vmem:[#allocation2_spill] sm:$0xff] %v4236_v46  ;;  %1237 = vmatmul.bf16.vlgmr.msra.gmra.mxu0 %v3912_v22 }
  0xa5   :  { %v1042_v49 = vpop.f32.mrf.mxu3  ;;  %3492 = vmatmul.msk.bf16.vlgmr.msra.gmra.mxu2 %vm926_vm0, %v3753_v12 }
  0xa8   :  { %v1006_v59 = vpop.f32.mrf.mxu2 }
  0xa9   :  { %v4253_v60 = vadd.f32 %v1035_v10, %v1006_v59  ;;  %v950_v61 = vpop.f32.mrf.mxu0  ;;  %v987_v1 = vpop.f32.mrf.mxu1  ;;  %v3379_v59 = vor.u32 %v3668_v56, %v3378_v55 }
  0xaa   :  { %3490 = vmatmul.msk.bf16.gmra.mxu3 %vm926_vm0, %v3940_v33  ;;  %v4263_v0 = vadd.f32 %v979_v20, %v950_v61  ;;  %v3380_v61 = vld [vmem:[%s6925_s1 + $0x3e0] sm:$0xf0] }
  0xab   :  { %7078 = vst [vmem:[#allocation3_spill] sm:$0xff] %v4253_v60  ;;  %v3383_v62 = vor.u32 %v3660_v58, %v3380_v61  ;;  %1403 = vmatpush.bf16.msra.mxu1 %v3379_v59  ;;  %v3188_v61 = vld [vmem:[%s6925_s1 + $0x260] sm:$0xf0] }
  0xac   :  { %7079 = vst [vmem:[#allocation4_spill] sm:$0xff] %v4263_v0  ;;  %1189 = vmatmul.bf16.gmra.mxu1 %v4022_v5 }
  0xad   :  { %v1045_v3 = vpop.f32.mrf.mxu3  ;;  %1461 = vmatpush.bf16.msra.mxu0 %v3383_v62  ;;  %v2994_v62 = vld [vmem:[%s6925_s1 + $0xa0] sm:$0xf] }
  0xb0   :  { %v1008_v8 = vpop.f32.mrf.mxu2 }
  0xb1   :  { %v4273_v9 = vadd.f32 %v4192_v23, %v1008_v8  ;;  %v953_v10 = vpop.f32.mrf.mxu0  ;;  %v989_v13 = vpop.f32.mrf.mxu1 }
  0xb2   :  { %v4275_v11 = vadd.f32 %v982_v34, %v953_v10 }
  0xb3   :  { %7080 = vst [vmem:[#allocation5_spill] sm:$0xff] %v4273_v9 }
  0xb4   :  { %7081 = vst [vmem:[#allocation6_spill] sm:$0xff] %v4275_v11  ;;  %1242 = vmatmul.bf16.gmra.mxu0 %v3982_v52 }
  0xb5   :  { %v1047_v14 = vpop.f32.mrf.mxu3  ;;  %3493 = vmatmul.msk.bf16.gmra.mxu2 %vm926_vm0, %v3846_v53 }
  0xb8   :  { %v1011_v18 = vpop.f32.mrf.mxu2 }
  0xb9   :  { %v4286_v19 = vadd.f32 %v1040_v36, %v1011_v18  ;;  %v955_v20 = vpop.f32.mrf.mxu0  ;;  %v992_v23 = vpop.f32.mrf.mxu1  ;;  %v3636_v18 = vld [vmem:[%s6925_s1 + $0x2dc] sm:$0xf0] }
  0xba   :  { %3491 = vmatmul.msk.bf16.gmra.mxu3 %vm926_vm0, %v3992_v57  ;;  %v4290_v21 = vadd.f32 %v984_v47, %v955_v20  ;;  %v3444_v47 = vld [vmem:[%s6925_s1 + $0x460] sm:$0xf0]  ;;  %v3251_v20 = vor.u32 %v3636_v18, %v3250_v16 }
  0xbb   :  { %7082 = vst [vmem:[#allocation7_spill] sm:$0xff] %v4286_v19  ;;  %v3447_v50 = vor.u32 %v3676_v45, %v3444_v47 }
  0xbc   :  { %7083 = vst [vmem:[#allocation8_spill] sm:$0xff] %v4290_v21  ;;  %1194 = vmatmul.bf16.gmra.mxu1 %v4065_v25 }
  0xbd   :  { %v1050_v27 = vpop.f32.mrf.mxu3  ;;  %1497 = vmatpush.bf16.msra.mxu2 %v3447_v50  ;;  %v3058_v50 = vld [vmem:[%s6925_s1 + $0x120] sm:$0xf] }
  0xc0   :  { %v1013_v31 = vpop.f32.mrf.mxu2 }
  0xc1   :  { %v4305_v34 = vadd.f32 %v1042_v49, %v1013_v31  ;;  %v958_v35 = vpop.f32.mrf.mxu0  ;;  %v994_v37 = vpop.f32.mrf.mxu1 }
  0xc2   :  { %v4307_v36 = vadd.f32 %v987_v1, %v958_v35 }
  0xc3   :  { %7084 = vst [vmem:[#allocation9_spill] sm:$0xff] %v4305_v34 }
  0xc4   :  { %7085 = vst [vmem:[#allocation10_spill] sm:$0xff] %v4307_v36  ;;  %1247 = vmatmul.bf16.gmra.mxu0 %v4022_v5 }
  0xc5   :  { %v4309_v38 = vpop.f32.mrf.mxu3  ;;  %3494 = vmatmul.msk.bf16.gmra.mxu2 %vm926_vm0, %v3940_v33 }
  0xc8   :  { %v1016_v42 = vpop.f32.mrf.mxu2 }
  0xc9   :  { %v4320_v43 = vadd.f32 %v1045_v3, %v1016_v42  ;;  %v960_v44 = vpop.f32.mrf.mxu0  ;;  %v1064_v49 = vpop.f32.mrf.mxu1  ;;  %v3314_v3 = vld [vmem:[%s6925_s1 + $0x320] sm:$0xf] }
  0xca   :  { %3496 = vmatmul.msk.bf16.vlgmr.msrb.gmra.mxu3 %vm926_vm0, %v3753_v12  ;;  %v4330_v48 = vadd.f32 %v989_v13, %v960_v44  ;;  %v3315_v8 = vor.u32 %v3652_v4, %v3314_v3  ;;  %v3604_v42 = vld [vmem:[%s6925_s1 + $0x1dc] sm:$0xf0] }
  0xcb   :  { %7086 = vst [vmem:[#allocation11_spill] sm:$0xff] %v4320_v43 }
  0xcc   :  { %7087 = vst [vmem:[#allocation12_spill] sm:$0xff] %v4330_v48  ;;  %1295 = vmatmul.bf16.vlgmr.msrb.gmra.mxu1 %v3912_v22 }
  0xcd   :  { %v1093_v51 = vpop.f32.mrf.mxu3  ;;  %1404 = vmatpush.bf16.msra.mxu1 %v3315_v8 }
  0xce   :  { %v4332_v54 = vadd.f32 %v1093_v51, %v1064_v49  ;;  %v3588_v51 = vld [vmem:[%s6925_s1 + $0x15c] sm:$0xf0] }
  0xcf   :  { %v3059_v56 = vor.u32 %v3588_v51, %v3058_v50  ;;  %v3564_v50 = vld [vmem:[%s6925_s1 + $0xa4] sm:$0xf] }
  0xd0   :  { %7088 = vst [vmem:[#allocation13_spill] sm:$0xff] %v4332_v54  ;;  %v1018_v63 = vpop.f32.mrf.mxu2  ;;  %v2996_v51 = vld [vmem:[%s6925_s1 + $0xe0] sm:$0xf0] }
  0xd1   :  { %v4347_v1 = vadd.f32 %v1047_v14, %v1018_v63  ;;  %v963_v2 = vpop.f32.mrf.mxu0  ;;  %v1066_v7 = vpop.f32.mrf.mxu1  ;;  %v3644_v14 = vld [vmem:[%s6925_s1 + $0x324] sm:$0xf]  ;;  %1405 = vmatpush.bf16.msra.mxu1 %v3251_v20 }
  0xd2   :  { %v4355_v6 = vadd.f32 %v992_v23, %v963_v2  ;;  %v3319_v17 = vor.u32 %v3644_v14, %v3316_v15  ;;  %v3572_v2 = vld [vmem:[%s6925_s1 + $0xdc] sm:$0xf0]  ;;  %v3596_v20 = vld [vmem:[%s6925_s1 + $0x1a4] sm:$0xf] }
  0xd3   :  { %7089 = vst [vmem:[#allocation14_spill] sm:$0xff] %v4347_v1  ;;  %v2995_v3 = vor.u32 %v3572_v2, %v2994_v62  ;;  %v3556_v14 = vld [vmem:[%s6925_s1 + $0x5c] sm:$0xf0] }
  0xd4   :  { %7090 = vst [vmem:[#allocation15_spill] sm:$0xff] %v4355_v6  ;;  %1252 = vmatmul.bf16.gmra.mxu0 %v4065_v25 }
  0xd5   :  { %v1095_v10 = vpop.f32.mrf.mxu3  ;;  %3495 = vmatmul.msk.bf16.gmra.mxu2 %vm926_vm0, %v3992_v57  ;;  %1462 = vmatpush.bf16.msra.mxu0 %v3319_v17 }
  0xd6   :  { %v4358_v13 = vadd.f32 %v1095_v10, %v1066_v7  ;;  %1406 = vmatpush.bf16.msra.mxu1 %v3187_v32  ;;  %v2930_v10 = vld [vmem:[%s6925_s1 + $0x20] sm:$0xf] }
  0xd7   :  { %v2931_v16 = vor.u32 %v3556_v14, %v2930_v10  ;;  %v3450_v14 = vld [vmem:[%s6925_s1 + $0x428] sm:$0xf] }
  0xd8   :  { %7091 = vst [vmem:[#allocation16_spill] sm:$0xff] %v4358_v13  ;;  %v1021_v23 = vpop.f32.mrf.mxu2 }
  0xd9   :  { %v4374_v24 = vadd.f32 %v1050_v27, %v1021_v23  ;;  %v965_v26 = vpop.f32.mrf.mxu0  ;;  %v1069_v31 = vpop.f32.mrf.mxu1  ;;  %1463 = vmatpush.bf16.msra.mxu0 %v3255_v41  ;;  %v3124_v23 = vld [vmem:[%s6925_s1 + $0x1e0] sm:$0xf0] }
  0xda   :  { %3497 = vmatmul.msk.bf16.gmra.mxu3 %vm926_vm0, %v3846_v53  ;;  %v4384_v30 = vadd.f32 %v994_v37, %v965_v26  ;;  %v3122_v37 = vld [vmem:[%s6925_s1 + $0x1a0] sm:$0xf]  ;;  %v3127_v26 = vor.u32 %v3596_v20, %v3124_v23 }
  0xdb   :  { %7092 = vst [vmem:[#allocation17_spill] sm:$0xff] %v4374_v24  ;;  %v3123_v44 = vor.u32 %v3604_v42, %v3122_v37  ;;  %v3060_v37 = vld [vmem:[%s6925_s1 + $0x160] sm:$0xf0] }
  0xdc   :  { %7093 = vst [vmem:[#allocation18_spill] sm:$0xff] %v4384_v30  ;;  %1300 = vmatmul.bf16.gmra.mxu1 %v3982_v52  ;;  %v3063_v41 = vor.u32 %v3580_v40, %v3060_v37  ;;  %v3386_v37 = vld [vmem:[%s6925_s1 + $0x3a8] sm:$0xf] }
  0xdd   :  { %v1098_v35 = vpop.f32.mrf.mxu3  ;;  %1407 = vmatpush.bf16.msra.mxu1 %v3123_v44 }
  0xde   :  { %v4386_v27 = vadd.f32 %v1098_v35, %v1069_v31 }
  0xe0   :  { %7094 = vst [vmem:[#allocation19_spill] sm:$0xff] %v4386_v27  ;;  %v1023_v45 = vpop.f32.mrf.mxu2 }
  0xe1   :  { %v4402_v47 = vadd.f32 %v4309_v38, %v1023_v45  ;;  %v1122_v49 = vpop.f32.mrf.mxu0  ;;  %v1071_v55 = vpop.f32.mrf.mxu1  ;;  %v3612_v38 = vld [vmem:[%s6925_s1 + $0x224] sm:$0xf]  ;;  %1408 = vmatpush.bf16.msra.mxu1 %v3059_v56  ;;  %v2999_v56 = vor.u32 %v3564_v50, %v2996_v51 }
  0xe2   :  { %v3191_v63 = vor.u32 %v3612_v38, %v3188_v61  ;;  %v3548_v38 = vld [vmem:[%s6925_s1 + $0x24] sm:$0xf] }
  0xe3   :  { %7095 = vst [vmem:[#allocation20_spill] sm:$0xff] %v4402_v47  ;;  %v2932_v61 = vld [vmem:[%s6925_s1 + $0x60] sm:$0xf0] }
  0xe4   :  { %1353 = vmatmul.bf16.vlgmr.msrb.gmra.mxu0 %v3912_v22 }
  0xe5   :  { %v1100_v58 = vpop.f32.mrf.mxu3  ;;  %3500 = vmatmul.msk.bf16.vlgmr.msrb.gmra.mxu2 %vm926_vm0, %v3753_v12  ;;  %1464 = vmatpush.bf16.msra.mxu0 %v3191_v63  ;;  %v2935_v63 = vor.u32 %v3548_v38, %v2932_v61  ;;  %v3322_v38 = vld [vmem:[%s6925_s1 + $0x328] sm:$0xf] }
  0xe6   :  { %v4411_v59 = vadd.f32 %v1100_v58, %v1071_v55  ;;  %1409 = vmatpush.bf16.msra.mxu1 %v2995_v3  ;;  %v3653_v61 = vld [vmem:[%s6925_s1 + $0x364] sm:$0xf0] }
  0xe8   :  { %7096 = vst [vmem:[#allocation21_spill] sm:$0xff] %v4411_v59  ;;  %v1151_v4 = vpop.f32.mrf.mxu2 }
  0xe9   :  { %v4427_v7 = vadd.f32 %v1151_v4, %v1122_v49  ;;  %v1124_v8 = vpop.f32.mrf.mxu0  ;;  %v1074_v15 = vpop.f32.mrf.mxu1  ;;  %1465 = vmatpush.bf16.msra.mxu0 %v3127_v26  ;;  %v3677_v26 = vld [vmem:[%s6925_s1 + $0x42c] sm:$0xf] }
  0xea   :  { %3498 = vmatmul.msk.bf16.gmra.mxu3 %vm926_vm0, %v3940_v33  ;;  %1410 = vmatpush.bf16.msra.mxu1 %v2931_v16 }
  0xeb   :  { %7097 = vst [vmem:[#allocation22_spill] sm:$0xff] %v4427_v7 }
  0xec   :  { %1305 = vmatmul.bf16.gmra.mxu1 %v4022_v5 }
  0xed   :  { %v1103_v17 = vpop.f32.mrf.mxu3  ;;  %1466 = vmatpush.bf16.msra.mxu0 %v3063_v41  ;;  %v3669_v41 = vld [vmem:[%s6925_s1 + $0x3e4] sm:$0xf0] }
  0xee   :  { %v4437_v18 = vadd.f32 %v1103_v17, %v1074_v15  ;;  %v3685_v15 = vld [vmem:[%s6925_s1 + $0x464] sm:$0xf0] }
  0xef   :  { %v3451_v16 = vor.u32 %v3685_v15, %v3450_v14  ;;  %v3324_v14 = vld [vmem:[%s6925_s1 + $0x368] sm:$0xf0]  ;;  %v3258_v15 = vld [vmem:[%s6925_s1 + $0x2a8] sm:$0xf] }
  0xf0   :  { %7098 = vst [vmem:[#allocation23_spill] sm:$0xff] %v4437_v18  ;;  %v1153_v28 = vpop.f32.mrf.mxu2 }
  0xf1   :  { %v4446_v29 = vadd.f32 %v1153_v28, %v1124_v8  ;;  %v1127_v31 = vpop.f32.mrf.mxu0  ;;  %v1076_v32 = vpop.f32.mrf.mxu1  ;;  %1467 = vmatpush.bf16.msra.mxu0 %v2999_v56  ;;  %1555 = vmatpush.bf16.msrb.mxu3 %v3451_v16  ;;  %v3452_v28 = vld [vmem:[%s6925_s1 + $0x468] sm:$0xf0] }
  0xf4   :  { %1358 = vmatmul.bf16.gmra.mxu0 %v3982_v52 }
  0xf5   :  { %v1105_v35 = vpop.f32.mrf.mxu3  ;;  %3501 = vmatmul.msk.bf16.gmra.mxu2 %vm926_vm0, %v3846_v53  ;;  %1468 = vmatpush.bf16.msra.mxu0 %v2935_v63  ;;  %v3323_v63 = vor.u32 %v3653_v61, %v3322_v38  ;;  %v3605_v38 = vld [vmem:[%s6925_s1 + $0x1e4] sm:$0xf0] }
  0xf6   :  { %v4449_v39 = vadd.f32 %v1105_v35, %v1076_v32  ;;  %v3455_v32 = vor.u32 %v3677_v26, %v3452_v28 }
  0xf8   :  { %7099 = vst [vmem:[#allocation24_spill] sm:$0xff] %v4449_v39  ;;  %v1156_v42 = vpop.f32.mrf.mxu2  ;;  %1613 = vmatpush.bf16.msrb.mxu2 %v3455_v32  ;;  %v3194_v32 = vld [vmem:[%s6925_s1 + $0x228] sm:$0xf] }
  0xf9   :  { %v4459_v44 = vadd.f32 %v1156_v42, %v1127_v31  ;;  %v1129_v45 = vpop.f32.mrf.mxu0  ;;  %v1079_v49 = vpop.f32.mrf.mxu1  ;;  %v3661_v42 = vld [vmem:[%s6925_s1 + $0x3ac] sm:$0xf] }
  0xfa   :  { %3499 = vmatmul.msk.bf16.gmra.mxu3 %vm926_vm0, %v3992_v57 }
  0xfb   :  { %7100 = vst [vmem:[#allocation25_spill] sm:$0xff] %v4459_v44 }
  0xfc   :  { %1310 = vmatmul.bf16.gmra.mxu1 %v4065_v25 }
  0xfd   :  { %v1108_v55 = vpop.f32.mrf.mxu3 }
  0xfe   :  { %v4469_v58 = vadd.f32 %v1108_v55, %v1079_v49  ;;  %v3388_v49 = vld [vmem:[%s6925_s1 + $0x3e8] sm:$0xf0] }
  0xff   :  { %v3391_v50 = vor.u32 %v3661_v42, %v3388_v49  ;;  %v3629_v49 = vld [vmem:[%s6925_s1 + $0x2ac] sm:$0xf] }
 0x100   :  { %7101 = vst [vmem:[#allocation26_spill] sm:$0xff] %v4469_v58  ;;  %v1158_v62 = vpop.f32.mrf.mxu2 }
 0x101   :  { %v4478_v2 = vadd.f32 %v1158_v62, %v1129_v45  ;;  %v1132_v3 = vpop.f32.mrf.mxu0  ;;  %v1081_v4 = vpop.f32.mrf.mxu1  ;;  %v3387_v45 = vor.u32 %v3669_v41, %v3386_v37  ;;  %1577 = vmatpush.bf16.msrb.mxu0 %v3391_v50  ;;  %v3260_v50 = vld [vmem:[%s6925_s1 + $0x2e8] sm:$0xf0] }
 0x103   :  { %7102 = vst [vmem:[#allocation27_spill] sm:$0xff] %v4478_v2  ;;  %1519 = vmatpush.bf16.msrb.mxu1 %v3387_v45 }
 0x104   :  { %1363 = vmatmul.bf16.gmra.mxu0 %v4022_v5 }
 0x105   :  { %v1110_v8 = vpop.f32.mrf.mxu3  ;;  %3502 = vmatmul.msk.bf16.gmra.mxu2 %vm926_vm0, %v3940_v33 }
 0x106   :  { %v4481_v10 = vadd.f32 %v1110_v8, %v1081_v4  ;;  %v3645_v8 = vld [vmem:[%s6925_s1 + $0x32c] sm:$0xf] }
 0x107   :  { %1520 = vmatpush.bf16.msrb.mxu1 %v3323_v63  ;;  %v3327_v16 = vor.u32 %v3645_v8, %v3324_v14  ;;  %v3066_v8 = vld [vmem:[%s6925_s1 + $0x128] sm:$0xf] }
 0x108   :  { %7103 = vst [vmem:[#allocation28_spill] sm:$0xff] %v4481_v10  ;;  %v1161_v17 = vpop.f32.mrf.mxu2  ;;  %v3589_v14 = vld [vmem:[%s6925_s1 + $0x164] sm:$0xf0] }
 0x109   :  { %v4491_v20 = vadd.f32 %v1161_v17, %v1132_v3  ;;  %v1134_v23 = vpop.f32.mrf.mxu0  ;;  %v1180_v31 = vpop.f32.mrf.mxu1  ;;  %v3637_v17 = vld [vmem:[%s6925_s1 + $0x2e4] sm:$0xf0]  ;;  %1578 = vmatpush.bf16.msrb.mxu0 %v3327_v16  ;;  %v3067_v16 = vor.u32 %v3589_v14, %v3066_v8  ;;  %v3132_v14 = vld [vmem:[%s6925_s1 + $0x1e8] sm:$0xf0] }
 0x10a   :  { %3504 = vmatmul.msk.bf16.vlgmr.msra.gmra.mxu3 %vm926_vm0, %v3753_v12 }
 0x10b   :  { %7104 = vst [vmem:[#allocation29_spill] sm:$0xff] %v4491_v20 }
 0x10c   :  { %1411 = vmatmul.bf16.vlgmr.msra.gmra.mxu1 %v3912_v22 }
 0x10d   :  { %v1209_v35 = vpop.f32.mrf.mxu3 }
 0x10e   :  { %v4501_v40 = vadd.f32 %v1209_v35, %v1180_v31  ;;  %v3621_v35 = vld [vmem:[%s6925_s1 + $0x264] sm:$0xf0] }
 0x10f   :  { %v3195_v41 = vor.u32 %v3621_v35, %v3194_v32  ;;  %v3002_v32 = vld [vmem:[%s6925_s1 + $0xa8] sm:$0xf] }
 0x110   :  { %7105 = vst [vmem:[#allocation30_spill] sm:$0xff] %v4501_v40  ;;  %v1163_v51 = vpop.f32.mrf.mxu2 }
 0x111   :  { %v4516_v55 = vadd.f32 %v1163_v51, %v1134_v23  ;;  %v1137_v56 = vpop.f32.mrf.mxu0  ;;  %v1182_v62 = vpop.f32.mrf.mxu1  ;;  %v3259_v23 = vor.u32 %v3637_v17, %v3258_v15  ;;  %v3130_v51 = vld [vmem:[%s6925_s1 + $0x1a8] sm:$0xf] }
 0x112   :  { %v3131_v61 = vor.u32 %v3605_v38, %v3130_v51  ;;  %v2938_v51 = vld [vmem:[%s6925_s1 + $0x28] sm:$0xf] }
 0x113   :  { %7106 = vst [vmem:[#allocation31_spill] sm:$0xff] %v4516_v55  ;;  %1521 = vmatpush.bf16.msrb.mxu1 %v3259_v23 }
 0x114   :  { %1368 = vmatmul.bf16.gmra.mxu0 %v4065_v25 }
 0x115   :  { %v1211_v3 = vpop.f32.mrf.mxu3  ;;  %3503 = vmatmul.msk.bf16.gmra.mxu2 %vm926_vm0, %v3992_v57 }
 0x116   :  { %v4525_v4 = vadd.f32 %v1211_v3, %v1182_v62 }
 0x117   :  { %1522 = vmatpush.bf16.msrb.mxu1 %v3195_v41 }
 0x118   :  { %v1166_v26 = vpop.f32.mrf.mxu2 }
 0x119   :  { %v4541_v28 = vadd.f32 %v1166_v26, %v1137_v56  ;;  %v1139_v31 = vpop.f32.mrf.mxu0  ;;  %v1185_v37 = vpop.f32.mrf.mxu1  ;;  %v3263_v56 = vor.u32 %v3629_v49, %v3260_v50  ;;  %v3613_v26 = vld [vmem:[%s6925_s1 + $0x22c] sm:$0xf] }
 0x11a   :  { %3505 = vmatmul.msk.bf16.gmra.mxu3 %vm926_vm0, %v3846_v53 }
 0x11b   :  { %7107 = vst [vmem:[#allocation32_spill] sm:$0xff] %v4541_v28  ;;  %1579 = vmatpush.bf16.msrb.mxu0 %v3263_v56  ;;  %1523 = vmatpush.bf16.msrb.mxu1 %v3131_v61  ;;  %v3557_v56 = vld [vmem:[%s6925_s1 + $0x64] sm:$0xf0] }
 0x11c   :  { %1416 = vmatmul.bf16.gmra.mxu1 %v3982_v52  ;;  %v2939_v61 = vor.u32 %v3557_v56, %v2938_v51 }
 0x11d   :  { %v1214_v42 = vpop.f32.mrf.mxu3 }
 0x11e   :  { %v4551_v45 = vadd.f32 %v1214_v42, %v1185_v37  ;;  %v3573_v37 = vld [vmem:[%s6925_s1 + $0xe4] sm:$0xf0] }
 0x11f   :  { %1524 = vmatpush.bf16.msrb.mxu1 %v3067_v16  ;;  %v3003_v41 = vor.u32 %v3573_v37, %v3002_v32  ;;  %v3581_v37 = vld [vmem:[%s6925_s1 + $0x12c] sm:$0xf] }
 0x120   :  { %7108 = vst [vmem:[#allocation33_spill] sm:$0xff] %v4551_v45  ;;  %v1168_v62 = vpop.f32.mrf.mxu2 }
 0x121   :  { %v4566_v63 = vadd.f32 %v1168_v62, %v1139_v31  ;;  %v1238_v3 = vpop.f32.mrf.mxu0  ;;  %v1187_v15 = vpop.f32.mrf.mxu1  ;;  %v3196_v31 = vld [vmem:[%s6925_s1 + $0x268] sm:$0xf0] }
 0x122   :  { %v3199_v35 = vor.u32 %v3613_v26, %v3196_v31 }
 0x123   :  { %7109 = vst [vmem:[#allocation34_spill] sm:$0xff] %v4566_v63  ;;  %1525 = vmatpush.bf16.msrb.mxu1 %v3003_v41  ;;  %v3068_v41 = vld [vmem:[%s6925_s1 + $0x168] sm:$0xf0] }
 0x124   :  { %1469 = vmatmul.bf16.vlgmr.msra.gmra.mxu0 %v3912_v22 }
 0x125   :  { %v1216_v17 = vpop.f32.mrf.mxu3  ;;  %3508 = vmatmul.msk.bf16.vlgmr.msra.gmra.mxu2 %vm926_vm0, %v3753_v12  ;;  %1580 = vmatpush.bf16.msrb.mxu0 %v3199_v35 }
 0x126   :  { %v4575_v23 = vadd.f32 %v1216_v17, %v1187_v15 }
 0x127   :  { %1526 = vmatpush.bf16.msrb.mxu1 %v2939_v61  ;;  %v3565_v61 = vld [vmem:[%s6925_s1 + $0xac] sm:$0xf] }
 0x128   :  { %7110 = vst [vmem:[#allocation35_spill] sm:$0xff] %v4575_v23  ;;  %v1267_v42 = vpop.f32.mrf.mxu2 }
 0x129   :  { %v4591_v49 = vadd.f32 %v1267_v42, %v1238_v3  ;;  %v1240_v50 = vpop.f32.mrf.mxu0  ;;  %v1190_v38 = vpop.f32.mrf.mxu1  ;;  %v3597_v3 = vld [vmem:[%s6925_s1 + $0x1ac] sm:$0xf]  ;;  %v3071_v42 = vor.u32 %v3581_v37, %v3068_v41 }
 0x12a   :  { %3506 = vmatmul.msk.bf16.gmra.mxu3 %vm926_vm0, %v3940_v33  ;;  %v3135_v15 = vor.u32 %v3597_v3, %v3132_v14 }
 0x12b   :  { %7111 = vst [vmem:[#allocation36_spill] sm:$0xff] %v4591_v49 }
 0x12c   :  { %1421 = vmatmul.bf16.gmra.mxu1 %v4022_v5  ;;  %1581 = vmatpush.bf16.msrb.mxu0 %v3135_v15 }
 0x12d   :  { %v1219_v62 = vpop.f32.mrf.mxu3 }
 0x12e   :  { %v4601_v8 = vadd.f32 %v1219_v62, %v1190_v38  ;;  %v3004_v62 = vld [vmem:[%s6925_s1 + $0xe8] sm:$0xf0] }
 0x12f   :  { %v3007_v14 = vor.u32 %v3565_v61, %v3004_v62  ;;  %v3458_v61 = vld [vmem:[%s6925_s1 + $0x430] sm:$0xf] }
 0x130   :  { %7112 = vst [vmem:[#allocation37_spill] sm:$0xff] %v4601_v8  ;;  %v1269_v16 = vpop.f32.mrf.mxu2  ;;  %1582 = vmatpush.bf16.msrb.mxu0 %v3071_v42 }
 0x131   :  { %v4610_v17 = vadd.f32 %v1269_v16, %v1240_v50  ;;  %v1243_v26 = vpop.f32.mrf.mxu0  ;;  %v1192_v31 = vpop.f32.mrf.mxu1  ;;  %v3549_v16 = vld [vmem:[%s6925_s1 + $0x2c] sm:$0xf] }
 0x134   :  { %1474 = vmatmul.bf16.gmra.mxu0 %v3982_v52 }
 0x135   :  { %v1221_v32 = vpop.f32.mrf.mxu3  ;;  %3509 = vmatmul.msk.bf16.gmra.mxu2 %vm926_vm0, %v3846_v53  ;;  %1583 = vmatpush.bf16.msrb.mxu0 %v3007_v14 }
 0x136   :  { %v4613_v35 = vadd.f32 %v1221_v32, %v1192_v31 }
 0x138   :  { %7113 = vst [vmem:[#allocation38_spill] sm:$0xff] %v4613_v35  ;;  %v1272_v50 = vpop.f32.mrf.mxu2 }
 0x139   :  { %v4623_v51 = vadd.f32 %v1272_v50, %v1243_v26  ;;  %v1245_v56 = vpop.f32.mrf.mxu0  ;;  %v1195_v38 = vpop.f32.mrf.mxu1  ;;  %v2940_v26 = vld [vmem:[%s6925_s1 + $0x68] sm:$0xf0] }
 0x13a   :  { %3507 = vmatmul.msk.bf16.gmra.mxu3 %vm926_vm0, %v3992_v57  ;;  %v2943_v32 = vor.u32 %v3549_v16, %v2940_v26  ;;  %v3678_v26 = vld [vmem:[%s6925_s1 + $0x434] sm:$0xf] }
 0x13b   :  { %7114 = vst [vmem:[#allocation39_spill] sm:$0xff] %v4623_v51 }
 0x13c   :  { %1426 = vmatmul.bf16.gmra.mxu1 %v4065_v25  ;;  %1584 = vmatpush.bf16.msrb.mxu0 %v2943_v32 }
 0x13d   :  { %v1224_v3 = vpop.f32.mrf.mxu3 }
 0x13e   :  { %v4633_v15 = vadd.f32 %v1224_v3, %v1195_v38 }
 0x140   :  { %7115 = vst [vmem:[#allocation40_spill] sm:$0xff] %v4633_v15  ;;  %v1274_v31 = vpop.f32.mrf.mxu2  ;;  %v3654_v15 = vld [vmem:[%s6925_s1 + $0x36c] sm:$0xf0] }
 0x141   :  { %v4642_v37 = vadd.f32 %v1274_v31, %v1245_v56  ;;  %v1248_v41 = vpop.f32.mrf.mxu0  ;;  %v1197_v42 = vpop.f32.mrf.mxu1  ;;  %v3686_v56 = vld [vmem:[%s6925_s1 + $0x46c] sm:$0xf0]  ;;  %v3460_v31 = vld [vmem:[%s6925_s1 + $0x470] sm:$0xf0] }
 0x142   :  { %v3459_v62 = vor.u32 %v3686_v56, %v3458_v61  ;;  %v3670_v56 = vld [vmem:[%s6925_s1 + $0x3ec] sm:$0xf0] }
 0x143   :  { %7116 = vst [vmem:[#allocation41_spill] sm:$0xff] %v4642_v37 }
 0x144   :  { %1479 = vmatmul.bf16.gmra.mxu0 %v4022_v5  ;;  %1671 = vmatpush.bf16.msra.mxu3 %v3459_v62  ;;  %v3662_v62 = vld [vmem:[%s6925_s1 + $0x3b4] sm:$0xf] }
 0x145   :  { %v1226_v50 = vpop.f32.mrf.mxu3  ;;  %3510 = vmatmul.msk.bf16.gmra.mxu2 %vm926_vm0, %v3940_v33 }
 0x146   :  { %v4645_v38 = vadd.f32 %v1226_v50, %v1197_v42  ;;  %v3463_v42 = vor.u32 %v3678_v26, %v3460_v31  ;;  %v3396_v26 = vld [vmem:[%s6925_s1 + $0x3f0] sm:$0xf0] }
 0x147   :  { %v3399_v31 = vor.u32 %v3662_v62, %v3396_v26 }
 0x148   :  { %7117 = vst [vmem:[#allocation42_spill] sm:$0xff] %v4645_v38  ;;  %v1277_v3 = vpop.f32.mrf.mxu2  ;;  %1729 = vmatpush.bf16.msra.mxu2 %v3463_v42  ;;  %v3330_v38 = vld [vmem:[%s6925_s1 + $0x330] sm:$0xf] }
 0x149   :  { %v4655_v14 = vadd.f32 %v1277_v3, %v1248_v41  ;;  %v1250_v16 = vpop.f32.mrf.mxu0  ;;  %v1296_v32 = vpop.f32.mrf.mxu1  ;;  %v3394_v41 = vld [vmem:[%s6925_s1 + $0x3b0] sm:$0xf]  ;;  %1693 = vmatpush.bf16.msra.mxu0 %v3399_v31 }
 0x14a   :  { %3512 = vmatmul.msk.bf16.vlgmr.msrb.gmra.mxu3 %vm926_vm0, %v3753_v12  ;;  %v3395_v3 = vor.u32 %v3670_v56, %v3394_v41  ;;  %v3331_v56 = vor.u32 %v3654_v15, %v3330_v38  ;;  %v3266_v15 = vld [vmem:[%s6925_s1 + $0x2b0] sm:$0xf] }
 0x14b   :  { %7118 = vst [vmem:[#allocation43_spill] sm:$0xff] %v4655_v14 }
 0x14c   :  { %1527 = vmatmul.bf16.vlgmr.msrb.gmra.mxu1 %v3912_v22 }
 0x14d   :  { %v1325_v50 = vpop.f32.mrf.mxu3  ;;  %1635 = vmatpush.bf16.msra.mxu1 %v3395_v3  ;;  %v3332_v3 = vld [vmem:[%s6925_s1 + $0x370] sm:$0xf0] }
 0x14e   :  { %v4665_v61 = vadd.f32 %v1325_v50, %v1296_v32 }
 0x150   :  { %7119 = vst [vmem:[#allocation44_spill] sm:$0xff] %v4665_v61  ;;  %v1279_v32 = vpop.f32.mrf.mxu2 }
 0x151   :  { %v4680_v42 = vadd.f32 %v1279_v32, %v1250_v16  ;;  %v1253_v50 = vpop.f32.mrf.mxu0  ;;  %v1298_v41 = vpop.f32.mrf.mxu1  ;;  %1636 = vmatpush.bf16.msra.mxu1 %v3331_v56  ;;  %v3646_v16 = vld [vmem:[%s6925_s1 + $0x334] sm:$0xf]  ;;  %v3202_v56 = vld [vmem:[%s6925_s1 + $0x230] sm:$0xf] }
 0x152   :  { %v3335_v38 = vor.u32 %v3646_v16, %v3332_v3  ;;  %v3622_v16 = vld [vmem:[%s6925_s1 + $0x26c] sm:$0xf0] }
 0x153   :  { %7120 = vst [vmem:[#allocation45_spill] sm:$0xff] %v4680_v42  ;;  %v3203_v42 = vor.u32 %v3622_v16, %v3202_v56  ;;  %v3606_v56 = vld [vmem:[%s6925_s1 + $0x1ec] sm:$0xf0] }
 0x154   :  { %1484 = vmatmul.bf16.gmra.mxu0 %v4065_v25 }
 0x155   :  { %v1327_v14 = vpop.f32.mrf.mxu3  ;;  %3511 = vmatmul.msk.bf16.gmra.mxu2 %vm926_vm0, %v3992_v57  ;;  %1694 = vmatpush.bf16.msra.mxu0 %v3335_v38  ;;  %v3268_v38 = vld [vmem:[%s6925_s1 + $0x2f0] sm:$0xf0] }
 0x156   :  { %v4689_v62 = vadd.f32 %v1327_v14, %v1298_v41  ;;  %v3638_v14 = vld [vmem:[%s6925_s1 + $0x2ec] sm:$0xf0] }
 0x157   :  { %v3267_v26 = vor.u32 %v3638_v14, %v3266_v15 }
 0x158   :  { %7121 = vst [vmem:[#allocation46_spill] sm:$0xff] %v4689_v62  ;;  %v1282_v31 = vpop.f32.mrf.mxu2  ;;  %v3590_v62 = vld [vmem:[%s6925_s1 + $0x16c] sm:$0xf0] }
 0x159   :  { %v4705_v32 = vadd.f32 %v1282_v31, %v1253_v50  ;;  %v1255_v41 = vpop.f32.mrf.mxu0  ;;  %1637 = vmatpush.bf16.msra.mxu1 %v3267_v26  ;;  %v1301_v3 = vpop.f32.mrf.mxu1  ;;  %v3630_v50 = vld [vmem:[%s6925_s1 + $0x2b4] sm:$0xf]  ;;  %v3138_v26 = vld [vmem:[%s6925_s1 + $0x1b0] sm:$0xf] }
 0x15a   :  { %3513 = vmatmul.msk.bf16.gmra.mxu3 %vm926_vm0, %v3846_v53  ;;  %v3271_v31 = vor.u32 %v3630_v50, %v3268_v38  ;;  %v3139_v16 = vor.u32 %v3606_v56, %v3138_v26  ;;  %v3574_v56 = vld [vmem:[%s6925_s1 + $0xec] sm:$0xf0] }
 0x15b   :  { %7122 = vst [vmem:[#allocation47_spill] sm:$0xff] %v4705_v32 }
 0x15c   :  { %1532 = vmatmul.bf16.gmra.mxu1 %v3982_v52  ;;  %1695 = vmatpush.bf16.msra.mxu0 %v3271_v31  ;;  %v3204_v31 = vld [vmem:[%s6925_s1 + $0x270] sm:$0xf0] }
 0x15d   :  { %v1330_v15 = vpop.f32.mrf.mxu3  ;;  %1638 = vmatpush.bf16.msra.mxu1 %v3203_v42 }
 0x15e   :  { %v4715_v14 = vadd.f32 %v1330_v15, %v1301_v3 }
 0x160   :  { %7123 = vst [vmem:[#allocation48_spill] sm:$0xff] %v4715_v14  ;;  %v1284_v3 = vpop.f32.mrf.mxu2  ;;  %v3074_v14 = vld [vmem:[%s6925_s1 + $0x130] sm:$0xf] }
 0x161   :  { %v4730_v15 = vadd.f32 %v1284_v3, %v1255_v41  ;;  %v1354_v32 = vpop.f32.mrf.mxu0  ;;  %v1303_v50 = vpop.f32.mrf.mxu1  ;;  %1639 = vmatpush.bf16.msra.mxu1 %v3139_v16  ;;  %v3075_v42 = vor.u32 %v3590_v62, %v3074_v14  ;;  %v3614_v41 = vld [vmem:[%s6925_s1 + $0x234] sm:$0xf]  ;;  %v3010_v62 = vld [vmem:[%s6925_s1 + $0xb0] sm:$0xf] }
 0x162   :  { %v3207_v14 = vor.u32 %v3614_v41, %v3204_v31  ;;  %v3011_v16 = vor.u32 %v3574_v56, %v3010_v62 }
 0x163   :  { %7124 = vst [vmem:[#allocation49_spill] sm:$0xff] %v4730_v15  ;;  %v2946_v15 = vld [vmem:[%s6925_s1 + $0x30] sm:$0xf] }
 0x164   :  { %1585 = vmatmul.bf16.vlgmr.msrb.gmra.mxu0 %v3912_v22 }
 0x165   :  { %v1332_v38 = vpop.f32.mrf.mxu3  ;;  %3516 = vmatmul.msk.bf16.vlgmr.msrb.gmra.mxu2 %vm926_vm0, %v3753_v12  ;;  %1640 = vmatpush.bf16.msra.mxu1 %v3075_v42  ;;  %v3558_v42 = vld [vmem:[%s6925_s1 + $0x6c] sm:$0xf0] }
 0x166   :  { %v4739_v26 = vadd.f32 %v1332_v38, %v1303_v50  ;;  %1696 = vmatpush.bf16.msra.mxu0 %v3207_v14  ;;  %v2947_v31 = vor.u32 %v3558_v42, %v2946_v15  ;;  %v3140_v14 = vld [vmem:[%s6925_s1 + $0x1f0] sm:$0xf0] }
 0x168   :  { %7125 = vst [vmem:[#allocation50_spill] sm:$0xff] %v4739_v26  ;;  %v1383_v3 = vpop.f32.mrf.mxu2 }
 0x169   :  { %v4755_v50 = vadd.f32 %v1383_v3, %v1354_v32  ;;  %v1356_v38 = vpop.f32.mrf.mxu0  ;;  %v1306_v41 = vpop.f32.mrf.mxu1  ;;  %1641 = vmatpush.bf16.msra.mxu1 %v3011_v16  ;;  %v3598_v32 = vld [vmem:[%s6925_s1 + $0x1b4] sm:$0xf] }
 0x16a   :  { %3514 = vmatmul.msk.bf16.gmra.mxu3 %vm926_vm0, %v3940_v33  ;;  %v3143_v3 = vor.u32 %v3598_v32, %v3140_v14 }
 0x16b   :  { %7126 = vst [vmem:[#allocation51_spill] sm:$0xff] %v4755_v50 }
 0x16c   :  { %1537 = vmatmul.bf16.gmra.mxu1 %v4022_v5  ;;  %1697 = vmatpush.bf16.msra.mxu0 %v3143_v3 }
 0x16d   :  { %v1335_v62 = vpop.f32.mrf.mxu3  ;;  %1642 = vmatpush.bf16.msra.mxu1 %v2947_v31  ;;  %v3076_v31 = vld [vmem:[%s6925_s1 + $0x170] sm:$0xf0] }
 0x16e   :  { %v4765_v56 = vadd.f32 %v1335_v62, %v1306_v41  ;;  %v3582_v62 = vld [vmem:[%s6925_s1 + $0x134] sm:$0xf] }
 0x170   :  { %7127 = vst [vmem:[#allocation52_spill] sm:$0xff] %v4765_v56  ;;  %v1385_v26 = vpop.f32.mrf.mxu2 }
 0x171   :  { %v4774_v50 = vadd.f32 %v1385_v26, %v1356_v38  ;;  %v1359_v15 = vpop.f32.mrf.mxu0  ;;  %v1308_v16 = vpop.f32.mrf.mxu1  ;;  %v3079_v26 = vor.u32 %v3582_v62, %v3076_v31  ;;  %v2948_v31 = vld [vmem:[%s6925_s1 + $0x70] sm:$0xf0] }
 0x173   :  { %7128 = vst [vmem:[#allocation53_spill] sm:$0xff] %v4774_v50  ;;  %1698 = vmatpush.bf16.msra.mxu0 %v3079_v26 }
 0x174   :  { %1590 = vmatmul.bf16.gmra.mxu0 %v3982_v52 }
 0x175   :  { %v1337_v42 = vpop.f32.mrf.mxu3  ;;  %3517 = vmatmul.msk.bf16.gmra.mxu2 %vm926_vm0, %v3846_v53 }
 0x176   :  { %v4777_v41 = vadd.f32 %v1337_v42, %v1308_v16  ;;  %v3566_v16 = vld [vmem:[%s6925_s1 + $0xb4] sm:$0xf] }
 0x177   :  { %v3012_v42 = vld [vmem:[%s6925_s1 + $0xf0] sm:$0xf0] }
 0x178   :  { %7129 = vst [vmem:[#allocation54_spill] sm:$0xff] %v4777_v41  ;;  %v1388_v38 = vpop.f32.mrf.mxu2  ;;  %v3015_v50 = vor.u32 %v3566_v16, %v3012_v42 }
 0x179   :  { %v4787_v32 = vadd.f32 %v1388_v38, %v1359_v15  ;;  %v1361_v14 = vpop.f32.mrf.mxu0  ;;  %v1311_v3 = vpop.f32.mrf.mxu1  ;;  %v3550_v15 = vld [vmem:[%s6925_s1 + $0x34] sm:$0xf] }
 0x17a   :  { %3515 = vmatmul.msk.bf16.gmra.mxu3 %vm926_vm0, %v3992_v57  ;;  %1699 = vmatpush.bf16.msra.mxu0 %v3015_v50  ;;  %v2951_v38 = vor.u32 %v3550_v15, %v2948_v31  ;;  %v3466_v50 = vld [vmem:[%s6925_s1 + $0x438] sm:$0xf]  ;;  %v3679_v31 = vld [vmem:[%s6925_s1 + $0x43c] sm:$0xf] }
 0x17b   :  { %7130 = vst [vmem:[#allocation55_spill] sm:$0xff] %v4787_v32 }
 0x17c   :  { %1542 = vmatmul.bf16.gmra.mxu1 %v4065_v25 }
 0x17d   :  { %v1340_v41 = vpop.f32.mrf.mxu3 }
 0x17e   :  { %v4797_v62 = vadd.f32 %v1340_v41, %v1311_v3  ;;  %1700 = vmatpush.bf16.msra.mxu0 %v2951_v38 }
 0x180   :  { %7131 = vst [vmem:[#allocation56_spill] sm:$0xff] %v4797_v62  ;;  %v1390_v26 = vpop.f32.mrf.mxu2  ;;  %v3338_v62 = vld [vmem:[%s6925_s1 + $0x338] sm:$0xf] }
 0x181   :  { %v4806_v32 = vadd.f32 %v1390_v26, %v1361_v14  ;;  %v1364_v56 = vpop.f32.mrf.mxu0  ;;  %v1313_v61 = vpop.f32.mrf.mxu1  ;;  %v3687_v14 = vld [vmem:[%s6925_s1 + $0x474] sm:$0xf0]  ;;  %v3468_v26 = vld [vmem:[%s6925_s1 + $0x478] sm:$0xf0] }
 0x182   :  { %v3467_v16 = vor.u32 %v3687_v14, %v3466_v50  ;;  %v3671_v14 = vld [vmem:[%s6925_s1 + $0x3f4] sm:$0xf0] }
 0x183   :  { %7132 = vst [vmem:[#allocation57_spill] sm:$0xff] %v4806_v32 }
 0x184   :  { %1595 = vmatmul.bf16.gmra.mxu0 %v4022_v5  ;;  %1787 = vmatpush.bf16.msrb.mxu3 %v3467_v16  ;;  %v3663_v16 = vld [vmem:[%s6925_s1 + $0x3bc] sm:$0xf] }
 0x185   :  { %v1342_v41 = vpop.f32.mrf.mxu3  ;;  %3518 = vmatmul.msk.bf16.gmra.mxu2 %vm926_vm0, %v3940_v33 }
 0x186   :  { %v4809_v3 = vadd.f32 %v1342_v41, %v1313_v61  ;;  %v3471_v41 = vor.u32 %v3679_v31, %v3468_v26 }
 0x188   :  { %7133 = vst [vmem:[#allocation58_spill] sm:$0xff] %v4809_v3  ;;  %v1393_v42 = vpop.f32.mrf.mxu2  ;;  %1845 = vmatpush.bf16.msrb.mxu2 %v3471_v41 }
 0x189   :  { %v4819_v15 = vadd.f32 %v1393_v42, %v1364_v56  ;;  %v1366_v61 = vpop.f32.mrf.mxu0  ;;  %v1412_v38 = vpop.f32.mrf.mxu1  ;;  %v3402_v56 = vld [vmem:[%s6925_s1 + $0x3b8] sm:$0xf] }
 0x18a   :  { %3520 = vmatmul.msk.bf16.vlgmr.msra.gmra.mxu3 %vm926_vm0, %v3753_v12  ;;  %v3403_v42 = vor.u32 %v3671_v14, %v3402_v56 }
 0x18b   :  { %7134 = vst [vmem:[#allocation59_spill] sm:$0xff] %v4819_v15  ;;  %v3655_v15 = vld [vmem:[%s6925_s1 + $0x374] sm:$0xf0] }
 0x18c   :  { %1643 = vmatmul.bf16.vlgmr.msra.gmra.mxu1 %v3912_v22  ;;  %v3339_v14 = vor.u32 %v3655_v15, %v3338_v62  ;;  %v3274_v62 = vld [vmem:[%s6925_s1 + $0x2b8] sm:$0xf] }
 0x18d   :  { %v1441_v3 = vpop.f32.mrf.mxu3  ;;  %1751 = vmatpush.bf16.msrb.mxu1 %v3403_v42  ;;  %v3340_v42 = vld [vmem:[%s6925_s1 + $0x378] sm:$0xf0] }
 0x18e   :  { %v4829_v50 = vadd.f32 %v1441_v3, %v1412_v38  ;;  %v3404_v3 = vld [vmem:[%s6925_s1 + $0x3f8] sm:$0xf0] }
 0x18f   :  { %v3407_v31 = vor.u32 %v3663_v16, %v3404_v3 }
 0x190   :  { %7135 = vst [vmem:[#allocation60_spill] sm:$0xff] %v4829_v50  ;;  %v1395_v26 = vpop.f32.mrf.mxu2 }
 0x191   :  { %v4844_v38 = vadd.f32 %v1395_v26, %v1366_v61  ;;  %v1369_v41 = vpop.f32.mrf.mxu0  ;;  %1809 = vmatpush.bf16.msrb.mxu0 %v3407_v31  ;;  %v1414_v56 = vpop.f32.mrf.mxu1  ;;  %1752 = vmatpush.bf16.msrb.mxu1 %v3339_v14  ;;  %v3647_v61 = vld [vmem:[%s6925_s1 + $0x33c] sm:$0xf]  ;;  %v3210_v14 = vld [vmem:[%s6925_s1 + $0x238] sm:$0xf] }
 0x192   :  { %v3343_v15 = vor.u32 %v3647_v61, %v3340_v42  ;;  %v3623_v61 = vld [vmem:[%s6925_s1 + $0x274] sm:$0xf0] }
 0x193   :  { %7136 = vst [vmem:[#allocation61_spill] sm:$0xff] %v4844_v38  ;;  %v3211_v38 = vor.u32 %v3623_v61, %v3210_v14  ;;  %v3607_v14 = vld [vmem:[%s6925_s1 + $0x1f4] sm:$0xf0] }
 0x194   :  { %1600 = vmatmul.bf16.gmra.mxu0 %v4065_v25 }
 0x195   :  { %v1443_v32 = vpop.f32.mrf.mxu3  ;;  %3519 = vmatmul.msk.bf16.gmra.mxu2 %vm926_vm0, %v3992_v57  ;;  %1810 = vmatpush.bf16.msrb.mxu0 %v3343_v15  ;;  %v3276_v15 = vld [vmem:[%s6925_s1 + $0x2f8] sm:$0xf0] }
 0x196   :  { %v4853_v16 = vadd.f32 %v1443_v32, %v1414_v56  ;;  %v3639_v32 = vld [vmem:[%s6925_s1 + $0x2f4] sm:$0xf0] }
 0x197   :  { %v3275_v3 = vor.u32 %v3639_v32, %v3274_v62 }
 0x198   :  { %7137 = vst [vmem:[#allocation62_spill] sm:$0xff] %v4853_v16  ;;  %v1398_v31 = vpop.f32.mrf.mxu2  ;;  %v3591_v16 = vld [vmem:[%s6925_s1 + $0x174] sm:$0xf0] }
 0x199   :  { %v4869_v26 = vadd.f32 %v1398_v31, %v1369_v41  ;;  %v1371_v56 = vpop.f32.mrf.mxu0  ;;  %1753 = vmatpush.bf16.msrb.mxu1 %v3275_v3  ;;  %v1417_v42 = vpop.f32.mrf.mxu1  ;;  %v3631_v41 = vld [vmem:[%s6925_s1 + $0x2bc] sm:$0xf]  ;;  %v3146_v3 = vld [vmem:[%s6925_s1 + $0x1b8] sm:$0xf] }
 0x19a   :  { %3521 = vmatmul.msk.bf16.gmra.mxu3 %vm926_vm0, %v3846_v53  ;;  %v3279_v31 = vor.u32 %v3631_v41, %v3276_v15  ;;  %v3147_v61 = vor.u32 %v3607_v14, %v3146_v3  ;;  %v3575_v14 = vld [vmem:[%s6925_s1 + $0xf4] sm:$0xf0] }
 0x19b   :  { %7138 = vst [vmem:[#allocation63_spill] sm:$0xff] %v4869_v26 }
 0x19c   :  { %1648 = vmatmul.bf16.gmra.mxu1 %v3982_v52  ;;  %1811 = vmatpush.bf16.msrb.mxu0 %v3279_v31  ;;  %v3212_v31 = vld [vmem:[%s6925_s1 + $0x278] sm:$0xf0] }
 0x19d   :  { %v1446_v62 = vpop.f32.mrf.mxu3  ;;  %1754 = vmatpush.bf16.msrb.mxu1 %v3211_v38 }
 0x19e   :  { %v4879_v32 = vadd.f32 %v1446_v62, %v1417_v42 }
 0x1a0   :  { %7139 = vst [vmem:[#allocation64_spill] sm:$0xff] %v4879_v32  ;;  %v1400_v42 = vpop.f32.mrf.mxu2  ;;  %v3082_v32 = vld [vmem:[%s6925_s1 + $0x138] sm:$0xf] }
 0x1a1   :  { %v4894_v62 = vadd.f32 %v1400_v42, %v1371_v56  ;;  %v1470_v26 = vpop.f32.mrf.mxu0  ;;  %v1419_v41 = vpop.f32.mrf.mxu1  ;;  %1755 = vmatpush.bf16.msrb.mxu1 %v3147_v61  ;;  %v3083_v38 = vor.u32 %v3591_v16, %v3082_v32  ;;  %v3615_v56 = vld [vmem:[%s6925_s1 + $0x23c] sm:$0xf]  ;;  %v3018_v16 = vld [vmem:[%s6925_s1 + $0xb8] sm:$0xf] }
 0x1a2   :  { %v3215_v32 = vor.u32 %v3615_v56, %v3212_v31  ;;  %v3019_v61 = vor.u32 %v3575_v14, %v3018_v16 }
 0x1a3   :  { %7140 = vst [vmem:[#allocation65_spill] sm:$0xff] %v4894_v62  ;;  %v2954_v62 = vld [vmem:[%s6925_s1 + $0x38] sm:$0xf] }
 0x1a4   :  { %1701 = vmatmul.bf16.vlgmr.msra.gmra.mxu0 %v3912_v22 }
 0x1a5   :  { %v1448_v15 = vpop.f32.mrf.mxu3  ;;  %3524 = vmatmul.msk.bf16.vlgmr.msra.gmra.mxu2 %vm926_vm0, %v3753_v12  ;;  %1756 = vmatpush.bf16.msrb.mxu1 %v3083_v38  ;;  %v3559_v38 = vld [vmem:[%s6925_s1 + $0x74] sm:$0xf0] }
 0x1a6   :  { %v4903_v3 = vadd.f32 %v1448_v15, %v1419_v41  ;;  %1812 = vmatpush.bf16.msrb.mxu0 %v3215_v32  ;;  %v2955_v31 = vor.u32 %v3559_v38, %v2954_v62  ;;  %v3148_v32 = vld [vmem:[%s6925_s1 + $0x1f8] sm:$0xf0] }
 0x1a8   :  { %7141 = vst [vmem:[#allocation66_spill] sm:$0xff] %v4903_v3  ;;  %v1499_v42 = vpop.f32.mrf.mxu2 }
 0x1a9   :  { %v4919_v41 = vadd.f32 %v1499_v42, %v1470_v26  ;;  %v1472_v15 = vpop.f32.mrf.mxu0  ;;  %v1422_v56 = vpop.f32.mrf.mxu1  ;;  %1757 = vmatpush.bf16.msrb.mxu1 %v3019_v61  ;;  %v3599_v26 = vld [vmem:[%s6925_s1 + $0x1bc] sm:$0xf] }
 0x1aa   :  { %3522 = vmatmul.msk.bf16.gmra.mxu3 %vm926_vm0, %v3940_v33  ;;  %v3151_v42 = vor.u32 %v3599_v26, %v3148_v32 }
 0x1ab   :  { %7142 = vst [vmem:[#allocation67_spill] sm:$0xff] %v4919_v41 }
 0x1ac   :  { %1653 = vmatmul.bf16.gmra.mxu1 %v4022_v5  ;;  %1813 = vmatpush.bf16.msrb.mxu0 %v3151_v42 }
 0x1ad   :  { %v1451_v16 = vpop.f32.mrf.mxu3  ;;  %1758 = vmatpush.bf16.msrb.mxu1 %v2955_v31  ;;  %v3084_v31 = vld [vmem:[%s6925_s1 + $0x178] sm:$0xf0] }
 0x1ae   :  { %v4929_v14 = vadd.f32 %v1451_v16, %v1422_v56  ;;  %v3583_v16 = vld [vmem:[%s6925_s1 + $0x13c] sm:$0xf] }
 0x1b0   :  { %7143 = vst [vmem:[#allocation68_spill] sm:$0xff] %v4929_v14  ;;  %v1501_v3 = vpop.f32.mrf.mxu2 }
 0x1b1   :  { %v4938_v41 = vadd.f32 %v1501_v3, %v1472_v15  ;;  %v1475_v62 = vpop.f32.mrf.mxu0  ;;  %v1424_v61 = vpop.f32.mrf.mxu1  ;;  %v3087_v3 = vor.u32 %v3583_v16, %v3084_v31  ;;  %v2956_v31 = vld [vmem:[%s6925_s1 + $0x78] sm:$0xf0] }
 0x1b3   :  { %7144 = vst [vmem:[#allocation69_spill] sm:$0xff] %v4938_v41  ;;  %1814 = vmatpush.bf16.msrb.mxu0 %v3087_v3 }
 0x1b4   :  { %1706 = vmatmul.bf16.gmra.mxu0 %v3982_v52 }
 0x1b5   :  { %v1453_v38 = vpop.f32.mrf.mxu3  ;;  %3525 = vmatmul.msk.bf16.gmra.mxu2 %vm926_vm0, %v3846_v53 }
 0x1b6   :  { %v4941_v56 = vadd.f32 %v1453_v38, %v1424_v61  ;;  %v3567_v61 = vld [vmem:[%s6925_s1 + $0xbc] sm:$0xf] }
 0x1b7   :  { %v3020_v38 = vld [vmem:[%s6925_s1 + $0xf8] sm:$0xf0] }
 0x1b8   :  { %7145 = vst [vmem:[#allocation70_spill] sm:$0xff] %v4941_v56  ;;  %v1504_v15 = vpop.f32.mrf.mxu2  ;;  %v3023_v14 = vor.u32 %v3567_v61, %v3020_v38 }
 0x1b9   :  { %v4951_v26 = vadd.f32 %v1504_v15, %v1475_v62  ;;  %v1477_v32 = vpop.f32.mrf.mxu0  ;;  %v1427_v42 = vpop.f32.mrf.mxu1  ;;  %v3551_v62 = vld [vmem:[%s6925_s1 + $0x3c] sm:$0xf] }
 0x1ba   :  { %3523 = vmatmul.msk.bf16.gmra.mxu3 %vm926_vm0, %v3992_v57  ;;  %1815 = vmatpush.bf16.msrb.mxu0 %v3023_v14  ;;  %v2959_v15 = vor.u32 %v3551_v62, %v2956_v31 }
 0x1bb   :  { %7146 = vst [vmem:[#allocation71_spill] sm:$0xff] %v4951_v26 }
 0x1bc   :  { %1658 = vmatmul.bf16.gmra.mxu1 %v4065_v25 }
 0x1bd   :  { %v1456_v56 = vpop.f32.mrf.mxu3 }
 0x1be   :  { %v4961_v16 = vadd.f32 %v1456_v56, %v1427_v42  ;;  %1816 = vmatpush.bf16.msrb.mxu0 %v2959_v15 }
 0x1c0   :  { %7147 = vst [vmem:[#allocation72_spill] sm:$0xff] %v4961_v16  ;;  %v1506_v3 = vpop.f32.mrf.mxu2 }
 0x1c1   :  { %v4970_v26 = vadd.f32 %v1506_v3, %v1477_v32  ;;  %v1480_v41 = vpop.f32.mrf.mxu0  ;;  %v1429_v50 = vpop.f32.mrf.mxu1 }
 0x1c3   :  { %7148 = vst [vmem:[#allocation73_spill] sm:$0xff] %v4970_v26 }
 0x1c4   :  { %1711 = vmatmul.bf16.gmra.mxu0 %v4022_v5 }
 0x1c5   :  { %v1458_v56 = vpop.f32.mrf.mxu3  ;;  %3526 = vmatmul.msk.bf16.gmra.mxu2 %vm926_vm0, %v3940_v33 }
 0x1c6   :  { %v4973_v42 = vadd.f32 %v1458_v56, %v1429_v50 }
 0x1c8   :  { %7149 = vst [vmem:[#allocation74_spill] sm:$0xff] %v4973_v42  ;;  %v1509_v14 = vpop.f32.mrf.mxu2 }
 0x1c9   :  { %v4977_v61 = vadd.f32 %v1509_v14, %v1480_v41  ;;  %v1482_v38 = vpop.f32.mrf.mxu0  ;;  %v1528_v32 = vpop.f32.mrf.mxu1 }
 0x1ca   :  { %3528 = vmatmul.msk.bf16.vlgmr.msrb.gmra.mxu3 %vm926_vm0, %v3753_v12 }
 0x1cb   :  { %7150 = vst [vmem:[#allocation75_spill] sm:$0xff] %v4977_v61 }
 0x1cc   :  { %1759 = vmatmul.bf16.vlgmr.msrb.gmra.mxu1 %v3912_v22 }
 0x1cd   :  { %v1557_v62 = vpop.f32.mrf.mxu3 }
 0x1ce   :  { %v4981_v31 = vadd.f32 %v1557_v62, %v1528_v32 }
 0x1d0   :  { %7151 = vst [vmem:[#allocation76_spill] sm:$0xff] %v4981_v31  ;;  %v1511_v3 = vpop.f32.mrf.mxu2 }
 0x1d1   :  { %v4984_v15 = vadd.f32 %v1511_v3, %v1482_v38  ;;  %v1485_v50 = vpop.f32.mrf.mxu0  ;;  %v1530_v56 = vpop.f32.mrf.mxu1 }
 0x1d3   :  { %7152 = vst [vmem:[#allocation77_spill] sm:$0xff] %v4984_v15 }
 0x1d4   :  { %1716 = vmatmul.bf16.gmra.mxu0 %v4065_v25 }
 0x1d5   :  { %v1559_v42 = vpop.f32.mrf.mxu3  ;;  %3527 = vmatmul.msk.bf16.gmra.mxu2 %vm926_vm0, %v3992_v57 }
 0x1d6   :  { %v4987_v41 = vadd.f32 %v1559_v42, %v1530_v56 }
 0x1d8   :  { %v1514_v14 = vpop.f32.mrf.mxu2 }
 0x1d9   :  { %v4991_v16 = vadd.f32 %v1514_v14, %v1485_v50  ;;  %v1487_v32 = vpop.f32.mrf.mxu0  ;;  %v1533_v62 = vpop.f32.mrf.mxu1 }
 0x1da   :  { %3529 = vmatmul.msk.bf16.gmra.mxu3 %vm926_vm0, %v3846_v53 }
 0x1db   :  { %7153 = vst [vmem:[#allocation78_spill] sm:$0xff] %v4991_v16 }
 0x1dc   :  { %1764 = vmatmul.bf16.gmra.mxu1 %v3982_v52 }
 0x1dd   :  { %v1562_v38 = vpop.f32.mrf.mxu3 }
 0x1de   :  { %v4995_v3 = vadd.f32 %v1562_v38, %v1533_v62 }
 0x1e0   :  { %7154 = vst [vmem:[#allocation79_spill] sm:$0xff] %v4995_v3  ;;  %v1516_v15 = vpop.f32.mrf.mxu2 }
 0x1e1   :  { %v4998_v61 = vadd.f32 %v1516_v15, %v1487_v32  ;;  %v1586_v42 = vpop.f32.mrf.mxu0  ;;  %v1535_v56 = vpop.f32.mrf.mxu1 }
 0x1e3   :  { %7155 = vst [vmem:[#allocation80_spill] sm:$0xff] %v4998_v61 }
 0x1e4   :  { %1817 = vmatmul.bf16.vlgmr.msrb.gmra.mxu0 %v3912_v22 }
 0x1e5   :  { %v1564_v26 = vpop.f32.mrf.mxu3  ;;  %3532 = vmatmul.msk.bf16.vlgmr.msrb.gmra.mxu2 %vm926_vm0, %v3753_v12 }
 0x1e6   :  { %v5001_v50 = vadd.f32 %v1564_v26, %v1535_v56 }
 0x1e8   :  { %7156 = vst [vmem:[#allocation81_spill] sm:$0xff] %v5001_v50  ;;  %v1615_v14 = vpop.f32.mrf.mxu2 }
 0x1e9   :  { %v5005_v16 = vadd.f32 %v1615_v14, %v1586_v42  ;;  %v1588_v62 = vpop.f32.mrf.mxu0  ;;  %v1538_v38 = vpop.f32.mrf.mxu1 }
 0x1ea   :  { %3530 = vmatmul.msk.bf16.gmra.mxu3 %vm926_vm0, %v3940_v33 }
 0x1eb   :  { %7157 = vst [vmem:[#allocation82_spill] sm:$0xff] %v5005_v16 }
 0x1ec   :  { %1769 = vmatmul.bf16.gmra.mxu1 %v4022_v5 }
 0x1ed   :  { %v1567_v15 = vpop.f32.mrf.mxu3 }
 0x1ee   :  { %v5009_v32 = vadd.f32 %v1567_v15, %v1538_v38 }
 0x1f0   :  { %7158 = vst [vmem:[#allocation83_spill] sm:$0xff] %v5009_v32  ;;  %v1617_v61 = vpop.f32.mrf.mxu2 }
 0x1f1   :  { %v5012_v22 = vadd.f32 %v1617_v61, %v1588_v62  ;;  %v1591_v26 = vpop.f32.mrf.mxu0  ;;  %v1540_v56 = vpop.f32.mrf.mxu1 }
 0x1f3   :  { %7159 = vst [vmem:[#allocation84_spill] sm:$0xff] %v5012_v22  ;;  %v1884_v22 = vadd.f32 %v4273_v9, %v4263_v0 }
 0x1f4   :  { %1822 = vmatmul.bf16.gmra.mxu0 %v3982_v52 }
 0x1f5   :  { %v1569_v50 = vpop.f32.mrf.mxu3  ;;  %3533 = vmatmul.msk.bf16.gmra.mxu2 %vm926_vm0, %v3846_v53 }
 0x1f6   :  { %v5015_v12 = vadd.f32 %v1569_v50, %v1540_v56 }
 0x1f8   :  { %7160 = vst [vmem:[#allocation85_spill] sm:$0xff] %v5015_v12  ;;  %v1620_v42 = vpop.f32.mrf.mxu2 }
 0x1f9   :  { %v5019_v14 = vadd.f32 %v1620_v42, %v1591_v26  ;;  %v1593_v38 = vpop.f32.mrf.mxu0  ;;  %v1543_v15 = vpop.f32.mrf.mxu1 }
 0x1fa   :  { %3531 = vmatmul.msk.bf16.gmra.mxu3 %vm926_vm0, %v3992_v57 }
 0x1fb   :  { %7161 = vst [vmem:[#allocation86_spill] sm:$0xff] %v5019_v14 }
 0x1fc   :  { %1774 = vmatmul.bf16.gmra.mxu1 %v4065_v25 }
 0x1fd   :  { %v1572_v61 = vpop.f32.mrf.mxu3 }
 0x1fe   :  { %v5023_v62 = vadd.f32 %v1572_v61, %v1543_v15 }
 0x200   :  { %7162 = vst [vmem:[#allocation87_spill] sm:$0xff] %v5023_v62  ;;  %v1622_v32 = vpop.f32.mrf.mxu2 }
 0x201   :  { %v5026_v52 = vadd.f32 %v1622_v32, %v1593_v38  ;;  %v1596_v50 = vpop.f32.mrf.mxu0  ;;  %v1545_v56 = vpop.f32.mrf.mxu1 }
 0x203   :  { %7163 = vst [vmem:[#allocation88_spill] sm:$0xff] %v5026_v52 }
 0x204   :  { %1827 = vmatmul.bf16.gmra.mxu0 %v4022_v5 }
 0x205   :  { %v1574_v12 = vpop.f32.mrf.mxu3  ;;  %3534 = vmatmul.msk.bf16.gmra.mxu2 %vm926_vm0, %v3940_v33 }
 0x206   :  { %v5029_v53 = vadd.f32 %v1574_v12, %v1545_v56 }
 0x208   :  { %7164 = vst [vmem:[#allocation89_spill] sm:$0xff] %v5029_v53  ;;  %v1625_v26 = vpop.f32.mrf.mxu2 }
 0x209   :  { %v5033_v42 = vadd.f32 %v1625_v26, %v1596_v50  ;;  %v1598_v15 = vpop.f32.mrf.mxu0  ;;  %v5035_v61 = vpop.f32.mrf.mxu1 }
 0x20b   :  { %7165 = vst [vmem:[#allocation90_spill] sm:$0xff] %v5033_v42 }
 0x20d   :  { %v5037_v62 = vpop.f32.mrf.mxu3 }
 0x210   :  { %v1627_v32 = vpop.f32.mrf.mxu2 }
 0x211   :  { %v5039_v38 = vadd.f32 %v1627_v32, %v1598_v15  ;;  %v1601_v52 = vpop.f32.mrf.mxu0  ;;  %v5041_v14 = vpop.f32.mrf.mxu1 }
 0x212   :  { %7167 = vst [vmem:[#allocation92_spill] sm:$0xff] %v5041_v14  ;;  %v2051_v14 = vmul.f32 %v4290_v21, %v4290_v21 }
 0x213   :  { %7166 = vst [vmem:[#allocation91_spill] sm:$0xff] %v5039_v38 }
 0x214   :  { %1832 = vmatmul.bf16.gmra.mxu0 %v4065_v25 }
 0x215   :  { %v5043_v5 = vpop.f32.mrf.mxu3  ;;  %3535 = vmatmul.msk.bf16.gmra.mxu2 %vm926_vm0, %v3992_v57 }
 0x216   :  { %7168 = vst [vmem:[#allocation93_spill] sm:$0xff] %v5043_v5 }
 0x218   :  { %v1630_v33 = vpop.f32.mrf.mxu2 }
 0x219   :  { %v5048_v12 = vadd.f32 %v1630_v33, %v1601_v52  ;;  %v1603_v50 = vpop.f32.mrf.mxu0  ;;  %v5050_v56 = vpop.f32.mrf.mxu1 }
 0x21a   :  { %7170 = vst [vmem:[#allocation95_spill] sm:$0xff] %v5050_v56 }
 0x21b   :  { %7169 = vst [vmem:[#allocation94_spill] sm:$0xff] %v5048_v12 }
 0x21d   :  { %v5052_v26 = vpop.f32.mrf.mxu3 }
 0x21e   :  { %7171 = vst [vmem:[#allocation96_spill] sm:$0xff] %v5052_v26 }
 0x220   :  { %v1632_v15 = vpop.f32.mrf.mxu2 }
 0x221   :  { %v5054_v32 = vadd.f32 %v1632_v15, %v1603_v50  ;;  %v5056_v53 = vpop.f32.mrf.mxu0  ;;  %v5058_v38 = vpop.f32.mrf.mxu1 }
 0x222   :  { %7173 = vst [vmem:[#allocation98_spill] sm:$0xff] %v5058_v38 }
 0x223   :  { %7172 = vst [vmem:[#allocation97_spill] sm:$0xff] %v5054_v32 }
 0x225   :  { %v5060_v42 = vpop.f32.mrf.mxu3 }
 0x226   :  { %7174 = vst [vmem:[#allocation99_spill] sm:$0xff] %v5060_v42  ;;  %v2004_v42 = vmul.f32 %v4253_v60, %v4253_v60 }
 0x228   :  { %v5062_v25 = vpop.f32.mrf.mxu2 }
 0x229   :  { %v5064_v57 = vpop.f32.mrf.mxu0  ;;  %v5066_v52 = vpop.f32.mrf.mxu1 }
 0x22a   :  { %7175 = vst [vmem:[#allocation100_spill] sm:$0xff] %v5064_v57 }
 0x22b   :  { %7176 = vst [vmem:[#allocation101_spill] sm:$0xff] %v5066_v52 }
 0x22d   :  { %v5068_v33 = vpop.f32.mrf.mxu3 }
 0x22e   :  { %7177 = vst [vmem:[#allocation102_spill] sm:$0xff] %v5068_v33  ;;  %v2020_v33 = vmul.f32 %v4273_v9, %v4273_v9  ;;  %v1918_v9 = vadd.f32 %v4305_v34, %v4290_v21  ;;  %v2069_v21 = vmul.f32 %v4437_v18, %v4437_v18 }
 0x230   :  { %v5070_v12 = vpop.f32.mrf.mxu2 }
 0x231   :  { %7178 = vst [vmem:[#allocation103_spill] sm:$0xff] %v5070_v12  ;;  %v5072_v26 = vpop.f32.mrf.mxu0  ;;  %v5074_v50 = vpop.f32.mrf.mxu1  ;;  %v2068_v12 = vmul.f32 %v4320_v43, %v4320_v43 }
 0x232   :  { %7179 = vst [vmem:[#allocation104_spill] sm:$0xff] %v5072_v26  ;;  %v2003_v26 = vmul.f32 %v4236_v46, %v4236_v46 }
 0x233   :  { %7180 = vst [vmem:[#allocation105_spill] sm:$0xff] %v5074_v50  ;;  %v2019_v50 = vmul.f32 %v4263_v0, %v4263_v0  ;;  %v2021_v0 = vmul.f32 %v4358_v13, %v4358_v13 }
 0x234   :  { %v2131_v3 = vadd.f32 %v2004_v42, %v2003_v26  ;;  %v1901_v42 = vadd.f32 %v4286_v19, %v4275_v11 }
 0x235   :  { %v5076_v15 = vpop.f32.mrf.mxu3  ;;  %v2148_v5 = vadd.f32 %v2020_v33, %v2019_v50  ;;  %v1935_v50 = vadd.f32 %v4320_v43, %v4307_v36 }
 0x236   :  { %7181 = vst [vmem:[#allocation106_spill] sm:$0xff] %v5076_v15  ;;  %v2036_v15 = vmul.f32 %v4286_v19, %v4286_v19  ;;  %v2100_v19 = vmul.f32 %v4374_v24, %v4374_v24 }
 0x238   :  { %v5078_v32 = vpop.f32.mrf.mxu2 }
 0x239   :  { %7182 = vst [vmem:[#allocation107_spill] sm:$0xff] %v5078_v32  ;;  %v5080_v38 = vpop.f32.mrf.mxu0  ;;  %v5084_v56 = vpop.f32.mrf.mxu1 }
 0x23a   :  { %7183 = vst [vmem:[#allocation108_spill] sm:$0xff] %v5080_v38  ;;  %v2052_v38 = vmul.f32 %v4305_v34, %v4305_v34  ;;  %v1952_v34 = vadd.f32 %v4347_v1, %v4330_v48 }
 0x23b   :  { %7184 = vst [vmem:[#allocation109_spill] sm:$0xff] %v5084_v56  ;;  %v1867_v56 = vadd.f32 %v4253_v60, %v4236_v46  ;;  %v2067_v60 = vmul.f32 %v4307_v36, %v4307_v36  ;;  %v2084_v46 = vmul.f32 %v4347_v1, %v4347_v1 }
 0x23c   :  { %v2182_v33 = vadd.f32 %v2052_v38, %v2051_v14  ;;  %v2037_v14 = vmul.f32 %v4386_v27, %v4386_v27  ;;  %v2116_v38 = vmul.f32 %v4402_v47, %v4402_v47 }
 0x23d   :  { %v5088_v52 = vpop.f32.mrf.mxu3 }
 0x23e   :  { %7185 = vst [vmem:[#allocation110_spill] sm:$0xff] %v5088_v52  ;;  %v2035_v52 = vmul.f32 %v4275_v11, %v4275_v11 }
 0x240   :  { %v5098_v32 = vpop.f32.mrf.mxu2  ;;  %v2165_v26 = vadd.f32 %v2036_v15, %v2035_v52  ;;  %v2083_v52 = vmul.f32 %v4330_v48, %v4330_v48  ;;  %v1868_v15 = vadd.f32 %v1867_v56, %v4332_v54  ;;  %v2053_v56 = vmul.f32 %v4411_v59, %v4411_v59 }
 0x241   :  { %7186 = vst [vmem:[#allocation111_spill] sm:$0xff] %v5098_v32  ;;  %v5106_v57 = vpop.f32.mrf.mxu0  ;;  %v2005_v32 = vmul.f32 %v4332_v54, %v4332_v54  ;;  %v5142_v36 = vpop.f32.mrf.mxu1  ;;  %v2115_v54 = vmul.f32 %v4384_v30, %v4384_v30  ;;  %v1902_v48 = vadd.f32 %v1901_v42, %v4386_v27  ;;  %v2038_v27 = vmul.f32 %v4459_v44, %v4459_v44 }
 0x242   :  { %7187 = vst [vmem:[#allocation112_spill] sm:$0xff] %v5106_v57  ;;  %v2199_v57 = vadd.f32 %v2068_v12, %v2067_v60  ;;  %v2216_v43 = vadd.f32 %v2084_v46, %v2083_v52  ;;  %v2099_v60 = vmul.f32 %v4355_v6, %v4355_v6  ;;  %v1885_v12 = vadd.f32 %v1884_v22, %v4358_v13 }
 0x243   :  { %v2132_v11 = vadd.f32 %v2131_v3, %v2005_v32  ;;  %7188 = vst [vmem:[#allocation113_spill] sm:$0xff] %v5142_v36  ;;  %v2149_v3 = vadd.f32 %v2148_v5, %v2021_v0  ;;  %v1969_v32 = vadd.f32 %v4374_v24, %v4355_v6  ;;  %v2006_v46 = vmul.f32 %v4427_v7, %v4427_v7 }
 0x244   :  { %v2233_v22 = vadd.f32 %v2100_v19, %v2099_v60  ;;  %v2022_v0 = vmul.f32 %v4446_v29, %v4446_v29  ;;  %v2166_v24 = vadd.f32 %v2165_v26, %v2037_v14  ;;  %v1986_v6 = vadd.f32 %v4402_v47, %v4384_v30 }
 0x245   :  { %v5150_v52 = vpop.f32.mrf.mxu3  ;;  %v2250_v13 = vadd.f32 %v2116_v38, %v2115_v54  ;;  %v1919_v19 = vadd.f32 %v1918_v9, %v4411_v59  ;;  %v2183_v60 = vadd.f32 %v2182_v33, %v2053_v56  ;;  %v1869_v42 = vadd.f32 %v1868_v15, %v4427_v7 }
 0x246   :  { %7189 = vst [vmem:[#allocation114_spill] sm:$0xff] %v5150_v52  ;;  %v2085_v52 = vmul.f32 %v4449_v39, %v4449_v39  ;;  %v2133_v36 = vadd.f32 %v2132_v11, %v2006_v46  ;;  %v2101_v26 = vmul.f32 %v4469_v58, %v4469_v58  ;;  %v2054_v54 = vmul.f32 %v4478_v2, %v4478_v2 }
 0x247   :  { %v2200_v14 = vadd.f32 %v2199_v57, %v2069_v21  ;;  %v1886_v38 = vadd.f32 %v1885_v12, %v4446_v29  ;;  %v2150_v47 = vadd.f32 %v2149_v3, %v2022_v0  ;;  %v2117_v9 = vmul.f32 %v4481_v10, %v4481_v10 }
 0x248   :  { %v5152_v1 = vpop.f32.mrf.mxu2  ;;  %v1953_v33 = vadd.f32 %v1952_v34, %v4449_v39  ;;  %v2217_v15 = vadd.f32 %v2216_v43, %v2085_v52  ;;  %v1903_v11 = vadd.f32 %v1902_v48, %v4459_v44  ;;  %v2167_v56 = vadd.f32 %v2166_v24, %v2038_v27 }
 0x249   :  { %7190 = vst [vmem:[#allocation115_spill] sm:$0xff] %v5152_v1  ;;  %v5159_v5 = vpop.f32.mrf.mxu0  ;;  %v1936_v1 = vadd.f32 %v1935_v50, %v4437_v18  ;;  %v2070_v50 = vmul.f32 %v4491_v20, %v4491_v20  ;;  %v1970_v46 = vadd.f32 %v1969_v32, %v4469_v58  ;;  %v2007_v21 = vmul.f32 %v4501_v40, %v4501_v40  ;;  %v5195_v52 = vpop.f32.mrf.mxu1 }
 0x24a   :  { %v2086_v57 = vmul.f32 %v4516_v55, %v4516_v55  ;;  %v2234_v12 = vadd.f32 %v2233_v22, %v2101_v26  ;;  %v1920_v3 = vadd.f32 %v1919_v19, %v4478_v2  ;;  %v2184_v0 = vadd.f32 %v2183_v60, %v2054_v54 }
 0x24b   :  { %v2023_v34 = vmul.f32 %v4525_v4, %v4525_v4  ;;  %v1987_v48 = vadd.f32 %v1986_v6, %v4481_v10  ;;  %v2251_v24 = vadd.f32 %v2250_v13, %v2117_v9  ;;  %v1937_v27 = vadd.f32 %v1936_v1, %v4491_v20  ;;  %v7199_v10 = vld [vmem:[#allocation45_spill] sm:$0xff] }
 0x24c   :  { %v2102_v32 = vmul.f32 %v4541_v28, %v4541_v28  ;;  %v2201_v22 = vadd.f32 %v2200_v14, %v2070_v50  ;;  %v1870_v19 = vadd.f32 %v1869_v42, %v4501_v40  ;;  %v2039_v60 = vmul.f32 %v4551_v45, %v4551_v45  ;;  %v7198_v40 = vld [vmem:[#allocation60_spill] sm:$0xff] }
 0x24d   :  { %v2118_v26 = vmul.f32 %v4566_v63, %v4566_v63  ;;  %v5204_v6 = vpop.f32.mrf.mxu3  ;;  %v2134_v13 = vadd.f32 %v2133_v36, %v2007_v21  ;;  %v1954_v1 = vadd.f32 %v1953_v33, %v4516_v55  ;;  %v2218_v54 = vadd.f32 %v2217_v15, %v2086_v57 }
 0x24e   :  { %v2055_v9 = vmul.f32 %v4575_v23, %v4575_v23  ;;  %v1887_v20 = vadd.f32 %v1886_v38, %v4525_v4  ;;  %v2151_v14 = vadd.f32 %v2150_v47, %v2023_v34  ;;  %v2008_v42 = vmul.f32 %v4591_v49, %v4591_v49 }
 0x24f   :  { %v2071_v50 = vmul.f32 %v4601_v8, %v4601_v8  ;;  %v1971_v18 = vadd.f32 %v1970_v46, %v4541_v28  ;;  %v5215_v44 = vadd.f32 %v2234_v12, %v2102_v32  ;;  %v1904_v36 = vadd.f32 %v1903_v11, %v4551_v45 }
 0x250   :  { %v5189_v43 = vpop.f32.mrf.mxu2  ;;  %v2024_v33 = vmul.f32 %v4610_v17, %v4610_v17  ;;  %v2168_v15 = vadd.f32 %v2167_v56, %v2039_v60  ;;  %v5221_v21 = vadd.f32 %v1987_v48, %v4566_v63  ;;  %v5223_v47 = vadd.f32 %v2251_v24, %v2118_v26 }
 0x251   :  { %v5197_v58 = vpop.f32.mrf.mxu0  ;;  %v2087_v38 = vmul.f32 %v4613_v35, %v4613_v35  ;;  %v1921_v57 = vadd.f32 %v1920_v3, %v4575_v23  ;;  %v2185_v34 = vadd.f32 %v2184_v0, %v2055_v9  ;;  %v1871_v46 = vadd.f32 %v1870_v19, %v4591_v49  ;;  %v7191_v0 = vld [vmem:[#allocation44_spill] sm:$0xff]  ;;  %v5254_v45 = vpop.f32.mrf.mxu1  ;;  %v7217_v23 = vld [vmem:[#allocation59_spill] sm:$0xff] }
 0x252   :  { %v2040_v11 = vmul.f32 %v4623_v51, %v4623_v51  ;;  %v2135_v12 = vadd.f32 %v2134_v13, %v2008_v42  ;;  %v1938_v32 = vadd.f32 %v1937_v27, %v4601_v8  ;;  %v2202_v56 = vadd.f32 %v2201_v22, %v2071_v50  ;;  %v7192_v27 = vld [vmem:[#allocation43_spill] sm:$0xff]  ;;  %v7193_v8 = vld [vmem:[#allocation40_spill] sm:$0xff] }
 0x253   :  { %v2056_v48 = vmul.f32 %v4642_v37, %v4642_v37  ;;  %v1888_v60 = vadd.f32 %v1887_v20, %v4610_v17  ;;  %v2152_v26 = vadd.f32 %v2151_v14, %v2024_v33  ;;  %v1955_v3 = vadd.f32 %v1954_v1, %v4613_v35  ;;  %v7194_v14 = vld [vmem:[#allocation46_spill] sm:$0xff]  ;;  %v7195_v33 = vld [vmem:[#allocation51_spill] sm:$0xff] }
 0x254   :  { %v1872_v9 = vadd.f32 %v1871_v46, %v7191_v0  ;;  %v5241_v28 = vadd.f32 %v2218_v54, %v2087_v38  ;;  %v1905_v13 = vadd.f32 %v1904_v36, %v4623_v51  ;;  %v2072_v22 = vmul.f32 %v7192_v27, %v7192_v27  ;;  %v7196_v51 = vld [vmem:[#allocation48_spill] sm:$0xff] }
 0x255   :  { %v2009_v42 = vmul.f32 %v7191_v0, %v7191_v0  ;;  %v2169_v50 = vadd.f32 %v2168_v15, %v2040_v11  ;;  %v5249_v20 = vadd.f32 %v1971_v18, %v7193_v8  ;;  %v2025_v1 = vmul.f32 %v7194_v14, %v7194_v14  ;;  %v5263_v11 = vpop.f32.mrf.mxu3  ;;  %v7197_v0 = vld [vmem:[#allocation50_spill] sm:$0xff] }
 0x256   :  { %v1873_v46 = vadd.f32 %v1872_v9, %v7195_v33  ;;  %v5258_v54 = vmul.f32 %v7193_v8, %v7193_v8  ;;  %v1922_v36 = vadd.f32 %v1921_v57, %v4642_v37  ;;  %v2186_v38 = vadd.f32 %v2185_v34, %v2056_v48  ;;  %v7200_v34 = vld [vmem:[#allocation52_spill] sm:$0xff]  ;;  %v7202_v37 = vld [vmem:[#allocation53_spill] sm:$0xff] }
 0x257   :  { %v2041_v15 = vmul.f32 %v7196_v51, %v7196_v51  ;;  %v1939_v18 = vadd.f32 %v1938_v32, %v7192_v27  ;;  %v2057_v49 = vmul.f32 %v7197_v0, %v7197_v0  ;;  %v2010_v9 = vmul.f32 %v7195_v33, %v7195_v33  ;;  %v7201_v27 = vld [vmem:[#allocation67_spill] sm:$0xff] }
 0x258   :  { %v5234_v24 = vpop.f32.mrf.mxu2  ;;  %v1874_v7 = vadd.f32 %v1873_v46, %v7198_v40  ;;  %v2203_v8 = vadd.f32 %v2202_v56, %v2072_v22  ;;  %v2136_v63 = vadd.f32 %v2135_v12, %v2009_v42  ;;  %v5272_v57 = vadd.f32 %v1955_v3, %v7199_v10 }
 0x259   :  { %v5239_v19 = vpop.f32.mrf.mxu0  ;;  %v2073_v48 = vmul.f32 %v7200_v34, %v7200_v34  ;;  %v1889_v30 = vadd.f32 %v1888_v60, %v7194_v14  ;;  %v2153_v35 = vadd.f32 %v2152_v26, %v2025_v1  ;;  %v1906_v32 = vadd.f32 %v1905_v13, %v7196_v51  ;;  %v7204_v1 = vld [vmem:[#allocation62_spill] sm:$0xff] }
 0x25a   :  { %v1875_v55 = vadd.f32 %v1874_v7, %v7201_v27  ;;  %v2170_v39 = vadd.f32 %v2169_v50, %v2041_v15  ;;  %v1923_v33 = vadd.f32 %v1922_v36, %v7197_v0  ;;  %v2026_v56 = vmul.f32 %v7202_v37, %v7202_v37  ;;  %v7207_v15 = vld [vmem:[#allocation69_spill] sm:$0xff] }
 0x25b   :  { %v2011_v12 = vmul.f32 %v7198_v40, %v7198_v40  ;;  %v2187_v22 = vadd.f32 %v2186_v38, %v2057_v49  ;;  %v2137_v42 = vadd.f32 %v2136_v63, %v2010_v9  ;;  %v5289_v26 = vadd.f32 %v5037_v62, %v5035_v61  ;;  %v7205_v63 = vld [vmem:[#allocation55_spill] sm:$0xff] }
 0x25c   :  { %v1876_v60 = vadd.f32 %v1875_v55, %v4981_v31  ;;  %v1940_v13 = vadd.f32 %v1939_v18, %v7200_v34  ;;  %v5292_v50 = vadd.f32 %v2203_v8, %v2073_v48  ;;  %v2027_v46 = vmul.f32 %v7204_v1, %v7204_v1 }
 0x25d   :  { %7203 = vst [vmem:[#allocation46_spill] sm:$0xff] %v5289_v26  ;;  %v2012_v36 = vmul.f32 %v7201_v27, %v7201_v27  ;;  %v1890_v49 = vadd.f32 %v1889_v30, %v7202_v37  ;;  %v2042_v55 = vmul.f32 %v7205_v63, %v7205_v63  ;;  %v5304_v62 = vadd.f32 %v5062_v25, %v5056_v53  ;;  %v7208_v30 = vld [vmem:[#allocation57_spill] sm:$0xff]  ;;  %v1765_v53 = vpop.f32.mrf.mxu1 }
 0x25e   :  { %v1877_v38 = vadd.f32 %v1876_v60, %v5005_v16  ;;  %v2154_v61 = vadd.f32 %v2153_v35, %v2026_v56  ;;  %v2138_v8 = vadd.f32 %v2137_v42, %v2011_v12  ;;  %v2028_v18 = vmul.f32 %v7207_v15, %v7207_v15  ;;  %v1794_v42 = vpop.f32.mrf.mxu3  ;;  %v7211_v27 = vld [vmem:[#allocation93_spill] sm:$0xff] }
 0x25f   :  { %7206 = vst [vmem:[#allocation45_spill] sm:$0xff] %v5304_v62  ;;  %v2013_v9 = vmul.f32 %v4981_v31, %v4981_v31  ;;  %v1907_v48 = vadd.f32 %v1906_v32, %v7205_v63  ;;  %v2058_v34 = vmul.f32 %v7208_v30, %v7208_v30  ;;  %v5316_v60 = vadd.f32 %v5204_v6, %v5195_v52  ;;  %v7210_v31 = vld [vmem:[#allocation92_spill] sm:$0xff] }
 0x260   :  { %v5284_v3 = vpop.f32.mrf.mxu2  ;;  %v1878_v51 = vadd.f32 %v1877_v38, %v5289_v26  ;;  %v2155_v35 = vadd.f32 %v2154_v61, %v2027_v46  ;;  %v2139_v25 = vadd.f32 %v2138_v8, %v2012_v36  ;;  %v2029_v56 = vmul.f32 %v4987_v41, %v4987_v41  ;;  %v7212_v6 = vld [vmem:[#allocation64_spill] sm:$0xff] }
 0x261   :  { %v1818_v7 = vpop.f32.mrf.mxu0  ;;  %7209 = vst [vmem:[#allocation116_spill] sm:$0xff] %v5316_v60  ;;  %v2014_v12 = vmul.f32 %v5005_v16, %v5005_v16  ;;  %v2171_v32 = vadd.f32 %v2170_v39, %v2042_v55  ;;  %v1924_v63 = vadd.f32 %v1923_v33, %v7208_v30  ;;  %v5325_v38 = vadd.f32 %v7211_v27, %v7210_v31  ;;  %v7213_v8 = vld [vmem:[#allocation84_spill] sm:$0xff]  ;;  %v7215_v33 = vld [vmem:[#allocation103_spill] sm:$0xff] }
 0x262   :  { %v1879_v52 = vadd.f32 %v1878_v51, %v5304_v62  ;;  %v2043_v46 = vmul.f32 %v7212_v6, %v7212_v6  ;;  %v2156_v36 = vadd.f32 %v2155_v35, %v2028_v18  ;;  %v2140_v61 = vadd.f32 %v2139_v25, %v2013_v9  ;;  %v7214_v55 = vld [vmem:[#allocation100_spill] sm:$0xff] }
 0x263   :  { %v2030_v40 = vmul.f32 %v7213_v8, %v7213_v8  ;;  %v2015_v39 = vmul.f32 %v5289_v26, %v5289_v26  ;;  %v5336_v16 = vadd.f32 %v7215_v33, %v7214_v55  ;;  %v2188_v30 = vadd.f32 %v2187_v22, %v2058_v34  ;;  %v7220_v33 = vld [vmem:[#allocation79_spill] sm:$0xff] }
 0x264   :  { %v1880_v51 = vadd.f32 %v1879_v52, %v5316_v60  ;;  %v5342_v18 = vadd.f32 %v1940_v13, %v7217_v23  ;;  %v2157_v9 = vadd.f32 %v2156_v36, %v2029_v56  ;;  %v2141_v35 = vadd.f32 %v2140_v61, %v2014_v12  ;;  %v7218_v13 = vld [vmem:[#allocation71_spill] sm:$0xff] }
 0x265   :  { %v2031_v25 = vmul.f32 %v5325_v38, %v5325_v38  ;;  %v2016_v26 = vmul.f32 %v5304_v62, %v5304_v62  ;;  %v5350_v55 = vadd.f32 %v5263_v11, %v5254_v45  ;;  %v1908_v34 = vadd.f32 %v1907_v48, %v7212_v6  ;;  %v7219_v45 = vld [vmem:[#allocation66_spill] sm:$0xff] }
 0x266   :  { %v2172_v22 = vadd.f32 %v2171_v32, %v2043_v46  ;;  %v2044_v56 = vmul.f32 %v7218_v13, %v7218_v13  ;;  %v2158_v12 = vadd.f32 %v2157_v9, %v2030_v40  ;;  %v2142_v52 = vadd.f32 %v2141_v35, %v2015_v39  ;;  %v7221_v32 = vld [vmem:[#allocation95_spill] sm:$0xff]  ;;  %v7222_v46 = vld [vmem:[#allocation96_spill] sm:$0xff]  ;;  %v1767_v40 = vpop.f32.mrf.mxu1  ;;  %v7224_v62 = vld [vmem:[#allocation86_spill] sm:$0xff]  ;;  %v1796_v59 = vpop.f32.mrf.mxu3 }
 0x267   :  { %v2032_v36 = vmul.f32 %v5336_v16, %v5336_v16  ;;  %v2017_v61 = vmul.f32 %v5316_v60, %v5316_v60  ;;  %v2059_v11 = vmul.f32 %v7219_v45, %v7219_v45  ;;  %v2045_v48 = vmul.f32 %v7220_v33, %v7220_v33 }
 0x268   :  { %v1847_v0 = vpop.f32.mrf.mxu2  ;;  %v2143_v9 = vadd.f32 %v2142_v52, %v2016_v26  ;;  %v2033_v35 = vmul.f32 %v5350_v55, %v5350_v55  ;;  %v1909_v6 = vadd.f32 %v1908_v34, %v7218_v13  ;;  %v2173_v60 = vadd.f32 %v2172_v22, %v2044_v56 }
 0x269   :  { %v5338_v31 = vadd.f32 %v1847_v0, %v1818_v7  ;;  %v1820_v27 = vpop.f32.mrf.mxu0  ;;  %v1891_v7 = vadd.f32 %v1890_v49, %v7204_v1  ;;  %v2046_v2 = vmul.f32 %v7224_v62, %v7224_v62 }
 0x26a   :  { %v2144_v52 = vadd.f32 %v2143_v9, %v2017_v61  ;;  %v2174_v34 = vadd.f32 %v2173_v60, %v2045_v48  ;;  %v7229_v61 = vld [vmem:[#allocation73_spill] sm:$0xff] }
 0x26b   :  { %7216 = vst [vmem:[#allocation92_spill] sm:$0xff] %v5338_v31  ;;  %v1881_v0 = vadd.f32 %v1880_v51, %v5338_v31  ;;  %v1892_v49 = vadd.f32 %v1891_v7, %v7207_v15  ;;  %v5368_v51 = vadd.f32 %v7222_v46, %v7221_v32  ;;  %v2018_v39 = vmul.f32 %v5338_v31, %v5338_v31  ;;  %v7225_v46 = vld [vmem:[#allocation104_spill] sm:$0xff]  ;;  %v7226_v15 = vld [vmem:[#allocation107_spill] sm:$0xff] }
 0x26c   :  { %v5380_v1 = vadd.f32 %v7226_v15, %v7225_v46  ;;  %v2060_v60 = vmul.f32 %v7229_v61, %v7229_v61  ;;  %v2175_v48 = vadd.f32 %v2174_v34, %v2046_v2 }
 0x26d   :  { %1882 = vadd.xlane.f32.xlu0 %v1881_v0  ;;  %7223 = vst [vmem:[#allocation93_spill] sm:$0xff] %v5368_v51  ;;  %v2159_v0 = vadd.f32 %v2158_v12, %v2031_v25  ;;  %v1893_v7 = vadd.f32 %v1892_v49, %v4987_v41  ;;  %v1910_v25 = vadd.f32 %v1909_v6, %v7220_v33  ;;  %v7257_v33 = vld [vmem:[#allocation106_spill] sm:$0xff] }
 0x26e   :  { %7227 = vst [vmem:[#allocation84_spill] sm:$0xff] %v5380_v1  ;;  %v2047_v56 = vmul.f32 %v5368_v51, %v5368_v51  ;;  %v5388_v12 = vadd.f32 %v1794_v42, %v1765_v53  ;;  %v2145_v49 = vadd.f32 %v2144_v52, %v2018_v39  ;;  %v2048_v53 = vmul.f32 %v5380_v1, %v5380_v1  ;;  %v7233_v52 = vld [vmem:[#allocation68_spill] sm:$0xff] }
 0x26f   :  { %v2160_v37 = vadd.f32 %v2159_v0, %v2032_v36  ;;  %v1894_v22 = vadd.f32 %v1893_v7, %v7213_v8  ;;  %v1925_v36 = vadd.f32 %v1924_v63, %v7219_v45  ;;  %v1911_v6 = vadd.f32 %v1910_v25, %v7224_v62  ;;  %v7231_v63 = vld [vmem:[#allocation98_spill] sm:$0xff]  ;;  %v7232_v7 = vld [vmem:[#allocation99_spill] sm:$0xff] }
 0x270   :  { %v1849_v32 = vpop.f32.mrf.mxu2  ;;  %7228 = vst [vmem:[#allocation100_spill] sm:$0xff] %v5388_v12  ;;  %v2189_v39 = vadd.f32 %v2188_v30, %v2059_v11  ;;  %v2075_v2 = vmul.f32 %v7233_v52, %v7233_v52  ;;  %v2049_v34 = vmul.f32 %v5388_v12, %v5388_v12 }
 0x271   :  { %v5382_v31 = vadd.f32 %v1849_v32, %v1820_v27  ;;  %v1823_v26 = vpop.f32.mrf.mxu0  ;;  %v2161_v46 = vadd.f32 %v2160_v37, %v2033_v35  ;;  %v2074_v27 = vmul.f32 %v7217_v23, %v7217_v23  ;;  %v1895_v9 = vadd.f32 %v1894_v22, %v5325_v38  ;;  %v7230_v37 = vld [vmem:[#allocation81_spill] sm:$0xff] }
 0x272   :  { %v2061_v35 = vmul.f32 %v7230_v37, %v7230_v37  ;;  %v1912_v0 = vadd.f32 %v1911_v6, %v5368_v51  ;;  %v5406_v32 = vadd.f32 %v7232_v7, %v7231_v63  ;;  %v2176_v22 = vadd.f32 %v2175_v48, %v2047_v56  ;;  %v7235_v63 = vld [vmem:[#allocation108_spill] sm:$0xff]  ;;  %v7236_v7 = vld [vmem:[#allocation111_spill] sm:$0xff]  ;;  %v1770_v51 = vpop.f32.mrf.mxu1 }
 0x273   :  { %v2034_v15 = vmul.f32 %v5382_v31, %v5382_v31  ;;  %v1896_v25 = vadd.f32 %v1895_v9, %v5336_v16  ;;  %v1926_v30 = vadd.f32 %v1925_v36, %v7229_v61  ;;  %v2190_v11 = vadd.f32 %v2189_v39, %v2060_v60  ;;  %v1799_v39 = vpop.f32.mrf.mxu3 }
 0x274   :  { %v5419_v23 = vadd.f32 %v7236_v7, %v7235_v63  ;;  %v2177_v56 = vadd.f32 %v2176_v22, %v2048_v53  ;;  %v2063_v48 = vmul.f32 %v5406_v32, %v5406_v32  ;;  %v1942_v53 = vadd.f32 %v5342_v18, %v7233_v52  ;;  %v7240_v18 = vld [vmem:[#allocation101_spill] sm:$0xff]  ;;  %v7241_v7 = vld [vmem:[#allocation102_spill] sm:$0xff] }
 0x275   :  { %2146 = vadd.xlane.f32.xlu0 %v2145_v49  ;;  %v2162_v42 = vadd.f32 %v2161_v46, %v2034_v15  ;;  %v7234_v49 = vld [vmem:[#allocation88_spill] sm:$0xff]  ;;  %v1913_v46 = vadd.f32 %v1912_v0, %v5380_v1  ;;  %v1897_v62 = vadd.f32 %v1896_v25, %v5350_v55  ;;  %v1927_v36 = vadd.f32 %v1926_v30, %v7230_v37 }
 0x276   :  { %v2062_v15 = vmul.f32 %v7234_v49, %v7234_v49  ;;  %v2191_v60 = vadd.f32 %v2190_v11, %v2061_v35  ;;  %v5428_v1 = vadd.f32 %v1796_v59, %v1767_v40  ;;  %v2205_v25 = vadd.f32 %v5292_v50, %v2074_v27  ;;  %v7238_v35 = vld [vmem:[#allocation75_spill] sm:$0xff] }
 0x277   :  { %2163 = vadd.xlane.f32.xlu1 %v2162_v42  ;;  %v1914_v0 = vadd.f32 %v1913_v46, %v5388_v12  ;;  %v1898_v63 = vadd.f32 %v1897_v62, %v5382_v31  ;;  %v2076_v22 = vmul.f32 %v7238_v35, %v7238_v35  ;;  %v1928_v30 = vadd.f32 %v1927_v36, %v7234_v49  ;;  %v7239_v50 = vld [vmem:[#allocation83_spill] sm:$0xff] }
 0x278   :  { %v1852_v6 = vpop.f32.mrf.mxu2  ;;  %v2192_v11 = vadd.f32 %v2191_v60, %v2062_v15  ;;  %v2064_v59 = vmul.f32 %v5419_v23, %v5419_v23  ;;  %v2206_v46 = vadd.f32 %v2205_v25, %v2075_v2  ;;  %v2077_v27 = vmul.f32 %v7239_v50, %v7239_v50 }
 0x279   :  { %v5421_v9 = vadd.f32 %v1852_v6, %v1823_v26  ;;  %v1825_v42 = vpop.f32.mrf.mxu0  ;;  %v2178_v6 = vadd.f32 %v2177_v56, %v2049_v34  ;;  %v1943_v34 = vadd.f32 %v1942_v53, %v7238_v35  ;;  %v5447_v56 = vadd.f32 %v7241_v7, %v7240_v18  ;;  %v7245_v7 = vld [vmem:[#allocation112_spill] sm:$0xff] }
 0x27a   :  { %v1929_v36 = vadd.f32 %v1928_v30, %v5406_v32  ;;  %v2193_v15 = vadd.f32 %v2192_v11, %v2063_v48  ;;  %v2065_v60 = vmul.f32 %v5428_v1, %v5428_v1  ;;  %v7246_v30 = vld [vmem:[#allocation115_spill] sm:$0xff] }
 0x27b   :  { %7237 = vst [vmem:[#allocation103_spill] sm:$0xff] %v5421_v9  ;;  %v2050_v26 = vmul.f32 %v5421_v9, %v5421_v9  ;;  %v1915_v40 = vadd.f32 %v1914_v0, %v5421_v9  ;;  %v2207_v0 = vadd.f32 %v2206_v46, %v2076_v22  ;;  %v5460_v48 = vadd.f32 %v7246_v30, %v7245_v7 }
 0x27c   :  { %7242 = vst [vmem:[#allocation66_spill] sm:$0xff] %v5447_v56  ;;  %v1930_v18 = vadd.f32 %v1929_v36, %v5419_v23  ;;  %v2079_v22 = vmul.f32 %v5447_v56, %v5447_v56 }
 0x27d   :  { %1899 = vadd.xlane.f32.xlu0 %v1898_v63  ;;  %v2179_v62 = vadd.f32 %v2178_v6, %v2050_v26  ;;  %v7243_v63 = vld [vmem:[#allocation54_spill] sm:$0xff]  ;;  %v1944_v26 = vadd.f32 %v1943_v34, %v7239_v50  ;;  %7247 = vst [vmem:[#allocation95_spill] sm:$0xff] %v5460_v48  ;;  %v2208_v52 = vadd.f32 %v2207_v0, %v2077_v27  ;;  %v1772_v50 = vpop.f32.mrf.mxu1 }
 0x27e   :  { %v1957_v2 = vadd.f32 %v5272_v57, %v7243_v63  ;;  %v7244_v6 = vld [vmem:[#allocation90_spill] sm:$0xff]  ;;  %v5468_v34 = vadd.f32 %v1799_v39, %v1770_v51  ;;  %v1931_v36 = vadd.f32 %v1930_v18, %v5428_v1  ;;  %v2088_v27 = vmul.f32 %v7199_v10, %v7199_v10 }
 0x27f   :  { %2180 = vadd.xlane.f32.xlu2 %v2179_v62  ;;  %1916 = vadd.xlane.f32.xlu1 %v1915_v40  ;;  %v2078_v25 = vmul.f32 %v7244_v6, %v7244_v6  ;;  %v2194_v62 = vadd.f32 %v2193_v15, %v2064_v59  ;;  %v7248_v40 = vld [vmem:[#allocation61_spill] sm:$0xff]  ;;  %v1945_v57 = vadd.f32 %v1944_v26, %v7244_v6  ;;  %v7251_v15 = vld [vmem:[#allocation70_spill] sm:$0xff]  ;;  %v1801_v26 = vpop.f32.mrf.mxu3  ;;  %v7252_v6 = vld [vmem:[#allocation47_spill] sm:$0xff] }
 0x280   :  { %v1854_v53 = vpop.f32.mrf.mxu2  ;;  %v1958_v35 = vadd.f32 %v1957_v2, %v7248_v40  ;;  %7249 = vst [vmem:[#allocation96_spill] sm:$0xff] %v5468_v34  ;;  %v2080_v39 = vmul.f32 %v5460_v48, %v5460_v48  ;;  %v1973_v9 = vadd.f32 %v5249_v20, %v7252_v6  ;;  %v7256_v20 = vld [vmem:[#allocation105_spill] sm:$0xff] }
 0x281   :  { %v5462_v11 = vadd.f32 %v1854_v53, %v1825_v42  ;;  %v1828_v46 = vpop.f32.mrf.mxu0  ;;  %v2195_v42 = vadd.f32 %v2194_v62, %v2065_v60  ;;  %v7250_v53 = vld [vmem:[#allocation42_spill] sm:$0xff]  ;;  %v2209_v0 = vadd.f32 %v2208_v52, %v2078_v25  ;;  %v1946_v51 = vadd.f32 %v1945_v57, %v5447_v56 }
 0x282   :  { %v2119_v59 = vmul.f32 %v7250_v53, %v7250_v53  ;;  %v1959_v2 = vadd.f32 %v1958_v35, %v7251_v15  ;;  %v2236_v60 = vadd.f32 %v5215_v44, %v5258_v54  ;;  %v1989_v62 = vadd.f32 %v5221_v21, %v7250_v53  ;;  %v7253_v35 = vld [vmem:[#allocation77_spill] sm:$0xff]  ;;  %v7254_v54 = vld [vmem:[#allocation56_spill] sm:$0xff] }
 0x283   :  { %v2066_v7 = vmul.f32 %v5462_v11, %v5462_v11  ;;  %v1932_v18 = vadd.f32 %v1931_v36, %v5462_v11  ;;  %v2210_v25 = vadd.f32 %v2209_v0, %v2079_v22  ;;  %v1947_v57 = vadd.f32 %v1946_v51, %v5460_v48  ;;  %v7255_v21 = vld [vmem:[#allocation85_spill] sm:$0xff] }
 0x284   :  { %v1960_v52 = vadd.f32 %v1959_v2, %v7253_v35  ;;  %v2081_v56 = vmul.f32 %v5468_v34, %v5468_v34  ;;  %v2253_v36 = vadd.f32 %v5223_v47, %v2119_v59  ;;  %v2220_v44 = vadd.f32 %v5241_v28, %v2088_v27  ;;  %v7260_v47 = vld [vmem:[#allocation63_spill] sm:$0xff]  ;;  %v7264_v48 = vld [vmem:[#allocation65_spill] sm:$0xff] }
 0x285   :  { %v2196_v30 = vadd.f32 %v2195_v42, %v2066_v7  ;;  %v1974_v7 = vadd.f32 %v1973_v9, %v7254_v54  ;;  %v5498_v2 = vadd.f32 %v7257_v33, %v7256_v20  ;;  %v1948_v0 = vadd.f32 %v1947_v57, %v5468_v34  ;;  %v7261_v59 = vld [vmem:[#allocation91_spill] sm:$0xff]  ;;  %v7262_v57 = vld [vmem:[#allocation58_spill] sm:$0xff] }
 0x286   :  { %v1961_v42 = vadd.f32 %v1960_v52, %v7255_v21  ;;  %v2211_v51 = vadd.f32 %v2210_v25, %v2080_v39  ;;  %v2089_v28 = vmul.f32 %v7243_v63, %v7243_v63  ;;  %v5511_v52 = vadd.f32 %v5189_v43, %v5159_v5  ;;  %v7263_v5 = vld [vmem:[#allocation72_spill] sm:$0xff] }
 0x287   :  { %1933 = vadd.xlane.f32.xlu1 %v1932_v18  ;;  %2197 = vadd.xlane.f32.xlu0 %v2196_v30  ;;  %v7259_v18 = vld [vmem:[#allocation49_spill] sm:$0xff]  ;;  %v1975_v9 = vadd.f32 %v1974_v7, %v7260_v47  ;;  %v2104_v39 = vmul.f32 %v7252_v6, %v7252_v6  ;;  %v2121_v7 = vmul.f32 %v7262_v57, %v7262_v57 }
 0x288   :  { %v1857_v12 = vpop.f32.mrf.mxu2  ;;  %v2120_v30 = vmul.f32 %v7259_v18, %v7259_v18  ;;  %v1962_v27 = vadd.f32 %v1961_v42, %v7261_v59  ;;  %v1990_v25 = vadd.f32 %v1989_v62, %v7259_v18  ;;  %v2090_v42 = vmul.f32 %v7248_v40, %v7248_v40  ;;  %v1804_v18 = vpop.f32.mrf.mxu3 }
 0x289   :  { %v5500_v22 = vadd.f32 %v1857_v12, %v1828_v46  ;;  %v2212_v46 = vadd.f32 %v2211_v51, %v2081_v56  ;;  %v1830_v20 = vpop.f32.mrf.mxu0  ;;  %v1976_v43 = vadd.f32 %v1975_v9, %v7263_v5  ;;  %v5525_v34 = vadd.f32 %v1801_v26, %v1772_v50 }
 0x28a   :  { %v2254_v51 = vadd.f32 %v2253_v36, %v2120_v30  ;;  %v2221_v6 = vadd.f32 %v2220_v44, %v2089_v28  ;;  %v2105_v62 = vmul.f32 %v7254_v54, %v7254_v54  ;;  %v2122_v13 = vmul.f32 %v7264_v48, %v7264_v48  ;;  %v7266_v44 = vld [vmem:[#allocation74_spill] sm:$0xff] }
 0x28b   :  { %7258 = vst [vmem:[#allocation104_spill] sm:$0xff] %v5500_v22  ;;  %v1949_v33 = vadd.f32 %v1948_v0, %v5500_v22  ;;  %v2082_v12 = vmul.f32 %v5500_v22, %v5500_v22  ;;  %v1963_v0 = vadd.f32 %v1962_v27, %v5498_v2  ;;  %v1775_v22 = vpop.f32.mrf.mxu1  ;;  %v1991_v53 = vadd.f32 %v1990_v25, %v7262_v57  ;;  %v7265_v27 = vld [vmem:[#allocation78_spill] sm:$0xff]  ;;  %v7268_v25 = vld [vmem:[#allocation109_spill] sm:$0xff] }
 0x28c   :  { %v2091_v9 = vmul.f32 %v7251_v15, %v7251_v15  ;;  %v1977_v50 = vadd.f32 %v1976_v43, %v7265_v27  ;;  %v2222_v36 = vadd.f32 %v2221_v6, %v2090_v42  ;;  %v2123_v30 = vmul.f32 %v7266_v44, %v7266_v44  ;;  %v7269_v57 = vld [vmem:[#allocation110_spill] sm:$0xff] }
 0x28d   :  { %1950 = vadd.xlane.f32.xlu2 %v1949_v33  ;;  %v2213_v56 = vadd.f32 %v2212_v46, %v2082_v12  ;;  %v1964_v26 = vadd.f32 %v1963_v0, %v5511_v52  ;;  %v2255_v33 = vadd.f32 %v2254_v51, %v2121_v7  ;;  %v2092_v28 = vmul.f32 %v7253_v35, %v7253_v35  ;;  %v7267_v46 = vld [vmem:[#allocation87_spill] sm:$0xff]  ;;  %v7271_v51 = vld [vmem:[#allocation94_spill] sm:$0xff] }
 0x28e   :  { %v1978_v54 = vadd.f32 %v1977_v50, %v7267_v46  ;;  %v5543_v40 = vadd.f32 %v7269_v57, %v7268_v25  ;;  %v2237_v0 = vadd.f32 %v2236_v60, %v2104_v39  ;;  %v2106_v6 = vmul.f32 %v7260_v47, %v7260_v47  ;;  %v7277_v25 = vld [vmem:[#allocation114_spill] sm:$0xff] }
 0x28f   :  { %2214 = vadd.xlane.f32.xlu0 %v2213_v56  ;;  %v1965_v43 = vadd.f32 %v1964_v26, %v5525_v34  ;;  %v1992_v7 = vadd.f32 %v1991_v53, %v7264_v48  ;;  %v2256_v42 = vadd.f32 %v2255_v33, %v2122_v13  ;;  %v2223_v56 = vadd.f32 %v2222_v36, %v2091_v9  ;;  %v7273_v26 = vld [vmem:[#allocation80_spill] sm:$0xff]  ;;  %v7276_v36 = vld [vmem:[#allocation113_spill] sm:$0xff] }
 0x290   :  { %v1859_v12 = vpop.f32.mrf.mxu2  ;;  %7270 = vst [vmem:[#allocation107_spill] sm:$0xff] %v5543_v40  ;;  %v1979_v35 = vadd.f32 %v1978_v54, %v7271_v51  ;;  %v5554_v50 = vadd.f32 %v5234_v24, %v5197_v58  ;;  %v2124_v60 = vmul.f32 %v7273_v26, %v7273_v26  ;;  %v2093_v39 = vmul.f32 %v7255_v21, %v7255_v21  ;;  %v7275_v24 = vld [vmem:[#allocation89_spill] sm:$0xff] }
 0x291   :  { %v5545_v15 = vadd.f32 %v1859_v12, %v1830_v20  ;;  %v2238_v20 = vadd.f32 %v2237_v0, %v2105_v62  ;;  %v1993_v12 = vadd.f32 %v1992_v7, %v7266_v44  ;;  %v2257_v53 = vadd.f32 %v2256_v42, %v2123_v30  ;;  %v1833_v0 = vpop.f32.mrf.mxu0 }
 0x292   :  { %7272 = vst [vmem:[#allocation73_spill] sm:$0xff] %v5554_v50  ;;  %v2224_v13 = vadd.f32 %v2223_v56, %v2092_v28  ;;  %v1980_v9 = vadd.f32 %v1979_v35, %v5543_v40  ;;  %v5563_v54 = vadd.f32 %v1804_v18, %v1775_v22  ;;  %v2125_v62 = vmul.f32 %v7275_v24, %v7275_v24  ;;  %v7278_v56 = vld [vmem:[#allocation97_spill] sm:$0xff] }
 0x293   :  { %v1966_v57 = vadd.f32 %v1965_v43, %v5545_v15  ;;  %v1994_v58 = vadd.f32 %v1993_v12, %v7273_v26  ;;  %v2094_v33 = vmul.f32 %v7261_v59, %v7261_v59  ;;  %v5572_v43 = vadd.f32 %v7277_v25, %v7276_v36  ;;  %v1777_v18 = vpop.f32.mrf.mxu1  ;;  %v1806_v12 = vpop.f32.mrf.mxu3 }
 0x294   :  { %7274 = vst [vmem:[#allocation81_spill] sm:$0xff] %v5563_v54  ;;  %v2239_v30 = vadd.f32 %v2238_v20, %v2106_v6  ;;  %v2107_v35 = vmul.f32 %v7263_v5, %v7263_v5  ;;  %v1981_v22 = vadd.f32 %v1980_v9, %v5554_v50  ;;  %v2258_v28 = vadd.f32 %v2257_v53, %v2124_v60 }
 0x295   :  { %1967 = vadd.xlane.f32.xlu2 %v1966_v57  ;;  %v2225_v7 = vadd.f32 %v2224_v13, %v2093_v39  ;;  %v1995_v42 = vadd.f32 %v1994_v58, %v7275_v24  ;;  %v2126_v57 = vmul.f32 %v7278_v56, %v7278_v56  ;;  %v2095_v36 = vmul.f32 %v5498_v2, %v5498_v2 }
 0x296   :  { %v5584_v6 = vadd.f32 %v5284_v3, %v5239_v19  ;;  %v1982_v9 = vadd.f32 %v1981_v22, %v5563_v54  ;;  %v2108_v60 = vmul.f32 %v7265_v27, %v7265_v27  ;;  %v2259_v39 = vadd.f32 %v2258_v28, %v2125_v62 }
 0x297   :  { %v2226_v53 = vadd.f32 %v2225_v7, %v2094_v33  ;;  %v2127_v13 = vmul.f32 %v5572_v43, %v5572_v43  ;;  %v1996_v58 = vadd.f32 %v1995_v42, %v7278_v56  ;;  %v2096_v25 = vmul.f32 %v5511_v52, %v5511_v52 }
 0x298   :  { %v1862_v47 = vpop.f32.mrf.mxu2  ;;  %7279 = vst [vmem:[#allocation98_spill] sm:$0xff] %v5584_v6  ;;  %v5596_v5 = vadd.f32 %v1806_v12, %v1777_v18  ;;  %v2240_v3 = vadd.f32 %v2239_v30, %v2107_v35  ;;  %v2128_v33 = vmul.f32 %v5584_v6, %v5584_v6  ;;  %v2097_v28 = vmul.f32 %v5525_v34, %v5525_v34 }
 0x299   :  { %v5586_v20 = vadd.f32 %v1862_v47, %v1833_v0  ;;  %v2109_v47 = vmul.f32 %v7267_v46, %v7267_v46  ;;  %v2260_v0 = vadd.f32 %v2259_v39, %v2126_v57  ;;  %v2227_v22 = vadd.f32 %v2226_v53, %v2095_v36  ;;  %v1835_v39 = vpop.f32.mrf.mxu0 }
 0x29a   :  { %7281 = vst [vmem:[#allocation88_spill] sm:$0xff] %v5596_v5  ;;  %v1997_v62 = vadd.f32 %v1996_v58, %v5572_v43  ;;  %v2241_v7 = vadd.f32 %v2240_v3, %v2108_v60  ;;  %v2110_v18 = vmul.f32 %v7271_v51, %v7271_v51  ;;  %v2129_v35 = vmul.f32 %v5596_v5, %v5596_v5 }
 0x29b   :  { %7280 = vst [vmem:[#allocation99_spill] sm:$0xff] %v5586_v20  ;;  %v1983_v19 = vadd.f32 %v1982_v9, %v5586_v20  ;;  %v2261_v42 = vadd.f32 %v2260_v0, %v2127_v13  ;;  %v2098_v57 = vmul.f32 %v5545_v15, %v5545_v15  ;;  %v2228_v12 = vadd.f32 %v2227_v22, %v2096_v25 }
 0x29c   :  { %v1998_v30 = vadd.f32 %v1997_v62, %v5584_v6  ;;  %v2242_v36 = vadd.f32 %v2241_v7, %v2109_v47  ;;  %v2111_v9 = vmul.f32 %v5543_v40, %v5543_v40  ;;  %v2112_v0 = vmul.f32 %v5554_v50, %v5554_v50 }
 0x29d   :  { %1984 = vadd.xlane.f32.xlu1 %v1983_v19  ;;  %v2229_v13 = vadd.f32 %v2228_v12, %v2097_v28  ;;  %v2262_v19 = vadd.f32 %v2261_v42, %v2128_v33  ;;  %v2113_v7 = vmul.f32 %v5563_v54, %v5563_v54  ;;  %v2114_v33 = vmul.f32 %v5586_v20, %v5586_v20 }
 0x29e   :  { %v1999_v58 = vadd.f32 %v1998_v30, %v5596_v5  ;;  %v2243_v3 = vadd.f32 %v2242_v36, %v2110_v18 }
 0x29f   :  { %v2230_v51 = vadd.f32 %v2229_v13, %v2098_v57  ;;  %v2263_v47 = vadd.f32 %v2262_v19, %v2129_v35 }
 0x2a0   :  { %v1864_v53 = vpop.f32.mrf.mxu2  ;;  %v2244_v22 = vadd.f32 %v2243_v3, %v2111_v9 }
 0x2a1   :  { %v5615_v60 = vadd.f32 %v1864_v53, %v1835_v39  ;;  %v3699_v53 = vmov 8192.0  }
 0x2a2   :  { %v2245_v28 = vadd.f32 %v2244_v22, %v2112_v0  ;;  %3693 = vrcp.f32 %v3699_v53 }
 0x2a3   :  { %7282 = vst [vmem:[#allocation108_spill] sm:$0xff] %v5615_v60  ;;  %v2000_v62 = vadd.f32 %v1999_v58, %v5615_v60  ;;  %v2130_v25 = vmul.f32 %v5615_v60, %v5615_v60 }
 0x2a4   :  { %v2246_v18 = vadd.f32 %v2245_v28, %v2113_v7 }
 0x2a5   :  { %2001 = vadd.xlane.f32.xlu2 %v2000_v62  ;;  %2231 = vadd.xlane.f32.xlu1 %v2230_v51  ;;  %v2264_v30 = vadd.f32 %v2263_v47, %v2130_v25 }
 0x2a6   :  { %v2247_v42 = vadd.f32 %v2246_v18, %v2114_v33 }
 0x2a7   :  { %2265 = vadd.xlane.f32.xlu0 %v2264_v30  ;;  %v3700_v30 = vmov 0  }
 0x2a8   :  { %v3694_v13 = vpop.eup %3693  ;;  %3691 = vset.pattern.permute.xlu2 %v3700_v30  ;;  %3690 = vset.pattern.permute.xlu1 %v3700_v30 }
 0x2a9   :  { %v2280_v3 = vmul.f32 8192.0, %v3694_v13  ;;  %3692 = vset.pattern.permute.xlu0 %v3700_v30  ;;  %vm2284_vm1 = vweird.f32 %v3694_v13 }
 0x2ab   :  { %v2281_v62 = vsub.f32 1.0, %v2280_v3 }
 0x2ad   :  { %2248 = vadd.xlane.f32.xlu2 %v2247_v42  ;;  %v2282_v22 = vmul.f32 %v3694_v13, %v2281_v62 }
 0x2af   :  { %v2283_v33 = vadd.f32 %v3694_v13, %v2282_v22 }
 0x2b1   :  { %v2285_v3 = vsel %vm2284_vm1, %v3694_v13, %v2283_v33 }
 0x2e0   :  { %v1883_v57 = vpop.xlane.xlu0 %1882 }
 0x2e8   :  { %v2147_v36 = vpop.xlane.xlu0 %2146 }
 0x2ea   :  { %v2164_v12 = vpop.xlane.xlu1 %2163 }
 0x2f0   :  { %v1900_v9 = vpop.xlane.xlu0 %1899 }
 0x2f2   :  { %v2181_v39 = vpop.xlane.xlu2 %2180  ;;  %v1917_v35 = vpop.xlane.xlu1 %1916 }
 0x2f3   :  { %v2267_v28 = vadd.f32 %v1917_v35, %v1883_v57 }
 0x2fa   :  { %v1934_v51 = vpop.xlane.xlu1 %1933  ;;  %v2198_v19 = vpop.xlane.xlu0 %2197 }
 0x2fb   :  { %v2268_v7 = vadd.f32 %v1934_v51, %v1900_v9  ;;  %v2274_v18 = vadd.f32 %v2198_v19, %v2164_v12  ;;  %v2273_v9 = vadd.f32 %v2181_v39, %v2147_v36 }
 0x300   :  { %v1951_v58 = vpop.xlane.xlu2 %1950 }
 0x301   :  { %v2269_v54 = vadd.f32 %v2267_v28, %v1951_v58 }
 0x302   :  { %v2215_v0 = vpop.xlane.xlu0 %2214 }
 0x303   :  { %v2275_v6 = vadd.f32 %v2273_v9, %v2215_v0  ;;  %v2323_v9 = vld [vmem:[%s6928_s3 + $0x8] sm:$0xff] }
 0x308   :  { %v1968_v25 = vpop.xlane.xlu2 %1967 }
 0x309   :  { %v2270_v42 = vadd.f32 %v2268_v7, %v1968_v25 }
 0x310   :  { %v1985_v47 = vpop.xlane.xlu1 %1984 }
 0x311   :  { %v2271_v27 = vadd.f32 %v2269_v54, %v1985_v47 }
 0x313   :  { %v2286_v22 = vmul.f32 %v2285_v3, %v2271_v27  ;;  %v2297_v27 = vld [vmem:[%s6927_s2 + $0x8] sm:$0xff] }
 0x315   :  { %v2290_v19 = vmul.f32 %v2286_v22, %v2286_v22 }
 0x318   :  { %v2002_v53 = vpop.xlane.xlu2 %2001  ;;  %v2232_v20 = vpop.xlane.xlu1 %2231 }
 0x319   :  { %v2272_v50 = vadd.f32 %v2270_v42, %v2002_v53  ;;  %v2276_v40 = vadd.f32 %v2274_v18, %v2232_v20  ;;  %v2296_v42 = vld [vmem:[%s6927_s2] sm:$0xff] }
 0x31a   :  { %v2266_v46 = vpop.xlane.xlu0 %2265 }
 0x31b   :  { %v2287_v60 = vmul.f32 %v2285_v3, %v2272_v50  ;;  %v2278_v62 = vadd.f32 %v2276_v40, %v2266_v46 }
 0x31d   :  { %v2291_v51 = vmul.f32 %v2287_v60, %v2287_v60  ;;  %v2289_v5 = vmul.f32 %v2285_v3, %v2278_v62 }
 0x31f   :  { %v2293_v30 = vsub.f32 %v2289_v5, %v2291_v51 }
 0x320   :  { %v2249_v57 = vpop.xlane.xlu2 %2248 }
 0x321   :  { %v2295_v12 = vmax.f32 %v2293_v30, 0.0  ;;  %v2277_v35 = vadd.f32 %v2275_v6, %v2249_v57  ;;  %v2322_v30 = vld [vmem:[%s6928_s3] sm:$0xff] }
 0x323   :  { %v2299_v25 = vadd.f32 1e-05, %v2295_v12  ;;  %v2288_v7 = vmul.f32 %v2285_v3, %v2277_v35 }
 0x325   :  { %3695 = vrsqrt.f32 %v2299_v25  ;;  %v2292_v58 = vsub.f32 %v2288_v7, %v2290_v19  ;;  %vm2316_vm3 = vweird.f32 %v2299_v25  ;;  %v7284_v7 = vld [vmem:[#allocation5_spill] sm:$0xff] }
 0x327   :  { %v2294_v20 = vmax.f32 %v2292_v58, 0.0 }
 0x329   :  { %v2298_v13 = vadd.f32 1e-05, %v2294_v20  ;;  %v7285_v20 = vld [vmem:[#allocation16_spill] sm:$0xff] }
 0x32b   :  { %v3696_v33 = vpop.eup %3695  ;;  %3697 = vrsqrt.f32 %v2298_v13  ;;  %vm2306_vm6 = vweird.f32 %v2298_v13 }
 0x32c   :  { %v2311_v50 = vmul.f32 %v3696_v33, %v2299_v25  ;;  %vm2317_vm2 = vweird.f32 %v3696_v33  ;;  %v7283_v25 = vld [vmem:[#allocation4_spill] sm:$0xff] }
 0x32d   :  { %vm2318_vm4 = vmor %vm2316_vm3, %vm2317_vm2 }
 0x32e   :  { %v2312_v40 = vmul.f32 %v3696_v33, %v2311_v50 }
 0x330   :  { %v2313_v46 = vmul.f32 0.5, %v2312_v40 }
 0x331   :  { %v3698_v54 = vpop.eup %3697 }
 0x332   :  { %v2301_v36 = vmul.f32 %v3698_v54, %v2298_v13  ;;  %v2314_v39 = vsub.f32 1.5, %v2313_v46  ;;  %vm2307_vm5 = vweird.f32 %v3698_v54  ;;  %v7286_v46 = vld [vmem:[#allocation53_spill] sm:$0xff] }
 0x333   :  { %vm2308_vm7 = vmor %vm2306_vm6, %vm2307_vm5 }
 0x334   :  { %v2302_v5 = vmul.f32 %v3698_v54, %v2301_v36  ;;  %v2315_v6 = vmul.f32 %v3696_v33, %v2314_v39  ;;  %v7287_v36 = vld [vmem:[#allocation62_spill] sm:$0xff]  ;;  %v7288_v39 = vld [vmem:[#allocation69_spill] sm:$0xff] }
 0x336   :  { %v2319_v47 = vsel %vm2318_vm4, %v3696_v33, %v2315_v6  ;;  %v2303_v0 = vmul.f32 0.5, %v2302_v5 }
 0x337   :  { %v2321_v28 = vmul.f32 %v2319_v47, %v2297_v27  ;;  %v7289_v47 = vld [vmem:[#allocation8_spill] sm:$0xff] }
 0x338   :  { %v2304_v18 = vsub.f32 1.5, %v2303_v0  ;;  %v7290_v0 = vld [vmem:[#allocation9_spill] sm:$0xff] }
 0x339   :  { %2335 = vperm.xlu2 %3691, %v2321_v28   ;;  %v2325_v3 = vmul.f32 %v2321_v28, %v2287_v60  ;;  %v7291_v28 = vld [vmem:[#allocation21_spill] sm:$0xff] }
 0x33a   :  { %v2305_v53 = vmul.f32 %v3698_v54, %v2304_v18  ;;  %v7292_v18 = vld [vmem:[#allocation27_spill] sm:$0xff] }
 0x33b   :  { %v2327_v57 = vsub.f32 %v2323_v9, %v2325_v3 }
 0x33c   :  { %v2309_v62 = vsel %vm2308_vm7, %v3698_v54, %v2305_v53  ;;  %v7294_v53 = vld [vmem:[#allocation41_spill] sm:$0xff] }
 0x33d   :  { %v2320_v51 = vmul.f32 %v2309_v62, %v2296_v42  ;;  %v7293_v42 = vld [vmem:[#allocation35_spill] sm:$0xff]  ;;  %v7295_v62 = vld [vmem:[#allocation50_spill] sm:$0xff] }
 0x33f   :  { %2330 = vperm.xlu1 %3690, %v2320_v51   ;;  %v2324_v12 = vmul.f32 %v2320_v51, %v2286_v22  ;;  %v7296_v51 = vld [vmem:[#allocation57_spill] sm:$0xff] }
 0x341   :  { %2473 = vperm.xlu2 %3691, %v2327_v57   ;;  %v2326_v35 = vsub.f32 %v2322_v30, %v2324_v12 }
 0x343   :  { %2468 = vperm.xlu0 %3692, %v2326_v35  }
 0x393   :  { %v5639_v19 = vpop.permute.xlu2 %2335 }
 0x394   :  { %v5643_v60 = vmul.f32 %v5639_v19, %v7283_v25  ;;  %v5647_v58 = vmul.f32 %v5639_v19, %v7284_v7  ;;  %v5651_v13 = vmul.f32 %v5639_v19, %v7285_v20  ;;  %v5655_v22 = vmul.f32 %v5639_v19, %v4446_v29  ;;  %v7297_v20 = vld [vmem:[#allocation12_spill] sm:$0xff] }
 0x395   :  { %v5659_v33 = vmul.f32 %v5639_v19, %v4525_v4  ;;  %v5663_v50 = vmul.f32 %v5639_v19, %v4610_v17  ;;  %v5667_v40 = vmul.f32 %v5639_v19, %v7194_v14  ;;  %v5671_v54 = vmul.f32 %v5639_v19, %v7286_v46  ;;  %v7298_v46 = vld [vmem:[#allocation14_spill] sm:$0xff] }
 0x396   :  { %v5675_v29 = vmul.f32 %v5639_v19, %v7287_v36  ;;  %v5679_v4 = vmul.f32 %v5639_v19, %v7288_v39  ;;  %v5683_v17 = vmul.f32 %v5639_v19, %v4987_v41  ;;  %v5687_v14 = vmul.f32 %v5639_v19, %v7213_v8  ;;  %v7299_v36 = vld [vmem:[#allocation24_spill] sm:$0xff]  ;;  %v7300_v39 = vld [vmem:[#allocation31_spill] sm:$0xff] }
 0x397   :  { %v5691_v5 = vmul.f32 %v5639_v19, %v5325_v38  ;;  %v5695_v27 = vmul.f32 %v5639_v19, %v5336_v16  ;;  %v5699_v6 = vmul.f32 %v5639_v19, %v5350_v55  ;;  %v5703_v41 = vmul.f32 %v5639_v19, %v5382_v31 }
 0x398   :  { %v5707_v8 = vmul.f32 %v5639_v19, %v7289_v47  ;;  %v5711_v38 = vmul.f32 %v5639_v19, %v7290_v0  ;;  %v5715_v16 = vmul.f32 %v5639_v19, %v7291_v28  ;;  %v5719_v55 = vmul.f32 %v5639_v19, %v7292_v18  ;;  %v7301_v47 = vld [vmem:[#allocation38_spill] sm:$0xff]  ;;  %v7302_v18 = vld [vmem:[#allocation61_spill] sm:$0xff] }
 0x399   :  { %v5723_v31 = vmul.f32 %v5639_v19, %v7293_v42  ;;  %v5727_v3 = vmul.f32 %v5639_v19, %v7294_v53  ;;  %v5731_v9 = vmul.f32 %v5639_v19, %v7295_v62  ;;  %v5735_v30 = vmul.f32 %v5639_v19, %v7296_v51  ;;  %v7303_v53 = vld [vmem:[#allocation70_spill] sm:$0xff]  ;;  %v7304_v51 = vld [vmem:[#allocation77_spill] sm:$0xff] }
 0x39a   :  { %v5739_v57 = vmul.f32 %v5639_v19, %v7219_v45  ;;  %v5743_v12 = vmul.f32 %v5639_v19, %v7229_v61  ;;  %v5747_v35 = vmul.f32 %v5639_v19, %v7230_v37  ;;  %v5751_v25 = vmul.f32 %v5639_v19, %v7234_v49 }
 0x39b   :  { %v5755_v7 = vmul.f32 %v5639_v19, %v5406_v32  ;;  %v5759_v45 = vmul.f32 %v5639_v19, %v5419_v23  ;;  %v5763_v61 = vmul.f32 %v5639_v19, %v5428_v1  ;;  %v5767_v37 = vmul.f32 %v5639_v19, %v5462_v11 }
 0x39c   :  { %v5771_v49 = vmul.f32 %v5639_v19, %v7297_v20  ;;  %v5775_v32 = vmul.f32 %v5639_v19, %v7298_v46  ;;  %v5779_v23 = vmul.f32 %v5639_v19, %v7299_v36  ;;  %v5783_v1 = vmul.f32 %v5639_v19, %v7300_v39 }
 0x39d   :  { %v5787_v11 = vmul.f32 %v5639_v19, %v7301_v47  ;;  %v5791_v0 = vmul.f32 %v5639_v19, %v7199_v10  ;;  %v5795_v28 = vmul.f32 %v5639_v19, %v7243_v63  ;;  %v5799_v42 = vmul.f32 %v5639_v19, %v7302_v18  ;;  %v7307_v47 = vld [vmem:[#allocation18_spill] sm:$0xff]  ;;  %v7309_v18 = vld [vmem:[#allocation20_spill] sm:$0xff] }
 0x39e   :  { %v5803_v62 = vmul.f32 %v5639_v19, %v7303_v53  ;;  %v5807_v20 = vmul.f32 %v5639_v19, %v7304_v51  ;;  %v5811_v10 = vmul.f32 %v5639_v19, %v7255_v21  ;;  %v5815_v63 = vmul.f32 %v5639_v19, %v7261_v59  ;;  %v7310_v53 = vld [vmem:[#allocation28_spill] sm:$0xff]  ;;  %v7312_v51 = vld [vmem:[#allocation34_spill] sm:$0xff] }
 0x39f   :  { %v5819_v46 = vmul.f32 %v5639_v19, %v5498_v2  ;;  %v5823_v36 = vmul.f32 %v5639_v19, %v5511_v52  ;;  %v5827_v39 = vmul.f32 %v5639_v19, %v5525_v34  ;;  %v5831_v21 = vmul.f32 %v5639_v19, %v5545_v15 }
 0x3a0   :  { %v5835_v59 = vmul.f32 %v5639_v19, %v7307_v47  ;;  %v5839_v2 = vmul.f32 %v5639_v19, %v7309_v18  ;;  %v5843_v52 = vmul.f32 %v5639_v19, %v7310_v53  ;;  %v5847_v34 = vmul.f32 %v5639_v19, %v7312_v51 }
 0x3a1   :  { %7305 = vst [vmem:[#allocation111_spill] sm:$0xff] %v5827_v39  ;;  %v7313_v39 = vld [vmem:[#allocation42_spill] sm:$0xff]  ;;  %v5863_v53 = vmul.f32 %v5639_v19, %v7264_v48  ;;  %v5869_v51 = vmul.f32 %v5639_v19, %v7266_v44  ;;  %v5885_v48 = vmul.f32 %v5639_v19, %v5572_v43 }
 0x3a2   :  { %7306 = vst [vmem:[#allocation101_spill] sm:$0xff] %v5831_v21  ;;  %v5851_v15 = vmul.f32 %v5639_v19, %v7313_v39  ;;  %v7314_v21 = vld [vmem:[#allocation49_spill] sm:$0xff]  ;;  %v5873_v39 = vmul.f32 %v5639_v19, %v7273_v26 }
 0x3a3   :  { %7308 = vst [vmem:[#allocation102_spill] sm:$0xff] %v5835_v59  ;;  %v5855_v47 = vmul.f32 %v5639_v19, %v7314_v21  ;;  %v7315_v59 = vld [vmem:[#allocation58_spill] sm:$0xff]  ;;  %v5877_v21 = vmul.f32 %v5639_v19, %v7275_v24 }
 0x3a4   :  { %7311 = vst [vmem:[#allocation54_spill] sm:$0xff] %v5843_v52  ;;  %v5859_v18 = vmul.f32 %v5639_v19, %v7315_v59  ;;  %v5865_v52 = vpop.permute.xlu2 %2473  ;;  %v5881_v59 = vmul.f32 %v5639_v19, %v7278_v56 }
 0x3a5   :  { %7316 = vst [vmem:[#allocation112_spill] sm:$0xff] %v5863_v53  ;;  %v7319_v53 = vld [vmem:[#allocation98_spill] sm:$0xff]  ;;  %v5901_v56 = vadd.f32 %v5865_v52, %v5643_v60  ;;  %v5905_v43 = vadd.f32 %v5865_v52, %v5647_v58  ;;  %v5921_v60 = vadd.f32 %v5865_v52, %v5663_v50  ;;  %v5925_v58 = vadd.f32 %v5865_v52, %v5667_v40 }
 0x3a6   :  { %7317 = vst [vmem:[#allocation115_spill] sm:$0xff] %v5869_v51  ;;  %v5889_v44 = vmul.f32 %v5639_v19, %v7319_v53  ;;  %v7320_v51 = vld [vmem:[#allocation88_spill] sm:$0xff]  ;;  %v5909_v53 = vadd.f32 %v5865_v52, %v5651_v13  ;;  %v5929_v13 = vadd.f32 %v5865_v52, %v5671_v54  ;;  %v5941_v50 = vadd.f32 %v5865_v52, %v5683_v17 }
 0x3a7   :  { %7318 = vst [vmem:[#allocation85_spill] sm:$0xff] %v5873_v39  ;;  %v5893_v26 = vmul.f32 %v5639_v19, %v7320_v51  ;;  %v7321_v39 = vld [vmem:[#allocation108_spill] sm:$0xff]  ;;  %v5913_v51 = vadd.f32 %v5865_v52, %v5655_v22  ;;  %v5933_v22 = vadd.f32 %v5865_v52, %v5675_v29  ;;  %v5945_v40 = vadd.f32 %v5865_v52, %v5687_v14 }
 0x3a8   :  { %v5897_v24 = vmul.f32 %v5639_v19, %v7321_v39  ;;  %v5917_v19 = vadd.f32 %v5865_v52, %v5659_v33  ;;  %v5937_v33 = vadd.f32 %v5865_v52, %v5679_v4  ;;  %v5949_v54 = vadd.f32 %v5865_v52, %v5691_v5 }
 0x3a9   :  { %v5953_v29 = vadd.f32 %v5865_v52, %v5695_v27  ;;  %v5957_v4 = vadd.f32 %v5865_v52, %v5699_v6  ;;  %v5961_v17 = vadd.f32 %v5865_v52, %v5703_v41  ;;  %v5965_v14 = vadd.f32 %v5865_v52, %v5707_v8 }
 0x3aa   :  { %v5969_v5 = vadd.f32 %v5865_v52, %v5711_v38  ;;  %v5973_v27 = vadd.f32 %v5865_v52, %v5715_v16  ;;  %v5977_v6 = vadd.f32 %v5865_v52, %v5719_v55  ;;  %v5981_v41 = vadd.f32 %v5865_v52, %v5723_v31 }
 0x3ab   :  { %v5985_v8 = vadd.f32 %v5865_v52, %v5727_v3  ;;  %v5989_v38 = vadd.f32 %v5865_v52, %v5731_v9  ;;  %v5993_v16 = vadd.f32 %v5865_v52, %v5735_v30  ;;  %v5997_v55 = vadd.f32 %v5865_v52, %v5739_v57 }
 0x3ac   :  { %v6001_v31 = vadd.f32 %v5865_v52, %v5743_v12  ;;  %v6005_v3 = vadd.f32 %v5865_v52, %v5747_v35  ;;  %v6009_v9 = vadd.f32 %v5865_v52, %v5751_v25  ;;  %v6013_v30 = vadd.f32 %v5865_v52, %v5755_v7 }
 0x3ad   :  { %v6017_v57 = vadd.f32 %v5865_v52, %v5759_v45  ;;  %v6021_v12 = vadd.f32 %v5865_v52, %v5763_v61  ;;  %v6025_v35 = vadd.f32 %v5865_v52, %v5767_v37  ;;  %v6029_v25 = vadd.f32 %v5865_v52, %v5771_v49 }
 0x3ae   :  { %v6033_v7 = vadd.f32 %v5865_v52, %v5775_v32  ;;  %v6037_v45 = vadd.f32 %v5865_v52, %v5779_v23  ;;  %v6041_v61 = vadd.f32 %v5865_v52, %v5783_v1  ;;  %v6045_v37 = vadd.f32 %v5865_v52, %v5787_v11 }
 0x3af   :  { %v6049_v49 = vadd.f32 %v5865_v52, %v5791_v0  ;;  %v6053_v32 = vadd.f32 %v5865_v52, %v5795_v28  ;;  %v6057_v23 = vadd.f32 %v5865_v52, %v5799_v42  ;;  %v6061_v1 = vadd.f32 %v5865_v52, %v5803_v62 }
 0x3b0   :  { %v6065_v11 = vadd.f32 %v5865_v52, %v5807_v20  ;;  %v6069_v0 = vadd.f32 %v5865_v52, %v5811_v10  ;;  %v6073_v28 = vadd.f32 %v5865_v52, %v5815_v63  ;;  %v6077_v42 = vadd.f32 %v5865_v52, %v5819_v46 }
 0x3b1   :  { %v6081_v62 = vadd.f32 %v5865_v52, %v5823_v36  ;;  %v2620_v39 = vmax.f32 %v5901_v56, 0.0  ;;  %v2621_v20 = vmax.f32 %v5905_v43, 0.0  ;;  %v2623_v10 = vmax.f32 %v5913_v51, 0.0 }
 0x3b2   :  { %7322 = vst [vmem:[#allocation105_spill] sm:$0xff] %v6065_v11  ;;  %v2622_v11 = vmax.f32 %v5909_v53, 0.0  ;;  %v2625_v63 = vmax.f32 %v5921_v60, 0.0  ;;  %v2626_v56 = vmax.f32 %v5925_v58, 0.0  ;;  %v2627_v43 = vmax.f32 %v5929_v13, 0.0 }
 0x3b3   :  { %7323 = vst [vmem:[#allocation106_spill] sm:$0xff] %v6069_v0  ;;  %v2624_v0 = vmax.f32 %v5917_v19, 0.0  ;;  %v6105_v51 = vadd.f32 %v5865_v52, %v5839_v2  ;;  %v2628_v19 = vmax.f32 %v5933_v22, 0.0  ;;  %v2629_v60 = vmax.f32 %v5937_v33, 0.0 }
 0x3b4   :  { %7324 = vst [vmem:[#allocation91_spill] sm:$0xff] %v6073_v28  ;;  %v7327_v28 = vld [vmem:[#allocation111_spill] sm:$0xff]  ;;  %v2630_v58 = vmax.f32 %v5941_v50, 0.0  ;;  %v2631_v13 = vmax.f32 %v5945_v40, 0.0  ;;  %v6119_v22 = vadd.f32 %v5865_v52, %v5847_v34  ;;  %v2634_v33 = vmax.f32 %v5957_v4, 0.0 }
 0x3b5   :  { %7325 = vst [vmem:[#allocation65_spill] sm:$0xff] %v6077_v42  ;;  %v6091_v46 = vadd.f32 %v5865_v52, %v7327_v28  ;;  %v7329_v42 = vld [vmem:[#allocation101_spill] sm:$0xff]  ;;  %v7333_v28 = vld [vmem:[#allocation54_spill] sm:$0xff]  ;;  %v2742_v2 = vpack.c.bf16 %v2625_v63, %v2624_v0  ;;  %v6125_v50 = vadd.f32 %v5865_v52, %v5851_v15  ;;  %v2652_v40 = vmax.f32 %v5965_v14, 0.0 }
 0x3b6   :  { %7326 = vst [vmem:[#allocation74_spill] sm:$0xff] %v6081_v62  ;;  %v6095_v36 = vadd.f32 %v5865_v52, %v7329_v42  ;;  %v7331_v62 = vld [vmem:[#allocation102_spill] sm:$0xff]  ;;  %v6111_v42 = vadd.f32 %v5865_v52, %v7333_v28  ;;  %v2635_v28 = vmax.f32 %v5961_v17, 0.0  ;;  %v6134_v34 = vadd.f32 %v5865_v52, %v5855_v47  ;;  %v7335_v47 = vld [vmem:[#allocation112_spill] sm:$0xff] }
 0x3b7   :  { %7328 = vst [vmem:[#allocation109_spill] sm:$0xff] %v6091_v46  ;;  %v6101_v53 = vadd.f32 %v5865_v52, %v7331_v62  ;;  %v2633_v62 = vmax.f32 %v5953_v29, 0.0  ;;  %v2741_v46 = vpack.c.bf16 %v2623_v10, %v2622_v11  ;;  %v2744_v29 = vpack.c.bf16 %v2629_v60, %v2628_v19 }
 0x3b8   :  { %7330 = vst [vmem:[#allocation110_spill] sm:$0xff] %v6095_v36  ;;  %v2632_v36 = vmax.f32 %v5949_v54, 0.0  ;;  %v2653_v54 = vmax.f32 %v5969_v5, 0.0  ;;  %v2654_v4 = vmax.f32 %v5973_v27, 0.0  ;;  %v2655_v17 = vmax.f32 %v5977_v6, 0.0 }
 0x3b9   :  { %7332 = vst [vmem:[#allocation80_spill] sm:$0xff] %v6101_v53  ;;  %v2740_v53 = vpack.c.bf16 %v2621_v20, %v2620_v39  ;;  %v2745_v11 = vpack.c.bf16 %v2631_v13, %v2630_v58  ;;  %v6143_v15 = vadd.f32 %v5865_v52, %v5859_v18  ;;  %v2656_v14 = vmax.f32 %v5981_v41, 0.0  ;;  %v7336_v18 = vld [vmem:[#allocation115_spill] sm:$0xff] }
 0x3ba   :  { %7334 = vst [vmem:[#allocation89_spill] sm:$0xff] %v6111_v42  ;;  %v2743_v42 = vpack.c.bf16 %v2627_v43, %v2626_v56  ;;  %v2657_v5 = vmax.f32 %v5985_v8, 0.0  ;;  %v2746_v0 = vpack.c.bf16 %v2633_v62, %v2632_v36  ;;  %v6152_v27 = vadd.f32 %v5865_v52, %v7335_v47 }
 0x3bb   :  { %2804 = vst [vmem:[%s6929_s4 + $0x40] sm:$0xff] %v2740_v53  ;;  %v2658_v6 = vmax.f32 %v5989_v38, 0.0  ;;  %v2659_v39 = vmax.f32 %v5993_v16, 0.0  ;;  %v2747_v20 = vpack.c.bf16 %v2635_v28, %v2634_v33  ;;  %v6161_v41 = vadd.f32 %v5865_v52, %v7336_v18  ;;  %v7337_v38 = vld [vmem:[#allocation85_spill] sm:$0xff] }
 0x3bc   :  { %2805 = vst [vmem:[%s6929_s4 + $0x48] sm:$0xff] %v2741_v46  ;;  %v2660_v8 = vmax.f32 %v5997_v55, 0.0  ;;  %v2661_v10 = vmax.f32 %v6001_v31, 0.0  ;;  %v2756_v63 = vpack.c.bf16 %v2653_v54, %v2652_v40  ;;  %v6170_v16 = vadd.f32 %v5865_v52, %v7337_v38 }
 0x3bd   :  { %2806 = vst [vmem:[%s6929_s4 + $0x50] sm:$0xff] %v2742_v2  ;;  %v2662_v46 = vmax.f32 %v6005_v3, 0.0  ;;  %v2663_v36 = vmax.f32 %v6009_v9, 0.0  ;;  %v2757_v56 = vpack.c.bf16 %v2655_v17, %v2654_v4  ;;  %v6179_v55 = vadd.f32 %v5865_v52, %v5877_v21  ;;  %v7339_v2 = vld [vmem:[#allocation106_spill] sm:$0xff] }
 0x3be   :  { %2807 = vst [vmem:[%s6929_s4 + $0x58] sm:$0xff] %v2743_v42  ;;  %v2664_v31 = vmax.f32 %v6013_v30, 0.0  ;;  %v2665_v43 = vmax.f32 %v6017_v57, 0.0  ;;  %v2758_v53 = vpack.c.bf16 %v2657_v5, %v2656_v14  ;;  %v6188_v3 = vadd.f32 %v5865_v52, %v5881_v59  ;;  %v7342_v40 = vld [vmem:[#allocation74_spill] sm:$0xff] }
 0x3bf   :  { %2808 = vst [vmem:[%s6929_s4 + $0x60] sm:$0xff] %v2744_v29  ;;  %v2666_v9 = vmax.f32 %v6021_v12, 0.0  ;;  %v2667_v19 = vmax.f32 %v6025_v35, 0.0  ;;  %v2759_v60 = vpack.c.bf16 %v2659_v39, %v2658_v6  ;;  %v6197_v21 = vadd.f32 %v5865_v52, %v5885_v48  ;;  %v7344_v17 = vld [vmem:[#allocation110_spill] sm:$0xff] }
 0x3c0   :  { %2809 = vst [vmem:[%s6929_s4 + $0x68] sm:$0xff] %v2745_v11  ;;  %v2684_v30 = vmax.f32 %v6029_v25, 0.0  ;;  %v2685_v57 = vmax.f32 %v6033_v7, 0.0  ;;  %v2760_v42 = vpack.c.bf16 %v2661_v10, %v2660_v8  ;;  %v6206_v59 = vadd.f32 %v5865_v52, %v5889_v44  ;;  %v7345_v14 = vld [vmem:[#allocation80_spill] sm:$0xff] }
 0x3c1   :  { %2810 = vst [vmem:[%s6929_s4 + $0x70] sm:$0xff] %v2746_v0  ;;  %v2686_v12 = vmax.f32 %v6037_v45, 0.0  ;;  %v2687_v35 = vmax.f32 %v6041_v61, 0.0  ;;  %v2761_v58 = vpack.c.bf16 %v2663_v36, %v2662_v46  ;;  %v2602_v48 = vadd.f32 %v5865_v52, %v5893_v26  ;;  %v7346_v6 = vld [vmem:[#allocation89_spill] sm:$0xff] }
 0x3c2   :  { %2811 = vst [vmem:[%s6929_s4 + $0x78] sm:$0xff] %v2747_v20  ;;  %v2688_v25 = vmax.f32 %v6045_v37, 0.0  ;;  %v2689_v7 = vmax.f32 %v6049_v49, 0.0  ;;  %v2762_v13 = vpack.c.bf16 %v2665_v43, %v2664_v31  ;;  %v2603_v44 = vadd.f32 %v5865_v52, %v5897_v24  ;;  %v7338_v37 = vld [vmem:[#allocation105_spill] sm:$0xff]  ;;  %v7340_v52 = vld [vmem:[#allocation91_spill] sm:$0xff] }
 0x3c3   :  { %2820 = vst [vmem:[%s6929_s4 + $0xc0] sm:$0xff] %v2756_v63  ;;  %v2690_v45 = vmax.f32 %v6053_v32, 0.0  ;;  %v2691_v61 = vmax.f32 %v6057_v23, 0.0  ;;  %v2763_v62 = vpack.c.bf16 %v2667_v19, %v2666_v9  ;;  %v2692_v26 = vmax.f32 %v6061_v1, 0.0  ;;  %v7341_v32 = vld [vmem:[#allocation65_spill] sm:$0xff] }
 0x3c4   :  { %2821 = vst [vmem:[%s6929_s4 + $0xc8] sm:$0xff] %v2757_v56  ;;  %v2693_v49 = vmax.f32 %v7338_v37, 0.0  ;;  %v2694_v33 = vmax.f32 %v7339_v2, 0.0  ;;  %v2772_v28 = vpack.c.bf16 %v2685_v57, %v2684_v30  ;;  %v2695_v24 = vmax.f32 %v7340_v52, 0.0  ;;  %v7343_v1 = vld [vmem:[#allocation109_spill] sm:$0xff]  ;;  %v7347_v57 = vld [vmem:[#allocation2_spill] sm:$0xff] }
 0x3c5   :  { %2822 = vst [vmem:[%s6929_s4 + $0xd0] sm:$0xff] %v2758_v53  ;;  %v2696_v23 = vmax.f32 %v7341_v32, 0.0  ;;  %v2697_v54 = vmax.f32 %v7342_v40, 0.0  ;;  %v2773_v29 = vpack.c.bf16 %v2687_v35, %v2686_v12  ;;  %v2698_v4 = vmax.f32 %v7343_v1, 0.0  ;;  %v6279_v53 = vpop.permute.xlu1 %2330  ;;  %v7349_v35 = vld [vmem:[#allocation13_spill] sm:$0xff]  ;;  %v7357_v52 = vld [vmem:[#allocation76_spill] sm:$0xff] }
 0x3c6   :  { %2823 = vst [vmem:[%s6929_s4 + $0xd8] sm:$0xff] %v2759_v60  ;;  %v2699_v11 = vmax.f32 %v7344_v17, 0.0  ;;  %v2716_v5 = vmax.f32 %v7345_v14, 0.0  ;;  %v2774_v0 = vpack.c.bf16 %v2689_v7, %v2688_v25  ;;  %v2717_v47 = vmax.f32 %v6105_v51, 0.0  ;;  %v7351_v7 = vld [vmem:[#allocation30_spill] sm:$0xff] }
 0x3c7   :  { %2824 = vst [vmem:[%s6929_s4 + $0xe0] sm:$0xff] %v2760_v42  ;;  %v2718_v39 = vmax.f32 %v7346_v6, 0.0  ;;  %v2719_v20 = vmax.f32 %v6119_v22, 0.0  ;;  %v2775_v18 = vpack.c.bf16 %v2691_v61, %v2690_v45  ;;  %v2720_v8 = vmax.f32 %v6125_v50, 0.0  ;;  %v7353_v61 = vld [vmem:[#allocation44_spill] sm:$0xff]  ;;  %v7358_v32 = vld [vmem:[#allocation82_spill] sm:$0xff] }
 0x3c8   :  { %2825 = vst [vmem:[%s6929_s4 + $0xe8] sm:$0xff] %v2761_v58  ;;  %v2721_v10 = vmax.f32 %v6134_v34, 0.0  ;;  %v2722_v63 = vmax.f32 %v6143_v15, 0.0  ;;  %v2776_v38 = vpack.c.bf16 %v2693_v49, %v2692_v26  ;;  %v2723_v51 = vmax.f32 %v6152_v27, 0.0  ;;  %v7354_v26 = vld [vmem:[#allocation51_spill] sm:$0xff]  ;;  %v7355_v49 = vld [vmem:[#allocation60_spill] sm:$0xff] }
 0x3c9   :  { %2826 = vst [vmem:[%s6929_s4 + $0xf0] sm:$0xff] %v2762_v13  ;;  %v2724_v22 = vmax.f32 %v6161_v41, 0.0  ;;  %v2725_v46 = vmax.f32 %v6170_v16, 0.0  ;;  %v2777_v36 = vpack.c.bf16 %v2695_v24, %v2694_v33  ;;  %v2726_v50 = vmax.f32 %v6179_v55, 0.0  ;;  %v7356_v33 = vld [vmem:[#allocation67_spill] sm:$0xff]  ;;  %v7359_v40 = vld [vmem:[#allocation46_spill] sm:$0xff] }
 0x3ca   :  { %2827 = vst [vmem:[%s6929_s4 + $0xf8] sm:$0xff] %v2763_v62  ;;  %v2727_v34 = vmax.f32 %v6188_v3, 0.0  ;;  %v2728_v15 = vmax.f32 %v6197_v21, 0.0  ;;  %v2778_v56 = vpack.c.bf16 %v2697_v54, %v2696_v23  ;;  %v2729_v27 = vmax.f32 %v6206_v59, 0.0  ;;  %v7348_v59 = vld [vmem:[#allocation3_spill] sm:$0xff] }
 0x3cb   :  { %2836 = vst [vmem:[%s6929_s4 + $0x140] sm:$0xff] %v2772_v28  ;;  %v2730_v41 = vmax.f32 %v2602_v48, 0.0  ;;  %v2731_v16 = vmax.f32 %v2603_v44, 0.0  ;;  %v2779_v31 = vpack.c.bf16 %v2699_v11, %v2698_v4  ;;  %v2788_v43 = vpack.c.bf16 %v2717_v47, %v2716_v5  ;;  %v7350_v48 = vld [vmem:[#allocation22_spill] sm:$0xff]  ;;  %v7352_v44 = vld [vmem:[#allocation36_spill] sm:$0xff]  ;;  %v7364_v47 = vld [vmem:[#allocation7_spill] sm:$0xff] }
 0x3cc   :  { %2837 = vst [vmem:[%s6929_s4 + $0x148] sm:$0xff] %v2773_v29  ;;  %v2789_v55 = vpack.c.bf16 %v2719_v20, %v2718_v39  ;;  %v2790_v3 = vpack.c.bf16 %v2721_v10, %v2720_v8  ;;  %v2791_v9 = vpack.c.bf16 %v2723_v51, %v2722_v63  ;;  %v2792_v19 = vpack.c.bf16 %v2725_v46, %v2724_v22  ;;  %v7360_v29 = vld [vmem:[#allocation45_spill] sm:$0xff]  ;;  %v7361_v4 = vld [vmem:[#allocation116_spill] sm:$0xff]  ;;  %v7363_v5 = vld [vmem:[#allocation6_spill] sm:$0xff] }
 0x3cd   :  { %2838 = vst [vmem:[%s6929_s4 + $0x150] sm:$0xff] %v2774_v0  ;;  %v2793_v60 = vpack.c.bf16 %v2727_v34, %v2726_v50  ;;  %v2794_v21 = vpack.c.bf16 %v2729_v27, %v2728_v15  ;;  %v2795_v30 = vpack.c.bf16 %v2731_v16, %v2730_v41  ;;  %v6292_v42 = vmul.f32 %v6279_v53, %v7347_v57  ;;  %v7362_v11 = vld [vmem:[#allocation92_spill] sm:$0xff]  ;;  %v7365_v39 = vld [vmem:[#allocation19_spill] sm:$0xff]  ;;  %v7367_v10 = vld [vmem:[#allocation33_spill] sm:$0xff] }
 0x3ce   :  { %2839 = vst [vmem:[%s6929_s4 + $0x158] sm:$0xff] %v2775_v18  ;;  %v6296_v12 = vmul.f32 %v6279_v53, %v7348_v59  ;;  %v6300_v58 = vmul.f32 %v6279_v53, %v7349_v35  ;;  %v6304_v25 = vmul.f32 %v6279_v53, %v7350_v48  ;;  %v6311_v13 = vmul.f32 %v6279_v53, %v7351_v7  ;;  %v7366_v18 = vld [vmem:[#allocation25_spill] sm:$0xff]  ;;  %v7369_v22 = vld [vmem:[#allocation48_spill] sm:$0xff]  ;;  %v7373_v41 = vld [vmem:[#allocation79_spill] sm:$0xff] }
 0x3cf   :  { %2840 = vst [vmem:[%s6929_s4 + $0x160] sm:$0xff] %v2776_v38  ;;  %v6315_v45 = vmul.f32 %v6279_v53, %v7352_v44  ;;  %v6319_v62 = vmul.f32 %v6279_v53, %v7353_v61  ;;  %v6323_v37 = vmul.f32 %v6279_v53, %v7354_v26  ;;  %v6330_v2 = vmul.f32 %v6279_v53, %v7355_v49  ;;  %v7368_v38 = vld [vmem:[#allocation39_spill] sm:$0xff]  ;;  %v7371_v34 = vld [vmem:[#allocation64_spill] sm:$0xff]  ;;  %v7379_v35 = vld [vmem:[#allocation10_spill] sm:$0xff] }
 0x3d0   :  { %2841 = vst [vmem:[%s6929_s4 + $0x168] sm:$0xff] %v2777_v36  ;;  %v6334_v28 = vmul.f32 %v6279_v53, %v7356_v33  ;;  %v6338_v24 = vmul.f32 %v6279_v53, %v7357_v52  ;;  %v6342_v23 = vmul.f32 %v6279_v53, %v7358_v32  ;;  %v6349_v54 = vmul.f32 %v6279_v53, %v7359_v40  ;;  %v7370_v36 = vld [vmem:[#allocation55_spill] sm:$0xff]  ;;  %v7382_v26 = vld [vmem:[#allocation29_spill] sm:$0xff] }
 0x3d1   :  { %2842 = vst [vmem:[%s6929_s4 + $0x170] sm:$0xff] %v2778_v56  ;;  %v6353_v1 = vmul.f32 %v6279_v53, %v7360_v29  ;;  %v6357_v17 = vmul.f32 %v6279_v53, %v7361_v4  ;;  %v6361_v14 = vmul.f32 %v6279_v53, %v7362_v11  ;;  %v6368_v0 = vmul.f32 %v6279_v53, %v7363_v5  ;;  %v7372_v56 = vld [vmem:[#allocation71_spill] sm:$0xff]  ;;  %v7383_v33 = vld [vmem:[#allocation37_spill] sm:$0xff]  ;;  %v7385_v29 = vld [vmem:[#allocation52_spill] sm:$0xff] }
 0x3d2   :  { %2843 = vst [vmem:[%s6929_s4 + $0x178] sm:$0xff] %v2779_v31  ;;  %v6372_v6 = vmul.f32 %v6279_v53, %v7364_v47  ;;  %v6376_v20 = vmul.f32 %v6279_v53, %v7365_v39  ;;  %v6380_v8 = vmul.f32 %v6279_v53, %v7366_v18  ;;  %v6387_v63 = vmul.f32 %v6279_v53, %v7367_v10  ;;  %v7374_v31 = vld [vmem:[#allocation86_spill] sm:$0xff]  ;;  %v7378_v57 = vld [vmem:[#allocation103_spill] sm:$0xff]  ;;  %v7387_v47 = vld [vmem:[#allocation68_spill] sm:$0xff] }
 0x3d3   :  { %2852 = vst [vmem:[%s6929_s4 + $0x1c0] sm:$0xff] %v2788_v43  ;;  %v6391_v51 = vmul.f32 %v6279_v53, %v7368_v38  ;;  %v6395_v46 = vmul.f32 %v6279_v53, %v7369_v22  ;;  %v6399_v50 = vmul.f32 %v6279_v53, %v7370_v36  ;;  %v6406_v15 = vmul.f32 %v6279_v53, %v7371_v34  ;;  %v7381_v44 = vld [vmem:[#allocation23_spill] sm:$0xff]  ;;  %v7390_v36 = vld [vmem:[#allocation90_spill] sm:$0xff] }
 0x3d4   :  { %2853 = vst [vmem:[%s6929_s4 + $0x1c8] sm:$0xff] %v2789_v55  ;;  %v6410_v27 = vmul.f32 %v6279_v53, %v7372_v56  ;;  %v6414_v16 = vmul.f32 %v6279_v53, %v7373_v41  ;;  %v6418_v43 = vmul.f32 %v6279_v53, %v7374_v31  ;;  %v7375_v55 = vld [vmem:[#allocation93_spill] sm:$0xff]  ;;  %v6437_v59 = vmul.f32 %v6279_v53, %v7378_v57  ;;  %v7384_v32 = vld [vmem:[#allocation43_spill] sm:$0xff]  ;;  %v7391_v56 = vld [vmem:[#allocation66_spill] sm:$0xff] }
 0x3d5   :  { %2854 = vst [vmem:[%s6929_s4 + $0x1d0] sm:$0xff] %v2790_v3  ;;  %v6425_v3 = vmul.f32 %v6279_v53, %v7375_v55  ;;  %v6441_v48 = vmul.f32 %v6279_v53, %v7379_v35  ;;  %v6449_v61 = vmul.f32 %v6279_v53, %v7381_v44  ;;  %v6453_v49 = vmul.f32 %v6279_v53, %v7382_v26  ;;  %v7386_v11 = vld [vmem:[#allocation59_spill] sm:$0xff]  ;;  %v7394_v57 = vld [vmem:[#allocation104_spill] sm:$0xff]  ;;  %v7396_v26 = vld [vmem:[#allocation17_spill] sm:$0xff] }
 0x3d6   :  { %2855 = vst [vmem:[%s6929_s4 + $0x1d8] sm:$0xff] %v2791_v9  ;;  %v7376_v9 = vld [vmem:[#allocation84_spill] sm:$0xff]  ;;  %v6457_v52 = vmul.f32 %v6279_v53, %v7383_v33  ;;  %v6461_v40 = vmul.f32 %v6279_v53, %v7384_v32  ;;  %v6465_v4 = vmul.f32 %v6279_v53, %v7385_v29  ;;  %v6469_v5 = vmul.f32 %v6279_v53, %v7386_v11  ;;  %v7388_v18 = vld [vmem:[#allocation75_spill] sm:$0xff]  ;;  %v7397_v32 = vld [vmem:[#allocation26_spill] sm:$0xff] }
 0x3d7   :  { %2856 = vst [vmem:[%s6929_s4 + $0x1e0] sm:$0xff] %v2792_v19  ;;  %v6429_v19 = vmul.f32 %v6279_v53, %v7376_v9  ;;  %v6473_v39 = vmul.f32 %v6279_v53, %v7387_v47  ;;  %v6477_v10 = vmul.f32 %v6279_v53, %v7388_v18  ;;  %v7389_v38 = vld [vmem:[#allocation83_spill] sm:$0xff]  ;;  %v6485_v34 = vmul.f32 %v6279_v53, %v7390_v36  ;;  %v7393_v9 = vld [vmem:[#allocation96_spill] sm:$0xff] }
 0x3d8   :  { %2857 = vst [vmem:[%s6929_s4 + $0x1e8] sm:$0xff] %v2793_v60  ;;  %v7377_v60 = vld [vmem:[#allocation100_spill] sm:$0xff]  ;;  %v6481_v22 = vmul.f32 %v6279_v53, %v7389_v38  ;;  %v6489_v41 = vmul.f32 %v6279_v53, %v7391_v56  ;;  %v7392_v31 = vld [vmem:[#allocation95_spill] sm:$0xff]  ;;  %v6501_v35 = vmul.f32 %v6279_v53, %v7394_v57  ;;  %v6509_v33 = vmul.f32 %v6279_v53, %v7396_v26  ;;  %v6535_v26 = vpop.permute.xlu0 %2468 }
 0x3d9   :  { %2858 = vst [vmem:[%s6929_s4 + $0x1f0] sm:$0xff] %v2794_v21  ;;  %v6433_v21 = vmul.f32 %v6279_v53, %v7377_v60  ;;  %v6493_v55 = vmul.f32 %v6279_v53, %v7392_v31  ;;  %v6497_v60 = vmul.f32 %v6279_v53, %v7393_v9  ;;  %v6513_v29 = vmul.f32 %v6279_v53, %v7397_v32  ;;  %v7398_v11 = vld [vmem:[#allocation32_spill] sm:$0xff]  ;;  %v7402_v36 = vld [vmem:[#allocation47_spill] sm:$0xff] }
 0x3da   :  { %2859 = vst [vmem:[%s6929_s4 + $0x1f8] sm:$0xff] %v2795_v30  ;;  %v7380_v30 = vld [vmem:[#allocation11_spill] sm:$0xff]  ;;  %v6517_v47 = vmul.f32 %v6279_v53, %v7398_v11  ;;  %v7400_v18 = vld [vmem:[#allocation40_spill] sm:$0xff]  ;;  %v6525_v56 = vmul.f32 %v6279_v53, %v7402_v36 }
 0x3db   :  { %v6445_v7 = vmul.f32 %v6279_v53, %v7380_v30  ;;  %v7395_v30 = vld [vmem:[#allocation15_spill] sm:$0xff]  ;;  %v6521_v38 = vmul.f32 %v6279_v53, %v7400_v18  ;;  %v7404_v31 = vld [vmem:[#allocation56_spill] sm:$0xff]  ;;  %v7410_v18 = vld [vmem:[#allocation78_spill] sm:$0xff] }
 0x3dc   :  { %v6505_v44 = vmul.f32 %v6279_v53, %v7395_v30  ;;  %7399 = vst [vmem:[#allocation113_spill] sm:$0xff] %v6517_v47  ;;  %v6529_v9 = vmul.f32 %v6279_v53, %v7404_v31  ;;  %v7406_v57 = vld [vmem:[#allocation63_spill] sm:$0xff]  ;;  %v7408_v32 = vld [vmem:[#allocation72_spill] sm:$0xff]  ;;  %v7413_v31 = vld [vmem:[#allocation94_spill] sm:$0xff] }
 0x3dd   :  { %7401 = vst [vmem:[#allocation114_spill] sm:$0xff] %v6521_v38  ;;  %v6533_v30 = vmul.f32 %v6279_v53, %v7406_v57  ;;  %v6539_v11 = vmul.f32 %v6279_v53, %v7408_v32  ;;  %v6543_v38 = vmul.f32 %v6279_v53, %v7410_v18  ;;  %v7412_v36 = vld [vmem:[#allocation87_spill] sm:$0xff]  ;;  %v7417_v47 = vld [vmem:[#allocation73_spill] sm:$0xff] }
 0x3de   :  { %7403 = vst [vmem:[#allocation97_spill] sm:$0xff] %v6525_v56  ;;  %v6547_v56 = vmul.f32 %v6279_v53, %v7412_v36  ;;  %v7415_v57 = vld [vmem:[#allocation107_spill] sm:$0xff]  ;;  %v6559_v32 = vmul.f32 %v6279_v53, %v7417_v47  ;;  %v2479_v47 = vadd.f32 %v6535_v26, %v6304_v25  ;;  %v6591_v25 = vadd.f32 %v6535_v26, %v6338_v24 }
 0x3df   :  { %7405 = vst [vmem:[#allocation4_spill] sm:$0xff] %v6529_v9  ;;  %v6551_v9 = vmul.f32 %v6279_v53, %v7413_v31  ;;  %v2476_v31 = vadd.f32 %v6535_v26, %v6292_v42  ;;  %v2483_v42 = vadd.f32 %v6535_v26, %v6323_v37  ;;  %v6605_v37 = vadd.f32 %v6535_v26, %v6357_v17 }
 0x3e0   :  { %7407 = vst [vmem:[#allocation5_spill] sm:$0xff] %v6533_v30  ;;  %v6555_v30 = vmul.f32 %v6279_v53, %v7415_v57  ;;  %v2478_v57 = vadd.f32 %v6535_v26, %v6300_v58  ;;  %v2485_v58 = vadd.f32 %v6535_v26, %v6334_v28  ;;  %v6613_v28 = vadd.f32 %v6535_v26, %v6368_v0 }
 0x3e1   :  { %7409 = vst [vmem:[#allocation16_spill] sm:$0xff] %v6539_v11  ;;  %v7419_v11 = vld [vmem:[#allocation81_spill] sm:$0xff]  ;;  %v6617_v24 = vadd.f32 %v6535_v26, %v6372_v6  ;;  %v6633_v17 = vadd.f32 %v6535_v26, %v6391_v51  ;;  %v6641_v0 = vadd.f32 %v6535_v26, %v6399_v50  ;;  %v6645_v6 = vadd.f32 %v6535_v26, %v6406_v15 }
 0x3e2   :  { %7411 = vst [vmem:[#allocation53_spill] sm:$0xff] %v6543_v38  ;;  %v6563_v18 = vmul.f32 %v6279_v53, %v7419_v11  ;;  %v7421_v38 = vld [vmem:[#allocation99_spill] sm:$0xff]  ;;  %v2480_v11 = vadd.f32 %v6535_v26, %v6311_v13  ;;  %v2487_v13 = vadd.f32 %v6535_v26, %v6342_v23  ;;  %v6621_v23 = vadd.f32 %v6535_v26, %v6376_v20 }
 0x3e3   :  { %7414 = vst [vmem:[#allocation62_spill] sm:$0xff] %v6551_v9  ;;  %v6567_v36 = vmul.f32 %v6279_v53, %v7421_v38  ;;  %v2477_v9 = vadd.f32 %v6535_v26, %v6296_v12  ;;  %v2482_v53 = vadd.f32 %v6535_v26, %v6319_v62  ;;  %v2484_v12 = vadd.f32 %v6535_v26, %v6330_v2 }
 0x3e4   :  { %7416 = vst [vmem:[#allocation69_spill] sm:$0xff] %v6555_v30  ;;  %v6601_v62 = vadd.f32 %v6535_v26, %v6353_v1  ;;  %v6609_v2 = vadd.f32 %v6535_v26, %v6361_v14  ;;  %v6629_v1 = vadd.f32 %v6535_v26, %v6387_v63  ;;  %v6637_v14 = vadd.f32 %v6535_v26, %v6395_v46 }
 0x3e5   :  { %7418 = vst [vmem:[#allocation8_spill] sm:$0xff] %v6559_v32  ;;  %v6649_v20 = vadd.f32 %v6535_v26, %v6410_v27  ;;  %v6657_v63 = vadd.f32 %v6535_v26, %v6418_v43  ;;  %v6661_v51 = vadd.f32 %v6535_v26, %v6425_v3  ;;  %v6665_v46 = vadd.f32 %v6535_v26, %v6429_v19 }
 0x3e6   :  { %7420 = vst [vmem:[#allocation9_spill] sm:$0xff] %v6563_v18  ;;  %v2481_v18 = vadd.f32 %v6535_v26, %v6315_v45  ;;  %v6597_v45 = vadd.f32 %v6535_v26, %v6349_v54  ;;  %v6625_v54 = vadd.f32 %v6535_v26, %v6380_v8  ;;  %v6653_v8 = vadd.f32 %v6535_v26, %v6414_v16 }
 0x3e7   :  { %7422 = vst [vmem:[#allocation21_spill] sm:$0xff] %v6567_v36  ;;  %v6669_v50 = vadd.f32 %v6535_v26, %v6433_v21  ;;  %v6673_v15 = vadd.f32 %v6535_v26, %v6437_v59  ;;  %v6677_v27 = vadd.f32 %v6535_v26, %v6441_v48  ;;  %v6681_v16 = vadd.f32 %v6535_v26, %v6445_v7 }
 0x3e8   :  { %v6685_v43 = vadd.f32 %v6535_v26, %v6449_v61  ;;  %v6689_v3 = vadd.f32 %v6535_v26, %v6453_v49  ;;  %v6693_v19 = vadd.f32 %v6535_v26, %v6457_v52  ;;  %v6697_v21 = vadd.f32 %v6535_v26, %v6461_v40 }
 0x3e9   :  { %v2604_v59 = vmax.f32 %v2476_v31, 0.0  ;;  %v2605_v48 = vmax.f32 %v2477_v9, 0.0  ;;  %v2606_v7 = vmax.f32 %v2478_v57, 0.0  ;;  %v2607_v38 = vmax.f32 %v2479_v47, 0.0 }
 0x3ea   :  { %v2608_v36 = vmax.f32 %v2480_v11, 0.0  ;;  %v2609_v32 = vmax.f32 %v2481_v18, 0.0  ;;  %v6701_v61 = vadd.f32 %v6535_v26, %v6465_v4  ;;  %v6705_v49 = vadd.f32 %v6535_v26, %v6469_v5 }
 0x3eb   :  { %v2610_v52 = vmax.f32 %v2482_v53, 0.0  ;;  %v2611_v30 = vmax.f32 %v2483_v42, 0.0  ;;  %v6709_v40 = vadd.f32 %v6535_v26, %v6473_v39  ;;  %v6713_v9 = vadd.f32 %v6535_v26, %v6477_v10 }
 0x3ec   :  { %v2612_v31 = vmax.f32 %v2484_v12, 0.0  ;;  %v2613_v18 = vmax.f32 %v2485_v58, 0.0  ;;  %v6717_v4 = vadd.f32 %v6535_v26, %v6481_v22  ;;  %v2614_v57 = vmax.f32 %v6591_v25, 0.0 }
 0x3ed   :  { %v2615_v5 = vmax.f32 %v2487_v13, 0.0  ;;  %v2616_v47 = vmax.f32 %v6597_v45, 0.0  ;;  %v2617_v11 = vmax.f32 %v6601_v62, 0.0  ;;  %v2732_v53 = vpack.c.bf16 %v2605_v48, %v2604_v59 }
 0x3ee   :  { %v2733_v39 = vpack.c.bf16 %v2607_v38, %v2606_v7  ;;  %v2734_v42 = vpack.c.bf16 %v2609_v32, %v2608_v36  ;;  %v6724_v10 = vadd.f32 %v6535_v26, %v6485_v34  ;;  %v2618_v12 = vmax.f32 %v6605_v37, 0.0 }
 0x3ef   :  { %v2619_v58 = vmax.f32 %v6609_v2, 0.0  ;;  %v2735_v22 = vpack.c.bf16 %v2611_v30, %v2610_v52  ;;  %v6730_v25 = vadd.f32 %v6535_v26, %v6489_v41  ;;  %v2636_v13 = vmax.f32 %v6613_v28, 0.0  ;;  %2796 = vst [vmem:[%s6929_s4] sm:$0xff] %v2732_v53 }
 0x3f0   :  { %v2637_v45 = vmax.f32 %v6617_v24, 0.0  ;;  %v2736_v62 = vpack.c.bf16 %v2613_v18, %v2612_v31  ;;  %v6739_v34 = vadd.f32 %v6535_v26, %v6493_v55  ;;  %v2638_v32 = vmax.f32 %v6621_v23, 0.0  ;;  %2797 = vst [vmem:[%s6929_s4 + $0x8] sm:$0xff] %v2733_v39 }
 0x3f1   :  { %v2639_v30 = vmax.f32 %v6625_v54, 0.0  ;;  %v2737_v36 = vpack.c.bf16 %v2615_v5, %v2614_v57  ;;  %v6748_v41 = vadd.f32 %v6535_v26, %v6497_v60  ;;  %v2640_v37 = vmax.f32 %v6629_v1, 0.0  ;;  %2798 = vst [vmem:[%s6929_s4 + $0x10] sm:$0xff] %v2734_v42 }
 0x3f2   :  { %v2641_v2 = vmax.f32 %v6633_v17, 0.0  ;;  %v2738_v28 = vpack.c.bf16 %v2617_v11, %v2616_v47  ;;  %v6757_v55 = vadd.f32 %v6535_v26, %v6501_v35  ;;  %v2642_v24 = vmax.f32 %v6637_v14, 0.0  ;;  %2799 = vst [vmem:[%s6929_s4 + $0x18] sm:$0xff] %v2735_v22 }
 0x3f3   :  { %v2643_v23 = vmax.f32 %v6641_v0, 0.0  ;;  %v2739_v54 = vpack.c.bf16 %v2619_v58, %v2618_v12  ;;  %v6766_v60 = vadd.f32 %v6535_v26, %v6505_v44  ;;  %v2644_v1 = vmax.f32 %v6645_v6, 0.0  ;;  %2800 = vst [vmem:[%s6929_s4 + $0x20] sm:$0xff] %v2736_v62 }
 0x3f4   :  { %v2645_v17 = vmax.f32 %v6649_v20, 0.0  ;;  %v2748_v59 = vpack.c.bf16 %v2637_v45, %v2636_v13  ;;  %v6775_v35 = vadd.f32 %v6535_v26, %v6509_v33  ;;  %v2646_v14 = vmax.f32 %v6653_v8, 0.0  ;;  %2801 = vst [vmem:[%s6929_s4 + $0x28] sm:$0xff] %v2737_v36  ;;  %v7423_v33 = vld [vmem:[#allocation113_spill] sm:$0xff] }
 0x3f5   :  { %v2647_v0 = vmax.f32 %v6657_v63, 0.0  ;;  %v2749_v48 = vpack.c.bf16 %v2639_v30, %v2638_v32  ;;  %v6784_v44 = vadd.f32 %v6535_v26, %v6513_v29  ;;  %v2648_v6 = vmax.f32 %v6661_v51, 0.0  ;;  %2802 = vst [vmem:[%s6929_s4 + $0x30] sm:$0xff] %v2738_v28  ;;  %v7424_v29 = vld [vmem:[#allocation114_spill] sm:$0xff] }
 0x3f6   :  { %v2649_v20 = vmax.f32 %v6665_v46, 0.0  ;;  %v2750_v7 = vpack.c.bf16 %v2641_v2, %v2640_v37  ;;  %v6793_v8 = vadd.f32 %v6535_v26, %v7423_v33  ;;  %v2650_v63 = vmax.f32 %v6669_v50, 0.0  ;;  %2803 = vst [vmem:[%s6929_s4 + $0x38] sm:$0xff] %v2739_v54  ;;  %v7425_v50 = vld [vmem:[#allocation97_spill] sm:$0xff] }
 0x3f7   :  { %v2651_v38 = vmax.f32 %v6673_v15, 0.0  ;;  %v2751_v52 = vpack.c.bf16 %v2643_v23, %v2642_v24  ;;  %v6802_v51 = vadd.f32 %v6535_v26, %v7424_v29  ;;  %v2668_v46 = vmax.f32 %v6677_v27, 0.0  ;;  %2812 = vst [vmem:[%s6929_s4 + $0x80] sm:$0xff] %v2748_v59  ;;  %v7426_v27 = vld [vmem:[#allocation4_spill] sm:$0xff] }
 0x3f8   :  { %v2669_v31 = vmax.f32 %v6681_v16, 0.0  ;;  %v2752_v18 = vpack.c.bf16 %v2645_v17, %v2644_v1  ;;  %v6811_v15 = vadd.f32 %v6535_v26, %v7425_v50  ;;  %v2670_v57 = vmax.f32 %v6685_v43, 0.0  ;;  %2813 = vst [vmem:[%s6929_s4 + $0x88] sm:$0xff] %v2749_v48  ;;  %v7427_v43 = vld [vmem:[#allocation5_spill] sm:$0xff] }
 0x3f9   :  { %v2671_v5 = vmax.f32 %v6689_v3, 0.0  ;;  %v2753_v47 = vpack.c.bf16 %v2647_v0, %v2646_v14  ;;  %v6820_v16 = vadd.f32 %v6535_v26, %v7426_v27  ;;  %v2672_v11 = vmax.f32 %v6693_v19, 0.0  ;;  %2814 = vst [vmem:[%s6929_s4 + $0x90] sm:$0xff] %v2750_v7  ;;  %v7428_v19 = vld [vmem:[#allocation16_spill] sm:$0xff] }
 0x3fa   :  { %v2673_v53 = vmax.f32 %v6697_v21, 0.0  ;;  %v2754_v39 = vpack.c.bf16 %v2649_v20, %v2648_v6  ;;  %v2579_v3 = vadd.f32 %v6535_v26, %v7427_v43  ;;  %v2674_v42 = vmax.f32 %v6701_v61, 0.0  ;;  %2815 = vst [vmem:[%s6929_s4 + $0x98] sm:$0xff] %v2751_v52  ;;  %v7429_v61 = vld [vmem:[#allocation53_spill] sm:$0xff] }
 0x3fb   :  { %v2675_v12 = vmax.f32 %v6705_v49, 0.0  ;;  %v2755_v58 = vpack.c.bf16 %v2651_v38, %v2650_v63  ;;  %v2580_v21 = vadd.f32 %v6535_v26, %v7428_v19  ;;  %v2676_v22 = vmax.f32 %v6709_v40, 0.0  ;;  %2816 = vst [vmem:[%s6929_s4 + $0xa0] sm:$0xff] %v2752_v18 }
 0x3fc   :  { %v2677_v13 = vmax.f32 %v6713_v9, 0.0  ;;  %v2764_v45 = vpack.c.bf16 %v2669_v31, %v2668_v46  ;;  %v2581_v49 = vadd.f32 %v6535_v26, %v7429_v61  ;;  %v2678_v62 = vmax.f32 %v6717_v4, 0.0  ;;  %2817 = vst [vmem:[%s6929_s4 + $0xa8] sm:$0xff] %v2753_v47  ;;  %v7430_v4 = vld [vmem:[#allocation62_spill] sm:$0xff] }
 0x3fd   :  { %v2679_v32 = vmax.f32 %v6724_v10, 0.0  ;;  %v2765_v30 = vpack.c.bf16 %v2671_v5, %v2670_v57  ;;  %v2582_v40 = vadd.f32 %v6535_v26, %v6547_v56  ;;  %v2680_v9 = vmax.f32 %v6730_v25, 0.0  ;;  %2818 = vst [vmem:[%s6929_s4 + $0xb0] sm:$0xff] %v2754_v39  ;;  %v7431_v56 = vld [vmem:[#allocation69_spill] sm:$0xff] }
 0x3fe   :  { %v2681_v36 = vmax.f32 %v6739_v34, 0.0  ;;  %v2766_v37 = vpack.c.bf16 %v2673_v53, %v2672_v11  ;;  %v2583_v10 = vadd.f32 %v6535_v26, %v7430_v4  ;;  %v2682_v2 = vmax.f32 %v6748_v41, 0.0  ;;  %2819 = vst [vmem:[%s6929_s4 + $0xb8] sm:$0xff] %v2755_v58  ;;  %v7432_v41 = vld [vmem:[#allocation8_spill] sm:$0xff] }
 0x3ff   :  { %v2683_v28 = vmax.f32 %v6757_v55, 0.0  ;;  %v2767_v24 = vpack.c.bf16 %v2675_v12, %v2674_v42  ;;  %v2584_v25 = vadd.f32 %v6535_v26, %v7431_v56  ;;  %v2700_v34 = vmax.f32 %v6766_v60, 0.0  ;;  %2828 = vst [vmem:[%s6929_s4 + $0x100] sm:$0xff] %v2764_v45  ;;  %v7433_v60 = vld [vmem:[#allocation9_spill] sm:$0xff] }
 0x400   :  { %v2701_v23 = vmax.f32 %v6775_v35, 0.0  ;;  %v2768_v54 = vpack.c.bf16 %v2677_v13, %v2676_v22  ;;  %v2585_v55 = vadd.f32 %v6535_v26, %v7432_v41  ;;  %v2702_v1 = vmax.f32 %v6784_v44, 0.0  ;;  %2829 = vst [vmem:[%s6929_s4 + $0x108] sm:$0xff] %v2765_v30  ;;  %v7434_v44 = vld [vmem:[#allocation21_spill] sm:$0xff] }
 0x401   :  { %v2703_v17 = vmax.f32 %v6793_v8, 0.0  ;;  %v2769_v59 = vpack.c.bf16 %v2679_v32, %v2678_v62  ;;  %v2586_v35 = vadd.f32 %v6535_v26, %v7433_v60  ;;  %v2704_v14 = vmax.f32 %v6802_v51, 0.0  ;;  %2830 = vst [vmem:[%s6929_s4 + $0x110] sm:$0xff] %v2766_v37 }
 0x402   :  { %v2705_v0 = vmax.f32 %v6811_v15, 0.0  ;;  %v2770_v48 = vpack.c.bf16 %v2681_v36, %v2680_v9  ;;  %v2587_v6 = vadd.f32 %v6535_v26, %v7434_v44  ;;  %v2706_v20 = vmax.f32 %v6820_v16, 0.0  ;;  %2831 = vst [vmem:[%s6929_s4 + $0x118] sm:$0xff] %v2767_v24 }
 0x403   :  { %v2707_v7 = vmax.f32 %v2579_v3, 0.0  ;;  %v2771_v33 = vpack.c.bf16 %v2683_v28, %v2682_v2  ;;  %v2708_v8 = vmax.f32 %v2580_v21, 0.0  ;;  %v2709_v63 = vmax.f32 %v2581_v49, 0.0  ;;  %2832 = vst [vmem:[%s6929_s4 + $0x120] sm:$0xff] %v2768_v54 }
 0x404   :  { %v2780_v38 = vpack.c.bf16 %v2701_v23, %v2700_v34  ;;  %v2710_v52 = vmax.f32 %v2582_v40, 0.0  ;;  %v2711_v29 = vmax.f32 %v2583_v10, 0.0  ;;  %v2781_v51 = vpack.c.bf16 %v2703_v17, %v2702_v1  ;;  %2833 = vst [vmem:[%s6929_s4 + $0x128] sm:$0xff] %v2769_v59 }
 0x405   :  { %v2712_v26 = vmax.f32 %v2584_v25, 0.0  ;;  %v2713_v46 = vmax.f32 %v2585_v55, 0.0  ;;  %v2782_v31 = vpack.c.bf16 %v2705_v0, %v2704_v14  ;;  %2834 = vst [vmem:[%s6929_s4 + $0x130] sm:$0xff] %v2770_v48  ;;  %v2714_v18 = vmax.f32 %v2586_v35, 0.0 }
 0x406   :  { %v2715_v50 = vmax.f32 %v2587_v6, 0.0  ;;  %v2783_v15 = vpack.c.bf16 %v2707_v7, %v2706_v20  ;;  %2835 = vst [vmem:[%s6929_s4 + $0x138] sm:$0xff] %v2771_v33  ;;  %v2784_v57 = vpack.c.bf16 %v2709_v63, %v2708_v8  ;;  %v2785_v5 = vpack.c.bf16 %v2711_v29, %v2710_v52 }
 0x407   :  { %2844 = vst [vmem:[%s6929_s4 + $0x180] sm:$0xff] %v2780_v38  ;;  %v2786_v47 = vpack.c.bf16 %v2713_v46, %v2712_v26 }
 0x408   :  { %2845 = vst [vmem:[%s6929_s4 + $0x188] sm:$0xff] %v2781_v51  ;;  %v2787_v27 = vpack.c.bf16 %v2715_v50, %v2714_v18 }
 0x409   :  { %2846 = vst [vmem:[%s6929_s4 + $0x190] sm:$0xff] %v2782_v31 }
 0x40a   :  { %2847 = vst [vmem:[%s6929_s4 + $0x198] sm:$0xff] %v2783_v15 }
 0x40b   :  { %2848 = vst [vmem:[%s6929_s4 + $0x1a0] sm:$0xff] %v2784_v57 }
 0x40c   :  { %2849 = vst [vmem:[%s6929_s4 + $0x1a8] sm:$0xff] %v2785_v5 }
 0x40d   :  { %2850 = vst [vmem:[%s6929_s4 + $0x1b0] sm:$0xff] %v2786_v47 }
 0x40e   :  { %2851 = vst [vmem:[%s6929_s4 + $0x1b8] sm:$0xff] %v2787_v27 }

// kernel: generator_forward.9
= control target key start
LH: loop header
LB: loop body
LE: loop exit
PB: predicated region body
PF: predicated region fallthrough
CT: control target
= control target key end

     0   :  { %s2873_s9 = smov 0   ;;  %s2875_s10 = smov 0   ;;  %s3683_s0 = inlined_call_operand.vmem [shape: bf16[16,144], index: 0, kind: input, shape index: {}]   ;;  %s3684_s1 = inlined_call_operand.vmem [shape: bf16[144,8192], index: 1, kind: input, shape index: {}]   ;;  %s3685_s2 = inlined_call_operand.vmem [shape: f32[16,8192], index: 2, kind: output, shape index: {}]  }
   0x1   :  { %s2877_s11 = smov 0  }
   0x2 LB: > { %s1983_s12 = sadd.s32 4294967295, %s2856_s11   ;;  %s2890_s13 = sadd.s32 1, %s2856_s11   ;;  %s2856_s11 = sphi %s2877_s11, %s3689_s11   ;;  %s2852_s10 = sphi %s2875_s10, %s3688_s10   ;;  %s2848_s9 = sphi %s2873_s9, %s3687_s9  }
   0x3   : > { %s37_s14 = ssub.s32 %s2856_s11, %s2890_s13  ;;  %s40_s15 = sadd.s32 1, %s2852_s10 }
   0x4   : > { %p38_p0 = scmp.eq.s32.totalorder %s37_s14, 0  ;;  %p47_p1 = scmp.ne.s32.totalorder %s2852_s10, %s2848_s9 }
   0x5   : > { %p48_p2 = scmp.eq.s32.totalorder %s2856_s11, 0  ;;  %p77_p3 = scmp.eq.s32.totalorder %s1983_s12, 3 }
   0x6   : > { %s2901_s16 = scalar_select %p38_p0, %s2852_s10, %s40_s15  }
   0x7   : > { %p49_p4 = por %p48_p2, %p47_p1  ;;  %p2903_p5 = por %p77_p3, %p47_p1 }
   0x8   : > { %p1986_p6 = scmp.ge.s32.totalorder %s2856_s11, 4 }
   0xa   : > { %102 = sbr.rel (%p1986_p6) target bundleno = 163 (0xa3), region = 20 }
   0xf   : > { %105 = sbr.rel (!%p49_p4) target bundleno = 163 (0xa3), region = 24  ;;  %s107_s18 = sand.u32 (%p49_p4), 1, %s2852_s10  }
  0x10   : > { %s2596_s19 = sshll.u32 (%p49_p4), %s2856_s11, 6  ;;  %s2744_s20 = smul.u32 (%p49_p4), 1152, %s107_s18 }
  0x11   : > { %s2913_s23 = scalar_lea.vmem (%p49_p4), %s3684_s1, %s2596_s19 }
  0x12   : > { %v125_v0 = vld [vmem:[%s2913_s23] sm:$0xff] (%p49_p4)  ;;  %v127_v1 = vld [vmem:[%s2913_s23 + $0x8] sm:$0xff] (%p49_p4)  ;;  %v129_v2 = vld [vmem:[%s2913_s23 + $0x10] sm:$0xff] (%p49_p4)  ;;  %s2918_s24 = scalar_lea.vmem (%p49_p4), [#allocation2], %s2744_s20 }
  0x13   : > { %126 = vst [vmem:[%s2918_s24] sm:$0xff] (%p49_p4), %v125_v0  ;;  %v131_v3 = vld [vmem:[%s2913_s23 + $0x18] sm:$0xff] (%p49_p4)  ;;  %v133_v4 = vld [vmem:[%s2913_s23 + $0x20] sm:$0xff] (%p49_p4)  ;;  %v135_v5 = vld [vmem:[%s2913_s23 + $0x28] sm:$0xff] (%p49_p4) }
  0x14   : > { %128 = vst [vmem:[%s2918_s24 + $0x8] sm:$0xff] %v127_v1  ;;  %v137_v6 = vld [vmem:[%s2913_s23 + $0x30] sm:$0xff]  ;;  %v139_v7 = vld [vmem:[%s2913_s23 + $0x38] sm:$0xff]  ;;  %v141_v8 = vld [vmem:[%s2913_s23 + $0x100] sm:$0xff] }
  0x15   : > { %130 = vst [vmem:[%s2918_s24 + $0x10] sm:$0xff] %v129_v2  ;;  %v143_v9 = vld [vmem:[%s2913_s23 + $0x108] sm:$0xff]  ;;  %v145_v10 = vld [vmem:[%s2913_s23 + $0x110] sm:$0xff]  ;;  %v147_v11 = vld [vmem:[%s2913_s23 + $0x118] sm:$0xff] }
  0x16   : > { %132 = vst [vmem:[%s2918_s24 + $0x18] sm:$0xff] %v131_v3  ;;  %v149_v12 = vld [vmem:[%s2913_s23 + $0x120] sm:$0xff]  ;;  %v151_v13 = vld [vmem:[%s2913_s23 + $0x128] sm:$0xff]  ;;  %v153_v14 = vld [vmem:[%s2913_s23 + $0x130] sm:$0xff] }
  0x17   : > { %134 = vst [vmem:[%s2918_s24 + $0x20] sm:$0xff] %v133_v4  ;;  %v155_v15 = vld [vmem:[%s2913_s23 + $0x138] sm:$0xff]  ;;  %v157_v16 = vld [vmem:[%s2913_s23 + $0x200] sm:$0xff]  ;;  %v159_v17 = vld [vmem:[%s2913_s23 + $0x208] sm:$0xff] }
  0x18   : > { %136 = vst [vmem:[%s2918_s24 + $0x28] sm:$0xff] %v135_v5  ;;  %v161_v18 = vld [vmem:[%s2913_s23 + $0x210] sm:$0xff]  ;;  %v163_v19 = vld [vmem:[%s2913_s23 + $0x218] sm:$0xff]  ;;  %v165_v20 = vld [vmem:[%s2913_s23 + $0x220] sm:$0xff] }
  0x19   : > { %138 = vst [vmem:[%s2918_s24 + $0x30] sm:$0xff] %v137_v6  ;;  %v167_v21 = vld [vmem:[%s2913_s23 + $0x228] sm:$0xff]  ;;  %v169_v22 = vld [vmem:[%s2913_s23 + $0x230] sm:$0xff]  ;;  %v171_v23 = vld [vmem:[%s2913_s23 + $0x238] sm:$0xff] }
  0x1a   : > { %140 = vst [vmem:[%s2918_s24 + $0x38] sm:$0xff] %v139_v7  ;;  %v173_v24 = vld [vmem:[%s2913_s23 + $0x300] sm:$0xff]  ;;  %v175_v25 = vld [vmem:[%s2913_s23 + $0x308] sm:$0xff]  ;;  %v177_v26 = vld [vmem:[%s2913_s23 + $0x310] sm:$0xff] }
  0x1b   : > { %142 = vst [vmem:[%s2918_s24 + $0x40] sm:$0xff] %v141_v8  ;;  %v179_v27 = vld [vmem:[%s2913_s23 + $0x318] sm:$0xff]  ;;  %v181_v28 = vld [vmem:[%s2913_s23 + $0x320] sm:$0xff]  ;;  %v183_v29 = vld [vmem:[%s2913_s23 + $0x328] sm:$0xff] }
  0x1c   : > { %144 = vst [vmem:[%s2918_s24 + $0x48] sm:$0xff] %v143_v9  ;;  %v185_v30 = vld [vmem:[%s2913_s23 + $0x330] sm:$0xff]  ;;  %v187_v31 = vld [vmem:[%s2913_s23 + $0x338] sm:$0xff]  ;;  %v189_v32 = vld [vmem:[%s2913_s23 + $0x400] sm:$0xff] }
  0x1d   : > { %146 = vst [vmem:[%s2918_s24 + $0x50] sm:$0xff] %v145_v10  ;;  %v191_v33 = vld [vmem:[%s2913_s23 + $0x408] sm:$0xff]  ;;  %v193_v34 = vld [vmem:[%s2913_s23 + $0x410] sm:$0xff]  ;;  %v195_v35 = vld [vmem:[%s2913_s23 + $0x418] sm:$0xff] }
  0x1e   : > { %148 = vst [vmem:[%s2918_s24 + $0x58] sm:$0xff] %v147_v11  ;;  %v197_v36 = vld [vmem:[%s2913_s23 + $0x420] sm:$0xff]  ;;  %v199_v37 = vld [vmem:[%s2913_s23 + $0x428] sm:$0xff]  ;;  %v201_v38 = vld [vmem:[%s2913_s23 + $0x430] sm:$0xff] }
  0x1f   : > { %150 = vst [vmem:[%s2918_s24 + $0x60] sm:$0xff] %v149_v12  ;;  %v203_v39 = vld [vmem:[%s2913_s23 + $0x438] sm:$0xff]  ;;  %v205_v40 = vld [vmem:[%s2913_s23 + $0x500] sm:$0xff]  ;;  %v207_v41 = vld [vmem:[%s2913_s23 + $0x508] sm:$0xff] }
  0x20   : > { %152 = vst [vmem:[%s2918_s24 + $0x68] sm:$0xff] %v151_v13  ;;  %v209_v42 = vld [vmem:[%s2913_s23 + $0x510] sm:$0xff]  ;;  %v211_v43 = vld [vmem:[%s2913_s23 + $0x518] sm:$0xff]  ;;  %v213_v44 = vld [vmem:[%s2913_s23 + $0x520] sm:$0xff] }
  0x21   : > { %154 = vst [vmem:[%s2918_s24 + $0x70] sm:$0xff] %v153_v14  ;;  %v215_v45 = vld [vmem:[%s2913_s23 + $0x528] sm:$0xff]  ;;  %v217_v46 = vld [vmem:[%s2913_s23 + $0x530] sm:$0xff]  ;;  %v219_v47 = vld [vmem:[%s2913_s23 + $0x538] sm:$0xff] }
  0x22   : > { %156 = vst [vmem:[%s2918_s24 + $0x78] sm:$0xff] %v155_v15  ;;  %v221_v48 = vld [vmem:[%s2913_s23 + $0x600] sm:$0xff]  ;;  %v223_v49 = vld [vmem:[%s2913_s23 + $0x608] sm:$0xff]  ;;  %v225_v50 = vld [vmem:[%s2913_s23 + $0x610] sm:$0xff] }
  0x23   : > { %158 = vst [vmem:[%s2918_s24 + $0x80] sm:$0xff] %v157_v16  ;;  %v227_v51 = vld [vmem:[%s2913_s23 + $0x618] sm:$0xff]  ;;  %v229_v52 = vld [vmem:[%s2913_s23 + $0x620] sm:$0xff]  ;;  %v231_v53 = vld [vmem:[%s2913_s23 + $0x628] sm:$0xff] }
  0x24   : > { %160 = vst [vmem:[%s2918_s24 + $0x88] sm:$0xff] %v159_v17  ;;  %v233_v54 = vld [vmem:[%s2913_s23 + $0x630] sm:$0xff]  ;;  %v235_v55 = vld [vmem:[%s2913_s23 + $0x638] sm:$0xff]  ;;  %v237_v56 = vld [vmem:[%s2913_s23 + $0x700] sm:$0xff] }
  0x25   : > { %162 = vst [vmem:[%s2918_s24 + $0x90] sm:$0xff] %v161_v18  ;;  %v239_v57 = vld [vmem:[%s2913_s23 + $0x708] sm:$0xff]  ;;  %v241_v58 = vld [vmem:[%s2913_s23 + $0x710] sm:$0xff]  ;;  %v243_v59 = vld [vmem:[%s2913_s23 + $0x718] sm:$0xff] }
  0x26   : > { %164 = vst [vmem:[%s2918_s24 + $0x98] sm:$0xff] %v163_v19  ;;  %v245_v60 = vld [vmem:[%s2913_s23 + $0x720] sm:$0xff]  ;;  %v247_v61 = vld [vmem:[%s2913_s23 + $0x728] sm:$0xff]  ;;  %v249_v62 = vld [vmem:[%s2913_s23 + $0x730] sm:$0xff] }
  0x27   : > { %166 = vst [vmem:[%s2918_s24 + $0xa0] sm:$0xff] %v165_v20  ;;  %v251_v63 = vld [vmem:[%s2913_s23 + $0x738] sm:$0xff]  ;;  %v253_v0 = vld [vmem:[%s2913_s23 + $0x800] sm:$0xff]  ;;  %v255_v1 = vld [vmem:[%s2913_s23 + $0x808] sm:$0xff] }
  0x28   : > { %168 = vst [vmem:[%s2918_s24 + $0xa8] sm:$0xff] %v167_v21  ;;  %v257_v2 = vld [vmem:[%s2913_s23 + $0x810] sm:$0xff]  ;;  %v259_v3 = vld [vmem:[%s2913_s23 + $0x818] sm:$0xff]  ;;  %v261_v4 = vld [vmem:[%s2913_s23 + $0x820] sm:$0xff] }
  0x29   : > { %170 = vst [vmem:[%s2918_s24 + $0xb0] sm:$0xff] %v169_v22  ;;  %v263_v5 = vld [vmem:[%s2913_s23 + $0x828] sm:$0xff]  ;;  %v265_v6 = vld [vmem:[%s2913_s23 + $0x830] sm:$0xff]  ;;  %v267_v7 = vld [vmem:[%s2913_s23 + $0x838] sm:$0xff] }
  0x2a   : > { %172 = vst [vmem:[%s2918_s24 + $0xb8] sm:$0xff] %v171_v23  ;;  %v269_v8 = vld [vmem:[%s2913_s23 + $0x900] sm:$0xff]  ;;  %v271_v9 = vld [vmem:[%s2913_s23 + $0x908] sm:$0xff]  ;;  %v273_v10 = vld [vmem:[%s2913_s23 + $0x910] sm:$0xff] }
  0x2b   : > { %174 = vst [vmem:[%s2918_s24 + $0xc0] sm:$0xff] %v173_v24  ;;  %v275_v11 = vld [vmem:[%s2913_s23 + $0x918] sm:$0xff]  ;;  %v277_v12 = vld [vmem:[%s2913_s23 + $0x920] sm:$0xff]  ;;  %v279_v13 = vld [vmem:[%s2913_s23 + $0x928] sm:$0xff] }
  0x2c   : > { %176 = vst [vmem:[%s2918_s24 + $0xc8] sm:$0xff] %v175_v25  ;;  %v281_v14 = vld [vmem:[%s2913_s23 + $0x930] sm:$0xff]  ;;  %v283_v15 = vld [vmem:[%s2913_s23 + $0x938] sm:$0xff]  ;;  %v285_v16 = vld [vmem:[%s2913_s23 + $0xa00] sm:$0xff] }
  0x2d   : > { %178 = vst [vmem:[%s2918_s24 + $0xd0] sm:$0xff] %v177_v26  ;;  %v287_v17 = vld [vmem:[%s2913_s23 + $0xa08] sm:$0xff]  ;;  %v289_v18 = vld [vmem:[%s2913_s23 + $0xa10] sm:$0xff]  ;;  %v291_v19 = vld [vmem:[%s2913_s23 + $0xa18] sm:$0xff] }
  0x2e   : > { %180 = vst [vmem:[%s2918_s24 + $0xd8] sm:$0xff] %v179_v27  ;;  %v293_v20 = vld [vmem:[%s2913_s23 + $0xa20] sm:$0xff]  ;;  %v295_v21 = vld [vmem:[%s2913_s23 + $0xa28] sm:$0xff]  ;;  %v297_v22 = vld [vmem:[%s2913_s23 + $0xa30] sm:$0xff] }
  0x2f   : > { %182 = vst [vmem:[%s2918_s24 + $0xe0] sm:$0xff] %v181_v28  ;;  %v299_v23 = vld [vmem:[%s2913_s23 + $0xa38] sm:$0xff]  ;;  %v301_v24 = vld [vmem:[%s2913_s23 + $0xb00] sm:$0xff]  ;;  %v303_v25 = vld [vmem:[%s2913_s23 + $0xb08] sm:$0xff] }
  0x30   : > { %184 = vst [vmem:[%s2918_s24 + $0xe8] sm:$0xff] %v183_v29  ;;  %v305_v26 = vld [vmem:[%s2913_s23 + $0xb10] sm:$0xff]  ;;  %v307_v27 = vld [vmem:[%s2913_s23 + $0xb18] sm:$0xff]  ;;  %v309_v28 = vld [vmem:[%s2913_s23 + $0xb20] sm:$0xff] }
  0x31   : > { %186 = vst [vmem:[%s2918_s24 + $0xf0] sm:$0xff] %v185_v30  ;;  %v311_v29 = vld [vmem:[%s2913_s23 + $0xb28] sm:$0xff]  ;;  %v313_v30 = vld [vmem:[%s2913_s23 + $0xb30] sm:$0xff] }
  0x32   : > { %188 = vst [vmem:[%s2918_s24 + $0xf8] sm:$0xff] %v187_v31  ;;  %v315_v31 = vld [vmem:[%s2913_s23 + $0xb38] sm:$0xff] }
  0x33   : > { %190 = vst [vmem:[%s2918_s24 + $0x100] sm:$0xff] %v189_v32  ;;  %v317_v32 = vld [vmem:[%s2913_s23 + $0xc00] sm:$0xff] }
  0x34   : > { %192 = vst [vmem:[%s2918_s24 + $0x108] sm:$0xff] %v191_v33  ;;  %v319_v33 = vld [vmem:[%s2913_s23 + $0xc08] sm:$0xff] }
  0x35   : > { %194 = vst [vmem:[%s2918_s24 + $0x110] sm:$0xff] %v193_v34  ;;  %v321_v34 = vld [vmem:[%s2913_s23 + $0xc10] sm:$0xff] }
  0x36   : > { %196 = vst [vmem:[%s2918_s24 + $0x118] sm:$0xff] %v195_v35  ;;  %v323_v35 = vld [vmem:[%s2913_s23 + $0xc18] sm:$0xff] }
  0x37   : > { %198 = vst [vmem:[%s2918_s24 + $0x120] sm:$0xff] %v197_v36  ;;  %v325_v36 = vld [vmem:[%s2913_s23 + $0xc20] sm:$0xff] }
  0x38   : > { %200 = vst [vmem:[%s2918_s24 + $0x128] sm:$0xff] %v199_v37  ;;  %v327_v37 = vld [vmem:[%s2913_s23 + $0xc28] sm:$0xff] }
  0x39   : > { %202 = vst [vmem:[%s2918_s24 + $0x130] sm:$0xff] %v201_v38  ;;  %v329_v38 = vld [vmem:[%s2913_s23 + $0xc30] sm:$0xff] }
  0x3a   : > { %204 = vst [vmem:[%s2918_s24 + $0x138] sm:$0xff] %v203_v39  ;;  %v331_v39 = vld [vmem:[%s2913_s23 + $0xc38] sm:$0xff] }
  0x3b   : > { %206 = vst [vmem:[%s2918_s24 + $0x140] sm:$0xff] %v205_v40  ;;  %v333_v40 = vld [vmem:[%s2913_s23 + $0xd00] sm:$0xff] }
  0x3c   : > { %208 = vst [vmem:[%s2918_s24 + $0x148] sm:$0xff] %v207_v41  ;;  %v335_v41 = vld [vmem:[%s2913_s23 + $0xd08] sm:$0xff] }
  0x3d   : > { %210 = vst [vmem:[%s2918_s24 + $0x150] sm:$0xff] %v209_v42  ;;  %v337_v42 = vld [vmem:[%s2913_s23 + $0xd10] sm:$0xff] }
  0x3e   : > { %212 = vst [vmem:[%s2918_s24 + $0x158] sm:$0xff] %v211_v43  ;;  %v339_v43 = vld [vmem:[%s2913_s23 + $0xd18] sm:$0xff] }
  0x3f   : > { %214 = vst [vmem:[%s2918_s24 + $0x160] sm:$0xff] %v213_v44  ;;  %v341_v44 = vld [vmem:[%s2913_s23 + $0xd20] sm:$0xff] }
  0x40   : > { %216 = vst [vmem:[%s2918_s24 + $0x168] sm:$0xff] %v215_v45  ;;  %v343_v45 = vld [vmem:[%s2913_s23 + $0xd28] sm:$0xff] }
  0x41   : > { %218 = vst [vmem:[%s2918_s24 + $0x170] sm:$0xff] %v217_v46  ;;  %v345_v46 = vld [vmem:[%s2913_s23 + $0xd30] sm:$0xff] }
  0x42   : > { %220 = vst [vmem:[%s2918_s24 + $0x178] sm:$0xff] %v219_v47  ;;  %v347_v47 = vld [vmem:[%s2913_s23 + $0xd38] sm:$0xff] }
  0x43   : > { %222 = vst [vmem:[%s2918_s24 + $0x180] sm:$0xff] %v221_v48  ;;  %v349_v48 = vld [vmem:[%s2913_s23 + $0xe00] sm:$0xff] }
  0x44   : > { %224 = vst [vmem:[%s2918_s24 + $0x188] sm:$0xff] %v223_v49  ;;  %v351_v49 = vld [vmem:[%s2913_s23 + $0xe08] sm:$0xff] }
  0x45   : > { %226 = vst [vmem:[%s2918_s24 + $0x190] sm:$0xff] %v225_v50  ;;  %v353_v50 = vld [vmem:[%s2913_s23 + $0xe10] sm:$0xff] }
  0x46   : > { %228 = vst [vmem:[%s2918_s24 + $0x198] sm:$0xff] %v227_v51  ;;  %v355_v51 = vld [vmem:[%s2913_s23 + $0xe18] sm:$0xff] }
  0x47   : > { %230 = vst [vmem:[%s2918_s24 + $0x1a0] sm:$0xff] %v229_v52  ;;  %v357_v52 = vld [vmem:[%s2913_s23 + $0xe20] sm:$0xff] }
  0x48   : > { %232 = vst [vmem:[%s2918_s24 + $0x1a8] sm:$0xff] %v231_v53  ;;  %v359_v53 = vld [vmem:[%s2913_s23 + $0xe28] sm:$0xff] }
  0x49   : > { %234 = vst [vmem:[%s2918_s24 + $0x1b0] sm:$0xff] %v233_v54  ;;  %v361_v54 = vld [vmem:[%s2913_s23 + $0xe30] sm:$0xff] }
  0x4a   : > { %236 = vst [vmem:[%s2918_s24 + $0x1b8] sm:$0xff] %v235_v55  ;;  %v363_v55 = vld [vmem:[%s2913_s23 + $0xe38] sm:$0xff] }
  0x4b   : > { %238 = vst [vmem:[%s2918_s24 + $0x1c0] sm:$0xff] %v237_v56  ;;  %v365_v56 = vld [vmem:[%s2913_s23 + $0xf00] sm:$0xff] }
  0x4c   : > { %240 = vst [vmem:[%s2918_s24 + $0x1c8] sm:$0xff] %v239_v57  ;;  %v367_v57 = vld [vmem:[%s2913_s23 + $0xf08] sm:$0xff] }
  0x4d   : > { %242 = vst [vmem:[%s2918_s24 + $0x1d0] sm:$0xff] %v241_v58  ;;  %v369_v58 = vld [vmem:[%s2913_s23 + $0xf10] sm:$0xff] }
  0x4e   : > { %244 = vst [vmem:[%s2918_s24 + $0x1d8] sm:$0xff] %v243_v59  ;;  %v371_v59 = vld [vmem:[%s2913_s23 + $0xf18] sm:$0xff] }
  0x4f   : > { %246 = vst [vmem:[%s2918_s24 + $0x1e0] sm:$0xff] %v245_v60  ;;  %v373_v60 = vld [vmem:[%s2913_s23 + $0xf20] sm:$0xff] }
  0x50   : > { %248 = vst [vmem:[%s2918_s24 + $0x1e8] sm:$0xff] %v247_v61  ;;  %v375_v61 = vld [vmem:[%s2913_s23 + $0xf28] sm:$0xff] }
  0x51   : > { %250 = vst [vmem:[%s2918_s24 + $0x1f0] sm:$0xff] %v249_v62  ;;  %v377_v62 = vld [vmem:[%s2913_s23 + $0xf30] sm:$0xff] }
  0x52   : > { %252 = vst [vmem:[%s2918_s24 + $0x1f8] sm:$0xff] %v251_v63  ;;  %v379_v63 = vld [vmem:[%s2913_s23 + $0xf38] sm:$0xff] }
  0x53   : > { %254 = vst [vmem:[%s2918_s24 + $0x200] sm:$0xff] %v253_v0  ;;  %v381_v0 = vld [vmem:[%s2913_s23 + $0x1000] sm:$0xff] }
  0x54   : > { %256 = vst [vmem:[%s2918_s24 + $0x208] sm:$0xff] %v255_v1  ;;  %v383_v1 = vld [vmem:[%s2913_s23 + $0x1008] sm:$0xff] }
  0x55   : > { %258 = vst [vmem:[%s2918_s24 + $0x210] sm:$0xff] %v257_v2  ;;  %v385_v2 = vld [vmem:[%s2913_s23 + $0x1010] sm:$0xff] }
  0x56   : > { %260 = vst [vmem:[%s2918_s24 + $0x218] sm:$0xff] %v259_v3  ;;  %v387_v3 = vld [vmem:[%s2913_s23 + $0x1018] sm:$0xff] }
  0x57   : > { %262 = vst [vmem:[%s2918_s24 + $0x220] sm:$0xff] %v261_v4  ;;  %v389_v4 = vld [vmem:[%s2913_s23 + $0x1020] sm:$0xff] }
  0x58   : > { %264 = vst [vmem:[%s2918_s24 + $0x228] sm:$0xff] %v263_v5  ;;  %v391_v5 = vld [vmem:[%s2913_s23 + $0x1028] sm:$0xff] }
  0x59   : > { %266 = vst [vmem:[%s2918_s24 + $0x230] sm:$0xff] %v265_v6  ;;  %v393_v6 = vld [vmem:[%s2913_s23 + $0x1030] sm:$0xff] }
  0x5a   : > { %268 = vst [vmem:[%s2918_s24 + $0x238] sm:$0xff] %v267_v7  ;;  %v395_v7 = vld [vmem:[%s2913_s23 + $0x1038] sm:$0xff] }
  0x5b   : > { %270 = vst [vmem:[%s2918_s24 + $0x240] sm:$0xff] %v269_v8  ;;  %v397_v8 = vld [vmem:[%s2913_s23 + $0x1100] sm:$0xff] }
  0x5c   : > { %272 = vst [vmem:[%s2918_s24 + $0x248] sm:$0xff] %v271_v9  ;;  %v399_v9 = vld [vmem:[%s2913_s23 + $0x1108] sm:$0xff] }
  0x5d   : > { %274 = vst [vmem:[%s2918_s24 + $0x250] sm:$0xff] %v273_v10  ;;  %v401_v10 = vld [vmem:[%s2913_s23 + $0x1110] sm:$0xff] }
  0x5e   : > { %276 = vst [vmem:[%s2918_s24 + $0x258] sm:$0xff] %v275_v11  ;;  %v403_v11 = vld [vmem:[%s2913_s23 + $0x1118] sm:$0xff] }
  0x5f   : > { %278 = vst [vmem:[%s2918_s24 + $0x260] sm:$0xff] %v277_v12  ;;  %v405_v12 = vld [vmem:[%s2913_s23 + $0x1120] sm:$0xff] }
  0x60   : > { %280 = vst [vmem:[%s2918_s24 + $0x268] sm:$0xff] %v279_v13  ;;  %v407_v13 = vld [vmem:[%s2913_s23 + $0x1128] sm:$0xff] }
  0x61   : > { %282 = vst [vmem:[%s2918_s24 + $0x270] sm:$0xff] %v281_v14  ;;  %v409_v14 = vld [vmem:[%s2913_s23 + $0x1130] sm:$0xff] }
  0x62   : > { %284 = vst [vmem:[%s2918_s24 + $0x278] sm:$0xff] %v283_v15  ;;  %v411_v15 = vld [vmem:[%s2913_s23 + $0x1138] sm:$0xff] }
  0x63   : > { %286 = vst [vmem:[%s2918_s24 + $0x280] sm:$0xff] %v285_v16 }
  0x64   : > { %288 = vst [vmem:[%s2918_s24 + $0x288] sm:$0xff] %v287_v17 }
  0x65   : > { %290 = vst [vmem:[%s2918_s24 + $0x290] sm:$0xff] %v289_v18 }
  0x66   : > { %292 = vst [vmem:[%s2918_s24 + $0x298] sm:$0xff] %v291_v19 }
  0x67   : > { %294 = vst [vmem:[%s2918_s24 + $0x2a0] sm:$0xff] %v293_v20 }
  0x68   : > { %296 = vst [vmem:[%s2918_s24 + $0x2a8] sm:$0xff] %v295_v21 }
  0x69   : > { %298 = vst [vmem:[%s2918_s24 + $0x2b0] sm:$0xff] %v297_v22 }
  0x6a   : > { %300 = vst [vmem:[%s2918_s24 + $0x2b8] sm:$0xff] %v299_v23 }
  0x6b   : > { %302 = vst [vmem:[%s2918_s24 + $0x2c0] sm:$0xff] %v301_v24 }
  0x6c   : > { %304 = vst [vmem:[%s2918_s24 + $0x2c8] sm:$0xff] %v303_v25 }
  0x6d   : > { %306 = vst [vmem:[%s2918_s24 + $0x2d0] sm:$0xff] %v305_v26 }
  0x6e   : > { %308 = vst [vmem:[%s2918_s24 + $0x2d8] sm:$0xff] %v307_v27 }
  0x6f   : > { %310 = vst [vmem:[%s2918_s24 + $0x2e0] sm:$0xff] %v309_v28 }
  0x70   : > { %312 = vst [vmem:[%s2918_s24 + $0x2e8] sm:$0xff] %v311_v29 }
  0x71   : > { %314 = vst [vmem:[%s2918_s24 + $0x2f0] sm:$0xff] %v313_v30 }
  0x72   : > { %316 = vst [vmem:[%s2918_s24 + $0x2f8] sm:$0xff] %v315_v31 }
  0x73   : > { %318 = vst [vmem:[%s2918_s24 + $0x300] sm:$0xff] %v317_v32 }
  0x74   : > { %320 = vst [vmem:[%s2918_s24 + $0x308] sm:$0xff] %v319_v33 }
  0x75   : > { %322 = vst [vmem:[%s2918_s24 + $0x310] sm:$0xff] %v321_v34 }
  0x76   : > { %324 = vst [vmem:[%s2918_s24 + $0x318] sm:$0xff] %v323_v35 }
  0x77   : > { %326 = vst [vmem:[%s2918_s24 + $0x320] sm:$0xff] %v325_v36 }
  0x78   : > { %328 = vst [vmem:[%s2918_s24 + $0x328] sm:$0xff] %v327_v37 }
  0x79   : > { %330 = vst [vmem:[%s2918_s24 + $0x330] sm:$0xff] %v329_v38 }
  0x7a   : > { %332 = vst [vmem:[%s2918_s24 + $0x338] sm:$0xff] %v331_v39 }
  0x7b   : > { %334 = vst [vmem:[%s2918_s24 + $0x340] sm:$0xff] %v333_v40 }
  0x7c   : > { %336 = vst [vmem:[%s2918_s24 + $0x348] sm:$0xff] %v335_v41 }
  0x7d   : > { %338 = vst [vmem:[%s2918_s24 + $0x350] sm:$0xff] %v337_v42 }
  0x7e   : > { %340 = vst [vmem:[%s2918_s24 + $0x358] sm:$0xff] %v339_v43 }
  0x7f   : > { %342 = vst [vmem:[%s2918_s24 + $0x360] sm:$0xff] %v341_v44 }
  0x80   : > { %344 = vst [vmem:[%s2918_s24 + $0x368] sm:$0xff] %v343_v45 }
  0x81   : > { %346 = vst [vmem:[%s2918_s24 + $0x370] sm:$0xff] %v345_v46 }
  0x82   : > { %348 = vst [vmem:[%s2918_s24 + $0x378] sm:$0xff] %v347_v47 }
  0x83   : > { %350 = vst [vmem:[%s2918_s24 + $0x380] sm:$0xff] %v349_v48 }
  0x84   : > { %352 = vst [vmem:[%s2918_s24 + $0x388] sm:$0xff] %v351_v49 }
  0x85   : > { %354 = vst [vmem:[%s2918_s24 + $0x390] sm:$0xff] %v353_v50 }
  0x86   : > { %356 = vst [vmem:[%s2918_s24 + $0x398] sm:$0xff] %v355_v51 }
  0x87   : > { %358 = vst [vmem:[%s2918_s24 + $0x3a0] sm:$0xff] %v357_v52 }
  0x88   : > { %360 = vst [vmem:[%s2918_s24 + $0x3a8] sm:$0xff] %v359_v53 }
  0x89   : > { %362 = vst [vmem:[%s2918_s24 + $0x3b0] sm:$0xff] %v361_v54 }
  0x8a   : > { %364 = vst [vmem:[%s2918_s24 + $0x3b8] sm:$0xff] %v363_v55 }
  0x8b   : > { %366 = vst [vmem:[%s2918_s24 + $0x3c0] sm:$0xff] %v365_v56 }
  0x8c   : > { %368 = vst [vmem:[%s2918_s24 + $0x3c8] sm:$0xff] %v367_v57 }
  0x8d   : > { %370 = vst [vmem:[%s2918_s24 + $0x3d0] sm:$0xff] %v369_v58 }
  0x8e   : > { %372 = vst [vmem:[%s2918_s24 + $0x3d8] sm:$0xff] %v371_v59 }
  0x8f   : > { %374 = vst [vmem:[%s2918_s24 + $0x3e0] sm:$0xff] %v373_v60 }
  0x90   : > { %376 = vst [vmem:[%s2918_s24 + $0x3e8] sm:$0xff] %v375_v61 }
  0x91   : > { %378 = vst [vmem:[%s2918_s24 + $0x3f0] sm:$0xff] %v377_v62 }
  0x92   : > { %380 = vst [vmem:[%s2918_s24 + $0x3f8] sm:$0xff] %v379_v63 }
  0x93   : > { %382 = vst [vmem:[%s2918_s24 + $0x400] sm:$0xff] %v381_v0 }
  0x94   : > { %384 = vst [vmem:[%s2918_s24 + $0x408] sm:$0xff] %v383_v1 }
  0x95   : > { %386 = vst [vmem:[%s2918_s24 + $0x410] sm:$0xff] %v385_v2 }
  0x96   : > { %388 = vst [vmem:[%s2918_s24 + $0x418] sm:$0xff] %v387_v3 }
  0x97   : > { %390 = vst [vmem:[%s2918_s24 + $0x420] sm:$0xff] %v389_v4 }
  0x98   : > { %392 = vst [vmem:[%s2918_s24 + $0x428] sm:$0xff] %v391_v5 }
  0x99   : > { %394 = vst [vmem:[%s2918_s24 + $0x430] sm:$0xff] %v393_v6 }
  0x9a   : > { %396 = vst [vmem:[%s2918_s24 + $0x438] sm:$0xff] %v395_v7 }
  0x9b   : > { %398 = vst [vmem:[%s2918_s24 + $0x440] sm:$0xff] %v397_v8 }
  0x9c   : > { %400 = vst [vmem:[%s2918_s24 + $0x448] sm:$0xff] %v399_v9 }
  0x9d   : > { %402 = vst [vmem:[%s2918_s24 + $0x450] sm:$0xff] %v401_v10 }
  0x9e   : > { %404 = vst [vmem:[%s2918_s24 + $0x458] sm:$0xff] %v403_v11 }
  0x9f   : > { %406 = vst [vmem:[%s2918_s24 + $0x460] sm:$0xff] %v405_v12 }
  0xa0   : > { %408 = vst [vmem:[%s2918_s24 + $0x468] sm:$0xff] %v407_v13 }
  0xa1   : > { %410 = vst [vmem:[%s2918_s24 + $0x470] sm:$0xff] %v409_v14 }
  0xa2   : > { %412 = vst [vmem:[%s2918_s24 + $0x478] sm:$0xff] %v411_v15 }
  0xa3 PF: > { %p1989_p7 = scmp.ge.s32.totalorder %s2856_s11, 1  ;;  %p417_p8 = scmp.lt.s32.totalorder %s2856_s11, 5 }
  0xa5   : > { %p418_p9 = pnand %p1989_p7, %p417_p8 }
  0xa6   : > { %s424_s25 = sand.u32 (!%p418_p9), 1, %s2848_s9  }
  0xa7   : > { %421 = sbr.rel (%p418_p9) target bundleno = 491 (0x1eb), region = 47  ;;  %s1990_s8 = sshll.u32 (!%p418_p9), %s424_s25, 8 }
  0xa8   : > { %s2745_s26 = smul.u32 (!%p418_p9), 1152, %s424_s25  ;;  %s3566_s14 = scalar_lea.vmem (!%p418_p9), [#allocation3], %s1990_s8 }
  0xaa   : > { %s3210_s27 = scalar_lea.vmem (!%p418_p9), [#allocation2], %s2745_s26 }
  0xac   : > { %vm1322_vm0 = vcmask 130048   ;;  %v2449_v16 = vld [vmem:[%s3210_s27 + $0x380] sm:$0xf]  ;;  %v2597_v19 = vld [vmem:[%s3683_s0 + $0x4] sm:$0xf]  ;;  %s2743_s9 = sshll.u32 (%p2903_p5), %s1983_s12, 7 }
  0xad   : > { %v2719_v17 = vld [vmem:[%s3210_s27 + $0x3bc] sm:$0xf0]  ;;  %v1995_v20 = vld [vmem:[%s3683_s0 + $0x8] sm:$0xf0]  ;;  %v2457_v23 = vld [vmem:[%s3210_s27 + $0x388] sm:$0xf]  ;;  %s3609_s17 = scalar_lea.vmem (%p2903_p5), %s3685_s2, %s2743_s9 }
  0xae   : > { %v2513_v18 = vld [vmem:[%s3210_s27 + $0x400] sm:$0xf]  ;;  %v2450_v21 = vor.u32 %v2719_v17, %v2449_v16  ;;  %v2720_v24 = vld [vmem:[%s3210_s27 + $0x3c4] sm:$0xf0]  ;;  %v2711_v27 = vld [vmem:[%s3210_s27 + $0x384] sm:$0xf]  ;;  %v3236_v43 = vor.u32 %v2597_v19, %v1995_v20 }
  0xaf   : > { %v2735_v22 = vld [vmem:[%s3210_s27 + $0x43c] sm:$0xf0]  ;;  %v2458_v26 = vor.u32 %v2720_v24, %v2457_v23  ;;  %v2451_v28 = vld [vmem:[%s3210_s27 + $0x3c0] sm:$0xf0]  ;;  %v2393_v32 = vld [vmem:[%s3210_s27 + $0x308] sm:$0xf] }
  0xb0   : > { %v2514_v25 = vor.u32 %v2735_v22, %v2513_v18  ;;  %v2385_v29 = vld [vmem:[%s3210_s27 + $0x300] sm:$0xf]  ;;  %1326 = vmatpush.bf16.msra.mxu0 %v2450_v21  ;;  %v2454_v30 = vor.u32 %v2711_v27, %v2451_v28  ;;  %v2704_v33 = vld [vmem:[%s3210_s27 + $0x344] sm:$0xf0]  ;;  %v2695_v36 = vld [vmem:[%s3210_s27 + $0x304] sm:$0xf] }
  0xb1   : > { %v2703_v31 = vld [vmem:[%s3210_s27 + $0x33c] sm:$0xf0]  ;;  %1382 = vmatpush.bf16.msra.mxu1 %v2458_v26  ;;  %v2394_v35 = vor.u32 %v2704_v33, %v2393_v32  ;;  %v2387_v37 = vld [vmem:[%s3210_s27 + $0x340] sm:$0xf0]  ;;  %v2329_v45 = vld [vmem:[%s3210_s27 + $0x288] sm:$0xf] }
  0xb2   : > { %1347 = vmatpush.bf16.msra.mxu2 %v2514_v25  ;;  %v2386_v34 = vor.u32 %v2703_v31, %v2385_v29  ;;  %v2727_v38 = vld [vmem:[%s3210_s27 + $0x404] sm:$0xf]  ;;  %v2390_v39 = vor.u32 %v2695_v36, %v2387_v37  ;;  %v2321_v41 = vld [vmem:[%s3210_s27 + $0x280] sm:$0xf]  ;;  %v2688_v46 = vld [vmem:[%s3210_s27 + $0x2c4] sm:$0xf0] }
  0xb3   : > { %v2515_v40 = vld [vmem:[%s3210_s27 + $0x440] sm:$0xf0]  ;;  %v2687_v42 = vld [vmem:[%s3210_s27 + $0x2bc] sm:$0xf0]  ;;  %v2521_v47 = vld [vmem:[%s3210_s27 + $0x408] sm:$0xf]  ;;  %v2330_v52 = vor.u32 %v2688_v46, %v2329_v45 }
  0xb4   : > { %v2518_v44 = vor.u32 %v2727_v38, %v2515_v40  ;;  %1327 = vmatpush.bf16.msra.mxu0 %v2386_v34  ;;  %v2322_v48 = vor.u32 %v2687_v42, %v2321_v41  ;;  %v2736_v49 = vld [vmem:[%s3210_s27 + $0x444] sm:$0xf0]  ;;  %v2679_v50 = vld [vmem:[%s3210_s27 + $0x284] sm:$0xf]  ;;  %v2712_v54 = vld [vmem:[%s3210_s27 + $0x38c] sm:$0xf] }
  0xb5   : > { %v2323_v51 = vld [vmem:[%s3210_s27 + $0x2c0] sm:$0xf0]  ;;  %2575 = vmatmul.msk.bf16.vlgmr.msra.gmra.mxu2 %vm1322_vm0, %v3236_v43  ;;  %1383 = vmatpush.bf16.msra.mxu1 %v2394_v35  ;;  %v2522_v53 = vor.u32 %v2736_v49, %v2521_v47  ;;  %v2459_v55 = vld [vmem:[%s3210_s27 + $0x3c8] sm:$0xf0]  ;;  %v2257_v56 = vld [vmem:[%s3210_s27 + $0x200] sm:$0xf] }
  0xb6   : > { %1354 = vmatpush.bf16.msrb.mxu2 %v2454_v30  ;;  %1375 = vmatpush.bf16.msra.mxu3 %v2518_v44  ;;  %v2326_v57 = vor.u32 %v2679_v50, %v2323_v51  ;;  %v2462_v58 = vor.u32 %v2712_v54, %v2459_v55  ;;  %v2671_v59 = vld [vmem:[%s3210_s27 + $0x23c] sm:$0xf0]  ;;  %v2265_v60 = vld [vmem:[%s3210_s27 + $0x208] sm:$0xf]  ;;  %v2663_v62 = vld [vmem:[%s3210_s27 + $0x204] sm:$0xf] }
  0xb7   : > { %v2672_v61 = vld [vmem:[%s3210_s27 + $0x244] sm:$0xf0]  ;;  %v2259_v63 = vld [vmem:[%s3210_s27 + $0x240] sm:$0xf0]  ;;  %v2696_v0 = vld [vmem:[%s3210_s27 + $0x30c] sm:$0xf]  ;;  %v2258_v1 = vor.u32 %v2671_v59, %v2257_v56 }
  0xb8   : > { %1328 = vmatpush.bf16.msra.mxu0 %v2322_v48  ;;  %v2395_v2 = vld [vmem:[%s3210_s27 + $0x348] sm:$0xf0]  ;;  %v2266_v3 = vor.u32 %v2672_v61, %v2265_v60  ;;  %v2193_v5 = vld [vmem:[%s3210_s27 + $0x180] sm:$0xf]  ;;  %v2201_v7 = vld [vmem:[%s3210_s27 + $0x188] sm:$0xf]  ;;  %v2262_v8 = vor.u32 %v2663_v62, %v2259_v63 }
  0xb9   : > { %2576 = vmatmul.msk.bf16.vlgmr.msra.gmra.mxu3 %vm1322_vm0, %v3236_v43  ;;  %1384 = vmatpush.bf16.msra.mxu1 %v2330_v52  ;;  %v2398_v4 = vor.u32 %v2696_v0, %v2395_v2  ;;  %v2655_v6 = vld [vmem:[%s3210_s27 + $0x1bc] sm:$0xf0]  ;;  %v2656_v9 = vld [vmem:[%s3210_s27 + $0x1c4] sm:$0xf0]  ;;  %v2680_v10 = vld [vmem:[%s3210_s27 + $0x28c] sm:$0xf] }
  0xba   : > { %1355 = vmatpush.bf16.msrb.mxu2 %v2390_v39  ;;  %1403 = vmatpush.bf16.msrb.mxu3 %v2522_v53  ;;  %v2331_v11 = vld [vmem:[%s3210_s27 + $0x2c8] sm:$0xf0]  ;;  %v2647_v12 = vld [vmem:[%s3210_s27 + $0x184] sm:$0xf]  ;;  %v2194_v14 = vor.u32 %v2655_v6, %v2193_v5  ;;  %v2202_v15 = vor.u32 %v2656_v9, %v2201_v7  ;;  %v2129_v17 = vld [vmem:[%s3210_s27 + $0x100] sm:$0xf] }
  0xbb   : > { %v2195_v13 = vld [vmem:[%s3210_s27 + $0x1c0] sm:$0xf0]  ;;  %v2334_v16 = vor.u32 %v2680_v10, %v2331_v11  ;;  %v2639_v18 = vld [vmem:[%s3210_s27 + $0x13c] sm:$0xf0]  ;;  %v2137_v19 = vld [vmem:[%s3210_s27 + $0x108] sm:$0xf] }
  0xbc   : > { %1329 = vmatpush.bf16.msra.mxu0 %v2258_v1  ;;  %v2198_v20 = vor.u32 %v2647_v12, %v2195_v13  ;;  %v2640_v21 = vld [vmem:[%s3210_s27 + $0x144] sm:$0xf0]  ;;  %v2664_v22 = vld [vmem:[%s3210_s27 + $0x20c] sm:$0xf]  ;;  %v2631_v24 = vld [vmem:[%s3210_s27 + $0x104] sm:$0xf]  ;;  %v2130_v26 = vor.u32 %v2639_v18, %v2129_v17 }
  0xbd   : > { %1385 = vmatpush.bf16.msra.mxu1 %v2266_v3  ;;  %v2267_v23 = vld [vmem:[%s3210_s27 + $0x248] sm:$0xf0]  ;;  %v2131_v25 = vld [vmem:[%s3210_s27 + $0x140] sm:$0xf0]  ;;  %v2138_v27 = vor.u32 %v2640_v21, %v2137_v19  ;;  %v2065_v29 = vld [vmem:[%s3210_s27 + $0x80] sm:$0xf] }
  0xbe   : > { %1410 = vmatpush.bf16.msra.mxu3 %v2462_v58  ;;  %1356 = vmatpush.bf16.msrb.mxu2 %v2326_v57  ;;  %v2270_v28 = vor.u32 %v2664_v22, %v2267_v23  ;;  %v2623_v30 = vld [vmem:[%s3210_s27 + $0xbc] sm:$0xf0]  ;;  %v2073_v31 = vld [vmem:[%s3210_s27 + $0x88] sm:$0xf]  ;;  %v2134_v32 = vor.u32 %v2631_v24, %v2131_v25  ;;  %v2648_v34 = vld [vmem:[%s3210_s27 + $0x18c] sm:$0xf] }
  0xbf   : > { %v2624_v33 = vld [vmem:[%s3210_s27 + $0xc4] sm:$0xf0]  ;;  %v2203_v35 = vld [vmem:[%s3210_s27 + $0x1c8] sm:$0xf0]  ;;  %v2615_v36 = vld [vmem:[%s3210_s27 + $0x84] sm:$0xf]  ;;  %v2066_v38 = vor.u32 %v2623_v30, %v2065_v29 }
  0xc0   : > { %1330 = vmatpush.bf16.msra.mxu0 %v2194_v14  ;;  %v2067_v37 = vld [vmem:[%s3210_s27 + $0xc0] sm:$0xf0]  ;;  %v2001_v39 = vld [vmem:[%s3210_s27] sm:$0xf]  ;;  %v2074_v41 = vor.u32 %v2624_v33, %v2073_v31  ;;  %v2206_v42 = vor.u32 %v2648_v34, %v2203_v35  ;;  %v2009_v44 = vld [vmem:[%s3210_s27 + $0x8] sm:$0xf] }
  0xc1   : > { %1386 = vmatpush.bf16.msra.mxu1 %v2202_v15  ;;  %v2607_v40 = vld [vmem:[%s3210_s27 + $0x3c] sm:$0xf0]  ;;  %v2608_v45 = vld [vmem:[%s3210_s27 + $0x44] sm:$0xf0]  ;;  %v2599_v46 = vld [vmem:[%s3210_s27 + $0x4] sm:$0xf]  ;;  %v2070_v47 = vor.u32 %v2615_v36, %v2067_v37 }
  0xc2   : > { %1411 = vmatpush.bf16.msra.mxu3 %v2398_v4  ;;  %1357 = vmatpush.bf16.msrb.mxu2 %v2262_v8  ;;  %v2003_v48 = vld [vmem:[%s3210_s27 + $0x40] sm:$0xf0]  ;;  %v2632_v49 = vld [vmem:[%s3210_s27 + $0x10c] sm:$0xf]  ;;  %v2465_v51 = vld [vmem:[%s3210_s27 + $0x390] sm:$0xf]  ;;  %v2002_v54 = vor.u32 %v2607_v40, %v2001_v39  ;;  %v2010_v58 = vor.u32 %v2608_v45, %v2009_v44 }
  0xc3   : > { %v2139_v50 = vld [vmem:[%s3210_s27 + $0x148] sm:$0xf0]  ;;  %v2721_v55 = vld [vmem:[%s3210_s27 + $0x3cc] sm:$0xf0]  ;;  %v1993_v56 = vld [vmem:[%s3683_s0] sm:$0xf]  ;;  %v2006_v62 = vor.u32 %v2599_v46, %v2003_v48 }
  0xc4   : > { %1331 = vmatpush.bf16.msra.mxu0 %v2130_v26  ;;  %v2728_v52 = vld [vmem:[%s3210_s27 + $0x40c] sm:$0xf]  ;;  %v2598_v57 = vld [vmem:[%s3683_s0 + $0x4] sm:$0xf0]  ;;  %v2142_v59 = vor.u32 %v2632_v49, %v2139_v50  ;;  %v2713_v60 = vld [vmem:[%s3210_s27 + $0x394] sm:$0xf]  ;;  %v2466_v2 = vor.u32 %v2721_v55, %v2465_v51 }
  0xc5   : > { %1387 = vmatpush.bf16.msra.mxu1 %v2138_v27  ;;  %v2523_v53 = vld [vmem:[%s3210_s27 + $0x448] sm:$0xf0]  ;;  %v2467_v61 = vld [vmem:[%s3210_s27 + $0x3d0] sm:$0xf0]  ;;  %v3306_v3 = vor.u32 %v2598_v57, %v1993_v56  ;;  %v2529_v4 = vld [vmem:[%s3210_s27 + $0x410] sm:$0xf] }
  0xc6   : > { %1412 = vmatpush.bf16.msra.mxu3 %v2334_v16  ;;  %1358 = vmatpush.bf16.msrb.mxu2 %v2198_v20  ;;  %v2526_v63 = vor.u32 %v2728_v52, %v2523_v53  ;;  %v2616_v0 = vld [vmem:[%s3210_s27 + $0x8c] sm:$0xf]  ;;  %v2737_v5 = vld [vmem:[%s3210_s27 + $0x44c] sm:$0xf0]  ;;  %v2470_v6 = vor.u32 %v2713_v60, %v2467_v61  ;;  %v2697_v10 = vld [vmem:[%s3210_s27 + $0x314] sm:$0xf] }
  0xc7   : > { %v2075_v1 = vld [vmem:[%s3210_s27 + $0xc8] sm:$0xf0]  ;;  %v2401_v7 = vld [vmem:[%s3210_s27 + $0x310] sm:$0xf]  ;;  %v2403_v11 = vld [vmem:[%s3210_s27 + $0x350] sm:$0xf0]  ;;  %v2530_v13 = vor.u32 %v2737_v5, %v2529_v4 }
  0xc8   : > { %1332 = vmatpush.bf16.msra.mxu0 %v2066_v38  ;;  %v2705_v8 = vld [vmem:[%s3210_s27 + $0x34c] sm:$0xf0]  ;;  %v2078_v9 = vor.u32 %v2616_v0, %v2075_v1  ;;  %v2600_v12 = vld [vmem:[%s3210_s27 + $0xc] sm:$0xf]  ;;  %v2729_v15 = vld [vmem:[%s3210_s27 + $0x414] sm:$0xf]  ;;  %v2406_v21 = vor.u32 %v2697_v10, %v2403_v11 }
  0xc9   : > { %2577 = vmatmul.msk.bf16.vlgmr.msrb.gmra.mxu3 %vm1322_vm0, %v3236_v43  ;;  %1388 = vmatpush.bf16.msra.mxu1 %v2074_v41  ;;  %v2011_v14 = vld [vmem:[%s3210_s27 + $0x48] sm:$0xf0]  ;;  %v2531_v16 = vld [vmem:[%s3210_s27 + $0x450] sm:$0xf0]  ;;  %v2402_v17 = vor.u32 %v2705_v8, %v2401_v7  ;;  %v2473_v18 = vld [vmem:[%s3210_s27 + $0x398] sm:$0xf] }
  0xca   : > { %1413 = vmatpush.bf16.msra.mxu3 %v2270_v28  ;;  %1359 = vmatpush.bf16.msrb.mxu2 %v2134_v32  ;;  %v2722_v19 = vld [vmem:[%s3210_s27 + $0x3d4] sm:$0xf0]  ;;  %v2534_v20 = vor.u32 %v2729_v15, %v2531_v16  ;;  %v2337_v22 = vld [vmem:[%s3210_s27 + $0x290] sm:$0xf]  ;;  %v2014_v24 = vor.u32 %v2600_v12, %v2011_v14  ;;  %v2681_v25 = vld [vmem:[%s3210_s27 + $0x294] sm:$0xf] }
  0xcb   : > { %v2689_v23 = vld [vmem:[%s3210_s27 + $0x2cc] sm:$0xf0]  ;;  %v2339_v26 = vld [vmem:[%s3210_s27 + $0x2d0] sm:$0xf0]  ;;  %v2474_v27 = vor.u32 %v2722_v19, %v2473_v18  ;;  %v2409_v29 = vld [vmem:[%s3210_s27 + $0x318] sm:$0xf] }
  0xcc   : > { %1333 = vmatpush.bf16.msra.mxu0 %v2002_v54  ;;  %v2338_v28 = vor.u32 %v2689_v23, %v2337_v22  ;;  %v2706_v30 = vld [vmem:[%s3210_s27 + $0x354] sm:$0xf0]  ;;  %v2342_v31 = vor.u32 %v2681_v25, %v2339_v26  ;;  %v2273_v32 = vld [vmem:[%s3210_s27 + $0x210] sm:$0xf]  ;;  %v2665_v34 = vld [vmem:[%s3210_s27 + $0x214] sm:$0xf] }
  0xcd   : > { %1389 = vmatpush.bf16.msra.mxu1 %v2010_v58  ;;  %v2673_v33 = vld [vmem:[%s3210_s27 + $0x24c] sm:$0xf0]  ;;  %v2275_v35 = vld [vmem:[%s3210_s27 + $0x250] sm:$0xf0]  ;;  %v2410_v36 = vor.u32 %v2706_v30, %v2409_v29  ;;  %v2345_v38 = vld [vmem:[%s3210_s27 + $0x298] sm:$0xf] }
  0xce   : > { %1414 = vmatpush.bf16.msra.mxu3 %v2206_v42  ;;  %1360 = vmatpush.bf16.msrb.mxu2 %v2070_v47  ;;  %v2274_v37 = vor.u32 %v2673_v33, %v2273_v32  ;;  %v2690_v39 = vld [vmem:[%s3210_s27 + $0x2d4] sm:$0xf0]  ;;  %v2278_v40 = vor.u32 %v2665_v34, %v2275_v35  ;;  %v2209_v41 = vld [vmem:[%s3210_s27 + $0x190] sm:$0xf]  ;;  %v2649_v44 = vld [vmem:[%s3210_s27 + $0x194] sm:$0xf] }
  0xcf   : > { %1334 = vmatmul.bf16.vlgmr.msra.gmra.mxu0 %v3306_v3  ;;  %v2657_v42 = vld [vmem:[%s3210_s27 + $0x1cc] sm:$0xf0]  ;;  %v2211_v45 = vld [vmem:[%s3210_s27 + $0x1d0] sm:$0xf0]  ;;  %v2346_v46 = vor.u32 %v2690_v39, %v2345_v38  ;;  %v2714_v47 = vld [vmem:[%s3210_s27 + $0x39c] sm:$0xf] }
  0xd0   : > { %1431 = vmatpush.bf16.msrb.mxu0 %v2526_v63  ;;  %1390 = vmatmul.bf16.vlgmr.msra.gmra.mxu1 %v3306_v3  ;;  %v2475_v48 = vld [vmem:[%s3210_s27 + $0x3d8] sm:$0xf0]  ;;  %v2210_v49 = vor.u32 %v2657_v42, %v2209_v41  ;;  %v2281_v50 = vld [vmem:[%s3210_s27 + $0x218] sm:$0xf]  ;;  %v2214_v52 = vor.u32 %v2649_v44, %v2211_v45  ;;  %v2145_v53 = vld [vmem:[%s3210_s27 + $0x110] sm:$0xf] }
  0xd1   : > { %1459 = vmatpush.bf16.msrb.mxu1 %v2530_v13  ;;  %v2674_v51 = vld [vmem:[%s3210_s27 + $0x254] sm:$0xf0]  ;;  %v2641_v54 = vld [vmem:[%s3210_s27 + $0x14c] sm:$0xf0]  ;;  %v2478_v55 = vor.u32 %v2714_v47, %v2475_v48  ;;  %v2633_v56 = vld [vmem:[%s3210_s27 + $0x114] sm:$0xf] }
  0xd2   : > { %1415 = vmatpush.bf16.msra.mxu3 %v2142_v59  ;;  %1361 = vmatpush.bf16.msrb.mxu2 %v2006_v62  ;;  %v2147_v57 = vld [vmem:[%s3210_s27 + $0x150] sm:$0xf0]  ;;  %v2282_v58 = vor.u32 %v2674_v51, %v2281_v50  ;;  %v2698_v59 = vld [vmem:[%s3210_s27 + $0x31c] sm:$0xf]  ;;  %v2146_v61 = vor.u32 %v2641_v54, %v2145_v53  ;;  %v2217_v62 = vld [vmem:[%s3210_s27 + $0x198] sm:$0xf] }
  0xd3   : > { %v2411_v60 = vld [vmem:[%s3210_s27 + $0x358] sm:$0xf0]  ;;  %v2658_v63 = vld [vmem:[%s3210_s27 + $0x1d4] sm:$0xf0]  ;;  %v2150_v0 = vor.u32 %v2633_v56, %v2147_v57  ;;  %v2081_v1 = vld [vmem:[%s3210_s27 + $0x90] sm:$0xf] }
  0xd4   : > { %1466 = vmatpush.bf16.msra.mxu0 %v2470_v6  ;;  %v2414_v4 = vor.u32 %v2698_v59, %v2411_v60  ;;  %v2617_v5 = vld [vmem:[%s3210_s27 + $0x94] sm:$0xf]  ;;  %v2218_v7 = vor.u32 %v2658_v63, %v2217_v62  ;;  %v2682_v8 = vld [vmem:[%s3210_s27 + $0x29c] sm:$0xf]  ;;  %v2017_v11 = vld [vmem:[%s3210_s27 + $0x10] sm:$0xf] }
  0xd5   : > { %1362 = vmatmul.bf16.vlgmr.msrb.gmra.mxu2 %v3306_v3  ;;  %1487 = vmatpush.bf16.msra.mxu1 %v2534_v20  ;;  %v2083_v6 = vld [vmem:[%s3210_s27 + $0xd0] sm:$0xf0]  ;;  %v2153_v12 = vld [vmem:[%s3210_s27 + $0x118] sm:$0xf]  ;;  %v2609_v15 = vld [vmem:[%s3210_s27 + $0x4c] sm:$0xf0] }
  0xd6   : > { %1438 = vmatpush.bf16.msra.mxu2 %v2466_v2  ;;  %1416 = vmatpush.bf16.msra.mxu3 %v2078_v9  ;;  %v2625_v2 = vld [vmem:[%s3210_s27 + $0xcc] sm:$0xf0]  ;;  %v2347_v9 = vld [vmem:[%s3210_s27 + $0x2d8] sm:$0xf0]  ;;  %v2642_v13 = vld [vmem:[%s3210_s27 + $0x154] sm:$0xf0]  ;;  %v2086_v14 = vor.u32 %v2617_v5, %v2083_v6  ;;  %v2018_v26 = vor.u32 %v2609_v15, %v2017_v11 }
  0xd7   : > { %v2082_v10 = vor.u32 %v2625_v2, %v2081_v1  ;;  %v2601_v16 = vld [vmem:[%s3210_s27 + $0x14] sm:$0xf]  ;;  %v2350_v18 = vor.u32 %v2682_v8, %v2347_v9  ;;  %v2666_v19 = vld [vmem:[%s3210_s27 + $0x21c] sm:$0xf]  ;;  %v2537_v20 = vld [vmem:[%s3210_s27 + $0x418] sm:$0xf]  ;;  %v2154_v22 = vor.u32 %v2642_v13, %v2153_v12 }
  0xd8   : > { %1467 = vmatpush.bf16.msra.mxu0 %v2406_v21  ;;  %v2738_v21 = vld [vmem:[%s3210_s27 + $0x454] sm:$0xf0]  ;;  %v2283_v23 = vld [vmem:[%s3210_s27 + $0x258] sm:$0xf0]  ;;  %v2723_v32 = vld [vmem:[%s3210_s27 + $0x3dc] sm:$0xf0] }
  0xd9   : > { %v2539_v25 = vld [vmem:[%s3210_s27 + $0x458] sm:$0xf0]  ;;  %v2538_v30 = vor.u32 %v2738_v21, %v2537_v20  ;;  %v2286_v33 = vor.u32 %v2666_v19, %v2283_v23  ;;  %v2715_v35 = vld [vmem:[%s3210_s27 + $0x3a4] sm:$0xf]  ;;  %v2025_v41 = vld [vmem:[%s3210_s27 + $0x18] sm:$0xf] }
  0xda   : > { %1439 = vmatpush.bf16.msra.mxu2 %v2402_v17  ;;  %1417 = vmatpush.bf16.msra.mxu3 %v2014_v24  ;;  %v2019_v17 = vld [vmem:[%s3210_s27 + $0x50] sm:$0xf0]  ;;  %v2730_v24 = vld [vmem:[%s3210_s27 + $0x41c] sm:$0xf]  ;;  %v2610_v42 = vld [vmem:[%s3210_s27 + $0x54] sm:$0xf0] }
  0xdb   : > { %v2022_v29 = vor.u32 %v2601_v16, %v2019_v17  ;;  %v2542_v34 = vor.u32 %v2730_v24, %v2539_v25  ;;  %v2650_v38 = vld [vmem:[%s3210_s27 + $0x19c] sm:$0xf]  ;;  %v2417_v44 = vld [vmem:[%s3210_s27 + $0x320] sm:$0xf]  ;;  %v2699_v50 = vld [vmem:[%s3210_s27 + $0x324] sm:$0xf] }
  0xdc   : > { %1468 = vmatpush.bf16.msra.mxu0 %v2342_v31  ;;  %v2481_v31 = vld [vmem:[%s3210_s27 + $0x3a0] sm:$0xf]  ;;  %v2219_v39 = vld [vmem:[%s3210_s27 + $0x1d8] sm:$0xf0]  ;;  %v2419_v51 = vld [vmem:[%s3210_s27 + $0x360] sm:$0xf0] }
  0xdd   : > { %1418 = vmatmul.bf16.vlgmr.msra.gmra.mxu3 %v3306_v3  ;;  %v2545_v47 = vld [vmem:[%s3210_s27 + $0x420] sm:$0xf]  ;;  %v2634_v53 = vld [vmem:[%s3210_s27 + $0x11c] sm:$0xf]  ;;  %v2489_v57 = vld [vmem:[%s3210_s27 + $0x3a8] sm:$0xf]  ;;  %v2422_v59 = vor.u32 %v2699_v50, %v2419_v51 }
  0xde   : > { %1494 = vmatpush.bf16.msrb.mxu3 %v2474_v27  ;;  %1440 = vmatpush.bf16.msra.mxu2 %v2338_v28  ;;  %v2089_v27 = vld [vmem:[%s3210_s27 + $0x98] sm:$0xf]  ;;  %v2739_v48 = vld [vmem:[%s3210_s27 + $0x45c] sm:$0xf0]  ;;  %v2155_v54 = vld [vmem:[%s3210_s27 + $0x158] sm:$0xf0] }
  0xdf   : > { %2578 = vmatmul.msk.bf16.vlgmr.msrb.gmra.mxu0 %vm1322_vm0, %v3236_v43  ;;  %v2626_v28 = vld [vmem:[%s3210_s27 + $0xd4] sm:$0xf0]  ;;  %v2546_v56 = vor.u32 %v2739_v48, %v2545_v47  ;;  %v2353_v60 = vld [vmem:[%s3210_s27 + $0x2a0] sm:$0xf]  ;;  %v2158_v62 = vor.u32 %v2634_v53, %v2155_v54  ;;  %v2683_v63 = vld [vmem:[%s3210_s27 + $0x2a4] sm:$0xf] }
  0xe0   : > { %1469 = vmatpush.bf16.msra.mxu0 %v2278_v40  ;;  %2579 = vmatmul.msk.bf16.vlgmr.msrb.gmra.mxu1 %vm1322_vm0, %v3236_v43  ;;  %v2482_v40 = vor.u32 %v2723_v32, %v2481_v31  ;;  %v2618_v2 = vld [vmem:[%s3210_s27 + $0x9c] sm:$0xf]  ;;  %v2425_v6 = vld [vmem:[%s3210_s27 + $0x328] sm:$0xf]  ;;  %v2289_v9 = vld [vmem:[%s3210_s27 + $0x220] sm:$0xf] }
  0xe1   : > { %1522 = vmatpush.bf16.msrb.mxu1 %v2478_v55  ;;  %v2667_v12 = vld [vmem:[%s3210_s27 + $0x224] sm:$0xf]  ;;  %v2602_v15 = vld [vmem:[%s3210_s27 + $0x1c] sm:$0xf]  ;;  %v2692_v19 = vld [vmem:[%s3210_s27 + $0x2e4] sm:$0xf0] }
  0xe2   : > { %1495 = vmatpush.bf16.msrb.mxu3 %v2410_v36  ;;  %1441 = vmatpush.bf16.msra.mxu2 %v2274_v37  ;;  %v2483_v36 = vld [vmem:[%s3210_s27 + $0x3e0] sm:$0xf0]  ;;  %v2090_v37 = vor.u32 %v2626_v28, %v2089_v27  ;;  %v2027_v16 = vld [vmem:[%s3210_s27 + $0x58] sm:$0xf0]  ;;  %v2225_v21 = vld [vmem:[%s3210_s27 + $0x1a0] sm:$0xf] }
  0xe3   : > { %v2486_v45 = vor.u32 %v2715_v35, %v2483_v36  ;;  %v2291_v13 = vld [vmem:[%s3210_s27 + $0x260] sm:$0xf0]  ;;  %v2030_v23 = vor.u32 %v2602_v15, %v2027_v16  ;;  %v2491_v31 = vld [vmem:[%s3210_s27 + $0x3e8] sm:$0xf0]  ;;  %v2297_v32 = vld [vmem:[%s3210_s27 + $0x228] sm:$0xf] }
  0xe4   : > { %1470 = vmatpush.bf16.msra.mxu0 %v2214_v52  ;;  %v2026_v52 = vor.u32 %v2610_v42, %v2025_v41  ;;  %v2294_v20 = vor.u32 %v2667_v12, %v2291_v13  ;;  %v2651_v24 = vld [vmem:[%s3210_s27 + $0x1a4] sm:$0xf]  ;;  %v2161_v35 = vld [vmem:[%s3210_s27 + $0x120] sm:$0xf]  ;;  %v2700_v42 = vld [vmem:[%s3210_s27 + $0x32c] sm:$0xf] }
  0xe5   : > { %1523 = vmatpush.bf16.msrb.mxu1 %v2414_v4  ;;  %v2091_v4 = vld [vmem:[%s3210_s27 + $0xd8] sm:$0xf0]  ;;  %v2227_v25 = vld [vmem:[%s3210_s27 + $0x1e0] sm:$0xf0]  ;;  %v2643_v36 = vld [vmem:[%s3210_s27 + $0x15c] sm:$0xf0] }
  0xe6   : > { %1496 = vmatpush.bf16.msrb.mxu3 %v2346_v46  ;;  %1442 = vmatpush.bf16.msra.mxu2 %v2210_v49  ;;  %v2707_v46 = vld [vmem:[%s3210_s27 + $0x35c] sm:$0xf0]  ;;  %v2222_v49 = vor.u32 %v2650_v38, %v2219_v39  ;;  %v2094_v11 = vor.u32 %v2618_v2, %v2091_v4  ;;  %v2731_v27 = vld [vmem:[%s3210_s27 + $0x424] sm:$0xf]  ;;  %v2660_v47 = vld [vmem:[%s3210_s27 + $0x1e4] sm:$0xf0] }
  0xe7   : > { %v2418_v55 = vor.u32 %v2707_v46, %v2417_v44  ;;  %v2547_v28 = vld [vmem:[%s3210_s27 + $0x460] sm:$0xf0]  ;;  %v2162_v44 = vor.u32 %v2643_v36, %v2161_v35  ;;  %v2233_v46 = vld [vmem:[%s3210_s27 + $0x1a8] sm:$0xf]  ;;  %v2627_v50 = vld [vmem:[%s3210_s27 + $0xdc] sm:$0xf0] }
  0xe8   : > { %1471 = vmatpush.bf16.msra.mxu0 %v2150_v0  ;;  %v2355_v0 = vld [vmem:[%s3210_s27 + $0x2e0] sm:$0xf0]  ;;  %v2234_v54 = vor.u32 %v2660_v47, %v2233_v46  ;;  %v2740_v2 = vld [vmem:[%s3210_s27 + $0x464] sm:$0xf0]  ;;  %v2497_v15 = vld [vmem:[%s3210_s27 + $0x3b0] sm:$0xf] }
  0xe9   : > { %1524 = vmatpush.bf16.msrb.mxu1 %v2350_v18  ;;  %v2358_v8 = vor.u32 %v2683_v63, %v2355_v0  ;;  %v2361_v18 = vld [vmem:[%s3210_s27 + $0x2a8] sm:$0xf]  ;;  %v2635_v38 = vld [vmem:[%s3210_s27 + $0x124] sm:$0xf]  ;;  %v2725_v16 = vld [vmem:[%s3210_s27 + $0x3ec] sm:$0xf0] }
  0xea   : > { %1497 = vmatpush.bf16.msrb.mxu3 %v2282_v58  ;;  %1443 = vmatpush.bf16.msra.mxu2 %v2146_v61  ;;  %v2724_v58 = vld [vmem:[%s3210_s27 + $0x3e4] sm:$0xf0]  ;;  %v2691_v61 = vld [vmem:[%s3210_s27 + $0x2dc] sm:$0xf0]  ;;  %v2163_v39 = vld [vmem:[%s3210_s27 + $0x160] sm:$0xf0] }
  0xeb   : > { %v2490_v1 = vor.u32 %v2724_v58, %v2489_v57  ;;  %v2354_v5 = vor.u32 %v2691_v61, %v2353_v60  ;;  %v2166_v48 = vor.u32 %v2635_v38, %v2163_v39  ;;  %v2619_v51 = vld [vmem:[%s3210_s27 + $0xa4] sm:$0xf]  ;;  %v2363_v57 = vld [vmem:[%s3210_s27 + $0x2e8] sm:$0xf0]  ;;  %v2169_v58 = vld [vmem:[%s3210_s27 + $0x128] sm:$0xf] }
  0xec   : > { %1472 = vmatpush.bf16.msra.mxu0 %v2086_v14  ;;  %v2033_v61 = vld [vmem:[%s3210_s27 + $0x20] sm:$0xf]  ;;  %v2603_v63 = vld [vmem:[%s3210_s27 + $0x24] sm:$0xf]  ;;  %v2171_v38 = vld [vmem:[%s3210_s27 + $0x168] sm:$0xf0] }
  0xed   : > { %1525 = vmatpush.bf16.msrb.mxu1 %v2286_v33  ;;  %v2676_v33 = vld [vmem:[%s3210_s27 + $0x264] sm:$0xf0]  ;;  %v2035_v0 = vld [vmem:[%s3210_s27 + $0x60] sm:$0xf0]  ;;  %v2369_v39 = vld [vmem:[%s3210_s27 + $0x2b0] sm:$0xf] }
  0xee   : > { %1498 = vmatpush.bf16.msrb.mxu3 %v2218_v7  ;;  %1444 = vmatpush.bf16.msra.mxu2 %v2082_v10  ;;  %v2708_v7 = vld [vmem:[%s3210_s27 + $0x364] sm:$0xf0]  ;;  %v2675_v10 = vld [vmem:[%s3210_s27 + $0x25c] sm:$0xf0]  ;;  %v2298_v41 = vor.u32 %v2676_v33, %v2297_v32  ;;  %v2038_v12 = vor.u32 %v2603_v63, %v2035_v0  ;;  %v2701_v33 = vld [vmem:[%s3210_s27 + $0x334] sm:$0xf] }
  0xef   : > { %v2426_v14 = vor.u32 %v2708_v7, %v2425_v6  ;;  %v2290_v17 = vor.u32 %v2675_v10, %v2289_v9  ;;  %v2732_v6 = vld [vmem:[%s3210_s27 + $0x42c] sm:$0xf]  ;;  %v2685_v47 = vld [vmem:[%s3210_s27 + $0x2b4] sm:$0xf] }
  0xf0   : > { %1473 = vmatpush.bf16.msra.mxu0 %v2022_v29  ;;  %2580 = vmatmul.msk.bf16.vlgmr.msra.gmra.mxu1 %vm1322_vm0, %v3236_v43  ;;  %v2716_v29 = vld [vmem:[%s3210_s27 + $0x3ac] sm:$0xf] }
  0xf1   : > { %1526 = vmatpush.bf16.msrb.mxu1 %v2222_v49  ;;  %v2097_v49 = vld [vmem:[%s3210_s27 + $0xa0] sm:$0xf]  ;;  %v2555_v7 = vld [vmem:[%s3210_s27 + $0x468] sm:$0xf0] }
  0xf2   : > { %1499 = vmatpush.bf16.msrb.mxu3 %v2154_v22  ;;  %1445 = vmatpush.bf16.msra.mxu2 %v2018_v26  ;;  %v2659_v22 = vld [vmem:[%s3210_s27 + $0x1dc] sm:$0xf0]  ;;  %v2362_v26 = vor.u32 %v2692_v19, %v2361_v18  ;;  %v2668_v9 = vld [vmem:[%s3210_s27 + $0x22c] sm:$0xf]  ;;  %v2717_v19 = vld [vmem:[%s3210_s27 + $0x3b4] sm:$0xf] }
  0xf3   : > { %1474 = vmatmul.bf16.vlgmr.msra.gmra.mxu0 %v3306_v3  ;;  %v2299_v10 = vld [vmem:[%s3210_s27 + $0x268] sm:$0xf0] }
  0xf4   : > { %1543 = vmatpush.bf16.msrb.mxu0 %v2542_v34  ;;  %v2230_v34 = vor.u32 %v2651_v24, %v2227_v25  ;;  %v2302_v18 = vor.u32 %v2668_v9, %v2299_v10  ;;  %v2235_v24 = vld [vmem:[%s3210_s27 + $0x1e8] sm:$0xf0]  ;;  %v2041_v25 = vld [vmem:[%s3210_s27 + $0x28] sm:$0xf]  ;;  %v2653_v10 = vld [vmem:[%s3210_s27 + $0x1b4] sm:$0xf] }
  0xf5   : > { %1446 = vmatmul.bf16.vlgmr.msra.gmra.mxu2 %v3306_v3  ;;  %1527 = vmatpush.bf16.msrb.mxu1 %v2158_v62  ;;  %v2611_v62 = vld [vmem:[%s3210_s27 + $0x5c] sm:$0xf0]  ;;  %v2604_v63 = vld [vmem:[%s3210_s27 + $0x2c] sm:$0xf] }
  0xf6   : > { %1515 = vmatpush.bf16.msrb.mxu2 %v2538_v30  ;;  %1500 = vmatpush.bf16.msrb.mxu3 %v2090_v37  ;;  %v2226_v30 = vor.u32 %v2659_v22, %v2225_v21  ;;  %v2550_v37 = vor.u32 %v2731_v27, %v2547_v28  ;;  %v2498_v22 = vor.u32 %v2725_v16, %v2497_v15  ;;  %v2433_v27 = vld [vmem:[%s3210_s27 + $0x330] sm:$0xf]  ;;  %v2043_v0 = vld [vmem:[%s3210_s27 + $0x68] sm:$0xf0]  ;;  %v2507_v15 = vld [vmem:[%s3210_s27 + $0x3f8] sm:$0xf0] }
  0xf7   : > { %v2709_v28 = vld [vmem:[%s3210_s27 + $0x36c] sm:$0xf0]  ;;  %v2046_v9 = vor.u32 %v2604_v63, %v2043_v0  ;;  %v2654_v0 = vld [vmem:[%s3210_s27 + $0x1bc] sm:$0xf] }
  0xf8   : > { %1578 = vmatpush.bf16.msra.mxu0 %v2486_v45  ;;  %v2427_v45 = vld [vmem:[%s3210_s27 + $0x368] sm:$0xf0]  ;;  %v2434_v36 = vor.u32 %v2709_v28, %v2433_v27  ;;  %v2177_v16 = vld [vmem:[%s3210_s27 + $0x130] sm:$0xf]  ;;  %v2702_v27 = vld [vmem:[%s3210_s27 + $0x33c] sm:$0xf] }
  0xf9   : > { %1528 = vmatpush.bf16.msrb.mxu1 %v2094_v11  ;;  %v2430_v53 = vor.u32 %v2700_v42, %v2427_v45  ;;  %v2105_v11 = vld [vmem:[%s3210_s27 + $0xa8] sm:$0xf]  ;;  %v2505_v42 = vld [vmem:[%s3210_s27 + $0x3b8] sm:$0xf]  ;;  %v2443_v28 = vld [vmem:[%s3210_s27 + $0x378] sm:$0xf0] }
  0xfa   : > { %1550 = vmatpush.bf16.msra.mxu2 %v2482_v40  ;;  %1501 = vmatpush.bf16.msrb.mxu3 %v2026_v52  ;;  %v2494_v40 = vor.u32 %v2716_v29, %v2491_v31  ;;  %v2099_v52 = vld [vmem:[%s3210_s27 + $0xe0] sm:$0xf0]  ;;  %v2741_v31 = vld [vmem:[%s3210_s27 + $0x46c] sm:$0xf0] }
  0xfb   : > { %v2102_v60 = vor.u32 %v2619_v51, %v2099_v52  ;;  %v2620_v51 = vld [vmem:[%s3210_s27 + $0xac] sm:$0xf] }
  0xfc   : > { %1579 = vmatpush.bf16.msra.mxu0 %v2422_v59  ;;  %v2644_v59 = vld [vmem:[%s3210_s27 + $0x164] sm:$0xf0]  ;;  %v2107_v52 = vld [vmem:[%s3210_s27 + $0xe8] sm:$0xf0] }
  0xfd   : > { %1502 = vmatmul.bf16.vlgmr.msrb.gmra.mxu3 %v3306_v3  ;;  %1529 = vmatpush.bf16.msrb.mxu1 %v2030_v23  ;;  %v2652_v23 = vld [vmem:[%s3210_s27 + $0x1ac] sm:$0xf] }
  0xfe   : > { %1551 = vmatpush.bf16.msra.mxu2 %v2418_v55  ;;  %1571 = vmatpush.bf16.msra.mxu3 %v2546_v56  ;;  %v2684_v55 = vld [vmem:[%s3210_s27 + $0x2ac] sm:$0xf]  ;;  %v2098_v56 = vor.u32 %v2627_v50, %v2097_v49  ;;  %v2238_v32 = vor.u32 %v2652_v23, %v2235_v24  ;;  %v2637_v23 = vld [vmem:[%s3210_s27 + $0x134] sm:$0xf] }
  0xff   : > { %v2366_v4 = vor.u32 %v2684_v55, %v2363_v57  ;;  %v2441_v55 = vld [vmem:[%s3210_s27 + $0x338] sm:$0xf]  ;;  %v2179_v24 = vld [vmem:[%s3210_s27 + $0x170] sm:$0xf0] }
 0x100   : > { %1580 = vmatpush.bf16.msra.mxu0 %v2358_v8  ;;  %1530 = vmatmul.bf16.vlgmr.msrb.gmra.mxu1 %v3306_v3  ;;  %v2034_v8 = vor.u32 %v2611_v62, %v2033_v61 }
 0x101   : > { %1599 = vmatpush.bf16.msra.mxu1 %v2550_v37  ;;  %v2636_v37 = vld [vmem:[%s3210_s27 + $0x12c] sm:$0xf] }
 0x102   : > { %1606 = vmatpush.bf16.msrb.mxu3 %v2490_v1  ;;  %1552 = vmatpush.bf16.msra.mxu2 %v2354_v5  ;;  %v2553_v1 = vld [vmem:[%s3210_s27 + $0x428] sm:$0xf]  ;;  %v2170_v5 = vor.u32 %v2644_v59, %v2169_v58  ;;  %v2174_v46 = vor.u32 %v2636_v37, %v2171_v38  ;;  %v2110_v58 = vor.u32 %v2620_v51, %v2107_v52  ;;  %v2669_v59 = vld [vmem:[%s3210_s27 + $0x234] sm:$0xf] }
 0x103   : > { %2582 = vmatmul.msk.bf16.vlgmr.msrb.gmra.mxu0 %vm1322_vm0, %v3236_v43  ;;  %v2554_v13 = vor.u32 %v2740_v2, %v2553_v1  ;;  %v2241_v1 = vld [vmem:[%s3210_s27 + $0x1b0] sm:$0xf]  ;;  %v2051_v51 = vld [vmem:[%s3210_s27 + $0x70] sm:$0xf0] }
 0x104   : > { %1581 = vmatpush.bf16.msra.mxu0 %v2294_v20  ;;  %v2499_v20 = vld [vmem:[%s3210_s27 + $0x3f0] sm:$0xf0]  ;;  %v2661_v2 = vld [vmem:[%s3210_s27 + $0x1ec] sm:$0xf0] }
 0x105   : > { %2581 = vmatmul.msk.bf16.vlgmr.msrb.gmra.mxu2 %vm1322_vm0, %v3236_v43  ;;  %1634 = vmatpush.bf16.msrb.mxu1 %v2494_v40  ;;  %v2502_v29 = vor.u32 %v2717_v19, %v2499_v20  ;;  %v2313_v19 = vld [vmem:[%s3210_s27 + $0x238] sm:$0xf] }
 0x106   : > { %1607 = vmatpush.bf16.msrb.mxu3 %v2426_v14  ;;  %1553 = vmatpush.bf16.msra.mxu2 %v2290_v17  ;;  %v2628_v14 = vld [vmem:[%s3210_s27 + $0xe4] sm:$0xf0]  ;;  %v2558_v17 = vor.u32 %v2732_v6, %v2555_v7  ;;  %v2733_v7 = vld [vmem:[%s3210_s27 + $0x434] sm:$0xf]  ;;  %v2678_v20 = vld [vmem:[%s3210_s27 + $0x274] sm:$0xf0] }
 0x107   : > { %v2106_v21 = vor.u32 %v2628_v14, %v2105_v11  ;;  %v2243_v11 = vld [vmem:[%s3210_s27 + $0x1f0] sm:$0xf0]  ;;  %v2718_v14 = vld [vmem:[%s3210_s27 + $0x3bc] sm:$0xf] }
 0x108   : > { %1582 = vmatpush.bf16.msra.mxu0 %v2230_v34  ;;  %v2435_v34 = vld [vmem:[%s3210_s27 + $0x370] sm:$0xf0] }
 0x109   : > { %1635 = vmatpush.bf16.msrb.mxu1 %v2430_v53  ;;  %v2438_v45 = vor.u32 %v2701_v33, %v2435_v34  ;;  %v2305_v53 = vld [vmem:[%s3210_s27 + $0x230] sm:$0xf]  ;;  %v2182_v33 = vor.u32 %v2637_v23, %v2179_v24  ;;  %v2446_v34 = vor.u32 %v2702_v27, %v2443_v28 }
 0x10a   : > { %1608 = vmatpush.bf16.msrb.mxu3 %v2362_v26  ;;  %1554 = vmatpush.bf16.msra.mxu2 %v2226_v30  ;;  %v2612_v26 = vld [vmem:[%s3210_s27 + $0x64] sm:$0xf0]  ;;  %v2561_v30 = vld [vmem:[%s3210_s27 + $0x430] sm:$0xf] }
 0x10b   : > { %v2042_v35 = vor.u32 %v2612_v26, %v2041_v25  ;;  %v2562_v40 = vor.u32 %v2741_v31, %v2561_v30  ;;  %v2314_v26 = vor.u32 %v2678_v20, %v2313_v19  ;;  %v2629_v30 = vld [vmem:[%s3210_s27 + $0xec] sm:$0xf0]  ;;  %v2249_v31 = vld [vmem:[%s3210_s27 + $0x1b8] sm:$0xf] }
 0x10c   : > { %1583 = vmatpush.bf16.msra.mxu0 %v2166_v48  ;;  %v2371_v48 = vld [vmem:[%s3210_s27 + $0x2f0] sm:$0xf0] }
 0x10d   : > { %2583 = vmatmul.msk.bf16.vlgmr.msra.gmra.mxu3 %vm1322_vm0, %v3236_v43  ;;  %1636 = vmatpush.bf16.msrb.mxu1 %v2366_v4  ;;  %v2374_v57 = vor.u32 %v2685_v47, %v2371_v48  ;;  %v2377_v4 = vld [vmem:[%s3210_s27 + $0x2b8] sm:$0xf] }
 0x10e   : > { %1609 = vmatpush.bf16.msrb.mxu3 %v2298_v41  ;;  %1555 = vmatpush.bf16.msra.mxu2 %v2162_v44  ;;  %v2693_v41 = vld [vmem:[%s3210_s27 + $0x2ec] sm:$0xf0]  ;;  %v2726_v44 = vld [vmem:[%s3210_s27 + $0x3f4] sm:$0xf0] }
 0x10f   : > { %v2370_v49 = vor.u32 %v2693_v41, %v2369_v39  ;;  %v2506_v50 = vor.u32 %v2726_v44, %v2505_v42  ;;  %v2686_v39 = vld [vmem:[%s3210_s27 + $0x2bc] sm:$0xf]  ;;  %v2049_v41 = vld [vmem:[%s3210_s27 + $0x30] sm:$0xf]  ;;  %v2185_v44 = vld [vmem:[%s3210_s27 + $0x138] sm:$0xf] }
 0x110   : > { %1584 = vmatpush.bf16.msra.mxu0 %v2102_v60  ;;  %2584 = vmatmul.msk.bf16.vlgmr.msra.gmra.mxu1 %vm1322_vm0, %v3236_v43  ;;  %v2307_v60 = vld [vmem:[%s3210_s27 + $0x270] sm:$0xf0]  ;;  %v2613_v42 = vld [vmem:[%s3210_s27 + $0x6c] sm:$0xf0]  ;;  %v2569_v47 = vld [vmem:[%s3210_s27 + $0x438] sm:$0xf] }
 0x111   : > { %1637 = vmatpush.bf16.msrb.mxu1 %v2302_v18  ;;  %v2310_v6 = vor.u32 %v2669_v59, %v2307_v60  ;;  %v2645_v18 = vld [vmem:[%s3210_s27 + $0x16c] sm:$0xf0]  ;;  %v2742_v48 = vld [vmem:[%s3210_s27 + $0x474] sm:$0xf0]  ;;  %v2050_v52 = vor.u32 %v2613_v42, %v2049_v41  ;;  %v2734_v59 = vld [vmem:[%s3210_s27 + $0x43c] sm:$0xf] }
 0x112   : > { %1610 = vmatpush.bf16.msrb.mxu3 %v2234_v54  ;;  %1556 = vmatpush.bf16.msra.mxu2 %v2098_v56  ;;  %v2677_v54 = vld [vmem:[%s3210_s27 + $0x26c] sm:$0xf0]  ;;  %v2710_v56 = vld [vmem:[%s3210_s27 + $0x374] sm:$0xf0]  ;;  %v2178_v25 = vor.u32 %v2645_v18, %v2177_v16  ;;  %v2571_v60 = vld [vmem:[%s3210_s27 + $0x478] sm:$0xf0] }
 0x113   : > { %v2306_v61 = vor.u32 %v2677_v54, %v2305_v53  ;;  %v2442_v62 = vor.u32 %v2710_v56, %v2441_v55  ;;  %v2670_v54 = vld [vmem:[%s3210_s27 + $0x23c] sm:$0xf]  ;;  %v2121_v56 = vld [vmem:[%s3210_s27 + $0xb8] sm:$0xf] }
 0x114   : > { %1585 = vmatpush.bf16.msra.mxu0 %v2038_v12  ;;  %v2242_v12 = vor.u32 %v2661_v2, %v2241_v1  ;;  %v2315_v55 = vld [vmem:[%s3210_s27 + $0x278] sm:$0xf0]  ;;  %v2574_v2 = vor.u32 %v2734_v59, %v2571_v60 }
 0x115   : > { %1638 = vmatpush.bf16.msrb.mxu1 %v2238_v32  ;;  %v2662_v32 = vld [vmem:[%s3210_s27 + $0x1f4] sm:$0xf0]  ;;  %v2251_v1 = vld [vmem:[%s3210_s27 + $0x1f8] sm:$0xf0] }
 0x116   : > { %1611 = vmatpush.bf16.msrb.mxu3 %v2170_v5  ;;  %1557 = vmatpush.bf16.msra.mxu2 %v2034_v8  ;;  %v2694_v5 = vld [vmem:[%s3210_s27 + $0x2f4] sm:$0xf0]  ;;  %v2563_v8 = vld [vmem:[%s3210_s27 + $0x470] sm:$0xf0]  ;;  %v2250_v38 = vor.u32 %v2662_v32, %v2249_v31 }
 0x117   : > { %1586 = vmatmul.bf16.vlgmr.msra.gmra.mxu0 %v3306_v3 }
 0x118   : > { %1655 = vmatpush.bf16.msrb.mxu0 %v2558_v17  ;;  %v2566_v17 = vor.u32 %v2733_v7, %v2563_v8  ;;  %v2638_v8 = vld [vmem:[%s3210_s27 + $0x13c] sm:$0xf] }
 0x119   : > { %1558 = vmatmul.bf16.vlgmr.msra.gmra.mxu2 %v3306_v3  ;;  %1639 = vmatpush.bf16.msrb.mxu1 %v2174_v46 }
 0x11a   : > { %1627 = vmatpush.bf16.msrb.mxu2 %v2554_v13  ;;  %1612 = vmatpush.bf16.msrb.mxu3 %v2106_v21  ;;  %v2378_v13 = vor.u32 %v2694_v5, %v2377_v4  ;;  %v2246_v21 = vor.u32 %v2653_v10, %v2243_v11  ;;  %v2057_v4 = vld [vmem:[%s3210_s27 + $0x38] sm:$0xf]  ;;  %v2622_v11 = vld [vmem:[%s3210_s27 + $0xbc] sm:$0xf] }
 0x11b   : > { %v2614_v5 = vld [vmem:[%s3210_s27 + $0x74] sm:$0xf0] }
 0x11c   : > { %1690 = vmatpush.bf16.msra.mxu0 %v2502_v29  ;;  %v2113_v29 = vld [vmem:[%s3210_s27 + $0xb0] sm:$0xf]  ;;  %v2058_v7 = vor.u32 %v2614_v5, %v2057_v4 }
 0x11d   : > { %1640 = vmatpush.bf16.msrb.mxu1 %v2110_v58  ;;  %v2114_v37 = vor.u32 %v2629_v30, %v2113_v29  ;;  %v2630_v58 = vld [vmem:[%s3210_s27 + $0xf4] sm:$0xf0] }
 0x11e   : > { %1662 = vmatpush.bf16.msra.mxu2 %v2498_v22  ;;  %1613 = vmatpush.bf16.msrb.mxu3 %v2042_v35  ;;  %v2510_v22 = vor.u32 %v2718_v14, %v2507_v15  ;;  %v2621_v35 = vld [vmem:[%s3210_s27 + $0xb4] sm:$0xf]  ;;  %v2122_v63 = vor.u32 %v2630_v58, %v2121_v56  ;;  %v2606_v14 = vld [vmem:[%s3210_s27 + $0x3c] sm:$0xf] }
 0x11f   : > { %v2059_v15 = vld [vmem:[%s3210_s27 + $0x78] sm:$0xf0] }
 0x120   : > { %1691 = vmatpush.bf16.msra.mxu0 %v2438_v45  ;;  %v2646_v45 = vld [vmem:[%s3210_s27 + $0x174] sm:$0xf0]  ;;  %v2062_v16 = vor.u32 %v2606_v14, %v2059_v15 }
 0x121   : > { %1614 = vmatmul.bf16.vlgmr.msrb.gmra.mxu3 %v3306_v3  ;;  %1641 = vmatpush.bf16.msrb.mxu1 %v2046_v9  ;;  %v2186_v53 = vor.u32 %v2646_v45, %v2185_v44  ;;  %v2187_v9 = vld [vmem:[%s3210_s27 + $0x178] sm:$0xf0] }
 0x122   : > { %1663 = vmatpush.bf16.msra.mxu2 %v2434_v36  ;;  %1683 = vmatpush.bf16.msra.mxu3 %v2562_v40  ;;  %v2115_v36 = vld [vmem:[%s3210_s27 + $0xf0] sm:$0xf0]  ;;  %v2379_v40 = vld [vmem:[%s3210_s27 + $0x2f8] sm:$0xf0]  ;;  %v2190_v10 = vor.u32 %v2638_v8, %v2187_v9 }
 0x123   : > { %v2118_v46 = vor.u32 %v2621_v35, %v2115_v36 }
 0x124   : > { %1692 = vmatpush.bf16.msra.mxu0 %v2374_v57  ;;  %1642 = vmatmul.bf16.vlgmr.msrb.gmra.mxu1 %v3306_v3  ;;  %v2570_v57 = vor.u32 %v2742_v48, %v2569_v47 }
 0x125   : > { %1711 = vmatpush.bf16.msra.mxu1 %v2566_v17 }
 0x126   : > { %1664 = vmatpush.bf16.msra.mxu2 %v2370_v49  ;;  %1718 = vmatpush.bf16.msrb.mxu3 %v2506_v50  ;;  %v2382_v49 = vor.u32 %v2686_v39, %v2379_v40  ;;  %v2605_v50 = vld [vmem:[%s3210_s27 + $0x34] sm:$0xf] }
 0x127   : > { %2586 = vmatmul.msk.bf16.vlgmr.msrb.gmra.mxu0 %vm1322_vm0, %v3236_v43 }
 0x128   : > { %1693 = vmatpush.bf16.msra.mxu0 %v2310_v6  ;;  %v2254_v6 = vor.u32 %v2654_v0, %v2251_v1 }
 0x129   : > { %2585 = vmatmul.msk.bf16.vlgmr.msrb.gmra.mxu2 %vm1322_vm0, %v3236_v43  ;;  %1746 = vmatpush.bf16.msrb.mxu1 %v2510_v22 }
 0x12a   : > { %1665 = vmatpush.bf16.msra.mxu2 %v2306_v61  ;;  %1719 = vmatpush.bf16.msrb.mxu3 %v2442_v62  ;;  %v2054_v61 = vor.u32 %v2605_v50, %v2051_v51  ;;  %v2318_v62 = vor.u32 %v2670_v54, %v2315_v55 }
 0x12c   : > { %1694 = vmatpush.bf16.msra.mxu0 %v2246_v21 }
 0x12d   : > { %1747 = vmatpush.bf16.msrb.mxu1 %v2446_v34 }
 0x12e   : > { %1666 = vmatpush.bf16.msra.mxu2 %v2242_v12  ;;  %1720 = vmatpush.bf16.msrb.mxu3 %v2378_v13  ;;  %v2123_v12 = vld [vmem:[%s3210_s27 + $0xf8] sm:$0xf0] }
 0x12f   : > { %v2126_v13 = vor.u32 %v2622_v11, %v2123_v12 }
 0x130   : > { %1695 = vmatpush.bf16.msra.mxu0 %v2182_v33 }
 0x131   : > { %2587 = vmatmul.msk.bf16.vlgmr.msra.gmra.mxu3 %vm1322_vm0, %v3236_v43  ;;  %1748 = vmatpush.bf16.msrb.mxu1 %v2382_v49 }
 0x132   : > { %1667 = vmatpush.bf16.msra.mxu2 %v2178_v25  ;;  %1721 = vmatpush.bf16.msrb.mxu3 %v2314_v26 }
 0x134   : > { %1696 = vmatpush.bf16.msra.mxu0 %v2118_v46  ;;  %2588 = vmatmul.msk.bf16.vlgmr.msra.gmra.mxu1 %vm1322_vm0, %v3236_v43 }
 0x135   : > { %1749 = vmatpush.bf16.msrb.mxu1 %v2318_v62 }
 0x136   : > { %1668 = vmatpush.bf16.msra.mxu2 %v2114_v37  ;;  %1722 = vmatpush.bf16.msrb.mxu3 %v2250_v38 }
 0x138   : > { %1697 = vmatpush.bf16.msra.mxu0 %v2054_v61  ;;  %v1349_v18 = vpop.f32.mrf.mxu2 }
 0x139   : > { %1750 = vmatpush.bf16.msrb.mxu1 %v2254_v6 }
 0x13a   : > { %1669 = vmatpush.bf16.msra.mxu2 %v2050_v52  ;;  %1723 = vmatpush.bf16.msrb.mxu3 %v2186_v53 }
 0x13b   : > { %1698 = vmatmul.bf16.vlgmr.msra.gmra.mxu0 %v3306_v3 }
 0x13c   : > { %1767 = vmatpush.bf16.msrb.mxu0 %v2574_v2  ;;  %v1377_v17 = vpop.f32.mrf.mxu3 }
 0x13d   : > { %1670 = vmatmul.bf16.vlgmr.msra.gmra.mxu2 %v3306_v3  ;;  %1751 = vmatpush.bf16.msrb.mxu1 %v2190_v10 }
 0x13e   : > { %1739 = vmatpush.bf16.msrb.mxu2 %v2570_v57  ;;  %1724 = vmatpush.bf16.msrb.mxu3 %v2122_v63 }
 0x140   : > { %v1351_v20 = vpop.f32.mrf.mxu2 }
 0x141   : > { %1752 = vmatpush.bf16.msrb.mxu1 %v2126_v13 }
 0x142   : > { %1725 = vmatpush.bf16.msrb.mxu3 %v2058_v7 }
 0x144   : > { %v1379_v19 = vpop.f32.mrf.mxu3 }
 0x145   : > { %1726 = vmatmul.bf16.vlgmr.msrb.gmra.mxu3 %v3306_v3  ;;  %1753 = vmatpush.bf16.msrb.mxu1 %v2062_v16 }
 0x148   : > { %1754 = vmatmul.bf16.vlgmr.msrb.gmra.mxu1 %v3306_v3 }
 0x14b   : > { %2590 = vmatmul.msk.bf16.vlgmr.msrb.gmra.mxu0 %vm1322_vm0, %v3236_v43 }
 0x14c   : > { %v1405_v21 = vpop.f32.mrf.mxu3  ;;  %v1335_v22 = vpop.f32.mrf.mxu0 }
 0x14d   : > { %2589 = vmatmul.msk.bf16.vlgmr.msrb.gmra.mxu2 %vm1322_vm0, %v3236_v43  ;;  %v1350_v23 = vadd.f32 %v1349_v18, %v1335_v22  ;;  %v1391_v24 = vpop.f32.mrf.mxu1 }
 0x14e   : > { %v1406_v25 = vadd.f32 %v1405_v21, %v1391_v24 }
 0x14f   : > { %2770 = vtanh.f32 %v1350_v23 }
 0x150   : > { %2772 = vtanh.f32 %v1406_v25 }
 0x154   : > { %v1407_v26 = vpop.f32.mrf.mxu3  ;;  %v1337_v28 = vpop.f32.mrf.mxu0 }
 0x155   : > { %v2771_v29 = vpop.eup %2770  ;;  %v1352_v43 = vadd.f32 %v1351_v20, %v1337_v28  ;;  %v1393_v31 = vpop.f32.mrf.mxu1 }
 0x156   : > { %v2773_v32 = vpop.eup %2772  ;;  %1806 = vst [vmem:[%s3566_s14] sm:$0xff] %v2771_v29  ;;  %v1408_v3 = vadd.f32 %v1407_v26, %v1393_v31 }
 0x157   : > { %1808 = vst [vmem:[%s3566_s14 + $0x10] sm:$0xff] %v2773_v32 }
 0x158   : > { %v1363_v27 = vpop.f32.mrf.mxu2 }
 0x159   : > { %v1378_v30 = vadd.f32 %v1377_v17, %v1363_v27 }
 0x15b   : > { %2774 = vtanh.f32 %v1378_v30 }
 0x15c   : > { %2776 = vtanh.f32 %v1352_v43  ;;  %v1433_v35 = vpop.f32.mrf.mxu0 }
 0x15d   : > { %2778 = vtanh.f32 %v1408_v3  ;;  %v1461_v39 = vpop.f32.mrf.mxu1 }
 0x160   : > { %v1419_v33 = vpop.f32.mrf.mxu3  ;;  %v1365_v34 = vpop.f32.mrf.mxu2 }
 0x161   : > { %v2775_v36 = vpop.eup %2774  ;;  %v1380_v37 = vadd.f32 %v1379_v19, %v1365_v34  ;;  %v1434_v38 = vadd.f32 %v1433_v35, %v1419_v33 }
 0x162   : > { %v2777_v40 = vpop.eup %2776  ;;  %1807 = vst [vmem:[%s3566_s14 + $0x8] sm:$0xff] %v2775_v36 }
 0x163   : > { %v2779_v41 = vpop.eup %2778  ;;  %1822 = vst [vmem:[%s3566_s14 + $0x80] sm:$0xff] %v2777_v40  ;;  %2780 = vtanh.f32 %v1380_v37 }
 0x164   : > { %1824 = vst [vmem:[%s3566_s14 + $0x90] sm:$0xff] %v2779_v41  ;;  %2782 = vtanh.f32 %v1434_v38  ;;  %v1435_v44 = vpop.f32.mrf.mxu0 }
 0x165   : > { %v1463_v47 = vpop.f32.mrf.mxu1 }
 0x168   : > { %v1421_v42 = vpop.f32.mrf.mxu3 }
 0x169   : > { %v2781_v45 = vpop.eup %2780  ;;  %v1436_v46 = vadd.f32 %v1435_v44, %v1421_v42 }
 0x16a   : > { %v2783_v48 = vpop.eup %2782  ;;  %1823 = vst [vmem:[%s3566_s14 + $0x88] sm:$0xff] %v2781_v45 }
 0x16b   : > { %1809 = vst [vmem:[%s3566_s14 + $0x18] sm:$0xff] %v2783_v48  ;;  %2784 = vtanh.f32 %v1436_v46 }
 0x16d   : > { %v1489_v51 = vpop.f32.mrf.mxu1 }
 0x170   : > { %v1475_v49 = vpop.f32.mrf.mxu0 }
 0x171   : > { %v2785_v50 = vpop.eup %2784  ;;  %v1490_v52 = vadd.f32 %v1489_v51, %v1475_v49 }
 0x172   : > { %1825 = vst [vmem:[%s3566_s14 + $0x98] sm:$0xff] %v2785_v50 }
 0x173   : > { %2786 = vtanh.f32 %v1490_v52 }
 0x175   : > { %v1491_v56 = vpop.f32.mrf.mxu1 }
 0x178   : > { %v1447_v53 = vpop.f32.mrf.mxu2  ;;  %v1477_v55 = vpop.f32.mrf.mxu0 }
 0x179   : > { %v1462_v54 = vadd.f32 %v1461_v39, %v1447_v53  ;;  %v2787_v57 = vpop.eup %2786  ;;  %v1492_v58 = vadd.f32 %v1491_v56, %v1477_v55 }
 0x17a   : > { %1811 = vst [vmem:[%s3566_s14 + $0x28] sm:$0xff] %v2787_v57 }
 0x17b   : > { %2788 = vtanh.f32 %v1462_v54 }
 0x17c   : > { %2790 = vtanh.f32 %v1492_v58 }
 0x17d   : > { %v1531_v0 = vpop.f32.mrf.mxu1 }
 0x180   : > { %v1503_v59 = vpop.f32.mrf.mxu3  ;;  %v1449_v60 = vpop.f32.mrf.mxu2 }
 0x181   : > { %v2789_v61 = vpop.eup %2788  ;;  %v1464_v62 = vadd.f32 %v1463_v47, %v1449_v60  ;;  %v1545_v63 = vpop.f32.mrf.mxu0 }
 0x182   : > { %1810 = vst [vmem:[%s3566_s14 + $0x20] sm:$0xff] %v2789_v61  ;;  %v2791_v1 = vpop.eup %2790  ;;  %v1546_v2 = vadd.f32 %v1545_v63, %v1531_v0 }
 0x183   : > { %2792 = vtanh.f32 %v1464_v62  ;;  %1827 = vst [vmem:[%s3566_s14 + $0xa8] sm:$0xff] %v2791_v1 }
 0x184   : > { %2794 = vtanh.f32 %v1546_v2 }
 0x185   : > { %v1533_v9 = vpop.f32.mrf.mxu1 }
 0x188   : > { %v1505_v4 = vpop.f32.mrf.mxu3  ;;  %v1517_v5 = vpop.f32.mrf.mxu2 }
 0x189   : > { %v2793_v6 = vpop.eup %2792  ;;  %v1518_v7 = vadd.f32 %v1517_v5, %v1503_v59  ;;  %v1547_v8 = vpop.f32.mrf.mxu0 }
 0x18a   : > { %1826 = vst [vmem:[%s3566_s14 + $0xa0] sm:$0xff] %v2793_v6  ;;  %v2795_v10 = vpop.eup %2794  ;;  %v1548_v11 = vadd.f32 %v1547_v8, %v1533_v9 }
 0x18b   : > { %2796 = vtanh.f32 %v1518_v7  ;;  %1813 = vst [vmem:[%s3566_s14 + $0x38] sm:$0xff] %v2795_v10 }
 0x18c   : > { %2798 = vtanh.f32 %v1548_v11 }
 0x18d   : > { %v1601_v17 = vpop.f32.mrf.mxu1 }
 0x190   : > { %v1573_v12 = vpop.f32.mrf.mxu3  ;;  %v1519_v13 = vpop.f32.mrf.mxu2 }
 0x191   : > { %v2797_v14 = vpop.eup %2796  ;;  %v1520_v15 = vadd.f32 %v1519_v13, %v1505_v4 }
 0x192   : > { %1812 = vst [vmem:[%s3566_s14 + $0x30] sm:$0xff] %v2797_v14  ;;  %v2799_v18 = vpop.eup %2798 }
 0x193   : > { %2800 = vtanh.f32 %v1520_v15  ;;  %1829 = vst [vmem:[%s3566_s14 + $0xb8] sm:$0xff] %v2799_v18  ;;  %v1862_v18 = vld [vmem:[%s3566_s14 + $0x8] sm:$0xff] (%p2903_p5) }
 0x194   : > { %v1587_v16 = vpop.f32.mrf.mxu0  ;;  %1863 = vst [vmem:[%s3609_s17 + $0x8] sm:$0xff] (%p2903_p5), %v1862_v18 }
 0x195   : > { %v1602_v19 = vadd.f32 %v1601_v17, %v1587_v16  ;;  %v1603_v25 = vpop.f32.mrf.mxu1  ;;  %v1860_v17 = vld [vmem:[%s3566_s14] sm:$0xff] (%p2903_p5) }
 0x196   : > { %1861 = vst [vmem:[%s3609_s17] sm:$0xff] (%p2903_p5), %v1860_v17 }
 0x197   : > { %2802 = vtanh.f32 %v1602_v19  ;;  %v1864_v19 = vld [vmem:[%s3566_s14 + $0x10] sm:$0xff] (%p2903_p5) }
 0x198   : > { %v1575_v20 = vpop.f32.mrf.mxu3  ;;  %1865 = vst [vmem:[%s3609_s17 + $0x10] sm:$0xff] (%p2903_p5), %v1864_v19 }
 0x199   : > { %v2801_v22 = vpop.eup %2800 }
 0x19a   : > { %1828 = vst [vmem:[%s3566_s14 + $0xb0] sm:$0xff] %v2801_v22  ;;  %v1870_v22 = vld [vmem:[%s3566_s14 + $0x28] sm:$0xff] (%p2903_p5) }
 0x19b   : > { %1871 = vst [vmem:[%s3609_s17 + $0x28] sm:$0xff] (%p2903_p5), %v1870_v22 }
 0x19c   : > { %v1559_v21 = vpop.f32.mrf.mxu2  ;;  %v1589_v24 = vpop.f32.mrf.mxu0 }
 0x19d   : > { %v1574_v23 = vadd.f32 %v1573_v12, %v1559_v21  ;;  %v2803_v26 = vpop.eup %2802  ;;  %v1604_v27 = vadd.f32 %v1603_v25, %v1589_v24  ;;  %v1868_v21 = vld [vmem:[%s3566_s14 + $0x20] sm:$0xff] (%p2903_p5)  ;;  %v1874_v24 = vld [vmem:[%s3566_s14 + $0x38] sm:$0xff] (%p2903_p5) }
 0x19e   : > { %1815 = vst [vmem:[%s3566_s14 + $0x48] sm:$0xff] %v2803_v26 }
 0x19f   : > { %2804 = vtanh.f32 %v1574_v23  ;;  %v1872_v23 = vld [vmem:[%s3566_s14 + $0x30] sm:$0xff] (%p2903_p5)  ;;  %1869 = vst [vmem:[%s3609_s17 + $0x20] sm:$0xff] (%p2903_p5), %v1868_v21 }
 0x1a0   : > { %2806 = vtanh.f32 %v1604_v27  ;;  %1873 = vst [vmem:[%s3609_s17 + $0x30] sm:$0xff] (%p2903_p5), %v1872_v23 }
 0x1a1   : > { %v1643_v3 = vpop.f32.mrf.mxu1  ;;  %1875 = vst [vmem:[%s3609_s17 + $0x38] sm:$0xff] (%p2903_p5), %v1874_v24 }
 0x1a4   : > { %v1561_v28 = vpop.f32.mrf.mxu2  ;;  %v1615_v29 = vpop.f32.mrf.mxu3 }
 0x1a5   : > { %v2805_v30 = vpop.eup %2804  ;;  %v1576_v43 = vadd.f32 %v1575_v20, %v1561_v28  ;;  %v1657_v31 = vpop.f32.mrf.mxu0  ;;  %v1866_v20 = vld [vmem:[%s3566_s14 + $0x18] sm:$0xff] (%p2903_p5)  ;;  %v1878_v26 = vld [vmem:[%s3566_s14 + $0x48] sm:$0xff] (%p2903_p5) }
 0x1a6   : > { %1814 = vst [vmem:[%s3566_s14 + $0x40] sm:$0xff] %v2805_v30  ;;  %v2807_v32 = vpop.eup %2806  ;;  %v1658_v33 = vadd.f32 %v1657_v31, %v1643_v3  ;;  %v1894_v3 = vld [vmem:[%s3566_s14 + $0x88] sm:$0xff] (%p2903_p5) }
 0x1a7   : > { %2808 = vtanh.f32 %v1576_v43  ;;  %1831 = vst [vmem:[%s3566_s14 + $0xc8] sm:$0xff] %v2807_v32  ;;  %v1892_v32 = vld [vmem:[%s3566_s14 + $0x80] sm:$0xff] (%p2903_p5) }
 0x1a8   : > { %2810 = vtanh.f32 %v1658_v33  ;;  %1867 = vst [vmem:[%s3609_s17 + $0x18] sm:$0xff] (%p2903_p5), %v1866_v20  ;;  %v1896_v33 = vld [vmem:[%s3566_s14 + $0x90] sm:$0xff] (%p2903_p5) }
 0x1a9   : > { %v1645_v39 = vpop.f32.mrf.mxu1  ;;  %1879 = vst [vmem:[%s3609_s17 + $0x48] sm:$0xff] (%p2903_p5), %v1878_v26 }
 0x1aa   : > { %1893 = vst [vmem:[%s3609_s17 + $0x200] sm:$0xff] (%p2903_p5), %v1892_v32 }
 0x1ab   : > { %1895 = vst [vmem:[%s3609_s17 + $0x208] sm:$0xff] (%p2903_p5), %v1894_v3 }
 0x1ac   : > { %v1617_v34 = vpop.f32.mrf.mxu3  ;;  %v1629_v35 = vpop.f32.mrf.mxu2  ;;  %1897 = vst [vmem:[%s3609_s17 + $0x210] sm:$0xff] (%p2903_p5), %v1896_v33 }
 0x1ad   : > { %v2809_v36 = vpop.eup %2808  ;;  %v1630_v37 = vadd.f32 %v1629_v35, %v1615_v29  ;;  %v1659_v38 = vpop.f32.mrf.mxu0  ;;  %v1876_v25 = vld [vmem:[%s3566_s14 + $0x40] sm:$0xff] (%p2903_p5) }
 0x1ae   : > { %1830 = vst [vmem:[%s3566_s14 + $0xc0] sm:$0xff] %v2809_v36  ;;  %v2811_v40 = vpop.eup %2810  ;;  %v1660_v41 = vadd.f32 %v1659_v38, %v1645_v39  ;;  %v1900_v35 = vld [vmem:[%s3566_s14 + $0xa0] sm:$0xff] (%p2903_p5)  ;;  %v1902_v36 = vld [vmem:[%s3566_s14 + $0xa8] sm:$0xff] (%p2903_p5)  ;;  %v1906_v38 = vld [vmem:[%s3566_s14 + $0xb8] sm:$0xff] (%p2903_p5) }
 0x1af   : > { %2812 = vtanh.f32 %v1630_v37  ;;  %1817 = vst [vmem:[%s3566_s14 + $0x58] sm:$0xff] %v2811_v40  ;;  %v1904_v37 = vld [vmem:[%s3566_s14 + $0xb0] sm:$0xff] (%p2903_p5)  ;;  %v1910_v40 = vld [vmem:[%s3566_s14 + $0xc8] sm:$0xff] (%p2903_p5) }
 0x1b0   : > { %2814 = vtanh.f32 %v1660_v41  ;;  %1877 = vst [vmem:[%s3609_s17 + $0x40] sm:$0xff] (%p2903_p5), %v1876_v25 }
 0x1b1   : > { %v1713_v48 = vpop.f32.mrf.mxu1  ;;  %1901 = vst [vmem:[%s3609_s17 + $0x220] sm:$0xff] (%p2903_p5), %v1900_v35 }
 0x1b2   : > { %1903 = vst [vmem:[%s3609_s17 + $0x228] sm:$0xff] (%p2903_p5), %v1902_v36 }
 0x1b3   : > { %1905 = vst [vmem:[%s3609_s17 + $0x230] sm:$0xff] (%p2903_p5), %v1904_v37 }
 0x1b4   : > { %v1631_v42 = vpop.f32.mrf.mxu2  ;;  %v1685_v46 = vpop.f32.mrf.mxu3  ;;  %1907 = vst [vmem:[%s3609_s17 + $0x238] sm:$0xff] (%p2903_p5), %v1906_v38 }
 0x1b5   : > { %v2813_v44 = vpop.eup %2812  ;;  %v1632_v45 = vadd.f32 %v1631_v42, %v1617_v34  ;;  %v1898_v34 = vld [vmem:[%s3566_s14 + $0x98] sm:$0xff] (%p2903_p5)  ;;  %v1908_v39 = vld [vmem:[%s3566_s14 + $0xc0] sm:$0xff] (%p2903_p5)  ;;  %1911 = vst [vmem:[%s3609_s17 + $0x248] sm:$0xff] (%p2903_p5), %v1910_v40 }
 0x1b6   : > { %1816 = vst [vmem:[%s3566_s14 + $0x50] sm:$0xff] %v2813_v44  ;;  %v2815_v49 = vpop.eup %2814  ;;  %v1882_v28 = vld [vmem:[%s3566_s14 + $0x58] sm:$0xff] (%p2903_p5) }
 0x1b7   : > { %2816 = vtanh.f32 %v1632_v45  ;;  %1833 = vst [vmem:[%s3566_s14 + $0xd8] sm:$0xff] %v2815_v49 }
 0x1b8   : > { %v1699_v47 = vpop.f32.mrf.mxu0  ;;  %1883 = vst [vmem:[%s3609_s17 + $0x58] sm:$0xff] (%p2903_p5), %v1882_v28 }
 0x1b9   : > { %v1714_v50 = vadd.f32 %v1713_v48, %v1699_v47  ;;  %v1715_v56 = vpop.f32.mrf.mxu1  ;;  %1899 = vst [vmem:[%s3609_s17 + $0x218] sm:$0xff] (%p2903_p5), %v1898_v34 }
 0x1ba   : > { %1909 = vst [vmem:[%s3609_s17 + $0x240] sm:$0xff] (%p2903_p5), %v1908_v39 }
 0x1bb   : > { %2818 = vtanh.f32 %v1714_v50 }
 0x1bc   : > { %v1687_v54 = vpop.f32.mrf.mxu3 }
 0x1bd   : > { %v2817_v52 = vpop.eup %2816  ;;  %v1880_v27 = vld [vmem:[%s3566_s14 + $0x50] sm:$0xff] (%p2903_p5) }
 0x1be   : > { %1832 = vst [vmem:[%s3566_s14 + $0xd0] sm:$0xff] %v2817_v52  ;;  %v1914_v42 = vld [vmem:[%s3566_s14 + $0xd8] sm:$0xff] (%p2903_p5) }
 0x1bf   : > { %1881 = vst [vmem:[%s3609_s17 + $0x50] sm:$0xff] (%p2903_p5), %v1880_v27 }
 0x1c0   : > { %v1671_v51 = vpop.f32.mrf.mxu2  ;;  %v1701_v55 = vpop.f32.mrf.mxu0  ;;  %1915 = vst [vmem:[%s3609_s17 + $0x258] sm:$0xff] (%p2903_p5), %v1914_v42 }
 0x1c1   : > { %v1686_v53 = vadd.f32 %v1685_v46, %v1671_v51  ;;  %v2819_v57 = vpop.eup %2818  ;;  %v1716_v58 = vadd.f32 %v1715_v56, %v1701_v55 }
 0x1c2   : > { %1819 = vst [vmem:[%s3566_s14 + $0x68] sm:$0xff] %v2819_v57 }
 0x1c3   : > { %2820 = vtanh.f32 %v1686_v53 }
 0x1c4   : > { %2822 = vtanh.f32 %v1716_v58 }
 0x1c5   : > { %v1755_v63 = vpop.f32.mrf.mxu1  ;;  %v1912_v41 = vld [vmem:[%s3566_s14 + $0xd0] sm:$0xff] (%p2903_p5) }
 0x1c6   : > { %1913 = vst [vmem:[%s3609_s17 + $0x250] sm:$0xff] (%p2903_p5), %v1912_v41 }
 0x1c8   : > { %v1673_v59 = vpop.f32.mrf.mxu2  ;;  %v1769_v62 = vpop.f32.mrf.mxu0 }
 0x1c9   : > { %v2821_v60 = vpop.eup %2820  ;;  %v1688_v61 = vadd.f32 %v1687_v54, %v1673_v59  ;;  %v1727_v1 = vpop.f32.mrf.mxu3  ;;  %v1770_v2 = vadd.f32 %v1769_v62, %v1755_v63  ;;  %v1886_v30 = vld [vmem:[%s3566_s14 + $0x68] sm:$0xff] (%p2903_p5) }
 0x1ca   : > { %1818 = vst [vmem:[%s3566_s14 + $0x60] sm:$0xff] %v2821_v60  ;;  %v2823_v0 = vpop.eup %2822 }
 0x1cb   : > { %2824 = vtanh.f32 %v1688_v61  ;;  %1835 = vst [vmem:[%s3566_s14 + $0xe8] sm:$0xff] %v2823_v0 }
 0x1cc   : > { %2826 = vtanh.f32 %v1770_v2  ;;  %1887 = vst [vmem:[%s3609_s17 + $0x68] sm:$0xff] (%p2903_p5), %v1886_v30 }
 0x1cd   : > { %v1757_v8 = vpop.f32.mrf.mxu1 }
 0x1d0   : > { %v1741_v4 = vpop.f32.mrf.mxu2  ;;  %v1771_v7 = vpop.f32.mrf.mxu0 }
 0x1d1   : > { %v2825_v5 = vpop.eup %2824  ;;  %v1742_v6 = vadd.f32 %v1741_v4, %v1727_v1  ;;  %v1772_v10 = vadd.f32 %v1771_v7, %v1757_v8  ;;  %v1729_v11 = vpop.f32.mrf.mxu3  ;;  %v1884_v29 = vld [vmem:[%s3566_s14 + $0x60] sm:$0xff] (%p2903_p5) }
 0x1d2   : > { %1834 = vst [vmem:[%s3566_s14 + $0xe0] sm:$0xff] %v2825_v5  ;;  %v2827_v9 = vpop.eup %2826  ;;  %v1918_v45 = vld [vmem:[%s3566_s14 + $0xe8] sm:$0xff] (%p2903_p5) }
 0x1d3   : > { %2828 = vtanh.f32 %v1742_v6  ;;  %1821 = vst [vmem:[%s3566_s14 + $0x78] sm:$0xff] %v2827_v9 }
 0x1d4   : > { %2830 = vtanh.f32 %v1772_v10  ;;  %1885 = vst [vmem:[%s3609_s17 + $0x60] sm:$0xff] (%p2903_p5), %v1884_v29 }
 0x1d5   : > { %1919 = vst [vmem:[%s3609_s17 + $0x268] sm:$0xff] (%p2903_p5), %v1918_v45 }
 0x1d8   : > { %v1743_v12 = vpop.f32.mrf.mxu2 }
 0x1d9   : > { %v2829_v13 = vpop.eup %2828  ;;  %v1744_v14 = vadd.f32 %v1743_v12, %v1729_v11  ;;  %v1916_v44 = vld [vmem:[%s3566_s14 + $0xe0] sm:$0xff] (%p2903_p5) }
 0x1da   : > { %1820 = vst [vmem:[%s3566_s14 + $0x70] sm:$0xff] %v2829_v13  ;;  %v2831_v15 = vpop.eup %2830  ;;  %v1890_v31 = vld [vmem:[%s3566_s14 + $0x78] sm:$0xff] (%p2903_p5) }
 0x1db   : > { %2832 = vtanh.f32 %v1744_v14  ;;  %1837 = vst [vmem:[%s3566_s14 + $0xf8] sm:$0xff] %v2831_v15 }
 0x1dc   : > { %1891 = vst [vmem:[%s3609_s17 + $0x78] sm:$0xff] (%p2903_p5), %v1890_v31 }
 0x1dd   : > { %1917 = vst [vmem:[%s3609_s17 + $0x260] sm:$0xff] (%p2903_p5), %v1916_v44 }
 0x1de   : > { %1844 = sbr.rel (!%p2903_p5) target bundleno = 491 (0x1eb), region = 55 }
 0x1e1   : > { %v2833_v16 = vpop.eup %2832  ;;  %v1888_v43 = vld [vmem:[%s3566_s14 + $0x70] sm:$0xff] (%p2903_p5) }
 0x1e2   : > { %1836 = vst [vmem:[%s3566_s14 + $0xf0] sm:$0xff] %v2833_v16  ;;  %v1922_v47 = vld [vmem:[%s3566_s14 + $0xf8] sm:$0xff] (%p2903_p5) }
 0x1e3   : > { %1889 = vst [vmem:[%s3609_s17 + $0x70] sm:$0xff] %v1888_v43 }
 0x1e4   : > { %1923 = vst [vmem:[%s3609_s17 + $0x278] sm:$0xff] %v1922_v47 }
 0x1e9   : > { %v1920_v46 = vld [vmem:[%s3566_s14 + $0xf0] sm:$0xff] }
 0x1ea   : > { %1921 = vst [vmem:[%s3609_s17 + $0x270] sm:$0xff] %v1920_v46 }
 0x1eb PF: > { %p9_p10 = scmp.ge.s32.totalorder %s2890_s13, 6   ;;  %s3687_s9 = smov %s2852_s10 }
 0x1ec   : > { %s3688_s10 = smov %s2901_s16  ;;  %s3689_s11 = smov %s2890_s13 }
 0x1ed   :  { %11 = sbr.rel (!%p9_p10) target bundleno = 2 (0x2), region = 109 }

</bundles_post_ra>
